<compile_context>
chip_gen: v5e
topology: v5e:2x2
jax: 0.10.0
libtpu: 0.0.40
codegen_flags: <defaults>
</compile_context>

<pallas_src>
import numpy as np
import jax
import jax.numpy as jnp
from jax import lax
from jax.experimental import pallas as pl
from jax.experimental.pallas import tpu as pltpu


STRIDE_F = 2  # frequency stride of every encoder stage (time stride is 1)


def _round_up(v, m):
    return ((v + m - 1) // m) * m


def _full_spec(shape):
    zeros = (0,) * len(shape)
    return pl.BlockSpec(shape, lambda b: zeros)


# ----------------------------------------------------------------------------
# Fused kernel: all encoder stages for one batch item
# ----------------------------------------------------------------------------
def _make_encoder_kernel(geoms, norm_flags, eps):
    n_stage = len(geoms)
    n_norm = int(sum(norm_flags))

    def kernel(*refs):
        i = 0
        x_ref = refs[i]; i += 1
        w_refs = refs[i:i + n_stage]; i += n_stage
        b_refs = refs[i:i + n_stage]; i += n_stage
        a_refs = refs[i:i + n_stage]; i += n_stage
        gb_refs = refs[i:i + 2 * n_norm]; i += 2 * n_norm
        s_refs = refs[i:i + n_stage - 1]; i += n_stage - 1
        o_refs = refs[i:i + n_stage]; i += n_stage
        p_refs = refs[i:i + n_stage - 1]

        cur = x_ref            # planes ref holding the current stage's input
        norm_i = 0
        for k in range(n_stage):
            g = geoms[k]
            cout, kt, fout, tout = g["cout"], g["kt"], g["fout"], g["tout"]
            n_cols = tout * fout

            # --- GateConv2d: Kt matmuls, K = Kf*Cin, N = T*F_out (lane dense)
            acc = jnp.zeros((2 * cout, n_cols), jnp.float32)
            for ikt in range(kt):
                w = w_refs[k][ikt]                                # (2Cout, Kf*Cinp)
                slab = cur[:, ikt * fout: ikt * fout + n_cols]    # (Kf*Cinp, N)
                acc = acc + jnp.dot(w, slab,
                                    preferred_element_type=jnp.float32)
            z = acc + b_refs[k][...]                              # bias (2Cout,1)
            # chunk (sublane-aligned) + out * sigmoid(gate), exact f32
            y = z[:cout] * (1.0 / (1.0 + jnp.exp(-z[cout:])))

            # --- InstanceNorm2d (affine), exact per-(b,c) stats over T*F,
            #     two-pass variance in f32
            if norm_flags[k]:
                gamma = gb_refs[2 * norm_i][...]
                beta = gb_refs[2 * norm_i + 1][...]
                norm_i += 1
                mean = jnp.mean(y, axis=1, keepdims=True)
                d = y - mean
                var = jnp.mean(d * d, axis=1, keepdims=True)
                y = d * lax.rsqrt(var + eps) * gamma + beta

            # --- PReLU
            alpha = a_refs[k][...]
            y = jnp.where(y >= 0.0, y, alpha * y)

            # --- lane-dense output store: (Cout, T*F_out)
            o_refs[k][...] = y.astype(o_refs[k].dtype)

            # --- build the next stage's de-interleaved, causally padded planes
            #     in VMEM scratch: plane[ikf*Cin+c, tp*Fn+f] = ypad[c, tp, 2f+ikf]
            if k + 1 < n_stage:
                gn = geoms[k + 1]
                kf_n, f_n, cin_n = gn["kf"], gn["fout"], gn["cin_pad"]
                p_ref = p_refs[k]
                s_all = s_refs[k][...]                            # (Fout, Kf_n*Fn)
                # causal pad row (tp = 0) for every plane
                p_ref[:, 0:f_n] = jnp.zeros((kf_n * cin_n, f_n), p_ref.dtype)
                for t in range(tout):
                    row = o_refs[k][:, t * fout:(t + 1) * fout]   # (Cout, Fout)
                    row = row.astype(s_all.dtype)
                    gat = jnp.dot(row, s_all,
                                  preferred_element_type=jnp.float32)
                    gat = gat.astype(p_ref.dtype)                 # (Cout, Kf_n*Fn)
                    for ikf in range(kf_n):
                        p_ref[ikf * cin_n:(ikf + 1) * cin_n,
                              (t + 1) * f_n:(t + 2) * f_n] = (
                            gat[:, ikf * f_n:(ikf + 1) * f_n])
                cur = p_ref

    return kernel


# ----------------------------------------------------------------------------
# Wrapper: one pallas_call for the whole encoder
# ----------------------------------------------------------------------------
def unet_encoder_forward(x, params, k1=(2, 3), eps=1e-5,
                         mm_dtype=jnp.float32):
    """JAX/Pallas equivalent of UNet_Encoder.forward: returns (x, en_list).

    x      : (B, Cin, T, F) or (B, T, F) float32 (torch NCHW layout)
    params : list of 5 dicts with 'w' (2Cout,Cin,Kt,Kf), 'b' (2Cout,),
             'alpha' (Cout,) and optionally 'gamma'/'beta' (Cout,) for stages
             that carry an InstanceNorm.
    mm_dtype: matmul operand dtype (jnp.bfloat16 recommended on v6e/v7x;
              accumulation + epilogue stay f32).
    """
    if x.ndim == 3:
        x = x[:, None, :, :]
    x = x.astype(jnp.float32)
    B, cin0, T, F = x.shape
    n_stage = len(params)
    ksizes = [(2, 5)] + [tuple(k1)] * (n_stage - 1)
    norm_flags = [("gamma" in p and p["gamma"] is not None) for p in params]

    # ---- geometry -----------------------------------------------------------
    geoms = []
    fin, cin = F, cin0
    for k in range(n_stage):
        kt, kf = ksizes[k]
        cout = params[k]["w"].shape[0] // 2
        assert params[k]["w"].shape[1] == cin and fin >= kf
        fout = (fin - kf) // STRIDE_F + 1
        # Only the first stage's channels are zero-padded to a full sublane
        # group (Cin=4 -> 8); later stages have Cin = previous Cout (>= 16).
        cin_pad = _round_up(cin, 8) if k == 0 else cin
        geoms.append(dict(cin=cin, cin_pad=cin_pad, cout=cout, kt=kt, kf=kf,
                          fin=fin, fout=fout, tout=T, tp=T + kt - 1))
        fin, cin = fout, cout

    g0 = geoms[0]

    # ---- stage-1 input planes: causal time pad + stride de-interleave,
    #      flattened to (Kf*Cin_pad, (T+Kt-1)*F_out): same-size re-layout of the
    #      (smallest) input tensor, done once wrapper-side.
    xpad = jnp.pad(x, ((0, 0), (0, 0), (g0["kt"] - 1, 0), (0, 0)))
    planes = []
    for ikf in range(g0["kf"]):
        pln = xpad[:, :, :, ikf::STRIDE_F][:, :, :, :g0["fout"]]
        planes.append(pln)
    xplanes = jnp.stack(planes, axis=1)            # (B, Kf, Cin, Tp, Fout)
    if g0["cin_pad"] != g0["cin"]:
        xplanes = jnp.pad(
            xplanes, ((0, 0), (0, 0), (0, g0["cin_pad"] - g0["cin"]),
                      (0, 0), (0, 0)))
    xplanes = xplanes.reshape(
        B, g0["kf"] * g0["cin_pad"], g0["tp"] * g0["fout"]).astype(mm_dtype)

    # ---- per-stage parameters ----------------------------------------------
    w_args, b_args, a_args, gb_args = [], [], [], []
    for k, (p, g) in enumerate(zip(params, geoms)):
        kt, kf = g["kt"], g["kf"]
        cin, cinp, cout = g["cin"], g["cin_pad"], g["cout"]
        # (2Cout,Cin,Kt,Kf) -> (Kt, 2Cout, Kf, Cin_pad) -> (Kt, 2Cout, Kf*Cin_pad)
        w = jnp.transpose(p["w"], (2, 0, 3, 1))
        if cinp != cin:
            w = jnp.pad(w, ((0, 0), (0, 0), (0, 0), (0, cinp - cin)))
        w_args.append(w.reshape(kt, 2 * cout, kf * cinp).astype(mm_dtype))
        b_args.append(p["b"].reshape(2 * cout, 1).astype(jnp.float32))
        a_args.append(p["alpha"].reshape(cout, 1).astype(jnp.float32))
        if norm_flags[k]:
            gb_args.append(p["gamma"].reshape(cout, 1).astype(jnp.float32))
            gb_args.append(p["beta"].reshape(cout, 1).astype(jnp.float32))

    # ---- 0/1 frequency-gather matrices (compile-time constants, tiny):
    #      next-plane column (ikf*Fn + f) picks previous column (2f + ikf).
    s_args = []
    for k in range(n_stage - 1):
        fprev = geoms[k]["fout"]
        kf_n, f_n = geoms[k + 1]["kf"], geoms[k + 1]["fout"]
        S = np.zeros((fprev, kf_n * f_n), np.float32)
        for ikf in range(kf_n):
            for f in range(f_n):
                S[STRIDE_F * f + ikf, ikf * f_n + f] = 1.0
        s_args.append(jnp.asarray(S, mm_dtype))

    # ---- pallas_call --------------------------------------------------------
    in_args = [xplanes] + w_args + b_args + a_args + gb_args + s_args
    in_specs = ([pl.BlockSpec((None,) + xplanes.shape[1:],
                              lambda b: (b, 0, 0))]
                + [_full_spec(a.shape) for a in in_args[1:]])

    out_shapes, out_specs = [], []
    for g in geoms:
        n_cols = g["tout"] * g["fout"]
        out_shapes.append(
            jax.ShapeDtypeStruct((B, g["cout"], n_cols), jnp.float32))
        out_specs.append(
            pl.BlockSpec((None, g["cout"], n_cols), lambda b: (b, 0, 0)))

    scratch_shapes = []
    for k in range(n_stage - 1):
        gn = geoms[k + 1]
        scratch_shapes.append(
            pltpu.VMEM((gn["kf"] * gn["cin_pad"], gn["tp"] * gn["fout"]),
                       mm_dtype))

    kernel = _make_encoder_kernel(geoms, norm_flags, eps)
    outs = pl.pallas_call(
        kernel,
        out_shape=tuple(out_shapes),
        grid_spec=pltpu.PrefetchScalarGridSpec(
            num_scalar_prefetch=0,
            grid=(B,),
            in_specs=in_specs,
            out_specs=tuple(out_specs),
            scratch_shapes=tuple(scratch_shapes)),
        compiler_params=pltpu.CompilerParams(
            dimension_semantics=("parallel",)),
    )(*in_args)

    en_list = [o.reshape(B, g["cout"], g["tout"], g["fout"])
               for o, g in zip(outs, geoms)]
    return en_list[-1], en_list


# ----------------------------------------------------------------------------
# NumPy (float64) reference of the torch module forward
# ----------------------------------------------------------------------------
def _np_gate_conv2d(x, W, b, ksize, stride):
    Kt, Kf = ksize
    st, sf = stride
    B, Cin, T, F = x.shape
    Cout2 = W.shape[0]
    Cout = Cout2 // 2
    xp = np.pad(x, ((0, 0), (0, 0), (Kt - 1, 0), (0, 0)))
    Tp = T + Kt - 1
    T_out = (Tp - Kt) // st + 1
    F_out = (F - Kf) // sf + 1
    y = np.zeros((B, Cout2, T_out, F_out), np.float64)
    for t in range(T_out):
        for f in range(F_out):
            patch = xp[:, :, t * st:t * st + Kt, f * sf:f * sf + Kf]
            y[:, :, t, f] = np.tensordot(patch, W, axes=([1, 2, 3], [1, 2, 3]))
    y = y + b[None, :, None, None]
    out, gate = y[:, :Cout], y[:, Cout:]
    return out * (1.0 / (1.0 + np.exp(-gate)))


def _np_instance_norm(x, gamma, beta, eps=1e-5):
    mean = x.mean(axis=(2, 3), keepdims=True)
    var = ((x - mean) ** 2).mean(axis=(2, 3), keepdims=True)
    xn = (x - mean) / np.sqrt(var + eps)
    return xn * gamma[None, :, None, None] + beta[None, :, None, None]


def _np_prelu(x, alpha):
    return np.where(x >= 0.0, x, alpha[None, :, None, None] * x)


def _np_encoder(x, params, k1=(2, 3)):
    ksizes = [(2, 5), k1, k1, k1, k1]
    stride = (1, 2)
    en = []
    x = x.astype(np.float64)
    for ks, p in zip(ksizes, params):
        y = _np_gate_conv2d(x, p["w"].astype(np.float64),
                            p["b"].astype(np.float64), ks, stride)
        if "gamma" in p:
            y = _np_instance_norm(y, p["gamma"].astype(np.float64),
                                  p["beta"].astype(np.float64))
        y = _np_prelu(y, p["alpha"].astype(np.float64))
        en.append(y)
        x = y
    return x, en


if __name__ == "__main__":
    # Small-but-representative EaBNet encoder shapes.
    B, cin, T, F = 2, 4, 8, 161          # (batch, channels, frames, freq bins)
    c, c_end = 16, 64                    # c_end = 64 is hard-coded in the module
    k1 = (2, 3)
    couts = [c, c, c, c, c_end]
    cins = [cin, c, c, c, c]
    ksizes = [(2, 5), k1, k1, k1, k1]
    with_norm = [True, False, False, True, True]   # NormSwitch placement

    key = jax.random.PRNGKey(0)
    keys = jax.random.split(key, 1 + 5 * 5)
    x = jax.random.normal(keys[0], (B, cin, T, F), jnp.float32)

    params = []
    for i in range(5):
        kw, kb, ka, kg, kbt = keys[1 + 5 * i:1 + 5 * (i + 1)]
        Co, Ci = couts[i], cins[i]
        Kt, Kf = ksizes[i]
        p = {
            "w": 0.2 * jax.random.normal(kw, (2 * Co, Ci, Kt, Kf), jnp.float32),
            "b": 0.1 * jax.random.normal(kb, (2 * Co,), jnp.float32),
            "alpha": 0.25 + 0.05 * jax.random.normal(ka, (Co,), jnp.float32),
        }
        if with_norm[i]:
            p["gamma"] = 1.0 + 0.1 * jax.random.normal(kg, (Co,), jnp.float32)
            p["beta"] = 0.1 * jax.random.normal(kbt, (Co,), jnp.float32)
        params.append(p)

    encoder = jax.jit(lambda xx, pp: unet_encoder_forward(xx, pp, k1=k1))
    out, en_list = encoder(x, params)
    out = jax.block_until_ready(out)
    en_list = [jax.block_until_ready(e) for e in en_list]

    np_params = [{k: np.asarray(v) for k, v in p.items()} for p in params]
    ref_out, ref_list = _np_encoder(np.asarray(x), np_params, k1=k1)

    assert out.shape == ref_out.shape, (out.shape, ref_out.shape)
    assert len(en_list) == len(ref_list) == 5
    for got, want in zip(en_list, ref_list):
        np.testing.assert_allclose(np.asarray(got), want, rtol=2e-3, atol=2e-3)
    np.testing.assert_allclose(np.asarray(out), ref_out, rtol=2e-3, atol=2e-3)
    print("KERNEL_OK")
</pallas_src>

<mosaic_0001>
module attributes {stable_mosaic.version = 11 : i64} {
  func.func @kernel(%arg0: i32, %arg1: memref<1x40x711xf32, #tpu.memory_space<vmem>>, %arg2: memref<2x32x40xf32, #tpu.memory_space<vmem>>, %arg3: memref<2x32x48xf32, #tpu.memory_space<vmem>>, %arg4: memref<2x32x48xf32, #tpu.memory_space<vmem>>, %arg5: memref<2x32x48xf32, #tpu.memory_space<vmem>>, %arg6: memref<2x128x48xf32, #tpu.memory_space<vmem>>, %arg7: memref<32x1xf32, #tpu.memory_space<vmem>>, %arg8: memref<32x1xf32, #tpu.memory_space<vmem>>, %arg9: memref<32x1xf32, #tpu.memory_space<vmem>>, %arg10: memref<32x1xf32, #tpu.memory_space<vmem>>, %arg11: memref<128x1xf32, #tpu.memory_space<vmem>>, %arg12: memref<16x1xf32, #tpu.memory_space<vmem>>, %arg13: memref<16x1xf32, #tpu.memory_space<vmem>>, %arg14: memref<16x1xf32, #tpu.memory_space<vmem>>, %arg15: memref<16x1xf32, #tpu.memory_space<vmem>>, %arg16: memref<64x1xf32, #tpu.memory_space<vmem>>, %arg17: memref<16x1xf32, #tpu.memory_space<vmem>>, %arg18: memref<16x1xf32, #tpu.memory_space<vmem>>, %arg19: memref<16x1xf32, #tpu.memory_space<vmem>>, %arg20: memref<16x1xf32, #tpu.memory_space<vmem>>, %arg21: memref<64x1xf32, #tpu.memory_space<vmem>>, %arg22: memref<64x1xf32, #tpu.memory_space<vmem>>, %arg23: memref<79x117xf32, #tpu.memory_space<vmem>>, %arg24: memref<39x57xf32, #tpu.memory_space<vmem>>, %arg25: memref<19x27xf32, #tpu.memory_space<vmem>>, %arg26: memref<9x12xf32, #tpu.memory_space<vmem>>, %arg27: memref<1x16x632xf32, #tpu.memory_space<vmem>>, %arg28: memref<1x16x312xf32, #tpu.memory_space<vmem>>, %arg29: memref<1x16x152xf32, #tpu.memory_space<vmem>>, %arg30: memref<1x16x72xf32, #tpu.memory_space<vmem>>, %arg31: memref<1x64x32xf32, #tpu.memory_space<vmem>>, %arg32: memref<48x351xf32, #tpu.memory_space<vmem>>, %arg33: memref<48x171xf32, #tpu.memory_space<vmem>>, %arg34: memref<48x81xf32, #tpu.memory_space<vmem>>, %arg35: memref<48x36xf32, #tpu.memory_space<vmem>>) attributes {dimension_semantics = [#tpu.dimension_semantics<parallel>], iteration_bounds = array<i64: 2>, scalar_prefetch = 0 : i64, scratch_operands = 4 : i64, tpu.core_type = #tpu.core_type<tc>, window_params = [{transform_indices = @transform_0, window_bounds = array<i64: 1, 40, 711>}, {pipeline_mode = #tpu.pipeline_mode<synchronous>, transform_indices = @transform_1, window_bounds = array<i64: 2, 32, 40>}, {pipeline_mode = #tpu.pipeline_mode<synchronous>, transform_indices = @transform_2, window_bounds = array<i64: 2, 32, 48>}, {pipeline_mode = #tpu.pipeline_mode<synchronous>, transform_indices = @transform_3, window_bounds = array<i64: 2, 32, 48>}, {pipeline_mode = #tpu.pipeline_mode<synchronous>, transform_indices = @transform_4, window_bounds = array<i64: 2, 32, 48>}, {pipeline_mode = #tpu.pipeline_mode<synchronous>, transform_indices = @transform_5, window_bounds = array<i64: 2, 128, 48>}, {pipeline_mode = #tpu.pipeline_mode<synchronous>, transform_indices = @transform_6, window_bounds = array<i64: 32, 1>}, {pipeline_mode = #tpu.pipeline_mode<synchronous>, transform_indices = @transform_7, window_bounds = array<i64: 32, 1>}, {pipeline_mode = #tpu.pipeline_mode<synchronous>, transform_indices = @transform_8, window_bounds = array<i64: 32, 1>}, {pipeline_mode = #tpu.pipeline_mode<synchronous>, transform_indices = @transform_9, window_bounds = array<i64: 32, 1>}, {pipeline_mode = #tpu.pipeline_mode<synchronous>, transform_indices = @transform_10, window_bounds = array<i64: 128, 1>}, {pipeline_mode = #tpu.pipeline_mode<synchronous>, transform_indices = @transform_11, window_bounds = array<i64: 16, 1>}, {pipeline_mode = #tpu.pipeline_mode<synchronous>, transform_indices = @transform_12, window_bounds = array<i64: 16, 1>}, {pipeline_mode = #tpu.pipeline_mode<synchronous>, transform_indices = @transform_13, window_bounds = array<i64: 16, 1>}, {pipeline_mode = #tpu.pipeline_mode<synchronous>, transform_indices = @transform_14, window_bounds = array<i64: 16, 1>}, {pipeline_mode = #tpu.pipeline_mode<synchronous>, transform_indices = @transform_15, window_bounds = array<i64: 64, 1>}, {pipeline_mode = #tpu.pipeline_mode<synchronous>, transform_indices = @transform_16, window_bounds = array<i64: 16, 1>}, {pipeline_mode = #tpu.pipeline_mode<synchronous>, transform_indices = @transform_17, window_bounds = array<i64: 16, 1>}, {pipeline_mode = #tpu.pipeline_mode<synchronous>, transform_indices = @transform_18, window_bounds = array<i64: 16, 1>}, {pipeline_mode = #tpu.pipeline_mode<synchronous>, transform_indices = @transform_19, window_bounds = array<i64: 16, 1>}, {pipeline_mode = #tpu.pipeline_mode<synchronous>, transform_indices = @transform_20, window_bounds = array<i64: 64, 1>}, {pipeline_mode = #tpu.pipeline_mode<synchronous>, transform_indices = @transform_21, window_bounds = array<i64: 64, 1>}, {pipeline_mode = #tpu.pipeline_mode<synchronous>, transform_indices = @transform_22, window_bounds = array<i64: 79, 117>}, {pipeline_mode = #tpu.pipeline_mode<synchronous>, transform_indices = @transform_23, window_bounds = array<i64: 39, 57>}, {pipeline_mode = #tpu.pipeline_mode<synchronous>, transform_indices = @transform_24, window_bounds = array<i64: 19, 27>}, {pipeline_mode = #tpu.pipeline_mode<synchronous>, transform_indices = @transform_25, window_bounds = array<i64: 9, 12>}, {transform_indices = @transform_26, window_bounds = array<i64: 1, 16, 632>}, {transform_indices = @transform_27, window_bounds = array<i64: 1, 16, 312>}, {transform_indices = @transform_28, window_bounds = array<i64: 1, 16, 152>}, {transform_indices = @transform_29, window_bounds = array<i64: 1, 16, 72>}, {transform_indices = @transform_30, window_bounds = array<i64: 1, 64, 32>}]} {
    %cst = arith.constant 0.000000e+00 : f32
    %0 = vector.broadcast %cst : f32 to vector<32x632xf32>
    %c0 = arith.constant 0 : index
    %c0_0 = arith.constant 0 : index
    %c0_1 = arith.constant 0 : index
    %1 = vector.load %arg2[%c0, %c0_0, %c0_1] : memref<2x32x40xf32, #tpu.memory_space<vmem>>, vector<1x32x40xf32>
    %2 = vector.shape_cast %1 : vector<1x32x40xf32> to vector<32x40xf32>
    %c0_2 = arith.constant 0 : index
    %c0_3 = arith.constant 0 : index
    %c0_4 = arith.constant 0 : index
    %3 = vector.load %arg1[%c0_2, %c0_3, %c0_4] : memref<1x40x711xf32, #tpu.memory_space<vmem>>, vector<1x40x632xf32>
    %4 = vector.shape_cast %3 : vector<1x40x632xf32> to vector<40x632xf32>
    %cst_5 = arith.constant dense<0.000000e+00> : vector<32x632xf32>
    %5 = tpu.matmul %2, %4, %cst_5 {dimension_numbers = #tpu.dot_dimension_numbers<[1], [0], [0], [1], [0, 0, 1, 1], [], []>} : vector<32x40xf32>, vector<40x632xf32>, vector<32x632xf32> -> vector<32x632xf32>
    %6 = arith.addf %0, %5 : vector<32x632xf32>
    %c1 = arith.constant 1 : index
    %c0_6 = arith.constant 0 : index
    %c0_7 = arith.constant 0 : index
    %7 = vector.load %arg2[%c1, %c0_6, %c0_7] : memref<2x32x40xf32, #tpu.memory_space<vmem>>, vector<1x32x40xf32>
    %8 = vector.shape_cast %7 : vector<1x32x40xf32> to vector<32x40xf32>
    %c0_8 = arith.constant 0 : index
    %c0_9 = arith.constant 0 : index
    %c79 = arith.constant 79 : index
    %9 = vector.load %arg1[%c0_8, %c0_9, %c79] : memref<1x40x711xf32, #tpu.memory_space<vmem>>, vector<1x40x632xf32>
    %10 = vector.shape_cast %9 : vector<1x40x632xf32> to vector<40x632xf32>
    %cst_10 = arith.constant dense<0.000000e+00> : vector<32x632xf32>
    %11 = tpu.matmul %8, %10, %cst_10 {dimension_numbers = #tpu.dot_dimension_numbers<[1], [0], [0], [1], [0, 0, 1, 1], [], []>} : vector<32x40xf32>, vector<40x632xf32>, vector<32x632xf32> -> vector<32x632xf32>
    %12 = arith.addf %6, %11 : vector<32x632xf32>
    %c0_11 = arith.constant 0 : index
    %c0_12 = arith.constant 0 : index
    %13 = vector.load %arg7[%c0_11, %c0_12] : memref<32x1xf32, #tpu.memory_space<vmem>>, vector<32x1xf32>
    %14 = vector.broadcast %13 : vector<32x1xf32> to vector<32x632xf32>
    %15 = arith.addf %12, %14 : vector<32x632xf32>
    %16 = vector.extract_strided_slice %15 {offsets = [0, 0], sizes = [16, 632], strides = [1, 1]} : vector<32x632xf32> to vector<16x632xf32>
    %17 = vector.extract_strided_slice %15 {offsets = [16, 0], sizes = [16, 632], strides = [1, 1]} : vector<32x632xf32> to vector<16x632xf32>
    %cst_13 = arith.constant 0.000000e+00 : f32
    %18 = vector.broadcast %cst_13 : f32 to vector<16x632xf32>
    %19 = arith.subf %18, %17 : vector<16x632xf32>
    %20 = math.exp %19 : vector<16x632xf32>
    %cst_14 = arith.constant 1.000000e+00 : f32
    %21 = vector.broadcast %cst_14 : f32 to vector<16x632xf32>
    %22 = arith.addf %21, %20 : vector<16x632xf32>
    %cst_15 = arith.constant 1.000000e+00 : f32
    %23 = vector.broadcast %cst_15 : f32 to vector<16x632xf32>
    %24 = arith.divf %23, %22 : vector<16x632xf32>
    %25 = arith.mulf %16, %24 : vector<16x632xf32>
    %c0_16 = arith.constant 0 : index
    %c0_17 = arith.constant 0 : index
    %26 = vector.load %arg17[%c0_16, %c0_17] : memref<16x1xf32, #tpu.memory_space<vmem>>, vector<16x1xf32>
    %c0_18 = arith.constant 0 : index
    %c0_19 = arith.constant 0 : index
    %27 = vector.load %arg18[%c0_18, %c0_19] : memref<16x1xf32, #tpu.memory_space<vmem>>, vector<16x1xf32>
    %cst_20 = arith.constant dense<0.000000e+00> : vector<16xf32>
    %28 = vector.multi_reduction <add>, %25, %cst_20 [1] : vector<16x632xf32> to vector<16xf32>
    %29 = vector.shape_cast %28 : vector<16xf32> to vector<16x1xf32>
    %cst_21 = arith.constant 6.320000e+02 : f32
    %30 = vector.broadcast %cst_21 : f32 to vector<16x1xf32>
    %31 = arith.divf %29, %30 : vector<16x1xf32>
    %32 = vector.broadcast %31 : vector<16x1xf32> to vector<16x632xf32>
    %33 = arith.subf %25, %32 : vector<16x632xf32>
    %34 = arith.mulf %33, %33 : vector<16x632xf32>
    %cst_22 = arith.constant dense<0.000000e+00> : vector<16xf32>
    %35 = vector.multi_reduction <add>, %34, %cst_22 [1] : vector<16x632xf32> to vector<16xf32>
    %36 = vector.shape_cast %35 : vector<16xf32> to vector<16x1xf32>
    %cst_23 = arith.constant 6.320000e+02 : f32
    %37 = vector.broadcast %cst_23 : f32 to vector<16x1xf32>
    %38 = arith.divf %36, %37 : vector<16x1xf32>
    %cst_24 = arith.constant 9.99999974E-6 : f32
    %39 = vector.broadcast %cst_24 : f32 to vector<16x1xf32>
    %40 = arith.addf %38, %39 : vector<16x1xf32>
    %41 = math.rsqrt %40 : vector<16x1xf32>
    %42 = vector.broadcast %41 : vector<16x1xf32> to vector<16x632xf32>
    %43 = arith.mulf %33, %42 : vector<16x632xf32>
    %44 = vector.broadcast %26 : vector<16x1xf32> to vector<16x632xf32>
    %45 = arith.mulf %43, %44 : vector<16x632xf32>
    %46 = vector.broadcast %27 : vector<16x1xf32> to vector<16x632xf32>
    %47 = arith.addf %45, %46 : vector<16x632xf32>
    %c0_25 = arith.constant 0 : index
    %c0_26 = arith.constant 0 : index
    %48 = vector.load %arg12[%c0_25, %c0_26] : memref<16x1xf32, #tpu.memory_space<vmem>>, vector<16x1xf32>
    %cst_27 = arith.constant 0.000000e+00 : f32
    %49 = vector.broadcast %cst_27 : f32 to vector<16x632xf32>
    %50 = arith.cmpf oge, %47, %49 : vector<16x632xf32>
    %51 = vector.broadcast %48 : vector<16x1xf32> to vector<16x632xf32>
    %52 = arith.mulf %51, %47 : vector<16x632xf32>
    %53 = arith.select %50, %47, %52 : vector<16x632xi1>, vector<16x632xf32>
    %c0_28 = arith.constant 0 : index
    %c0_29 = arith.constant 0 : index
    %c0_30 = arith.constant 0 : index
    %54 = vector.load %arg27[%c0_28, %c0_29, %c0_30] : memref<1x16x632xf32, #tpu.memory_space<vmem>>, vector<1x16x632xf32>
    %55 = vector.shape_cast %54 : vector<1x16x632xf32> to vector<16x632xf32>
    %56 = vector.shape_cast %53 : vector<16x632xf32> to vector<1x16x632xf32>
    tpu.vector_store %arg27[%c0_28, %c0_29, %c0_30], %56 {strides = array<i32>} : memref<1x16x632xf32, #tpu.memory_space<vmem>>, vector<1x16x632xf32>,
    %c0_31 = arith.constant 0 : index
    %c0_32 = arith.constant 0 : index
    %57 = vector.load %arg23[%c0_31, %c0_32] : memref<79x117xf32, #tpu.memory_space<vmem>>, vector<79x117xf32>
    %cst_33 = arith.constant 0.000000e+00 : f32
    %58 = vector.broadcast %cst_33 : f32 to vector<48x39xf32>
    %c0_34 = arith.constant 0 : index
    %c0_35 = arith.constant 0 : index
    %59 = vector.load %arg32[%c0_34, %c0_35] : memref<48x351xf32, #tpu.memory_space<vmem>>, vector<48x39xf32>
    tpu.vector_store %arg32[%c0_34, %c0_35], %58 {strides = array<i32>} : memref<48x351xf32, #tpu.memory_space<vmem>>, vector<48x39xf32>,
    %c0_36 = arith.constant 0 : index
    %c0_37 = arith.constant 0 : index
    %c0_38 = arith.constant 0 : index
    %60 = vector.load %arg27[%c0_36, %c0_37, %c0_38] : memref<1x16x632xf32, #tpu.memory_space<vmem>>, vector<1x16x79xf32>
    %61 = vector.shape_cast %60 : vector<1x16x79xf32> to vector<16x79xf32>
    %cst_39 = arith.constant dense<0.000000e+00> : vector<16x117xf32>
    %62 = tpu.matmul %61, %57, %cst_39 {dimension_numbers = #tpu.dot_dimension_numbers<[1], [0], [0], [1], [0, 0, 1, 1], [], []>} : vector<16x79xf32>, vector<79x117xf32>, vector<16x117xf32> -> vector<16x117xf32>
    %63 = vector.extract_strided_slice %62 {offsets = [0, 0], sizes = [16, 39], strides = [1, 1]} : vector<16x117xf32> to vector<16x39xf32>
    %c0_40 = arith.constant 0 : index
    %c39 = arith.constant 39 : index
    %64 = vector.load %arg32[%c0_40, %c39] : memref<48x351xf32, #tpu.memory_space<vmem>>, vector<16x39xf32>
    tpu.vector_store %arg32[%c0_40, %c39], %63 {strides = array<i32>} : memref<48x351xf32, #tpu.memory_space<vmem>>, vector<16x39xf32>,
    %65 = vector.extract_strided_slice %62 {offsets = [0, 39], sizes = [16, 39], strides = [1, 1]} : vector<16x117xf32> to vector<16x39xf32>
    %c16 = arith.constant 16 : index
    %c39_41 = arith.constant 39 : index
    %66 = vector.load %arg32[%c16, %c39_41] : memref<48x351xf32, #tpu.memory_space<vmem>>, vector<16x39xf32>
    tpu.vector_store %arg32[%c16, %c39_41], %65 {strides = array<i32>} : memref<48x351xf32, #tpu.memory_space<vmem>>, vector<16x39xf32>,
    %67 = vector.extract_strided_slice %62 {offsets = [0, 78], sizes = [16, 39], strides = [1, 1]} : vector<16x117xf32> to vector<16x39xf32>
    %c32 = arith.constant 32 : index
    %c39_42 = arith.constant 39 : index
    %68 = vector.load %arg32[%c32, %c39_42] : memref<48x351xf32, #tpu.memory_space<vmem>>, vector<16x39xf32>
    tpu.vector_store %arg32[%c32, %c39_42], %67 {strides = array<i32>} : memref<48x351xf32, #tpu.memory_space<vmem>>, vector<16x39xf32>,
    %c0_43 = arith.constant 0 : index
    %c0_44 = arith.constant 0 : index
    %c79_45 = arith.constant 79 : index
    %69 = vector.load %arg27[%c0_43, %c0_44, %c79_45] : memref<1x16x632xf32, #tpu.memory_space<vmem>>, vector<1x16x79xf32>
    %70 = vector.shape_cast %69 : vector<1x16x79xf32> to vector<16x79xf32>
    %cst_46 = arith.constant dense<0.000000e+00> : vector<16x117xf32>
    %71 = tpu.matmul %70, %57, %cst_46 {dimension_numbers = #tpu.dot_dimension_numbers<[1], [0], [0], [1], [0, 0, 1, 1], [], []>} : vector<16x79xf32>, vector<79x117xf32>, vector<16x117xf32> -> vector<16x117xf32>
    %72 = vector.extract_strided_slice %71 {offsets = [0, 0], sizes = [16, 39], strides = [1, 1]} : vector<16x117xf32> to vector<16x39xf32>
    %c0_47 = arith.constant 0 : index
    %c78 = arith.constant 78 : index
    %73 = vector.load %arg32[%c0_47, %c78] : memref<48x351xf32, #tpu.memory_space<vmem>>, vector<16x39xf32>
    tpu.vector_store %arg32[%c0_47, %c78], %72 {strides = array<i32>} : memref<48x351xf32, #tpu.memory_space<vmem>>, vector<16x39xf32>,
    %74 = vector.extract_strided_slice %71 {offsets = [0, 39], sizes = [16, 39], strides = [1, 1]} : vector<16x117xf32> to vector<16x39xf32>
    %c16_48 = arith.constant 16 : index
    %c78_49 = arith.constant 78 : index
    %75 = vector.load %arg32[%c16_48, %c78_49] : memref<48x351xf32, #tpu.memory_space<vmem>>, vector<16x39xf32>
    tpu.vector_store %arg32[%c16_48, %c78_49], %74 {strides = array<i32>} : memref<48x351xf32, #tpu.memory_space<vmem>>, vector<16x39xf32>,
    %76 = vector.extract_strided_slice %71 {offsets = [0, 78], sizes = [16, 39], strides = [1, 1]} : vector<16x117xf32> to vector<16x39xf32>
    %c32_50 = arith.constant 32 : index
    %c78_51 = arith.constant 78 : index
    %77 = vector.load %arg32[%c32_50, %c78_51] : memref<48x351xf32, #tpu.memory_space<vmem>>, vector<16x39xf32>
    tpu.vector_store %arg32[%c32_50, %c78_51], %76 {strides = array<i32>} : memref<48x351xf32, #tpu.memory_space<vmem>>, vector<16x39xf32>,
    %c0_52 = arith.constant 0 : index
    %c0_53 = arith.constant 0 : index
    %c158 = arith.constant 158 : index
    %78 = vector.load %arg27[%c0_52, %c0_53, %c158] : memref<1x16x632xf32, #tpu.memory_space<vmem>>, vector<1x16x79xf32>
    %79 = vector.shape_cast %78 : vector<1x16x79xf32> to vector<16x79xf32>
    %cst_54 = arith.constant dense<0.000000e+00> : vector<16x117xf32>
    %80 = tpu.matmul %79, %57, %cst_54 {dimension_numbers = #tpu.dot_dimension_numbers<[1], [0], [0], [1], [0, 0, 1, 1], [], []>} : vector<16x79xf32>, vector<79x117xf32>, vector<16x117xf32> -> vector<16x117xf32>
    %81 = vector.extract_strided_slice %80 {offsets = [0, 0], sizes = [16, 39], strides = [1, 1]} : vector<16x117xf32> to vector<16x39xf32>
    %c0_55 = arith.constant 0 : index
    %c117 = arith.constant 117 : index
    %82 = vector.load %arg32[%c0_55, %c117] : memref<48x351xf32, #tpu.memory_space<vmem>>, vector<16x39xf32>
    tpu.vector_store %arg32[%c0_55, %c117], %81 {strides = array<i32>} : memref<48x351xf32, #tpu.memory_space<vmem>>, vector<16x39xf32>,
    %83 = vector.extract_strided_slice %80 {offsets = [0, 39], sizes = [16, 39], strides = [1, 1]} : vector<16x117xf32> to vector<16x39xf32>
    %c16_56 = arith.constant 16 : index
    %c117_57 = arith.constant 117 : index
    %84 = vector.load %arg32[%c16_56, %c117_57] : memref<48x351xf32, #tpu.memory_space<vmem>>, vector<16x39xf32>
    tpu.vector_store %arg32[%c16_56, %c117_57], %83 {strides = array<i32>} : memref<48x351xf32, #tpu.memory_space<vmem>>, vector<16x39xf32>,
    %85 = vector.extract_strided_slice %80 {offsets = [0, 78], sizes = [16, 39], strides = [1, 1]} : vector<16x117xf32> to vector<16x39xf32>
    %c32_58 = arith.constant 32 : index
    %c117_59 = arith.constant 117 : index
    %86 = vector.load %arg32[%c32_58, %c117_59] : memref<48x351xf32, #tpu.memory_space<vmem>>, vector<16x39xf32>
    tpu.vector_store %arg32[%c32_58, %c117_59], %85 {strides = array<i32>} : memref<48x351xf32, #tpu.memory_space<vmem>>, vector<16x39xf32>,
    %c0_60 = arith.constant 0 : index
    %c0_61 = arith.constant 0 : index
    %c237 = arith.constant 237 : index
    %87 = vector.load %arg27[%c0_60, %c0_61, %c237] : memref<1x16x632xf32, #tpu.memory_space<vmem>>, vector<1x16x79xf32>
    %88 = vector.shape_cast %87 : vector<1x16x79xf32> to vector<16x79xf32>
    %cst_62 = arith.constant dense<0.000000e+00> : vector<16x117xf32>
    %89 = tpu.matmul %88, %57, %cst_62 {dimension_numbers = #tpu.dot_dimension_numbers<[1], [0], [0], [1], [0, 0, 1, 1], [], []>} : vector<16x79xf32>, vector<79x117xf32>, vector<16x117xf32> -> vector<16x117xf32>
    %90 = vector.extract_strided_slice %89 {offsets = [0, 0], sizes = [16, 39], strides = [1, 1]} : vector<16x117xf32> to vector<16x39xf32>
    %c0_63 = arith.constant 0 : index
    %c156 = arith.constant 156 : index
    %91 = vector.load %arg32[%c0_63, %c156] : memref<48x351xf32, #tpu.memory_space<vmem>>, vector<16x39xf32>
    tpu.vector_store %arg32[%c0_63, %c156], %90 {strides = array<i32>} : memref<48x351xf32, #tpu.memory_space<vmem>>, vector<16x39xf32>,
    %92 = vector.extract_strided_slice %89 {offsets = [0, 39], sizes = [16, 39], strides = [1, 1]} : vector<16x117xf32> to vector<16x39xf32>
    %c16_64 = arith.constant 16 : index
    %c156_65 = arith.constant 156 : index
    %93 = vector.load %arg32[%c16_64, %c156_65] : memref<48x351xf32, #tpu.memory_space<vmem>>, vector<16x39xf32>
    tpu.vector_store %arg32[%c16_64, %c156_65], %92 {strides = array<i32>} : memref<48x351xf32, #tpu.memory_space<vmem>>, vector<16x39xf32>,
    %94 = vector.extract_strided_slice %89 {offsets = [0, 78], sizes = [16, 39], strides = [1, 1]} : vector<16x117xf32> to vector<16x39xf32>
    %c32_66 = arith.constant 32 : index
    %c156_67 = arith.constant 156 : index
    %95 = vector.load %arg32[%c32_66, %c156_67] : memref<48x351xf32, #tpu.memory_space<vmem>>, vector<16x39xf32>
    tpu.vector_store %arg32[%c32_66, %c156_67], %94 {strides = array<i32>} : memref<48x351xf32, #tpu.memory_space<vmem>>, vector<16x39xf32>,
    %c0_68 = arith.constant 0 : index
    %c0_69 = arith.constant 0 : index
    %c316 = arith.constant 316 : index
    %96 = vector.load %arg27[%c0_68, %c0_69, %c316] : memref<1x16x632xf32, #tpu.memory_space<vmem>>, vector<1x16x79xf32>
    %97 = vector.shape_cast %96 : vector<1x16x79xf32> to vector<16x79xf32>
    %cst_70 = arith.constant dense<0.000000e+00> : vector<16x117xf32>
    %98 = tpu.matmul %97, %57, %cst_70 {dimension_numbers = #tpu.dot_dimension_numbers<[1], [0], [0], [1], [0, 0, 1, 1], [], []>} : vector<16x79xf32>, vector<79x117xf32>, vector<16x117xf32> -> vector<16x117xf32>
    %99 = vector.extract_strided_slice %98 {offsets = [0, 0], sizes = [16, 39], strides = [1, 1]} : vector<16x117xf32> to vector<16x39xf32>
    %c0_71 = arith.constant 0 : index
    %c195 = arith.constant 195 : index
    %100 = vector.load %arg32[%c0_71, %c195] : memref<48x351xf32, #tpu.memory_space<vmem>>, vector<16x39xf32>
    tpu.vector_store %arg32[%c0_71, %c195], %99 {strides = array<i32>} : memref<48x351xf32, #tpu.memory_space<vmem>>, vector<16x39xf32>,
    %101 = vector.extract_strided_slice %98 {offsets = [0, 39], sizes = [16, 39], strides = [1, 1]} : vector<16x117xf32> to vector<16x39xf32>
    %c16_72 = arith.constant 16 : index
    %c195_73 = arith.constant 195 : index
    %102 = vector.load %arg32[%c16_72, %c195_73] : memref<48x351xf32, #tpu.memory_space<vmem>>, vector<16x39xf32>
    tpu.vector_store %arg32[%c16_72, %c195_73], %101 {strides = array<i32>} : memref<48x351xf32, #tpu.memory_space<vmem>>, vector<16x39xf32>,
    %103 = vector.extract_strided_slice %98 {offsets = [0, 78], sizes = [16, 39], strides = [1, 1]} : vector<16x117xf32> to vector<16x39xf32>
    %c32_74 = arith.constant 32 : index
    %c195_75 = arith.constant 195 : index
    %104 = vector.load %arg32[%c32_74, %c195_75] : memref<48x351xf32, #tpu.memory_space<vmem>>, vector<16x39xf32>
    tpu.vector_store %arg32[%c32_74, %c195_75], %103 {strides = array<i32>} : memref<48x351xf32, #tpu.memory_space<vmem>>, vector<16x39xf32>,
    %c0_76 = arith.constant 0 : index
    %c0_77 = arith.constant 0 : index
    %c395 = arith.constant 395 : index
    %105 = vector.load %arg27[%c0_76, %c0_77, %c395] : memref<1x16x632xf32, #tpu.memory_space<vmem>>, vector<1x16x79xf32>
    %106 = vector.shape_cast %105 : vector<1x16x79xf32> to vector<16x79xf32>
    %cst_78 = arith.constant dense<0.000000e+00> : vector<16x117xf32>
    %107 = tpu.matmul %106, %57, %cst_78 {dimension_numbers = #tpu.dot_dimension_numbers<[1], [0], [0], [1], [0, 0, 1, 1], [], []>} : vector<16x79xf32>, vector<79x117xf32>, vector<16x117xf32> -> vector<16x117xf32>
    %108 = vector.extract_strided_slice %107 {offsets = [0, 0], sizes = [16, 39], strides = [1, 1]} : vector<16x117xf32> to vector<16x39xf32>
    %c0_79 = arith.constant 0 : index
    %c234 = arith.constant 234 : index
    %109 = vector.load %arg32[%c0_79, %c234] : memref<48x351xf32, #tpu.memory_space<vmem>>, vector<16x39xf32>
    tpu.vector_store %arg32[%c0_79, %c234], %108 {strides = array<i32>} : memref<48x351xf32, #tpu.memory_space<vmem>>, vector<16x39xf32>,
    %110 = vector.extract_strided_slice %107 {offsets = [0, 39], sizes = [16, 39], strides = [1, 1]} : vector<16x117xf32> to vector<16x39xf32>
    %c16_80 = arith.constant 16 : index
    %c234_81 = arith.constant 234 : index
    %111 = vector.load %arg32[%c16_80, %c234_81] : memref<48x351xf32, #tpu.memory_space<vmem>>, vector<16x39xf32>
    tpu.vector_store %arg32[%c16_80, %c234_81], %110 {strides = array<i32>} : memref<48x351xf32, #tpu.memory_space<vmem>>, vector<16x39xf32>,
    %112 = vector.extract_strided_slice %107 {offsets = [0, 78], sizes = [16, 39], strides = [1, 1]} : vector<16x117xf32> to vector<16x39xf32>
    %c32_82 = arith.constant 32 : index
    %c234_83 = arith.constant 234 : index
    %113 = vector.load %arg32[%c32_82, %c234_83] : memref<48x351xf32, #tpu.memory_space<vmem>>, vector<16x39xf32>
    tpu.vector_store %arg32[%c32_82, %c234_83], %112 {strides = array<i32>} : memref<48x351xf32, #tpu.memory_space<vmem>>, vector<16x39xf32>,
    %c0_84 = arith.constant 0 : index
    %c0_85 = arith.constant 0 : index
    %c474 = arith.constant 474 : index
    %114 = vector.load %arg27[%c0_84, %c0_85, %c474] : memref<1x16x632xf32, #tpu.memory_space<vmem>>, vector<1x16x79xf32>
    %115 = vector.shape_cast %114 : vector<1x16x79xf32> to vector<16x79xf32>
    %cst_86 = arith.constant dense<0.000000e+00> : vector<16x117xf32>
    %116 = tpu.matmul %115, %57, %cst_86 {dimension_numbers = #tpu.dot_dimension_numbers<[1], [0], [0], [1], [0, 0, 1, 1], [], []>} : vector<16x79xf32>, vector<79x117xf32>, vector<16x117xf32> -> vector<16x117xf32>
    %117 = vector.extract_strided_slice %116 {offsets = [0, 0], sizes = [16, 39], strides = [1, 1]} : vector<16x117xf32> to vector<16x39xf32>
    %c0_87 = arith.constant 0 : index
    %c273 = arith.constant 273 : index
    %118 = vector.load %arg32[%c0_87, %c273] : memref<48x351xf32, #tpu.memory_space<vmem>>, vector<16x39xf32>
    tpu.vector_store %arg32[%c0_87, %c273], %117 {strides = array<i32>} : memref<48x351xf32, #tpu.memory_space<vmem>>, vector<16x39xf32>,
    %119 = vector.extract_strided_slice %116 {offsets = [0, 39], sizes = [16, 39], strides = [1, 1]} : vector<16x117xf32> to vector<16x39xf32>
    %c16_88 = arith.constant 16 : index
    %c273_89 = arith.constant 273 : index
    %120 = vector.load %arg32[%c16_88, %c273_89] : memref<48x351xf32, #tpu.memory_space<vmem>>, vector<16x39xf32>
    tpu.vector_store %arg32[%c16_88, %c273_89], %119 {strides = array<i32>} : memref<48x351xf32, #tpu.memory_space<vmem>>, vector<16x39xf32>,
    %121 = vector.extract_strided_slice %116 {offsets = [0, 78], sizes = [16, 39], strides = [1, 1]} : vector<16x117xf32> to vector<16x39xf32>
    %c32_90 = arith.constant 32 : index
    %c273_91 = arith.constant 273 : index
    %122 = vector.load %arg32[%c32_90, %c273_91] : memref<48x351xf32, #tpu.memory_space<vmem>>, vector<16x39xf32>
    tpu.vector_store %arg32[%c32_90, %c273_91], %121 {strides = array<i32>} : memref<48x351xf32, #tpu.memory_space<vmem>>, vector<16x39xf32>,
    %c0_92 = arith.constant 0 : index
    %c0_93 = arith.constant 0 : index
    %c553 = arith.constant 553 : index
    %123 = vector.load %arg27[%c0_92, %c0_93, %c553] : memref<1x16x632xf32, #tpu.memory_space<vmem>>, vector<1x16x79xf32>
    %124 = vector.shape_cast %123 : vector<1x16x79xf32> to vector<16x79xf32>
    %cst_94 = arith.constant dense<0.000000e+00> : vector<16x117xf32>
    %125 = tpu.matmul %124, %57, %cst_94 {dimension_numbers = #tpu.dot_dimension_numbers<[1], [0], [0], [1], [0, 0, 1, 1], [], []>} : vector<16x79xf32>, vector<79x117xf32>, vector<16x117xf32> -> vector<16x117xf32>
    %126 = vector.extract_strided_slice %125 {offsets = [0, 0], sizes = [16, 39], strides = [1, 1]} : vector<16x117xf32> to vector<16x39xf32>
    %c0_95 = arith.constant 0 : index
    %c312 = arith.constant 312 : index
    %127 = vector.load %arg32[%c0_95, %c312] : memref<48x351xf32, #tpu.memory_space<vmem>>, vector<16x39xf32>
    tpu.vector_store %arg32[%c0_95, %c312], %126 {strides = array<i32>} : memref<48x351xf32, #tpu.memory_space<vmem>>, vector<16x39xf32>,
    %128 = vector.extract_strided_slice %125 {offsets = [0, 39], sizes = [16, 39], strides = [1, 1]} : vector<16x117xf32> to vector<16x39xf32>
    %c16_96 = arith.constant 16 : index
    %c312_97 = arith.constant 312 : index
    %129 = vector.load %arg32[%c16_96, %c312_97] : memref<48x351xf32, #tpu.memory_space<vmem>>, vector<16x39xf32>
    tpu.vector_store %arg32[%c16_96, %c312_97], %128 {strides = array<i32>} : memref<48x351xf32, #tpu.memory_space<vmem>>, vector<16x39xf32>,
    %130 = vector.extract_strided_slice %125 {offsets = [0, 78], sizes = [16, 39], strides = [1, 1]} : vector<16x117xf32> to vector<16x39xf32>
    %c32_98 = arith.constant 32 : index
    %c312_99 = arith.constant 312 : index
    %131 = vector.load %arg32[%c32_98, %c312_99] : memref<48x351xf32, #tpu.memory_space<vmem>>, vector<16x39xf32>
    tpu.vector_store %arg32[%c32_98, %c312_99], %130 {strides = array<i32>} : memref<48x351xf32, #tpu.memory_space<vmem>>, vector<16x39xf32>,
    %cst_100 = arith.constant 0.000000e+00 : f32
    %132 = vector.broadcast %cst_100 : f32 to vector<32x312xf32>
    %c0_101 = arith.constant 0 : index
    %c0_102 = arith.constant 0 : index
    %c0_103 = arith.constant 0 : index
    %133 = vector.load %arg3[%c0_101, %c0_102, %c0_103] : memref<2x32x48xf32, #tpu.memory_space<vmem>>, vector<1x32x48xf32>
    %134 = vector.shape_cast %133 : vector<1x32x48xf32> to vector<32x48xf32>
    %c0_104 = arith.constant 0 : index
    %c0_105 = arith.constant 0 : index
    %135 = vector.load %arg32[%c0_104, %c0_105] : memref<48x351xf32, #tpu.memory_space<vmem>>, vector<48x312xf32>
    %cst_106 = arith.constant dense<0.000000e+00> : vector<32x312xf32>
    %136 = tpu.matmul %134, %135, %cst_106 {dimension_numbers = #tpu.dot_dimension_numbers<[1], [0], [0], [1], [0, 0, 1, 1], [], []>} : vector<32x48xf32>, vector<48x312xf32>, vector<32x312xf32> -> vector<32x312xf32>
    %137 = arith.addf %132, %136 : vector<32x312xf32>
    %c1_107 = arith.constant 1 : index
    %c0_108 = arith.constant 0 : index
    %c0_109 = arith.constant 0 : index
    %138 = vector.load %arg3[%c1_107, %c0_108, %c0_109] : memref<2x32x48xf32, #tpu.memory_space<vmem>>, vector<1x32x48xf32>
    %139 = vector.shape_cast %138 : vector<1x32x48xf32> to vector<32x48xf32>
    %c0_110 = arith.constant 0 : index
    %c39_111 = arith.constant 39 : index
    %140 = vector.load %arg32[%c0_110, %c39_111] : memref<48x351xf32, #tpu.memory_space<vmem>>, vector<48x312xf32>
    %cst_112 = arith.constant dense<0.000000e+00> : vector<32x312xf32>
    %141 = tpu.matmul %139, %140, %cst_112 {dimension_numbers = #tpu.dot_dimension_numbers<[1], [0], [0], [1], [0, 0, 1, 1], [], []>} : vector<32x48xf32>, vector<48x312xf32>, vector<32x312xf32> -> vector<32x312xf32>
    %142 = arith.addf %137, %141 : vector<32x312xf32>
    %c0_113 = arith.constant 0 : index
    %c0_114 = arith.constant 0 : index
    %143 = vector.load %arg8[%c0_113, %c0_114] : memref<32x1xf32, #tpu.memory_space<vmem>>, vector<32x1xf32>
    %144 = vector.broadcast %143 : vector<32x1xf32> to vector<32x312xf32>
    %145 = arith.addf %142, %144 : vector<32x312xf32>
    %146 = vector.extract_strided_slice %145 {offsets = [0, 0], sizes = [16, 312], strides = [1, 1]} : vector<32x312xf32> to vector<16x312xf32>
    %147 = vector.extract_strided_slice %145 {offsets = [16, 0], sizes = [16, 312], strides = [1, 1]} : vector<32x312xf32> to vector<16x312xf32>
    %cst_115 = arith.constant 0.000000e+00 : f32
    %148 = vector.broadcast %cst_115 : f32 to vector<16x312xf32>
    %149 = arith.subf %148, %147 : vector<16x312xf32>
    %150 = math.exp %149 : vector<16x312xf32>
    %cst_116 = arith.constant 1.000000e+00 : f32
    %151 = vector.broadcast %cst_116 : f32 to vector<16x312xf32>
    %152 = arith.addf %151, %150 : vector<16x312xf32>
    %cst_117 = arith.constant 1.000000e+00 : f32
    %153 = vector.broadcast %cst_117 : f32 to vector<16x312xf32>
    %154 = arith.divf %153, %152 : vector<16x312xf32>
    %155 = arith.mulf %146, %154 : vector<16x312xf32>
    %c0_118 = arith.constant 0 : index
    %c0_119 = arith.constant 0 : index
    %156 = vector.load %arg13[%c0_118, %c0_119] : memref<16x1xf32, #tpu.memory_space<vmem>>, vector<16x1xf32>
    %cst_120 = arith.constant 0.000000e+00 : f32
    %157 = vector.broadcast %cst_120 : f32 to vector<16x312xf32>
    %158 = arith.cmpf oge, %155, %157 : vector<16x312xf32>
    %159 = vector.broadcast %156 : vector<16x1xf32> to vector<16x312xf32>
    %160 = arith.mulf %159, %155 : vector<16x312xf32>
    %161 = arith.select %158, %155, %160 : vector<16x312xi1>, vector<16x312xf32>
    %c0_121 = arith.constant 0 : index
    %c0_122 = arith.constant 0 : index
    %c0_123 = arith.constant 0 : index
    %162 = vector.load %arg28[%c0_121, %c0_122, %c0_123] : memref<1x16x312xf32, #tpu.memory_space<vmem>>, vector<1x16x312xf32>
    %163 = vector.shape_cast %162 : vector<1x16x312xf32> to vector<16x312xf32>
    %164 = vector.shape_cast %161 : vector<16x312xf32> to vector<1x16x312xf32>
    tpu.vector_store %arg28[%c0_121, %c0_122, %c0_123], %164 {strides = array<i32>} : memref<1x16x312xf32, #tpu.memory_space<vmem>>, vector<1x16x312xf32>,
    %c0_124 = arith.constant 0 : index
    %c0_125 = arith.constant 0 : index
    %165 = vector.load %arg24[%c0_124, %c0_125] : memref<39x57xf32, #tpu.memory_space<vmem>>, vector<39x57xf32>
    %cst_126 = arith.constant 0.000000e+00 : f32
    %166 = vector.broadcast %cst_126 : f32 to vector<48x19xf32>
    %c0_127 = arith.constant 0 : index
    %c0_128 = arith.constant 0 : index
    %167 = vector.load %arg33[%c0_127, %c0_128] : memref<48x171xf32, #tpu.memory_space<vmem>>, vector<48x19xf32>
    tpu.vector_store %arg33[%c0_127, %c0_128], %166 {strides = array<i32>} : memref<48x171xf32, #tpu.memory_space<vmem>>, vector<48x19xf32>,
    %c0_129 = arith.constant 0 : index
    %c0_130 = arith.constant 0 : index
    %c0_131 = arith.constant 0 : index
    %168 = vector.load %arg28[%c0_129, %c0_130, %c0_131] : memref<1x16x312xf32, #tpu.memory_space<vmem>>, vector<1x16x39xf32>
    %169 = vector.shape_cast %168 : vector<1x16x39xf32> to vector<16x39xf32>
    %cst_132 = arith.constant dense<0.000000e+00> : vector<16x57xf32>
    %170 = tpu.matmul %169, %165, %cst_132 {dimension_numbers = #tpu.dot_dimension_numbers<[1], [0], [0], [1], [0, 0, 1, 1], [], []>} : vector<16x39xf32>, vector<39x57xf32>, vector<16x57xf32> -> vector<16x57xf32>
    %171 = vector.extract_strided_slice %170 {offsets = [0, 0], sizes = [16, 19], strides = [1, 1]} : vector<16x57xf32> to vector<16x19xf32>
    %c0_133 = arith.constant 0 : index
    %c19 = arith.constant 19 : index
    %172 = vector.load %arg33[%c0_133, %c19] : memref<48x171xf32, #tpu.memory_space<vmem>>, vector<16x19xf32>
    tpu.vector_store %arg33[%c0_133, %c19], %171 {strides = array<i32>} : memref<48x171xf32, #tpu.memory_space<vmem>>, vector<16x19xf32>,
    %173 = vector.extract_strided_slice %170 {offsets = [0, 19], sizes = [16, 19], strides = [1, 1]} : vector<16x57xf32> to vector<16x19xf32>
    %c16_134 = arith.constant 16 : index
    %c19_135 = arith.constant 19 : index
    %174 = vector.load %arg33[%c16_134, %c19_135] : memref<48x171xf32, #tpu.memory_space<vmem>>, vector<16x19xf32>
    tpu.vector_store %arg33[%c16_134, %c19_135], %173 {strides = array<i32>} : memref<48x171xf32, #tpu.memory_space<vmem>>, vector<16x19xf32>,
    %175 = vector.extract_strided_slice %170 {offsets = [0, 38], sizes = [16, 19], strides = [1, 1]} : vector<16x57xf32> to vector<16x19xf32>
    %c32_136 = arith.constant 32 : index
    %c19_137 = arith.constant 19 : index
    %176 = vector.load %arg33[%c32_136, %c19_137] : memref<48x171xf32, #tpu.memory_space<vmem>>, vector<16x19xf32>
    tpu.vector_store %arg33[%c32_136, %c19_137], %175 {strides = array<i32>} : memref<48x171xf32, #tpu.memory_space<vmem>>, vector<16x19xf32>,
    %c0_138 = arith.constant 0 : index
    %c0_139 = arith.constant 0 : index
    %c39_140 = arith.constant 39 : index
    %177 = vector.load %arg28[%c0_138, %c0_139, %c39_140] : memref<1x16x312xf32, #tpu.memory_space<vmem>>, vector<1x16x39xf32>
    %178 = vector.shape_cast %177 : vector<1x16x39xf32> to vector<16x39xf32>
    %cst_141 = arith.constant dense<0.000000e+00> : vector<16x57xf32>
    %179 = tpu.matmul %178, %165, %cst_141 {dimension_numbers = #tpu.dot_dimension_numbers<[1], [0], [0], [1], [0, 0, 1, 1], [], []>} : vector<16x39xf32>, vector<39x57xf32>, vector<16x57xf32> -> vector<16x57xf32>
    %180 = vector.extract_strided_slice %179 {offsets = [0, 0], sizes = [16, 19], strides = [1, 1]} : vector<16x57xf32> to vector<16x19xf32>
    %c0_142 = arith.constant 0 : index
    %c38 = arith.constant 38 : index
    %181 = vector.load %arg33[%c0_142, %c38] : memref<48x171xf32, #tpu.memory_space<vmem>>, vector<16x19xf32>
    tpu.vector_store %arg33[%c0_142, %c38], %180 {strides = array<i32>} : memref<48x171xf32, #tpu.memory_space<vmem>>, vector<16x19xf32>,
    %182 = vector.extract_strided_slice %179 {offsets = [0, 19], sizes = [16, 19], strides = [1, 1]} : vector<16x57xf32> to vector<16x19xf32>
    %c16_143 = arith.constant 16 : index
    %c38_144 = arith.constant 38 : index
    %183 = vector.load %arg33[%c16_143, %c38_144] : memref<48x171xf32, #tpu.memory_space<vmem>>, vector<16x19xf32>
    tpu.vector_store %arg33[%c16_143, %c38_144], %182 {strides = array<i32>} : memref<48x171xf32, #tpu.memory_space<vmem>>, vector<16x19xf32>,
    %184 = vector.extract_strided_slice %179 {offsets = [0, 38], sizes = [16, 19], strides = [1, 1]} : vector<16x57xf32> to vector<16x19xf32>
    %c32_145 = arith.constant 32 : index
    %c38_146 = arith.constant 38 : index
    %185 = vector.load %arg33[%c32_145, %c38_146] : memref<48x171xf32, #tpu.memory_space<vmem>>, vector<16x19xf32>
    tpu.vector_store %arg33[%c32_145, %c38_146], %184 {strides = array<i32>} : memref<48x171xf32, #tpu.memory_space<vmem>>, vector<16x19xf32>,
    %c0_147 = arith.constant 0 : index
    %c0_148 = arith.constant 0 : index
    %c78_149 = arith.constant 78 : index
    %186 = vector.load %arg28[%c0_147, %c0_148, %c78_149] : memref<1x16x312xf32, #tpu.memory_space<vmem>>, vector<1x16x39xf32>
    %187 = vector.shape_cast %186 : vector<1x16x39xf32> to vector<16x39xf32>
    %cst_150 = arith.constant dense<0.000000e+00> : vector<16x57xf32>
    %188 = tpu.matmul %187, %165, %cst_150 {dimension_numbers = #tpu.dot_dimension_numbers<[1], [0], [0], [1], [0, 0, 1, 1], [], []>} : vector<16x39xf32>, vector<39x57xf32>, vector<16x57xf32> -> vector<16x57xf32>
    %189 = vector.extract_strided_slice %188 {offsets = [0, 0], sizes = [16, 19], strides = [1, 1]} : vector<16x57xf32> to vector<16x19xf32>
    %c0_151 = arith.constant 0 : index
    %c57 = arith.constant 57 : index
    %190 = vector.load %arg33[%c0_151, %c57] : memref<48x171xf32, #tpu.memory_space<vmem>>, vector<16x19xf32>
    tpu.vector_store %arg33[%c0_151, %c57], %189 {strides = array<i32>} : memref<48x171xf32, #tpu.memory_space<vmem>>, vector<16x19xf32>,
    %191 = vector.extract_strided_slice %188 {offsets = [0, 19], sizes = [16, 19], strides = [1, 1]} : vector<16x57xf32> to vector<16x19xf32>
    %c16_152 = arith.constant 16 : index
    %c57_153 = arith.constant 57 : index
    %192 = vector.load %arg33[%c16_152, %c57_153] : memref<48x171xf32, #tpu.memory_space<vmem>>, vector<16x19xf32>
    tpu.vector_store %arg33[%c16_152, %c57_153], %191 {strides = array<i32>} : memref<48x171xf32, #tpu.memory_space<vmem>>, vector<16x19xf32>,
    %193 = vector.extract_strided_slice %188 {offsets = [0, 38], sizes = [16, 19], strides = [1, 1]} : vector<16x57xf32> to vector<16x19xf32>
    %c32_154 = arith.constant 32 : index
    %c57_155 = arith.constant 57 : index
    %194 = vector.load %arg33[%c32_154, %c57_155] : memref<48x171xf32, #tpu.memory_space<vmem>>, vector<16x19xf32>
    tpu.vector_store %arg33[%c32_154, %c57_155], %193 {strides = array<i32>} : memref<48x171xf32, #tpu.memory_space<vmem>>, vector<16x19xf32>,
    %c0_156 = arith.constant 0 : index
    %c0_157 = arith.constant 0 : index
    %c117_158 = arith.constant 117 : index
    %195 = vector.load %arg28[%c0_156, %c0_157, %c117_158] : memref<1x16x312xf32, #tpu.memory_space<vmem>>, vector<1x16x39xf32>
    %196 = vector.shape_cast %195 : vector<1x16x39xf32> to vector<16x39xf32>
    %cst_159 = arith.constant dense<0.000000e+00> : vector<16x57xf32>
    %197 = tpu.matmul %196, %165, %cst_159 {dimension_numbers = #tpu.dot_dimension_numbers<[1], [0], [0], [1], [0, 0, 1, 1], [], []>} : vector<16x39xf32>, vector<39x57xf32>, vector<16x57xf32> -> vector<16x57xf32>
    %198 = vector.extract_strided_slice %197 {offsets = [0, 0], sizes = [16, 19], strides = [1, 1]} : vector<16x57xf32> to vector<16x19xf32>
    %c0_160 = arith.constant 0 : index
    %c76 = arith.constant 76 : index
    %199 = vector.load %arg33[%c0_160, %c76] : memref<48x171xf32, #tpu.memory_space<vmem>>, vector<16x19xf32>
    tpu.vector_store %arg33[%c0_160, %c76], %198 {strides = array<i32>} : memref<48x171xf32, #tpu.memory_space<vmem>>, vector<16x19xf32>,
    %200 = vector.extract_strided_slice %197 {offsets = [0, 19], sizes = [16, 19], strides = [1, 1]} : vector<16x57xf32> to vector<16x19xf32>
    %c16_161 = arith.constant 16 : index
    %c76_162 = arith.constant 76 : index
    %201 = vector.load %arg33[%c16_161, %c76_162] : memref<48x171xf32, #tpu.memory_space<vmem>>, vector<16x19xf32>
    tpu.vector_store %arg33[%c16_161, %c76_162], %200 {strides = array<i32>} : memref<48x171xf32, #tpu.memory_space<vmem>>, vector<16x19xf32>,
    %202 = vector.extract_strided_slice %197 {offsets = [0, 38], sizes = [16, 19], strides = [1, 1]} : vector<16x57xf32> to vector<16x19xf32>
    %c32_163 = arith.constant 32 : index
    %c76_164 = arith.constant 76 : index
    %203 = vector.load %arg33[%c32_163, %c76_164] : memref<48x171xf32, #tpu.memory_space<vmem>>, vector<16x19xf32>
    tpu.vector_store %arg33[%c32_163, %c76_164], %202 {strides = array<i32>} : memref<48x171xf32, #tpu.memory_space<vmem>>, vector<16x19xf32>,
    %c0_165 = arith.constant 0 : index
    %c0_166 = arith.constant 0 : index
    %c156_167 = arith.constant 156 : index
    %204 = vector.load %arg28[%c0_165, %c0_166, %c156_167] : memref<1x16x312xf32, #tpu.memory_space<vmem>>, vector<1x16x39xf32>
    %205 = vector.shape_cast %204 : vector<1x16x39xf32> to vector<16x39xf32>
    %cst_168 = arith.constant dense<0.000000e+00> : vector<16x57xf32>
    %206 = tpu.matmul %205, %165, %cst_168 {dimension_numbers = #tpu.dot_dimension_numbers<[1], [0], [0], [1], [0, 0, 1, 1], [], []>} : vector<16x39xf32>, vector<39x57xf32>, vector<16x57xf32> -> vector<16x57xf32>
    %207 = vector.extract_strided_slice %206 {offsets = [0, 0], sizes = [16, 19], strides = [1, 1]} : vector<16x57xf32> to vector<16x19xf32>
    %c0_169 = arith.constant 0 : index
    %c95 = arith.constant 95 : index
    %208 = vector.load %arg33[%c0_169, %c95] : memref<48x171xf32, #tpu.memory_space<vmem>>, vector<16x19xf32>
    tpu.vector_store %arg33[%c0_169, %c95], %207 {strides = array<i32>} : memref<48x171xf32, #tpu.memory_space<vmem>>, vector<16x19xf32>,
    %209 = vector.extract_strided_slice %206 {offsets = [0, 19], sizes = [16, 19], strides = [1, 1]} : vector<16x57xf32> to vector<16x19xf32>
    %c16_170 = arith.constant 16 : index
    %c95_171 = arith.constant 95 : index
    %210 = vector.load %arg33[%c16_170, %c95_171] : memref<48x171xf32, #tpu.memory_space<vmem>>, vector<16x19xf32>
    tpu.vector_store %arg33[%c16_170, %c95_171], %209 {strides = array<i32>} : memref<48x171xf32, #tpu.memory_space<vmem>>, vector<16x19xf32>,
    %211 = vector.extract_strided_slice %206 {offsets = [0, 38], sizes = [16, 19], strides = [1, 1]} : vector<16x57xf32> to vector<16x19xf32>
    %c32_172 = arith.constant 32 : index
    %c95_173 = arith.constant 95 : index
    %212 = vector.load %arg33[%c32_172, %c95_173] : memref<48x171xf32, #tpu.memory_space<vmem>>, vector<16x19xf32>
    tpu.vector_store %arg33[%c32_172, %c95_173], %211 {strides = array<i32>} : memref<48x171xf32, #tpu.memory_space<vmem>>, vector<16x19xf32>,
    %c0_174 = arith.constant 0 : index
    %c0_175 = arith.constant 0 : index
    %c195_176 = arith.constant 195 : index
    %213 = vector.load %arg28[%c0_174, %c0_175, %c195_176] : memref<1x16x312xf32, #tpu.memory_space<vmem>>, vector<1x16x39xf32>
    %214 = vector.shape_cast %213 : vector<1x16x39xf32> to vector<16x39xf32>
    %cst_177 = arith.constant dense<0.000000e+00> : vector<16x57xf32>
    %215 = tpu.matmul %214, %165, %cst_177 {dimension_numbers = #tpu.dot_dimension_numbers<[1], [0], [0], [1], [0, 0, 1, 1], [], []>} : vector<16x39xf32>, vector<39x57xf32>, vector<16x57xf32> -> vector<16x57xf32>
    %216 = vector.extract_strided_slice %215 {offsets = [0, 0], sizes = [16, 19], strides = [1, 1]} : vector<16x57xf32> to vector<16x19xf32>
    %c0_178 = arith.constant 0 : index
    %c114 = arith.constant 114 : index
    %217 = vector.load %arg33[%c0_178, %c114] : memref<48x171xf32, #tpu.memory_space<vmem>>, vector<16x19xf32>
    tpu.vector_store %arg33[%c0_178, %c114], %216 {strides = array<i32>} : memref<48x171xf32, #tpu.memory_space<vmem>>, vector<16x19xf32>,
    %218 = vector.extract_strided_slice %215 {offsets = [0, 19], sizes = [16, 19], strides = [1, 1]} : vector<16x57xf32> to vector<16x19xf32>
    %c16_179 = arith.constant 16 : index
    %c114_180 = arith.constant 114 : index
    %219 = vector.load %arg33[%c16_179, %c114_180] : memref<48x171xf32, #tpu.memory_space<vmem>>, vector<16x19xf32>
    tpu.vector_store %arg33[%c16_179, %c114_180], %218 {strides = array<i32>} : memref<48x171xf32, #tpu.memory_space<vmem>>, vector<16x19xf32>,
    %220 = vector.extract_strided_slice %215 {offsets = [0, 38], sizes = [16, 19], strides = [1, 1]} : vector<16x57xf32> to vector<16x19xf32>
    %c32_181 = arith.constant 32 : index
    %c114_182 = arith.constant 114 : index
    %221 = vector.load %arg33[%c32_181, %c114_182] : memref<48x171xf32, #tpu.memory_space<vmem>>, vector<16x19xf32>
    tpu.vector_store %arg33[%c32_181, %c114_182], %220 {strides = array<i32>} : memref<48x171xf32, #tpu.memory_space<vmem>>, vector<16x19xf32>,
    %c0_183 = arith.constant 0 : index
    %c0_184 = arith.constant 0 : index
    %c234_185 = arith.constant 234 : index
    %222 = vector.load %arg28[%c0_183, %c0_184, %c234_185] : memref<1x16x312xf32, #tpu.memory_space<vmem>>, vector<1x16x39xf32>
    %223 = vector.shape_cast %222 : vector<1x16x39xf32> to vector<16x39xf32>
    %cst_186 = arith.constant dense<0.000000e+00> : vector<16x57xf32>
    %224 = tpu.matmul %223, %165, %cst_186 {dimension_numbers = #tpu.dot_dimension_numbers<[1], [0], [0], [1], [0, 0, 1, 1], [], []>} : vector<16x39xf32>, vector<39x57xf32>, vector<16x57xf32> -> vector<16x57xf32>
    %225 = vector.extract_strided_slice %224 {offsets = [0, 0], sizes = [16, 19], strides = [1, 1]} : vector<16x57xf32> to vector<16x19xf32>
    %c0_187 = arith.constant 0 : index
    %c133 = arith.constant 133 : index
    %226 = vector.load %arg33[%c0_187, %c133] : memref<48x171xf32, #tpu.memory_space<vmem>>, vector<16x19xf32>
    tpu.vector_store %arg33[%c0_187, %c133], %225 {strides = array<i32>} : memref<48x171xf32, #tpu.memory_space<vmem>>, vector<16x19xf32>,
    %227 = vector.extract_strided_slice %224 {offsets = [0, 19], sizes = [16, 19], strides = [1, 1]} : vector<16x57xf32> to vector<16x19xf32>
    %c16_188 = arith.constant 16 : index
    %c133_189 = arith.constant 133 : index
    %228 = vector.load %arg33[%c16_188, %c133_189] : memref<48x171xf32, #tpu.memory_space<vmem>>, vector<16x19xf32>
    tpu.vector_store %arg33[%c16_188, %c133_189], %227 {strides = array<i32>} : memref<48x171xf32, #tpu.memory_space<vmem>>, vector<16x19xf32>,
    %229 = vector.extract_strided_slice %224 {offsets = [0, 38], sizes = [16, 19], strides = [1, 1]} : vector<16x57xf32> to vector<16x19xf32>
    %c32_190 = arith.constant 32 : index
    %c133_191 = arith.constant 133 : index
    %230 = vector.load %arg33[%c32_190, %c133_191] : memref<48x171xf32, #tpu.memory_space<vmem>>, vector<16x19xf32>
    tpu.vector_store %arg33[%c32_190, %c133_191], %229 {strides = array<i32>} : memref<48x171xf32, #tpu.memory_space<vmem>>, vector<16x19xf32>,
    %c0_192 = arith.constant 0 : index
    %c0_193 = arith.constant 0 : index
    %c273_194 = arith.constant 273 : index
    %231 = vector.load %arg28[%c0_192, %c0_193, %c273_194] : memref<1x16x312xf32, #tpu.memory_space<vmem>>, vector<1x16x39xf32>
    %232 = vector.shape_cast %231 : vector<1x16x39xf32> to vector<16x39xf32>
    %cst_195 = arith.constant dense<0.000000e+00> : vector<16x57xf32>
    %233 = tpu.matmul %232, %165, %cst_195 {dimension_numbers = #tpu.dot_dimension_numbers<[1], [0], [0], [1], [0, 0, 1, 1], [], []>} : vector<16x39xf32>, vector<39x57xf32>, vector<16x57xf32> -> vector<16x57xf32>
    %234 = vector.extract_strided_slice %233 {offsets = [0, 0], sizes = [16, 19], strides = [1, 1]} : vector<16x57xf32> to vector<16x19xf32>
    %c0_196 = arith.constant 0 : index
    %c152 = arith.constant 152 : index
    %235 = vector.load %arg33[%c0_196, %c152] : memref<48x171xf32, #tpu.memory_space<vmem>>, vector<16x19xf32>
    tpu.vector_store %arg33[%c0_196, %c152], %234 {strides = array<i32>} : memref<48x171xf32, #tpu.memory_space<vmem>>, vector<16x19xf32>,
    %236 = vector.extract_strided_slice %233 {offsets = [0, 19], sizes = [16, 19], strides = [1, 1]} : vector<16x57xf32> to vector<16x19xf32>
    %c16_197 = arith.constant 16 : index
    %c152_198 = arith.constant 152 : index
    %237 = vector.load %arg33[%c16_197, %c152_198] : memref<48x171xf32, #tpu.memory_space<vmem>>, vector<16x19xf32>
    tpu.vector_store %arg33[%c16_197, %c152_198], %236 {strides = array<i32>} : memref<48x171xf32, #tpu.memory_space<vmem>>, vector<16x19xf32>,
    %238 = vector.extract_strided_slice %233 {offsets = [0, 38], sizes = [16, 19], strides = [1, 1]} : vector<16x57xf32> to vector<16x19xf32>
    %c32_199 = arith.constant 32 : index
    %c152_200 = arith.constant 152 : index
    %239 = vector.load %arg33[%c32_199, %c152_200] : memref<48x171xf32, #tpu.memory_space<vmem>>, vector<16x19xf32>
    tpu.vector_store %arg33[%c32_199, %c152_200], %238 {strides = array<i32>} : memref<48x171xf32, #tpu.memory_space<vmem>>, vector<16x19xf32>,
    %cst_201 = arith.constant 0.000000e+00 : f32
    %240 = vector.broadcast %cst_201 : f32 to vector<32x152xf32>
    %c0_202 = arith.constant 0 : index
    %c0_203 = arith.constant 0 : index
    %c0_204 = arith.constant 0 : index
    %241 = vector.load %arg4[%c0_202, %c0_203, %c0_204] : memref<2x32x48xf32, #tpu.memory_space<vmem>>, vector<1x32x48xf32>
    %242 = vector.shape_cast %241 : vector<1x32x48xf32> to vector<32x48xf32>
    %c0_205 = arith.constant 0 : index
    %c0_206 = arith.constant 0 : index
    %243 = vector.load %arg33[%c0_205, %c0_206] : memref<48x171xf32, #tpu.memory_space<vmem>>, vector<48x152xf32>
    %cst_207 = arith.constant dense<0.000000e+00> : vector<32x152xf32>
    %244 = tpu.matmul %242, %243, %cst_207 {dimension_numbers = #tpu.dot_dimension_numbers<[1], [0], [0], [1], [0, 0, 1, 1], [], []>} : vector<32x48xf32>, vector<48x152xf32>, vector<32x152xf32> -> vector<32x152xf32>
    %245 = arith.addf %240, %244 : vector<32x152xf32>
    %c1_208 = arith.constant 1 : index
    %c0_209 = arith.constant 0 : index
    %c0_210 = arith.constant 0 : index
    %246 = vector.load %arg4[%c1_208, %c0_209, %c0_210] : memref<2x32x48xf32, #tpu.memory_space<vmem>>, vector<1x32x48xf32>
    %247 = vector.shape_cast %246 : vector<1x32x48xf32> to vector<32x48xf32>
    %c0_211 = arith.constant 0 : index
    %c19_212 = arith.constant 19 : index
    %248 = vector.load %arg33[%c0_211, %c19_212] : memref<48x171xf32, #tpu.memory_space<vmem>>, vector<48x152xf32>
    %cst_213 = arith.constant dense<0.000000e+00> : vector<32x152xf32>
    %249 = tpu.matmul %247, %248, %cst_213 {dimension_numbers = #tpu.dot_dimension_numbers<[1], [0], [0], [1], [0, 0, 1, 1], [], []>} : vector<32x48xf32>, vector<48x152xf32>, vector<32x152xf32> -> vector<32x152xf32>
    %250 = arith.addf %245, %249 : vector<32x152xf32>
    %c0_214 = arith.constant 0 : index
    %c0_215 = arith.constant 0 : index
    %251 = vector.load %arg9[%c0_214, %c0_215] : memref<32x1xf32, #tpu.memory_space<vmem>>, vector<32x1xf32>
    %252 = vector.broadcast %251 : vector<32x1xf32> to vector<32x152xf32>
    %253 = arith.addf %250, %252 : vector<32x152xf32>
    %254 = vector.extract_strided_slice %253 {offsets = [0, 0], sizes = [16, 152], strides = [1, 1]} : vector<32x152xf32> to vector<16x152xf32>
    %255 = vector.extract_strided_slice %253 {offsets = [16, 0], sizes = [16, 152], strides = [1, 1]} : vector<32x152xf32> to vector<16x152xf32>
    %cst_216 = arith.constant 0.000000e+00 : f32
    %256 = vector.broadcast %cst_216 : f32 to vector<16x152xf32>
    %257 = arith.subf %256, %255 : vector<16x152xf32>
    %258 = math.exp %257 : vector<16x152xf32>
    %cst_217 = arith.constant 1.000000e+00 : f32
    %259 = vector.broadcast %cst_217 : f32 to vector<16x152xf32>
    %260 = arith.addf %259, %258 : vector<16x152xf32>
    %cst_218 = arith.constant 1.000000e+00 : f32
    %261 = vector.broadcast %cst_218 : f32 to vector<16x152xf32>
    %262 = arith.divf %261, %260 : vector<16x152xf32>
    %263 = arith.mulf %254, %262 : vector<16x152xf32>
    %c0_219 = arith.constant 0 : index
    %c0_220 = arith.constant 0 : index
    %264 = vector.load %arg14[%c0_219, %c0_220] : memref<16x1xf32, #tpu.memory_space<vmem>>, vector<16x1xf32>
    %cst_221 = arith.constant 0.000000e+00 : f32
    %265 = vector.broadcast %cst_221 : f32 to vector<16x152xf32>
    %266 = arith.cmpf oge, %263, %265 : vector<16x152xf32>
    %267 = vector.broadcast %264 : vector<16x1xf32> to vector<16x152xf32>
    %268 = arith.mulf %267, %263 : vector<16x152xf32>
    %269 = arith.select %266, %263, %268 : vector<16x152xi1>, vector<16x152xf32>
    %c0_222 = arith.constant 0 : index
    %c0_223 = arith.constant 0 : index
    %c0_224 = arith.constant 0 : index
    %270 = vector.load %arg29[%c0_222, %c0_223, %c0_224] : memref<1x16x152xf32, #tpu.memory_space<vmem>>, vector<1x16x152xf32>
    %271 = vector.shape_cast %270 : vector<1x16x152xf32> to vector<16x152xf32>
    %272 = vector.shape_cast %269 : vector<16x152xf32> to vector<1x16x152xf32>
    tpu.vector_store %arg29[%c0_222, %c0_223, %c0_224], %272 {strides = array<i32>} : memref<1x16x152xf32, #tpu.memory_space<vmem>>, vector<1x16x152xf32>,
    %c0_225 = arith.constant 0 : index
    %c0_226 = arith.constant 0 : index
    %273 = vector.load %arg25[%c0_225, %c0_226] : memref<19x27xf32, #tpu.memory_space<vmem>>, vector<19x27xf32>
    %cst_227 = arith.constant 0.000000e+00 : f32
    %274 = vector.broadcast %cst_227 : f32 to vector<48x9xf32>
    %c0_228 = arith.constant 0 : index
    %c0_229 = arith.constant 0 : index
    %275 = vector.load %arg34[%c0_228, %c0_229] : memref<48x81xf32, #tpu.memory_space<vmem>>, vector<48x9xf32>
    tpu.vector_store %arg34[%c0_228, %c0_229], %274 {strides = array<i32>} : memref<48x81xf32, #tpu.memory_space<vmem>>, vector<48x9xf32>,
    %c0_230 = arith.constant 0 : index
    %c0_231 = arith.constant 0 : index
    %c0_232 = arith.constant 0 : index
    %276 = vector.load %arg29[%c0_230, %c0_231, %c0_232] : memref<1x16x152xf32, #tpu.memory_space<vmem>>, vector<1x16x19xf32>
    %277 = vector.shape_cast %276 : vector<1x16x19xf32> to vector<16x19xf32>
    %cst_233 = arith.constant dense<0.000000e+00> : vector<16x27xf32>
    %278 = tpu.matmul %277, %273, %cst_233 {dimension_numbers = #tpu.dot_dimension_numbers<[1], [0], [0], [1], [0, 0, 1, 1], [], []>} : vector<16x19xf32>, vector<19x27xf32>, vector<16x27xf32> -> vector<16x27xf32>
    %279 = vector.extract_strided_slice %278 {offsets = [0, 0], sizes = [16, 9], strides = [1, 1]} : vector<16x27xf32> to vector<16x9xf32>
    %c0_234 = arith.constant 0 : index
    %c9 = arith.constant 9 : index
    %280 = vector.load %arg34[%c0_234, %c9] : memref<48x81xf32, #tpu.memory_space<vmem>>, vector<16x9xf32>
    tpu.vector_store %arg34[%c0_234, %c9], %279 {strides = array<i32>} : memref<48x81xf32, #tpu.memory_space<vmem>>, vector<16x9xf32>,
    %281 = vector.extract_strided_slice %278 {offsets = [0, 9], sizes = [16, 9], strides = [1, 1]} : vector<16x27xf32> to vector<16x9xf32>
    %c16_235 = arith.constant 16 : index
    %c9_236 = arith.constant 9 : index
    %282 = vector.load %arg34[%c16_235, %c9_236] : memref<48x81xf32, #tpu.memory_space<vmem>>, vector<16x9xf32>
    tpu.vector_store %arg34[%c16_235, %c9_236], %281 {strides = array<i32>} : memref<48x81xf32, #tpu.memory_space<vmem>>, vector<16x9xf32>,
    %283 = vector.extract_strided_slice %278 {offsets = [0, 18], sizes = [16, 9], strides = [1, 1]} : vector<16x27xf32> to vector<16x9xf32>
    %c32_237 = arith.constant 32 : index
    %c9_238 = arith.constant 9 : index
    %284 = vector.load %arg34[%c32_237, %c9_238] : memref<48x81xf32, #tpu.memory_space<vmem>>, vector<16x9xf32>
    tpu.vector_store %arg34[%c32_237, %c9_238], %283 {strides = array<i32>} : memref<48x81xf32, #tpu.memory_space<vmem>>, vector<16x9xf32>,
    %c0_239 = arith.constant 0 : index
    %c0_240 = arith.constant 0 : index
    %c19_241 = arith.constant 19 : index
    %285 = vector.load %arg29[%c0_239, %c0_240, %c19_241] : memref<1x16x152xf32, #tpu.memory_space<vmem>>, vector<1x16x19xf32>
    %286 = vector.shape_cast %285 : vector<1x16x19xf32> to vector<16x19xf32>
    %cst_242 = arith.constant dense<0.000000e+00> : vector<16x27xf32>
    %287 = tpu.matmul %286, %273, %cst_242 {dimension_numbers = #tpu.dot_dimension_numbers<[1], [0], [0], [1], [0, 0, 1, 1], [], []>} : vector<16x19xf32>, vector<19x27xf32>, vector<16x27xf32> -> vector<16x27xf32>
    %288 = vector.extract_strided_slice %287 {offsets = [0, 0], sizes = [16, 9], strides = [1, 1]} : vector<16x27xf32> to vector<16x9xf32>
    %c0_243 = arith.constant 0 : index
    %c18 = arith.constant 18 : index
    %289 = vector.load %arg34[%c0_243, %c18] : memref<48x81xf32, #tpu.memory_space<vmem>>, vector<16x9xf32>
    tpu.vector_store %arg34[%c0_243, %c18], %288 {strides = array<i32>} : memref<48x81xf32, #tpu.memory_space<vmem>>, vector<16x9xf32>,
    %290 = vector.extract_strided_slice %287 {offsets = [0, 9], sizes = [16, 9], strides = [1, 1]} : vector<16x27xf32> to vector<16x9xf32>
    %c16_244 = arith.constant 16 : index
    %c18_245 = arith.constant 18 : index
    %291 = vector.load %arg34[%c16_244, %c18_245] : memref<48x81xf32, #tpu.memory_space<vmem>>, vector<16x9xf32>
    tpu.vector_store %arg34[%c16_244, %c18_245], %290 {strides = array<i32>} : memref<48x81xf32, #tpu.memory_space<vmem>>, vector<16x9xf32>,
    %292 = vector.extract_strided_slice %287 {offsets = [0, 18], sizes = [16, 9], strides = [1, 1]} : vector<16x27xf32> to vector<16x9xf32>
    %c32_246 = arith.constant 32 : index
    %c18_247 = arith.constant 18 : index
    %293 = vector.load %arg34[%c32_246, %c18_247] : memref<48x81xf32, #tpu.memory_space<vmem>>, vector<16x9xf32>
    tpu.vector_store %arg34[%c32_246, %c18_247], %292 {strides = array<i32>} : memref<48x81xf32, #tpu.memory_space<vmem>>, vector<16x9xf32>,
    %c0_248 = arith.constant 0 : index
    %c0_249 = arith.constant 0 : index
    %c38_250 = arith.constant 38 : index
    %294 = vector.load %arg29[%c0_248, %c0_249, %c38_250] : memref<1x16x152xf32, #tpu.memory_space<vmem>>, vector<1x16x19xf32>
    %295 = vector.shape_cast %294 : vector<1x16x19xf32> to vector<16x19xf32>
    %cst_251 = arith.constant dense<0.000000e+00> : vector<16x27xf32>
    %296 = tpu.matmul %295, %273, %cst_251 {dimension_numbers = #tpu.dot_dimension_numbers<[1], [0], [0], [1], [0, 0, 1, 1], [], []>} : vector<16x19xf32>, vector<19x27xf32>, vector<16x27xf32> -> vector<16x27xf32>
    %297 = vector.extract_strided_slice %296 {offsets = [0, 0], sizes = [16, 9], strides = [1, 1]} : vector<16x27xf32> to vector<16x9xf32>
    %c0_252 = arith.constant 0 : index
    %c27 = arith.constant 27 : index
    %298 = vector.load %arg34[%c0_252, %c27] : memref<48x81xf32, #tpu.memory_space<vmem>>, vector<16x9xf32>
    tpu.vector_store %arg34[%c0_252, %c27], %297 {strides = array<i32>} : memref<48x81xf32, #tpu.memory_space<vmem>>, vector<16x9xf32>,
    %299 = vector.extract_strided_slice %296 {offsets = [0, 9], sizes = [16, 9], strides = [1, 1]} : vector<16x27xf32> to vector<16x9xf32>
    %c16_253 = arith.constant 16 : index
    %c27_254 = arith.constant 27 : index
    %300 = vector.load %arg34[%c16_253, %c27_254] : memref<48x81xf32, #tpu.memory_space<vmem>>, vector<16x9xf32>
    tpu.vector_store %arg34[%c16_253, %c27_254], %299 {strides = array<i32>} : memref<48x81xf32, #tpu.memory_space<vmem>>, vector<16x9xf32>,
    %301 = vector.extract_strided_slice %296 {offsets = [0, 18], sizes = [16, 9], strides = [1, 1]} : vector<16x27xf32> to vector<16x9xf32>
    %c32_255 = arith.constant 32 : index
    %c27_256 = arith.constant 27 : index
    %302 = vector.load %arg34[%c32_255, %c27_256] : memref<48x81xf32, #tpu.memory_space<vmem>>, vector<16x9xf32>
    tpu.vector_store %arg34[%c32_255, %c27_256], %301 {strides = array<i32>} : memref<48x81xf32, #tpu.memory_space<vmem>>, vector<16x9xf32>,
    %c0_257 = arith.constant 0 : index
    %c0_258 = arith.constant 0 : index
    %c57_259 = arith.constant 57 : index
    %303 = vector.load %arg29[%c0_257, %c0_258, %c57_259] : memref<1x16x152xf32, #tpu.memory_space<vmem>>, vector<1x16x19xf32>
    %304 = vector.shape_cast %303 : vector<1x16x19xf32> to vector<16x19xf32>
    %cst_260 = arith.constant dense<0.000000e+00> : vector<16x27xf32>
    %305 = tpu.matmul %304, %273, %cst_260 {dimension_numbers = #tpu.dot_dimension_numbers<[1], [0], [0], [1], [0, 0, 1, 1], [], []>} : vector<16x19xf32>, vector<19x27xf32>, vector<16x27xf32> -> vector<16x27xf32>
    %306 = vector.extract_strided_slice %305 {offsets = [0, 0], sizes = [16, 9], strides = [1, 1]} : vector<16x27xf32> to vector<16x9xf32>
    %c0_261 = arith.constant 0 : index
    %c36 = arith.constant 36 : index
    %307 = vector.load %arg34[%c0_261, %c36] : memref<48x81xf32, #tpu.memory_space<vmem>>, vector<16x9xf32>
    tpu.vector_store %arg34[%c0_261, %c36], %306 {strides = array<i32>} : memref<48x81xf32, #tpu.memory_space<vmem>>, vector<16x9xf32>,
    %308 = vector.extract_strided_slice %305 {offsets = [0, 9], sizes = [16, 9], strides = [1, 1]} : vector<16x27xf32> to vector<16x9xf32>
    %c16_262 = arith.constant 16 : index
    %c36_263 = arith.constant 36 : index
    %309 = vector.load %arg34[%c16_262, %c36_263] : memref<48x81xf32, #tpu.memory_space<vmem>>, vector<16x9xf32>
    tpu.vector_store %arg34[%c16_262, %c36_263], %308 {strides = array<i32>} : memref<48x81xf32, #tpu.memory_space<vmem>>, vector<16x9xf32>,
    %310 = vector.extract_strided_slice %305 {offsets = [0, 18], sizes = [16, 9], strides = [1, 1]} : vector<16x27xf32> to vector<16x9xf32>
    %c32_264 = arith.constant 32 : index
    %c36_265 = arith.constant 36 : index
    %311 = vector.load %arg34[%c32_264, %c36_265] : memref<48x81xf32, #tpu.memory_space<vmem>>, vector<16x9xf32>
    tpu.vector_store %arg34[%c32_264, %c36_265], %310 {strides = array<i32>} : memref<48x81xf32, #tpu.memory_space<vmem>>, vector<16x9xf32>,
    %c0_266 = arith.constant 0 : index
    %c0_267 = arith.constant 0 : index
    %c76_268 = arith.constant 76 : index
    %312 = vector.load %arg29[%c0_266, %c0_267, %c76_268] : memref<1x16x152xf32, #tpu.memory_space<vmem>>, vector<1x16x19xf32>
    %313 = vector.shape_cast %312 : vector<1x16x19xf32> to vector<16x19xf32>
    %cst_269 = arith.constant dense<0.000000e+00> : vector<16x27xf32>
    %314 = tpu.matmul %313, %273, %cst_269 {dimension_numbers = #tpu.dot_dimension_numbers<[1], [0], [0], [1], [0, 0, 1, 1], [], []>} : vector<16x19xf32>, vector<19x27xf32>, vector<16x27xf32> -> vector<16x27xf32>
    %315 = vector.extract_strided_slice %314 {offsets = [0, 0], sizes = [16, 9], strides = [1, 1]} : vector<16x27xf32> to vector<16x9xf32>
    %c0_270 = arith.constant 0 : index
    %c45 = arith.constant 45 : index
    %316 = vector.load %arg34[%c0_270, %c45] : memref<48x81xf32, #tpu.memory_space<vmem>>, vector<16x9xf32>
    tpu.vector_store %arg34[%c0_270, %c45], %315 {strides = array<i32>} : memref<48x81xf32, #tpu.memory_space<vmem>>, vector<16x9xf32>,
    %317 = vector.extract_strided_slice %314 {offsets = [0, 9], sizes = [16, 9], strides = [1, 1]} : vector<16x27xf32> to vector<16x9xf32>
    %c16_271 = arith.constant 16 : index
    %c45_272 = arith.constant 45 : index
    %318 = vector.load %arg34[%c16_271, %c45_272] : memref<48x81xf32, #tpu.memory_space<vmem>>, vector<16x9xf32>
    tpu.vector_store %arg34[%c16_271, %c45_272], %317 {strides = array<i32>} : memref<48x81xf32, #tpu.memory_space<vmem>>, vector<16x9xf32>,
    %319 = vector.extract_strided_slice %314 {offsets = [0, 18], sizes = [16, 9], strides = [1, 1]} : vector<16x27xf32> to vector<16x9xf32>
    %c32_273 = arith.constant 32 : index
    %c45_274 = arith.constant 45 : index
    %320 = vector.load %arg34[%c32_273, %c45_274] : memref<48x81xf32, #tpu.memory_space<vmem>>, vector<16x9xf32>
    tpu.vector_store %arg34[%c32_273, %c45_274], %319 {strides = array<i32>} : memref<48x81xf32, #tpu.memory_space<vmem>>, vector<16x9xf32>,
    %c0_275 = arith.constant 0 : index
    %c0_276 = arith.constant 0 : index
    %c95_277 = arith.constant 95 : index
    %321 = vector.load %arg29[%c0_275, %c0_276, %c95_277] : memref<1x16x152xf32, #tpu.memory_space<vmem>>, vector<1x16x19xf32>
    %322 = vector.shape_cast %321 : vector<1x16x19xf32> to vector<16x19xf32>
    %cst_278 = arith.constant dense<0.000000e+00> : vector<16x27xf32>
    %323 = tpu.matmul %322, %273, %cst_278 {dimension_numbers = #tpu.dot_dimension_numbers<[1], [0], [0], [1], [0, 0, 1, 1], [], []>} : vector<16x19xf32>, vector<19x27xf32>, vector<16x27xf32> -> vector<16x27xf32>
    %324 = vector.extract_strided_slice %323 {offsets = [0, 0], sizes = [16, 9], strides = [1, 1]} : vector<16x27xf32> to vector<16x9xf32>
    %c0_279 = arith.constant 0 : index
    %c54 = arith.constant 54 : index
    %325 = vector.load %arg34[%c0_279, %c54] : memref<48x81xf32, #tpu.memory_space<vmem>>, vector<16x9xf32>
    tpu.vector_store %arg34[%c0_279, %c54], %324 {strides = array<i32>} : memref<48x81xf32, #tpu.memory_space<vmem>>, vector<16x9xf32>,
    %326 = vector.extract_strided_slice %323 {offsets = [0, 9], sizes = [16, 9], strides = [1, 1]} : vector<16x27xf32> to vector<16x9xf32>
    %c16_280 = arith.constant 16 : index
    %c54_281 = arith.constant 54 : index
    %327 = vector.load %arg34[%c16_280, %c54_281] : memref<48x81xf32, #tpu.memory_space<vmem>>, vector<16x9xf32>
    tpu.vector_store %arg34[%c16_280, %c54_281], %326 {strides = array<i32>} : memref<48x81xf32, #tpu.memory_space<vmem>>, vector<16x9xf32>,
    %328 = vector.extract_strided_slice %323 {offsets = [0, 18], sizes = [16, 9], strides = [1, 1]} : vector<16x27xf32> to vector<16x9xf32>
    %c32_282 = arith.constant 32 : index
    %c54_283 = arith.constant 54 : index
    %329 = vector.load %arg34[%c32_282, %c54_283] : memref<48x81xf32, #tpu.memory_space<vmem>>, vector<16x9xf32>
    tpu.vector_store %arg34[%c32_282, %c54_283], %328 {strides = array<i32>} : memref<48x81xf32, #tpu.memory_space<vmem>>, vector<16x9xf32>,
    %c0_284 = arith.constant 0 : index
    %c0_285 = arith.constant 0 : index
    %c114_286 = arith.constant 114 : index
    %330 = vector.load %arg29[%c0_284, %c0_285, %c114_286] : memref<1x16x152xf32, #tpu.memory_space<vmem>>, vector<1x16x19xf32>
    %331 = vector.shape_cast %330 : vector<1x16x19xf32> to vector<16x19xf32>
    %cst_287 = arith.constant dense<0.000000e+00> : vector<16x27xf32>
    %332 = tpu.matmul %331, %273, %cst_287 {dimension_numbers = #tpu.dot_dimension_numbers<[1], [0], [0], [1], [0, 0, 1, 1], [], []>} : vector<16x19xf32>, vector<19x27xf32>, vector<16x27xf32> -> vector<16x27xf32>
    %333 = vector.extract_strided_slice %332 {offsets = [0, 0], sizes = [16, 9], strides = [1, 1]} : vector<16x27xf32> to vector<16x9xf32>
    %c0_288 = arith.constant 0 : index
    %c63 = arith.constant 63 : index
    %334 = vector.load %arg34[%c0_288, %c63] : memref<48x81xf32, #tpu.memory_space<vmem>>, vector<16x9xf32>
    tpu.vector_store %arg34[%c0_288, %c63], %333 {strides = array<i32>} : memref<48x81xf32, #tpu.memory_space<vmem>>, vector<16x9xf32>,
    %335 = vector.extract_strided_slice %332 {offsets = [0, 9], sizes = [16, 9], strides = [1, 1]} : vector<16x27xf32> to vector<16x9xf32>
    %c16_289 = arith.constant 16 : index
    %c63_290 = arith.constant 63 : index
    %336 = vector.load %arg34[%c16_289, %c63_290] : memref<48x81xf32, #tpu.memory_space<vmem>>, vector<16x9xf32>
    tpu.vector_store %arg34[%c16_289, %c63_290], %335 {strides = array<i32>} : memref<48x81xf32, #tpu.memory_space<vmem>>, vector<16x9xf32>,
    %337 = vector.extract_strided_slice %332 {offsets = [0, 18], sizes = [16, 9], strides = [1, 1]} : vector<16x27xf32> to vector<16x9xf32>
    %c32_291 = arith.constant 32 : index
    %c63_292 = arith.constant 63 : index
    %338 = vector.load %arg34[%c32_291, %c63_292] : memref<48x81xf32, #tpu.memory_space<vmem>>, vector<16x9xf32>
    tpu.vector_store %arg34[%c32_291, %c63_292], %337 {strides = array<i32>} : memref<48x81xf32, #tpu.memory_space<vmem>>, vector<16x9xf32>,
    %c0_293 = arith.constant 0 : index
    %c0_294 = arith.constant 0 : index
    %c133_295 = arith.constant 133 : index
    %339 = vector.load %arg29[%c0_293, %c0_294, %c133_295] : memref<1x16x152xf32, #tpu.memory_space<vmem>>, vector<1x16x19xf32>
    %340 = vector.shape_cast %339 : vector<1x16x19xf32> to vector<16x19xf32>
    %cst_296 = arith.constant dense<0.000000e+00> : vector<16x27xf32>
    %341 = tpu.matmul %340, %273, %cst_296 {dimension_numbers = #tpu.dot_dimension_numbers<[1], [0], [0], [1], [0, 0, 1, 1], [], []>} : vector<16x19xf32>, vector<19x27xf32>, vector<16x27xf32> -> vector<16x27xf32>
    %342 = vector.extract_strided_slice %341 {offsets = [0, 0], sizes = [16, 9], strides = [1, 1]} : vector<16x27xf32> to vector<16x9xf32>
    %c0_297 = arith.constant 0 : index
    %c72 = arith.constant 72 : index
    %343 = vector.load %arg34[%c0_297, %c72] : memref<48x81xf32, #tpu.memory_space<vmem>>, vector<16x9xf32>
    tpu.vector_store %arg34[%c0_297, %c72], %342 {strides = array<i32>} : memref<48x81xf32, #tpu.memory_space<vmem>>, vector<16x9xf32>,
    %344 = vector.extract_strided_slice %341 {offsets = [0, 9], sizes = [16, 9], strides = [1, 1]} : vector<16x27xf32> to vector<16x9xf32>
    %c16_298 = arith.constant 16 : index
    %c72_299 = arith.constant 72 : index
    %345 = vector.load %arg34[%c16_298, %c72_299] : memref<48x81xf32, #tpu.memory_space<vmem>>, vector<16x9xf32>
    tpu.vector_store %arg34[%c16_298, %c72_299], %344 {strides = array<i32>} : memref<48x81xf32, #tpu.memory_space<vmem>>, vector<16x9xf32>,
    %346 = vector.extract_strided_slice %341 {offsets = [0, 18], sizes = [16, 9], strides = [1, 1]} : vector<16x27xf32> to vector<16x9xf32>
    %c32_300 = arith.constant 32 : index
    %c72_301 = arith.constant 72 : index
    %347 = vector.load %arg34[%c32_300, %c72_301] : memref<48x81xf32, #tpu.memory_space<vmem>>, vector<16x9xf32>
    tpu.vector_store %arg34[%c32_300, %c72_301], %346 {strides = array<i32>} : memref<48x81xf32, #tpu.memory_space<vmem>>, vector<16x9xf32>,
    %cst_302 = arith.constant 0.000000e+00 : f32
    %348 = vector.broadcast %cst_302 : f32 to vector<32x72xf32>
    %c0_303 = arith.constant 0 : index
    %c0_304 = arith.constant 0 : index
    %c0_305 = arith.constant 0 : index
    %349 = vector.load %arg5[%c0_303, %c0_304, %c0_305] : memref<2x32x48xf32, #tpu.memory_space<vmem>>, vector<1x32x48xf32>
    %350 = vector.shape_cast %349 : vector<1x32x48xf32> to vector<32x48xf32>
    %c0_306 = arith.constant 0 : index
    %c0_307 = arith.constant 0 : index
    %351 = vector.load %arg34[%c0_306, %c0_307] : memref<48x81xf32, #tpu.memory_space<vmem>>, vector<48x72xf32>
    %cst_308 = arith.constant dense<0.000000e+00> : vector<32x72xf32>
    %352 = tpu.matmul %350, %351, %cst_308 {dimension_numbers = #tpu.dot_dimension_numbers<[1], [0], [0], [1], [0, 0, 1, 1], [], []>} : vector<32x48xf32>, vector<48x72xf32>, vector<32x72xf32> -> vector<32x72xf32>
    %353 = arith.addf %348, %352 : vector<32x72xf32>
    %c1_309 = arith.constant 1 : index
    %c0_310 = arith.constant 0 : index
    %c0_311 = arith.constant 0 : index
    %354 = vector.load %arg5[%c1_309, %c0_310, %c0_311] : memref<2x32x48xf32, #tpu.memory_space<vmem>>, vector<1x32x48xf32>
    %355 = vector.shape_cast %354 : vector<1x32x48xf32> to vector<32x48xf32>
    %c0_312 = arith.constant 0 : index
    %c9_313 = arith.constant 9 : index
    %356 = vector.load %arg34[%c0_312, %c9_313] : memref<48x81xf32, #tpu.memory_space<vmem>>, vector<48x72xf32>
    %cst_314 = arith.constant dense<0.000000e+00> : vector<32x72xf32>
    %357 = tpu.matmul %355, %356, %cst_314 {dimension_numbers = #tpu.dot_dimension_numbers<[1], [0], [0], [1], [0, 0, 1, 1], [], []>} : vector<32x48xf32>, vector<48x72xf32>, vector<32x72xf32> -> vector<32x72xf32>
    %358 = arith.addf %353, %357 : vector<32x72xf32>
    %c0_315 = arith.constant 0 : index
    %c0_316 = arith.constant 0 : index
    %359 = vector.load %arg10[%c0_315, %c0_316] : memref<32x1xf32, #tpu.memory_space<vmem>>, vector<32x1xf32>
    %360 = vector.broadcast %359 : vector<32x1xf32> to vector<32x72xf32>
    %361 = arith.addf %358, %360 : vector<32x72xf32>
    %362 = vector.extract_strided_slice %361 {offsets = [0, 0], sizes = [16, 72], strides = [1, 1]} : vector<32x72xf32> to vector<16x72xf32>
    %363 = vector.extract_strided_slice %361 {offsets = [16, 0], sizes = [16, 72], strides = [1, 1]} : vector<32x72xf32> to vector<16x72xf32>
    %cst_317 = arith.constant 0.000000e+00 : f32
    %364 = vector.broadcast %cst_317 : f32 to vector<16x72xf32>
    %365 = arith.subf %364, %363 : vector<16x72xf32>
    %366 = math.exp %365 : vector<16x72xf32>
    %cst_318 = arith.constant 1.000000e+00 : f32
    %367 = vector.broadcast %cst_318 : f32 to vector<16x72xf32>
    %368 = arith.addf %367, %366 : vector<16x72xf32>
    %cst_319 = arith.constant 1.000000e+00 : f32
    %369 = vector.broadcast %cst_319 : f32 to vector<16x72xf32>
    %370 = arith.divf %369, %368 : vector<16x72xf32>
    %371 = arith.mulf %362, %370 : vector<16x72xf32>
    %c0_320 = arith.constant 0 : index
    %c0_321 = arith.constant 0 : index
    %372 = vector.load %arg19[%c0_320, %c0_321] : memref<16x1xf32, #tpu.memory_space<vmem>>, vector<16x1xf32>
    %c0_322 = arith.constant 0 : index
    %c0_323 = arith.constant 0 : index
    %373 = vector.load %arg20[%c0_322, %c0_323] : memref<16x1xf32, #tpu.memory_space<vmem>>, vector<16x1xf32>
    %cst_324 = arith.constant dense<0.000000e+00> : vector<16xf32>
    %374 = vector.multi_reduction <add>, %371, %cst_324 [1] : vector<16x72xf32> to vector<16xf32>
    %375 = vector.shape_cast %374 : vector<16xf32> to vector<16x1xf32>
    %cst_325 = arith.constant 7.200000e+01 : f32
    %376 = vector.broadcast %cst_325 : f32 to vector<16x1xf32>
    %377 = arith.divf %375, %376 : vector<16x1xf32>
    %378 = vector.broadcast %377 : vector<16x1xf32> to vector<16x72xf32>
    %379 = arith.subf %371, %378 : vector<16x72xf32>
    %380 = arith.mulf %379, %379 : vector<16x72xf32>
    %cst_326 = arith.constant dense<0.000000e+00> : vector<16xf32>
    %381 = vector.multi_reduction <add>, %380, %cst_326 [1] : vector<16x72xf32> to vector<16xf32>
    %382 = vector.shape_cast %381 : vector<16xf32> to vector<16x1xf32>
    %cst_327 = arith.constant 7.200000e+01 : f32
    %383 = vector.broadcast %cst_327 : f32 to vector<16x1xf32>
    %384 = arith.divf %382, %383 : vector<16x1xf32>
    %cst_328 = arith.constant 9.99999974E-6 : f32
    %385 = vector.broadcast %cst_328 : f32 to vector<16x1xf32>
    %386 = arith.addf %384, %385 : vector<16x1xf32>
    %387 = math.rsqrt %386 : vector<16x1xf32>
    %388 = vector.broadcast %387 : vector<16x1xf32> to vector<16x72xf32>
    %389 = arith.mulf %379, %388 : vector<16x72xf32>
    %390 = vector.broadcast %372 : vector<16x1xf32> to vector<16x72xf32>
    %391 = arith.mulf %389, %390 : vector<16x72xf32>
    %392 = vector.broadcast %373 : vector<16x1xf32> to vector<16x72xf32>
    %393 = arith.addf %391, %392 : vector<16x72xf32>
    %c0_329 = arith.constant 0 : index
    %c0_330 = arith.constant 0 : index
    %394 = vector.load %arg15[%c0_329, %c0_330] : memref<16x1xf32, #tpu.memory_space<vmem>>, vector<16x1xf32>
    %cst_331 = arith.constant 0.000000e+00 : f32
    %395 = vector.broadcast %cst_331 : f32 to vector<16x72xf32>
    %396 = arith.cmpf oge, %393, %395 : vector<16x72xf32>
    %397 = vector.broadcast %394 : vector<16x1xf32> to vector<16x72xf32>
    %398 = arith.mulf %397, %393 : vector<16x72xf32>
    %399 = arith.select %396, %393, %398 : vector<16x72xi1>, vector<16x72xf32>
    %c0_332 = arith.constant 0 : index
    %c0_333 = arith.constant 0 : index
    %c0_334 = arith.constant 0 : index
    %400 = vector.load %arg30[%c0_332, %c0_333, %c0_334] : memref<1x16x72xf32, #tpu.memory_space<vmem>>, vector<1x16x72xf32>
    %401 = vector.shape_cast %400 : vector<1x16x72xf32> to vector<16x72xf32>
    %402 = vector.shape_cast %399 : vector<16x72xf32> to vector<1x16x72xf32>
    tpu.vector_store %arg30[%c0_332, %c0_333, %c0_334], %402 {strides = array<i32>} : memref<1x16x72xf32, #tpu.memory_space<vmem>>, vector<1x16x72xf32>,
    %c0_335 = arith.constant 0 : index
    %c0_336 = arith.constant 0 : index
    %403 = vector.load %arg26[%c0_335, %c0_336] : memref<9x12xf32, #tpu.memory_space<vmem>>, vector<9x12xf32>
    %cst_337 = arith.constant 0.000000e+00 : f32
    %404 = vector.broadcast %cst_337 : f32 to vector<48x4xf32>
    %c0_338 = arith.constant 0 : index
    %c0_339 = arith.constant 0 : index
    %405 = vector.load %arg35[%c0_338, %c0_339] : memref<48x36xf32, #tpu.memory_space<vmem>>, vector<48x4xf32>
    tpu.vector_store %arg35[%c0_338, %c0_339], %404 {strides = array<i32>} : memref<48x36xf32, #tpu.memory_space<vmem>>, vector<48x4xf32>,
    %c0_340 = arith.constant 0 : index
    %c0_341 = arith.constant 0 : index
    %c0_342 = arith.constant 0 : index
    %406 = vector.load %arg30[%c0_340, %c0_341, %c0_342] : memref<1x16x72xf32, #tpu.memory_space<vmem>>, vector<1x16x9xf32>
    %407 = vector.shape_cast %406 : vector<1x16x9xf32> to vector<16x9xf32>
    %cst_343 = arith.constant dense<0.000000e+00> : vector<16x12xf32>
    %408 = tpu.matmul %407, %403, %cst_343 {dimension_numbers = #tpu.dot_dimension_numbers<[1], [0], [0], [1], [0, 0, 1, 1], [], []>} : vector<16x9xf32>, vector<9x12xf32>, vector<16x12xf32> -> vector<16x12xf32>
    %409 = vector.extract_strided_slice %408 {offsets = [0, 0], sizes = [16, 4], strides = [1, 1]} : vector<16x12xf32> to vector<16x4xf32>
    %c0_344 = arith.constant 0 : index
    %c4 = arith.constant 4 : index
    %410 = vector.load %arg35[%c0_344, %c4] : memref<48x36xf32, #tpu.memory_space<vmem>>, vector<16x4xf32>
    tpu.vector_store %arg35[%c0_344, %c4], %409 {strides = array<i32>} : memref<48x36xf32, #tpu.memory_space<vmem>>, vector<16x4xf32>,
    %411 = vector.extract_strided_slice %408 {offsets = [0, 4], sizes = [16, 4], strides = [1, 1]} : vector<16x12xf32> to vector<16x4xf32>
    %c16_345 = arith.constant 16 : index
    %c4_346 = arith.constant 4 : index
    %412 = vector.load %arg35[%c16_345, %c4_346] : memref<48x36xf32, #tpu.memory_space<vmem>>, vector<16x4xf32>
    tpu.vector_store %arg35[%c16_345, %c4_346], %411 {strides = array<i32>} : memref<48x36xf32, #tpu.memory_space<vmem>>, vector<16x4xf32>,
    %413 = vector.extract_strided_slice %408 {offsets = [0, 8], sizes = [16, 4], strides = [1, 1]} : vector<16x12xf32> to vector<16x4xf32>
    %c32_347 = arith.constant 32 : index
    %c4_348 = arith.constant 4 : index
    %414 = vector.load %arg35[%c32_347, %c4_348] : memref<48x36xf32, #tpu.memory_space<vmem>>, vector<16x4xf32>
    tpu.vector_store %arg35[%c32_347, %c4_348], %413 {strides = array<i32>} : memref<48x36xf32, #tpu.memory_space<vmem>>, vector<16x4xf32>,
    %c0_349 = arith.constant 0 : index
    %c0_350 = arith.constant 0 : index
    %c9_351 = arith.constant 9 : index
    %415 = vector.load %arg30[%c0_349, %c0_350, %c9_351] : memref<1x16x72xf32, #tpu.memory_space<vmem>>, vector<1x16x9xf32>
    %416 = vector.shape_cast %415 : vector<1x16x9xf32> to vector<16x9xf32>
    %cst_352 = arith.constant dense<0.000000e+00> : vector<16x12xf32>
    %417 = tpu.matmul %416, %403, %cst_352 {dimension_numbers = #tpu.dot_dimension_numbers<[1], [0], [0], [1], [0, 0, 1, 1], [], []>} : vector<16x9xf32>, vector<9x12xf32>, vector<16x12xf32> -> vector<16x12xf32>
    %418 = vector.extract_strided_slice %417 {offsets = [0, 0], sizes = [16, 4], strides = [1, 1]} : vector<16x12xf32> to vector<16x4xf32>
    %c0_353 = arith.constant 0 : index
    %c8 = arith.constant 8 : index
    %419 = vector.load %arg35[%c0_353, %c8] : memref<48x36xf32, #tpu.memory_space<vmem>>, vector<16x4xf32>
    tpu.vector_store %arg35[%c0_353, %c8], %418 {strides = array<i32>} : memref<48x36xf32, #tpu.memory_space<vmem>>, vector<16x4xf32>,
    %420 = vector.extract_strided_slice %417 {offsets = [0, 4], sizes = [16, 4], strides = [1, 1]} : vector<16x12xf32> to vector<16x4xf32>
    %c16_354 = arith.constant 16 : index
    %c8_355 = arith.constant 8 : index
    %421 = vector.load %arg35[%c16_354, %c8_355] : memref<48x36xf32, #tpu.memory_space<vmem>>, vector<16x4xf32>
    tpu.vector_store %arg35[%c16_354, %c8_355], %420 {strides = array<i32>} : memref<48x36xf32, #tpu.memory_space<vmem>>, vector<16x4xf32>,
    %422 = vector.extract_strided_slice %417 {offsets = [0, 8], sizes = [16, 4], strides = [1, 1]} : vector<16x12xf32> to vector<16x4xf32>
    %c32_356 = arith.constant 32 : index
    %c8_357 = arith.constant 8 : index
    %423 = vector.load %arg35[%c32_356, %c8_357] : memref<48x36xf32, #tpu.memory_space<vmem>>, vector<16x4xf32>
    tpu.vector_store %arg35[%c32_356, %c8_357], %422 {strides = array<i32>} : memref<48x36xf32, #tpu.memory_space<vmem>>, vector<16x4xf32>,
    %c0_358 = arith.constant 0 : index
    %c0_359 = arith.constant 0 : index
    %c18_360 = arith.constant 18 : index
    %424 = vector.load %arg30[%c0_358, %c0_359, %c18_360] : memref<1x16x72xf32, #tpu.memory_space<vmem>>, vector<1x16x9xf32>
    %425 = vector.shape_cast %424 : vector<1x16x9xf32> to vector<16x9xf32>
    %cst_361 = arith.constant dense<0.000000e+00> : vector<16x12xf32>
    %426 = tpu.matmul %425, %403, %cst_361 {dimension_numbers = #tpu.dot_dimension_numbers<[1], [0], [0], [1], [0, 0, 1, 1], [], []>} : vector<16x9xf32>, vector<9x12xf32>, vector<16x12xf32> -> vector<16x12xf32>
    %427 = vector.extract_strided_slice %426 {offsets = [0, 0], sizes = [16, 4], strides = [1, 1]} : vector<16x12xf32> to vector<16x4xf32>
    %c0_362 = arith.constant 0 : index
    %c12 = arith.constant 12 : index
    %428 = vector.load %arg35[%c0_362, %c12] : memref<48x36xf32, #tpu.memory_space<vmem>>, vector<16x4xf32>
    tpu.vector_store %arg35[%c0_362, %c12], %427 {strides = array<i32>} : memref<48x36xf32, #tpu.memory_space<vmem>>, vector<16x4xf32>,
    %429 = vector.extract_strided_slice %426 {offsets = [0, 4], sizes = [16, 4], strides = [1, 1]} : vector<16x12xf32> to vector<16x4xf32>
    %c16_363 = arith.constant 16 : index
    %c12_364 = arith.constant 12 : index
    %430 = vector.load %arg35[%c16_363, %c12_364] : memref<48x36xf32, #tpu.memory_space<vmem>>, vector<16x4xf32>
    tpu.vector_store %arg35[%c16_363, %c12_364], %429 {strides = array<i32>} : memref<48x36xf32, #tpu.memory_space<vmem>>, vector<16x4xf32>,
    %431 = vector.extract_strided_slice %426 {offsets = [0, 8], sizes = [16, 4], strides = [1, 1]} : vector<16x12xf32> to vector<16x4xf32>
    %c32_365 = arith.constant 32 : index
    %c12_366 = arith.constant 12 : index
    %432 = vector.load %arg35[%c32_365, %c12_366] : memref<48x36xf32, #tpu.memory_space<vmem>>, vector<16x4xf32>
    tpu.vector_store %arg35[%c32_365, %c12_366], %431 {strides = array<i32>} : memref<48x36xf32, #tpu.memory_space<vmem>>, vector<16x4xf32>,
    %c0_367 = arith.constant 0 : index
    %c0_368 = arith.constant 0 : index
    %c27_369 = arith.constant 27 : index
    %433 = vector.load %arg30[%c0_367, %c0_368, %c27_369] : memref<1x16x72xf32, #tpu.memory_space<vmem>>, vector<1x16x9xf32>
    %434 = vector.shape_cast %433 : vector<1x16x9xf32> to vector<16x9xf32>
    %cst_370 = arith.constant dense<0.000000e+00> : vector<16x12xf32>
    %435 = tpu.matmul %434, %403, %cst_370 {dimension_numbers = #tpu.dot_dimension_numbers<[1], [0], [0], [1], [0, 0, 1, 1], [], []>} : vector<16x9xf32>, vector<9x12xf32>, vector<16x12xf32> -> vector<16x12xf32>
    %436 = vector.extract_strided_slice %435 {offsets = [0, 0], sizes = [16, 4], strides = [1, 1]} : vector<16x12xf32> to vector<16x4xf32>
    %c0_371 = arith.constant 0 : index
    %c16_372 = arith.constant 16 : index
    %437 = vector.load %arg35[%c0_371, %c16_372] : memref<48x36xf32, #tpu.memory_space<vmem>>, vector<16x4xf32>
    tpu.vector_store %arg35[%c0_371, %c16_372], %436 {strides = array<i32>} : memref<48x36xf32, #tpu.memory_space<vmem>>, vector<16x4xf32>,
    %438 = vector.extract_strided_slice %435 {offsets = [0, 4], sizes = [16, 4], strides = [1, 1]} : vector<16x12xf32> to vector<16x4xf32>
    %c16_373 = arith.constant 16 : index
    %c16_374 = arith.constant 16 : index
    %439 = vector.load %arg35[%c16_373, %c16_374] : memref<48x36xf32, #tpu.memory_space<vmem>>, vector<16x4xf32>
    tpu.vector_store %arg35[%c16_373, %c16_374], %438 {strides = array<i32>} : memref<48x36xf32, #tpu.memory_space<vmem>>, vector<16x4xf32>,
    %440 = vector.extract_strided_slice %435 {offsets = [0, 8], sizes = [16, 4], strides = [1, 1]} : vector<16x12xf32> to vector<16x4xf32>
    %c32_375 = arith.constant 32 : index
    %c16_376 = arith.constant 16 : index
    %441 = vector.load %arg35[%c32_375, %c16_376] : memref<48x36xf32, #tpu.memory_space<vmem>>, vector<16x4xf32>
    tpu.vector_store %arg35[%c32_375, %c16_376], %440 {strides = array<i32>} : memref<48x36xf32, #tpu.memory_space<vmem>>, vector<16x4xf32>,
    %c0_377 = arith.constant 0 : index
    %c0_378 = arith.constant 0 : index
    %c36_379 = arith.constant 36 : index
    %442 = vector.load %arg30[%c0_377, %c0_378, %c36_379] : memref<1x16x72xf32, #tpu.memory_space<vmem>>, vector<1x16x9xf32>
    %443 = vector.shape_cast %442 : vector<1x16x9xf32> to vector<16x9xf32>
    %cst_380 = arith.constant dense<0.000000e+00> : vector<16x12xf32>
    %444 = tpu.matmul %443, %403, %cst_380 {dimension_numbers = #tpu.dot_dimension_numbers<[1], [0], [0], [1], [0, 0, 1, 1], [], []>} : vector<16x9xf32>, vector<9x12xf32>, vector<16x12xf32> -> vector<16x12xf32>
    %445 = vector.extract_strided_slice %444 {offsets = [0, 0], sizes = [16, 4], strides = [1, 1]} : vector<16x12xf32> to vector<16x4xf32>
    %c0_381 = arith.constant 0 : index
    %c20 = arith.constant 20 : index
    %446 = vector.load %arg35[%c0_381, %c20] : memref<48x36xf32, #tpu.memory_space<vmem>>, vector<16x4xf32>
    tpu.vector_store %arg35[%c0_381, %c20], %445 {strides = array<i32>} : memref<48x36xf32, #tpu.memory_space<vmem>>, vector<16x4xf32>,
    %447 = vector.extract_strided_slice %444 {offsets = [0, 4], sizes = [16, 4], strides = [1, 1]} : vector<16x12xf32> to vector<16x4xf32>
    %c16_382 = arith.constant 16 : index
    %c20_383 = arith.constant 20 : index
    %448 = vector.load %arg35[%c16_382, %c20_383] : memref<48x36xf32, #tpu.memory_space<vmem>>, vector<16x4xf32>
    tpu.vector_store %arg35[%c16_382, %c20_383], %447 {strides = array<i32>} : memref<48x36xf32, #tpu.memory_space<vmem>>, vector<16x4xf32>,
    %449 = vector.extract_strided_slice %444 {offsets = [0, 8], sizes = [16, 4], strides = [1, 1]} : vector<16x12xf32> to vector<16x4xf32>
    %c32_384 = arith.constant 32 : index
    %c20_385 = arith.constant 20 : index
    %450 = vector.load %arg35[%c32_384, %c20_385] : memref<48x36xf32, #tpu.memory_space<vmem>>, vector<16x4xf32>
    tpu.vector_store %arg35[%c32_384, %c20_385], %449 {strides = array<i32>} : memref<48x36xf32, #tpu.memory_space<vmem>>, vector<16x4xf32>,
    %c0_386 = arith.constant 0 : index
    %c0_387 = arith.constant 0 : index
    %c45_388 = arith.constant 45 : index
    %451 = vector.load %arg30[%c0_386, %c0_387, %c45_388] : memref<1x16x72xf32, #tpu.memory_space<vmem>>, vector<1x16x9xf32>
    %452 = vector.shape_cast %451 : vector<1x16x9xf32> to vector<16x9xf32>
    %cst_389 = arith.constant dense<0.000000e+00> : vector<16x12xf32>
    %453 = tpu.matmul %452, %403, %cst_389 {dimension_numbers = #tpu.dot_dimension_numbers<[1], [0], [0], [1], [0, 0, 1, 1], [], []>} : vector<16x9xf32>, vector<9x12xf32>, vector<16x12xf32> -> vector<16x12xf32>
    %454 = vector.extract_strided_slice %453 {offsets = [0, 0], sizes = [16, 4], strides = [1, 1]} : vector<16x12xf32> to vector<16x4xf32>
    %c0_390 = arith.constant 0 : index
    %c24 = arith.constant 24 : index
    %455 = vector.load %arg35[%c0_390, %c24] : memref<48x36xf32, #tpu.memory_space<vmem>>, vector<16x4xf32>
    tpu.vector_store %arg35[%c0_390, %c24], %454 {strides = array<i32>} : memref<48x36xf32, #tpu.memory_space<vmem>>, vector<16x4xf32>,
    %456 = vector.extract_strided_slice %453 {offsets = [0, 4], sizes = [16, 4], strides = [1, 1]} : vector<16x12xf32> to vector<16x4xf32>
    %c16_391 = arith.constant 16 : index
    %c24_392 = arith.constant 24 : index
    %457 = vector.load %arg35[%c16_391, %c24_392] : memref<48x36xf32, #tpu.memory_space<vmem>>, vector<16x4xf32>
    tpu.vector_store %arg35[%c16_391, %c24_392], %456 {strides = array<i32>} : memref<48x36xf32, #tpu.memory_space<vmem>>, vector<16x4xf32>,
    %458 = vector.extract_strided_slice %453 {offsets = [0, 8], sizes = [16, 4], strides = [1, 1]} : vector<16x12xf32> to vector<16x4xf32>
    %c32_393 = arith.constant 32 : index
    %c24_394 = arith.constant 24 : index
    %459 = vector.load %arg35[%c32_393, %c24_394] : memref<48x36xf32, #tpu.memory_space<vmem>>, vector<16x4xf32>
    tpu.vector_store %arg35[%c32_393, %c24_394], %458 {strides = array<i32>} : memref<48x36xf32, #tpu.memory_space<vmem>>, vector<16x4xf32>,
    %c0_395 = arith.constant 0 : index
    %c0_396 = arith.constant 0 : index
    %c54_397 = arith.constant 54 : index
    %460 = vector.load %arg30[%c0_395, %c0_396, %c54_397] : memref<1x16x72xf32, #tpu.memory_space<vmem>>, vector<1x16x9xf32>
    %461 = vector.shape_cast %460 : vector<1x16x9xf32> to vector<16x9xf32>
    %cst_398 = arith.constant dense<0.000000e+00> : vector<16x12xf32>
    %462 = tpu.matmul %461, %403, %cst_398 {dimension_numbers = #tpu.dot_dimension_numbers<[1], [0], [0], [1], [0, 0, 1, 1], [], []>} : vector<16x9xf32>, vector<9x12xf32>, vector<16x12xf32> -> vector<16x12xf32>
    %463 = vector.extract_strided_slice %462 {offsets = [0, 0], sizes = [16, 4], strides = [1, 1]} : vector<16x12xf32> to vector<16x4xf32>
    %c0_399 = arith.constant 0 : index
    %c28 = arith.constant 28 : index
    %464 = vector.load %arg35[%c0_399, %c28] : memref<48x36xf32, #tpu.memory_space<vmem>>, vector<16x4xf32>
    tpu.vector_store %arg35[%c0_399, %c28], %463 {strides = array<i32>} : memref<48x36xf32, #tpu.memory_space<vmem>>, vector<16x4xf32>,
    %465 = vector.extract_strided_slice %462 {offsets = [0, 4], sizes = [16, 4], strides = [1, 1]} : vector<16x12xf32> to vector<16x4xf32>
    %c16_400 = arith.constant 16 : index
    %c28_401 = arith.constant 28 : index
    %466 = vector.load %arg35[%c16_400, %c28_401] : memref<48x36xf32, #tpu.memory_space<vmem>>, vector<16x4xf32>
    tpu.vector_store %arg35[%c16_400, %c28_401], %465 {strides = array<i32>} : memref<48x36xf32, #tpu.memory_space<vmem>>, vector<16x4xf32>,
    %467 = vector.extract_strided_slice %462 {offsets = [0, 8], sizes = [16, 4], strides = [1, 1]} : vector<16x12xf32> to vector<16x4xf32>
    %c32_402 = arith.constant 32 : index
    %c28_403 = arith.constant 28 : index
    %468 = vector.load %arg35[%c32_402, %c28_403] : memref<48x36xf32, #tpu.memory_space<vmem>>, vector<16x4xf32>
    tpu.vector_store %arg35[%c32_402, %c28_403], %467 {strides = array<i32>} : memref<48x36xf32, #tpu.memory_space<vmem>>, vector<16x4xf32>,
    %c0_404 = arith.constant 0 : index
    %c0_405 = arith.constant 0 : index
    %c63_406 = arith.constant 63 : index
    %469 = vector.load %arg30[%c0_404, %c0_405, %c63_406] : memref<1x16x72xf32, #tpu.memory_space<vmem>>, vector<1x16x9xf32>
    %470 = vector.shape_cast %469 : vector<1x16x9xf32> to vector<16x9xf32>
    %cst_407 = arith.constant dense<0.000000e+00> : vector<16x12xf32>
    %471 = tpu.matmul %470, %403, %cst_407 {dimension_numbers = #tpu.dot_dimension_numbers<[1], [0], [0], [1], [0, 0, 1, 1], [], []>} : vector<16x9xf32>, vector<9x12xf32>, vector<16x12xf32> -> vector<16x12xf32>
    %472 = vector.extract_strided_slice %471 {offsets = [0, 0], sizes = [16, 4], strides = [1, 1]} : vector<16x12xf32> to vector<16x4xf32>
    %c0_408 = arith.constant 0 : index
    %c32_409 = arith.constant 32 : index
    %473 = vector.load %arg35[%c0_408, %c32_409] : memref<48x36xf32, #tpu.memory_space<vmem>>, vector<16x4xf32>
    tpu.vector_store %arg35[%c0_408, %c32_409], %472 {strides = array<i32>} : memref<48x36xf32, #tpu.memory_space<vmem>>, vector<16x4xf32>,
    %474 = vector.extract_strided_slice %471 {offsets = [0, 4], sizes = [16, 4], strides = [1, 1]} : vector<16x12xf32> to vector<16x4xf32>
    %c16_410 = arith.constant 16 : index
    %c32_411 = arith.constant 32 : index
    %475 = vector.load %arg35[%c16_410, %c32_411] : memref<48x36xf32, #tpu.memory_space<vmem>>, vector<16x4xf32>
    tpu.vector_store %arg35[%c16_410, %c32_411], %474 {strides = array<i32>} : memref<48x36xf32, #tpu.memory_space<vmem>>, vector<16x4xf32>,
    %476 = vector.extract_strided_slice %471 {offsets = [0, 8], sizes = [16, 4], strides = [1, 1]} : vector<16x12xf32> to vector<16x4xf32>
    %c32_412 = arith.constant 32 : index
    %c32_413 = arith.constant 32 : index
    %477 = vector.load %arg35[%c32_412, %c32_413] : memref<48x36xf32, #tpu.memory_space<vmem>>, vector<16x4xf32>
    tpu.vector_store %arg35[%c32_412, %c32_413], %476 {strides = array<i32>} : memref<48x36xf32, #tpu.memory_space<vmem>>, vector<16x4xf32>,
    %cst_414 = arith.constant 0.000000e+00 : f32
    %478 = vector.broadcast %cst_414 : f32 to vector<128x32xf32>
    %c0_415 = arith.constant 0 : index
    %c0_416 = arith.constant 0 : index
    %c0_417 = arith.constant 0 : index
    %479 = vector.load %arg6[%c0_415, %c0_416, %c0_417] : memref<2x128x48xf32, #tpu.memory_space<vmem>>, vector<1x128x48xf32>
    %480 = vector.shape_cast %479 : vector<1x128x48xf32> to vector<128x48xf32>
    %c0_418 = arith.constant 0 : index
    %c0_419 = arith.constant 0 : index
    %481 = vector.load %arg35[%c0_418, %c0_419] : memref<48x36xf32, #tpu.memory_space<vmem>>, vector<48x32xf32>
    %cst_420 = arith.constant dense<0.000000e+00> : vector<128x32xf32>
    %482 = tpu.matmul %480, %481, %cst_420 {dimension_numbers = #tpu.dot_dimension_numbers<[1], [0], [0], [1], [0, 0, 1, 1], [], []>} : vector<128x48xf32>, vector<48x32xf32>, vector<128x32xf32> -> vector<128x32xf32>
    %483 = arith.addf %478, %482 : vector<128x32xf32>
    %c1_421 = arith.constant 1 : index
    %c0_422 = arith.constant 0 : index
    %c0_423 = arith.constant 0 : index
    %484 = vector.load %arg6[%c1_421, %c0_422, %c0_423] : memref<2x128x48xf32, #tpu.memory_space<vmem>>, vector<1x128x48xf32>
    %485 = vector.shape_cast %484 : vector<1x128x48xf32> to vector<128x48xf32>
    %c0_424 = arith.constant 0 : index
    %c4_425 = arith.constant 4 : index
    %486 = vector.load %arg35[%c0_424, %c4_425] : memref<48x36xf32, #tpu.memory_space<vmem>>, vector<48x32xf32>
    %cst_426 = arith.constant dense<0.000000e+00> : vector<128x32xf32>
    %487 = tpu.matmul %485, %486, %cst_426 {dimension_numbers = #tpu.dot_dimension_numbers<[1], [0], [0], [1], [0, 0, 1, 1], [], []>} : vector<128x48xf32>, vector<48x32xf32>, vector<128x32xf32> -> vector<128x32xf32>
    %488 = arith.addf %483, %487 : vector<128x32xf32>
    %c0_427 = arith.constant 0 : index
    %c0_428 = arith.constant 0 : index
    %489 = vector.load %arg11[%c0_427, %c0_428] : memref<128x1xf32, #tpu.memory_space<vmem>>, vector<128x1xf32>
    %490 = vector.broadcast %489 : vector<128x1xf32> to vector<128x32xf32>
    %491 = arith.addf %488, %490 : vector<128x32xf32>
    %492 = vector.extract_strided_slice %491 {offsets = [0, 0], sizes = [64, 32], strides = [1, 1]} : vector<128x32xf32> to vector<64x32xf32>
    %493 = vector.extract_strided_slice %491 {offsets = [64, 0], sizes = [64, 32], strides = [1, 1]} : vector<128x32xf32> to vector<64x32xf32>
    %cst_429 = arith.constant 0.000000e+00 : f32
    %494 = vector.broadcast %cst_429 : f32 to vector<64x32xf32>
    %495 = arith.subf %494, %493 : vector<64x32xf32>
    %496 = math.exp %495 : vector<64x32xf32>
    %cst_430 = arith.constant 1.000000e+00 : f32
    %497 = vector.broadcast %cst_430 : f32 to vector<64x32xf32>
    %498 = arith.addf %497, %496 : vector<64x32xf32>
    %cst_431 = arith.constant 1.000000e+00 : f32
    %499 = vector.broadcast %cst_431 : f32 to vector<64x32xf32>
    %500 = arith.divf %499, %498 : vector<64x32xf32>
    %501 = arith.mulf %492, %500 : vector<64x32xf32>
    %c0_432 = arith.constant 0 : index
    %c0_433 = arith.constant 0 : index
    %502 = vector.load %arg21[%c0_432, %c0_433] : memref<64x1xf32, #tpu.memory_space<vmem>>, vector<64x1xf32>
    %c0_434 = arith.constant 0 : index
    %c0_435 = arith.constant 0 : index
    %503 = vector.load %arg22[%c0_434, %c0_435] : memref<64x1xf32, #tpu.memory_space<vmem>>, vector<64x1xf32>
    %cst_436 = arith.constant dense<0.000000e+00> : vector<64xf32>
    %504 = vector.multi_reduction <add>, %501, %cst_436 [1] : vector<64x32xf32> to vector<64xf32>
    %505 = vector.shape_cast %504 : vector<64xf32> to vector<64x1xf32>
    %cst_437 = arith.constant 3.200000e+01 : f32
    %506 = vector.broadcast %cst_437 : f32 to vector<64x1xf32>
    %507 = arith.divf %505, %506 : vector<64x1xf32>
    %508 = vector.broadcast %507 : vector<64x1xf32> to vector<64x32xf32>
    %509 = arith.subf %501, %508 : vector<64x32xf32>
    %510 = arith.mulf %509, %509 : vector<64x32xf32>
    %cst_438 = arith.constant dense<0.000000e+00> : vector<64xf32>
    %511 = vector.multi_reduction <add>, %510, %cst_438 [1] : vector<64x32xf32> to vector<64xf32>
    %512 = vector.shape_cast %511 : vector<64xf32> to vector<64x1xf32>
    %cst_439 = arith.constant 3.200000e+01 : f32
    %513 = vector.broadcast %cst_439 : f32 to vector<64x1xf32>
    %514 = arith.divf %512, %513 : vector<64x1xf32>
    %cst_440 = arith.constant 9.99999974E-6 : f32
    %515 = vector.broadcast %cst_440 : f32 to vector<64x1xf32>
    %516 = arith.addf %514, %515 : vector<64x1xf32>
    %517 = math.rsqrt %516 : vector<64x1xf32>
    %518 = vector.broadcast %517 : vector<64x1xf32> to vector<64x32xf32>
    %519 = arith.mulf %509, %518 : vector<64x32xf32>
    %520 = vector.broadcast %502 : vector<64x1xf32> to vector<64x32xf32>
    %521 = arith.mulf %519, %520 : vector<64x32xf32>
    %522 = vector.broadcast %503 : vector<64x1xf32> to vector<64x32xf32>
    %523 = arith.addf %521, %522 : vector<64x32xf32>
    %c0_441 = arith.constant 0 : index
    %c0_442 = arith.constant 0 : index
    %524 = vector.load %arg16[%c0_441, %c0_442] : memref<64x1xf32, #tpu.memory_space<vmem>>, vector<64x1xf32>
    %cst_443 = arith.constant 0.000000e+00 : f32
    %525 = vector.broadcast %cst_443 : f32 to vector<64x32xf32>
    %526 = arith.cmpf oge, %523, %525 : vector<64x32xf32>
    %527 = vector.broadcast %524 : vector<64x1xf32> to vector<64x32xf32>
    %528 = arith.mulf %527, %523 : vector<64x32xf32>
    %529 = arith.select %526, %523, %528 : vector<64x32xi1>, vector<64x32xf32>
    %c0_444 = arith.constant 0 : index
    %c0_445 = arith.constant 0 : index
    %c0_446 = arith.constant 0 : index
    %530 = vector.load %arg31[%c0_444, %c0_445, %c0_446] : memref<1x64x32xf32, #tpu.memory_space<vmem>>, vector<1x64x32xf32>
    %531 = vector.shape_cast %530 : vector<1x64x32xf32> to vector<64x32xf32>
    %532 = vector.shape_cast %529 : vector<64x32xf32> to vector<1x64x32xf32>
    tpu.vector_store %arg31[%c0_444, %c0_445, %c0_446], %532 {strides = array<i32>} : memref<1x64x32xf32, #tpu.memory_space<vmem>>, vector<1x64x32xf32>,
    return
  }
  func.func @transform_0(%arg0: i32) -> (i32, i32, i32) {
    %c0_i32 = arith.constant 0 : i32
    %c0_i32_0 = arith.constant 0 : i32
    %c0_i32_1 = arith.constant 0 : i32
    return %arg0, %c0_i32, %c0_i32_0 : i32, i32, i32
  }
  func.func @transform_1(%arg0: i32) -> (i32, i32, i32) {
    %c0_i32 = arith.constant 0 : i32
    %c0_i32_0 = arith.constant 0 : i32
    %c0_i32_1 = arith.constant 0 : i32
    %c0_i32_2 = arith.constant 0 : i32
    return %c0_i32, %c0_i32_0, %c0_i32_1 : i32, i32, i32
  }
  func.func @transform_2(%arg0: i32) -> (i32, i32, i32) {
    %c0_i32 = arith.constant 0 : i32
    %c0_i32_0 = arith.constant 0 : i32
    %c0_i32_1 = arith.constant 0 : i32
    %c0_i32_2 = arith.constant 0 : i32
    return %c0_i32, %c0_i32_0, %c0_i32_1 : i32, i32, i32
  }
  func.func @transform_3(%arg0: i32) -> (i32, i32, i32) {
    %c0_i32 = arith.constant 0 : i32
    %c0_i32_0 = arith.constant 0 : i32
    %c0_i32_1 = arith.constant 0 : i32
    %c0_i32_2 = arith.constant 0 : i32
    return %c0_i32, %c0_i32_0, %c0_i32_1 : i32, i32, i32
  }
  func.func @transform_4(%arg0: i32) -> (i32, i32, i32) {
    %c0_i32 = arith.constant 0 : i32
    %c0_i32_0 = arith.constant 0 : i32
    %c0_i32_1 = arith.constant 0 : i32
    %c0_i32_2 = arith.constant 0 : i32
    return %c0_i32, %c0_i32_0, %c0_i32_1 : i32, i32, i32
  }
  func.func @transform_5(%arg0: i32) -> (i32, i32, i32) {
    %c0_i32 = arith.constant 0 : i32
    %c0_i32_0 = arith.constant 0 : i32
    %c0_i32_1 = arith.constant 0 : i32
    %c0_i32_2 = arith.constant 0 : i32
    return %c0_i32, %c0_i32_0, %c0_i32_1 : i32, i32, i32
  }
  func.func @transform_6(%arg0: i32) -> (i32, i32) {
    %c0_i32 = arith.constant 0 : i32
    %c0_i32_0 = arith.constant 0 : i32
    %c0_i32_1 = arith.constant 0 : i32
    return %c0_i32, %c0_i32_0 : i32, i32
  }
  func.func @transform_7(%arg0: i32) -> (i32, i32) {
    %c0_i32 = arith.constant 0 : i32
    %c0_i32_0 = arith.constant 0 : i32
    %c0_i32_1 = arith.constant 0 : i32
    return %c0_i32, %c0_i32_0 : i32, i32
  }
  func.func @transform_8(%arg0: i32) -> (i32, i32) {
    %c0_i32 = arith.constant 0 : i32
    %c0_i32_0 = arith.constant 0 : i32
    %c0_i32_1 = arith.constant 0 : i32
    return %c0_i32, %c0_i32_0 : i32, i32
  }
  func.func @transform_9(%arg0: i32) -> (i32, i32) {
    %c0_i32 = arith.constant 0 : i32
    %c0_i32_0 = arith.constant 0 : i32
    %c0_i32_1 = arith.constant 0 : i32
    return %c0_i32, %c0_i32_0 : i32, i32
  }
  func.func @transform_10(%arg0: i32) -> (i32, i32) {
    %c0_i32 = arith.constant 0 : i32
    %c0_i32_0 = arith.constant 0 : i32
    %c0_i32_1 = arith.constant 0 : i32
    return %c0_i32, %c0_i32_0 : i32, i32
  }
  func.func @transform_11(%arg0: i32) -> (i32, i32) {
    %c0_i32 = arith.constant 0 : i32
    %c0_i32_0 = arith.constant 0 : i32
    %c0_i32_1 = arith.constant 0 : i32
    return %c0_i32, %c0_i32_0 : i32, i32
  }
  func.func @transform_12(%arg0: i32) -> (i32, i32) {
    %c0_i32 = arith.constant 0 : i32
    %c0_i32_0 = arith.constant 0 : i32
    %c0_i32_1 = arith.constant 0 : i32
    return %c0_i32, %c0_i32_0 : i32, i32
  }
  func.func @transform_13(%arg0: i32) -> (i32, i32) {
    %c0_i32 = arith.constant 0 : i32
    %c0_i32_0 = arith.constant 0 : i32
    %c0_i32_1 = arith.constant 0 : i32
    return %c0_i32, %c0_i32_0 : i32, i32
  }
  func.func @transform_14(%arg0: i32) -> (i32, i32) {
    %c0_i32 = arith.constant 0 : i32
    %c0_i32_0 = arith.constant 0 : i32
    %c0_i32_1 = arith.constant 0 : i32
    return %c0_i32, %c0_i32_0 : i32, i32
  }
  func.func @transform_15(%arg0: i32) -> (i32, i32) {
    %c0_i32 = arith.constant 0 : i32
    %c0_i32_0 = arith.constant 0 : i32
    %c0_i32_1 = arith.constant 0 : i32
    return %c0_i32, %c0_i32_0 : i32, i32
  }
  func.func @transform_16(%arg0: i32) -> (i32, i32) {
    %c0_i32 = arith.constant 0 : i32
    %c0_i32_0 = arith.constant 0 : i32
    %c0_i32_1 = arith.constant 0 : i32
    return %c0_i32, %c0_i32_0 : i32, i32
  }
  func.func @transform_17(%arg0: i32) -> (i32, i32) {
    %c0_i32 = arith.constant 0 : i32
    %c0_i32_0 = arith.constant 0 : i32
    %c0_i32_1 = arith.constant 0 : i32
    return %c0_i32, %c0_i32_0 : i32, i32
  }
  func.func @transform_18(%arg0: i32) -> (i32, i32) {
    %c0_i32 = arith.constant 0 : i32
    %c0_i32_0 = arith.constant 0 : i32
    %c0_i32_1 = arith.constant 0 : i32
    return %c0_i32, %c0_i32_0 : i32, i32
  }
  func.func @transform_19(%arg0: i32) -> (i32, i32) {
    %c0_i32 = arith.constant 0 : i32
    %c0_i32_0 = arith.constant 0 : i32
    %c0_i32_1 = arith.constant 0 : i32
    return %c0_i32, %c0_i32_0 : i32, i32
  }
  func.func @transform_20(%arg0: i32) -> (i32, i32) {
    %c0_i32 = arith.constant 0 : i32
    %c0_i32_0 = arith.constant 0 : i32
    %c0_i32_1 = arith.constant 0 : i32
    return %c0_i32, %c0_i32_0 : i32, i32
  }
  func.func @transform_21(%arg0: i32) -> (i32, i32) {
    %c0_i32 = arith.constant 0 : i32
    %c0_i32_0 = arith.constant 0 : i32
    %c0_i32_1 = arith.constant 0 : i32
    return %c0_i32, %c0_i32_0 : i32, i32
  }
  func.func @transform_22(%arg0: i32) -> (i32, i32) {
    %c0_i32 = arith.constant 0 : i32
    %c0_i32_0 = arith.constant 0 : i32
    %c0_i32_1 = arith.constant 0 : i32
    return %c0_i32, %c0_i32_0 : i32, i32
  }
  func.func @transform_23(%arg0: i32) -> (i32, i32) {
    %c0_i32 = arith.constant 0 : i32
    %c0_i32_0 = arith.constant 0 : i32
    %c0_i32_1 = arith.constant 0 : i32
    return %c0_i32, %c0_i32_0 : i32, i32
  }
  func.func @transform_24(%arg0: i32) -> (i32, i32) {
    %c0_i32 = arith.constant 0 : i32
    %c0_i32_0 = arith.constant 0 : i32
    %c0_i32_1 = arith.constant 0 : i32
    return %c0_i32, %c0_i32_0 : i32, i32
  }
  func.func @transform_25(%arg0: i32) -> (i32, i32) {
    %c0_i32 = arith.constant 0 : i32
    %c0_i32_0 = arith.constant 0 : i32
    %c0_i32_1 = arith.constant 0 : i32
    return %c0_i32, %c0_i32_0 : i32, i32
  }
  func.func @transform_26(%arg0: i32) -> (i32, i32, i32) {
    %c0_i32 = arith.constant 0 : i32
    %c0_i32_0 = arith.constant 0 : i32
    %c0_i32_1 = arith.constant 0 : i32
    return %arg0, %c0_i32, %c0_i32_0 : i32, i32, i32
  }
  func.func @transform_27(%arg0: i32) -> (i32, i32, i32) {
    %c0_i32 = arith.constant 0 : i32
    %c0_i32_0 = arith.constant 0 : i32
    %c0_i32_1 = arith.constant 0 : i32
    return %arg0, %c0_i32, %c0_i32_0 : i32, i32, i32
  }
  func.func @transform_28(%arg0: i32) -> (i32, i32, i32) {
    %c0_i32 = arith.constant 0 : i32
    %c0_i32_0 = arith.constant 0 : i32
    %c0_i32_1 = arith.constant 0 : i32
    return %arg0, %c0_i32, %c0_i32_0 : i32, i32, i32
  }
  func.func @transform_29(%arg0: i32) -> (i32, i32, i32) {
    %c0_i32 = arith.constant 0 : i32
    %c0_i32_0 = arith.constant 0 : i32
    %c0_i32_1 = arith.constant 0 : i32
    return %arg0, %c0_i32, %c0_i32_0 : i32, i32, i32
  }
  func.func @transform_30(%arg0: i32) -> (i32, i32, i32) {
    %c0_i32 = arith.constant 0 : i32
    %c0_i32_0 = arith.constant 0 : i32
    %c0_i32_1 = arith.constant 0 : i32
    return %arg0, %c0_i32, %c0_i32_0 : i32, i32, i32
  }
}

</mosaic_0001>

<bundles_post_ra>
// kernel: _lambda_.1
= control target key start
LH: loop header
LB: loop body
LE: loop exit
PB: predicated region body
PF: predicated region fallthrough
CT: control target
= control target key end

     0   :  { %s7013_s6 = smov 1   ;;  %s7014_s10 = smov 2   ;;  %s9448_s0 = inlined_call_operand.smem [shape: u32[31], index: -1, kind: input, shape index: {}] }
   0x1   :  { %s7112_s5 = sld [smem:[%s9448_s0]]   ;;  %s7015_s14 = smov 3  }
   0x2   :  { %s7117_s9 = sld [smem:[%s9448_s0 + %s7013_s6]]   ;;  %s7016_s18 = smov 4  }
   0x3   :  { %s7122_s13 = sld [smem:[%s9448_s0 + %s7014_s10]]   ;;  %s7017_s22 = smov 5  }
   0x4   :  { %s7127_s17 = sld [smem:[%s9448_s0 + %s7015_s14]]   ;;  %s7018_s26 = smov 6  }
   0x5   :  { %s7132_s21 = sld [smem:[%s9448_s0 + %s7016_s18]]   ;;  %s7019_s30 = smov 7  }
   0x6   :  { %s7137_s25 = sld [smem:[%s9448_s0 + %s7017_s22]]   ;;  %s7020_s4 = smov 8  }
   0x7   :  { %s7142_s29 = sld [smem:[%s9448_s0 + %s7018_s26]]   ;;  %s7021_s10 = smov 9  }
   0x8   :  { %s7147_s3 = sld [smem:[%s9448_s0 + %s7019_s30]]   ;;  %s7022_s15 = smov 10  }
   0x9   :  { %s7152_s8 = sld [smem:[%s9448_s0 + %s7020_s4]]   ;;  %s7023_s20 = smov 11  }
   0xa   :  { %9471 = sst [smem:[#allocation6_spill]] %s7127_s17  ;;  %s7024_s26 = smov 12  }
   0xb   :  { %9472 = sst [smem:[#allocation7_spill]] %s7132_s21  ;;  %s7025_s1 = smov 13  }
   0xc   :  { %9473 = sst [smem:[#allocation8_spill]] %s7137_s25  ;;  %s7026_s7 = smov 14  }
   0xd   :  { %s7157_s14 = sld [smem:[%s9448_s0 + %s7021_s10]]   ;;  %s7028_s22 = smov 16  }
   0xe   :  { %9474 = sst [smem:[#allocation9_spill]] %s7147_s3  ;;  %s7029_s28 = smov 17  }
   0xf   :  { %s7162_s19 = sld [smem:[%s9448_s0 + %s7022_s15]]   ;;  %s7027_s15 = smov 15  }
  0x10   :  { %s7167_s24 = sld [smem:[%s9448_s0 + %s7023_s20]]  }
  0x11   :  { %s7172_s30 = sld [smem:[%s9448_s0 + %s7024_s26]]  }
  0x12   :  { %s7177_s6 = sld [smem:[%s9448_s0 + %s7025_s1]]  }
  0x13   :  { %9475 = sst [smem:[#allocation10_spill]] %s7157_s14 }
  0x14   :  { %s7182_s12 = sld [smem:[%s9448_s0 + %s7026_s7]]   ;;  %s7030_s7 = smov 18  }
  0x15   :  { %9476 = sst [smem:[#allocation11_spill]] %s7162_s19 }
  0x16   :  { %s7187_s20 = sld [smem:[%s9448_s0 + %s7027_s15]]   ;;  %s7031_s15 = smov 19  }
  0x17   :  { %s7192_s27 = sld [smem:[%s9448_s0 + %s7028_s22]]   ;;  %s7032_s22 = smov 20  }
  0x18   :  { %s7197_s4 = sld [smem:[%s9448_s0 + %s7029_s28]]   ;;  %s7033_s28 = smov 21  }
  0x19   :  { %s7202_s25 = sld [smem:[%s9448_s0 + %s7030_s7]]   ;;  %s7034_s7 = smov 22  }
  0x1a   :  { %9477 = sst [smem:[#allocation12_spill]] %s7182_s12 }
  0x1b   :  { %s7212_s19 = sld [smem:[%s9448_s0 + %s7032_s22]]   ;;  %s7036_s22 = smov 24  }
  0x1c   :  { %9478 = sst [smem:[#allocation13_spill]] %s7187_s20 }
  0x1d   :  { %s7207_s20 = sld [smem:[%s9448_s0 + %s7031_s15]]   ;;  %s7035_s15 = smov 23  }
  0x1e   :  { %9479 = sst [smem:[#allocation14_spill]] %s7197_s4 }
  0x1f   :  { %9480 = sst [smem:[#allocation15_spill]] %s7202_s25 }
  0x20   :  { %s7217_s12 = sld [smem:[%s9448_s0 + %s7033_s28]]   ;;  %s7037_s28 = smov 25  }
  0x21   :  { %9482 = sst [smem:[#allocation17_spill]] %s7212_s19 }
  0x22   :  { %s7222_s25 = sld [smem:[%s9448_s0 + %s7034_s7]]   ;;  %s7038_s7 = smov 26  }
  0x23   :  { %9481 = sst [smem:[#allocation16_spill]] %s7207_s20 }
  0x24   :  { %s7227_s21 = sld [smem:[%s9448_s0 + %s7035_s15]]   ;;  %s7039_s15 = smov 27  }
  0x25   :  { %s7232_s19 = sld [smem:[%s9448_s0 + %s7036_s22]]   ;;  %s7040_s22 = smov 28  }
  0x26   :  { %9483 = sst [smem:[#allocation18_spill]] %s7217_s12 }
  0x27   :  { %s7237_s12 = sld [smem:[%s9448_s0 + %s7037_s28]]   ;;  %s7041_s28 = smov 29  }
  0x28   :  { %s7242_s20 = sld [smem:[%s9448_s0 + %s7038_s7]]   ;;  %s7042_s7 = smov 30  }
  0x29   :  { %s7247_s14 = sld [smem:[%s9448_s0 + %s7039_s15]]   ;;  %s7264_s15 = smov 0  }
  0x2a   :  { %s7262_s17 = sld [smem:[%s9448_s0 + %s7042_s7]]  }
  0x2b   :  { %9484 = sst [smem:[#allocation19_spill]] %s7232_s19 }
  0x2c   :  { %s7252_s19 = sld [smem:[%s9448_s0 + %s7040_s22]]  }
  0x2d   :  { %9485 = sst [smem:[#allocation20_spill]] %s7237_s12 }
  0x2e   :  { %s7257_s12 = sld [smem:[%s9448_s0 + %s7041_s28]]  }
  0x2f LB: > { %s9486_s4 = sld [smem:[#allocation14_spill]]  ;;  %s6291_s16 = sadd.s32 4294967295, %s7011_s15   ;;  %s7011_s15 = sphi %s7264_s15, %s72_s15  }
  0x30   : > { %s9487_s3 = sld [smem:[#allocation9_spill]]  ;;  %p6295_p0 = scmp.ge.s32.totalorder %s7011_s15, 1 }
  0x31   : > { %p852_p1 = scmp.lt.s32.totalorder %s7011_s15, 3 }
  0x33   : > { %p853_p2 = pnand %p6295_p0, %p852_p1 }
  0x34   : > { %p950_p3 = scmp.lt.s32.totalorder (!%p853_p2), %s6291_s16, 1  ;;  %s7043_s22 = smov (!%p853_p2), 49  }
  0x35   : > { %856 = sbr.rel (%p853_p2) target bundleno = 4464 (0x1170), region = 124  ;;  %s7046_s28 = smov (!%p853_p2), 19  }
  0x36   : > { %s7047_s1 = smov (!%p853_p2), 68   ;;  %s7048_s2 = smov (!%p853_p2), 98  }
  0x37   : > { %s7049_s7 = smov (!%p853_p2), 117   ;;  %s7050_s10 = smov (!%p853_p2), 38  }
  0x38   : > { %s7051_s11 = smov (!%p853_p2), 87  }
  0x3a   : > { %s9526_s16 = smov (!%p950_p3, %s6291_s16), 1  ;;  %vm1109_vm0 = vcmask 400384   ;;  %vm1160_vm1 = vcmask 326656  }
  0x3b   : > { %s6570_s0 = smul.u32 240, %s9526_s16 }
  0x3c   : > { %s6571_s23 = smul.u32 80, %s9526_s16 }
  0x3d   : > { %s7276_s18 = scalar_lea.vmem %s7112_s5, %s6570_s0  ;;  %s7053_s0 = smov 89  }
  0x3e   : > { %v7279_v0 = vld [vmem:[%s7276_s18 + $0xc0] sm:$0xff]  ;;  %v7282_v1 = vld [vmem:[%s7276_s18 + $0xc8] sm:$0xff]  ;;  %v7285_v2 = vld [vmem:[%s7276_s18 + $0x98] sm:$0xff]  ;;  %s7989_s26 = scalar_lea.vmem %s7242_s20, %s6571_s23  ;;  %s9462_s23 = smov 28  }
  0x3f   : > { %v6672_v3 = vpack.i.bf16 %v7282_v1, %v7279_v0  ;;  %v7290_v4 = vld [vmem:[%s7276_s18 + $0xa0] sm:$0xff]  ;;  %v7295_v6 = vld [vmem:[%s7276_s18 + $0x30] sm:$0xff]  ;;  %v7314_v12 = vld [vmem:[%s7276_s18 + $0x68] sm:$0xff] }
  0x40   : > { %v6682_v5 = vpack.i.bf16 %v7290_v4, %v7285_v2  ;;  %v7299_v7 = vld [vmem:[%s7276_s18 + $0x70] sm:$0xff]  ;;  %v7311_v11 = vld [vmem:[%s7276_s18 + $0x60] sm:$0xff]  ;;  %v7320_v14 = vld [vmem:[%s7276_s18 + $0x38] sm:$0xff] }
  0x41   : > { %6673 = vrot.lane.b32.xlu0 %v6672_v3, %s7043_s22  ;;  %v7303_v8 = vld [vmem:[%s7276_s18 + $0x90] sm:$0xff]  ;;  %v6692_v10 = vpack.i.bf16 %v7295_v6, %v7299_v7  ;;  %v7323_v15 = vld [vmem:[%s7276_s18 + $0x40] sm:$0xff]  ;;  %v6687_v16 = vpack.i.bf16 %v7314_v12, %v7311_v11  ;;  %v7335_v19 = vld [vmem:[%s7276_s18 + $0x8] sm:$0xff] }
  0x42   : > { %6683 = vrot.lane.b32.xlu1 %v6682_v5, %s7043_s22  ;;  %v7306_v9 = vld [vmem:[%s7276_s18 + $0xd0] sm:$0xff]  ;;  %v6697_v17 = vpack.i.bf16 %v7323_v15, %v7320_v14  ;;  %v7332_v18 = vld [vmem:[%s7276_s18] sm:$0xff]  ;;  %v7341_v21 = vld [vmem:[%s7276_s18 + $0xd8] sm:$0xff] }
  0x43   : > { %6693 = vrot.lane.b32.xlu2 %v6692_v10, %s7043_s22  ;;  %v6677_v13 = vpack.i.bf16 %v7303_v8, %v7306_v9  ;;  %v7338_v20 = vld [vmem:[%s7276_s18 + $0x10] sm:$0xff]  ;;  %v6702_v22 = vpack.i.bf16 %v7335_v19, %v7332_v18  ;;  %v7347_v23 = vld [vmem:[%s7276_s18 + $0xa8] sm:$0xff]  ;;  %v7350_v24 = vld [vmem:[%s7276_s18 + $0xe0] sm:$0xff] }
  0x44   : > { %v6707_v25 = vpack.i.bf16 %v7341_v21, %v7338_v20  ;;  %v6712_v26 = vpack.i.bf16 %v7350_v24, %v7347_v23  ;;  %v7359_v27 = vld [vmem:[%s7276_s18 + $0x78] sm:$0xff]  ;;  %v7362_v28 = vld [vmem:[%s7276_s18 + $0xb0] sm:$0xff]  ;;  %v7365_v29 = vld [vmem:[%s7276_s18 + $0x48] sm:$0xff] }
  0x45   : > { %v7368_v30 = vld [vmem:[%s7276_s18 + $0x80] sm:$0xff]  ;;  %v6717_v31 = vpack.i.bf16 %v7362_v28, %v7359_v27  ;;  %v7374_v32 = vld [vmem:[%s7276_s18 + $0x18] sm:$0xff]  ;;  %v7377_v33 = vld [vmem:[%s7276_s18 + $0x50] sm:$0xff] }
  0x46   : > { %v6722_v34 = vpack.i.bf16 %v7368_v30, %v7365_v29  ;;  %v6727_v35 = vpack.i.bf16 %v7377_v33, %v7374_v32  ;;  %v7386_v36 = vld [vmem:[%s7276_s18 + $0x20] sm:$0xff]  ;;  %v1018_v37 = vld [vmem:[%s7276_s18 + $0xe8] sm:$0xff]  ;;  %v1017_v39 = vld [vmem:[%s7276_s18 + $0xb8] sm:$0xff] }
  0x47   : > { %v1016_v38 = vld [vmem:[%s7276_s18 + $0x88] sm:$0xff]  ;;  %v6732_v40 = vpack.i.bf16 %v1018_v37, %v7386_v36  ;;  %v1015_v42 = vld [vmem:[%s7276_s18 + $0x58] sm:$0xff] }
  0x48   : > { %v1014_v41 = vld [vmem:[%s7276_s18 + $0x28] sm:$0xff]  ;;  %v6737_v43 = vpack.i.bf16 %v1016_v38, %v1017_v39  ;;  %s7054_s18 = smov 39  }
  0x49   : > { %6678 = vrot.lane.b32.xlu0 %v6677_v13, %s7043_s22  ;;  %v6742_v44 = vpack.i.bf16 %v1014_v41, %v1015_v42  ;;  %v7420_v42 = vld [vmem:[%s7117_s9 + $0x20] sm:$0xff] }
  0x4a   : > { %6688 = vrot.lane.b32.xlu1 %v6687_v16, %s7043_s22 }
  0x4b   : > { %6698 = vrot.lane.b32.xlu2 %v6697_v17, %s7043_s22 }
  0x51   : > { %6703 = vrot.lane.b32.xlu0 %v6702_v22, %s7043_s22 }
  0x52   : > { %6708 = vrot.lane.b32.xlu1 %v6707_v25, %s7043_s22 }
  0x53   : > { %6713 = vrot.lane.b32.xlu2 %v6712_v26, %s7043_s22 }
  0x59   : > { %6718 = vrot.lane.b32.xlu0 %v6717_v31, %s7043_s22 }
  0x5a   : > { %6723 = vrot.lane.b32.xlu1 %v6722_v34, %s7043_s22 }
  0x5b   : > { %6728 = vrot.lane.b32.xlu2 %v6727_v35, %s7043_s22 }
  0x61   : > { %6733 = vrot.lane.b32.xlu0 %v6732_v40, %s7043_s22 }
  0x62   : > { %6738 = vrot.lane.b32.xlu1 %v6737_v43, %s7043_s22 }
  0x63   : > { %6743 = vrot.lane.b32.xlu2 %v6742_v44, %s7043_s22 }
  0x9d   : > { %v7398_v45 = vpop.permute.xlu2 %6693 }
  0x9e   : > { %v6696_v58 = vunpack.i.h.bf16 %v7398_v45  ;;  %v6695_v10 = vunpack.i.l.bf16 %v7398_v45 }
  0xa5   : > { %v7401_v51 = vpop.permute.xlu2 %6698 }
  0xa6   : > { %v6701_v61 = vunpack.i.h.bf16 %v7401_v51  ;;  %v6700_v62 = vunpack.i.l.bf16 %v7401_v51 }
  0xa8   : > { %v1115_v22 = vsel %vm1109_vm0, %v6696_v58, %v6700_v62  ;;  %v1116_v25 = vsel %vm1109_vm0, %v6700_v62, %v6701_v61  ;;  %v7437_v58 = vld [vmem:[%s7117_s9 + $0x28] sm:$0xff] }
  0xad   : > { %v7411_v16 = vpop.permute.xlu2 %6713 }
  0xae   : > { %v6716_v26 = vunpack.i.h.bf16 %v7411_v16  ;;  %v6715_v38 = vunpack.i.l.bf16 %v7411_v16 }
  0xb3   : > { %v6674_v46 = vpop.permute.xlu0 %6673 }
  0xb4   : > { %v6676_v47 = vunpack.i.h.bf16 %v6674_v46  ;;  %v6675_v48 = vunpack.i.l.bf16 %v6674_v46  ;;  %v6684_v49 = vpop.permute.xlu1 %6683 }
  0xb5   : > { %v6686_v53 = vunpack.i.h.bf16 %v6684_v49  ;;  %v6685_v54 = vunpack.i.l.bf16 %v6684_v49 }
  0xb6   : > { %v1130_v50 = vsel %vm1109_vm0, %v6675_v48, %v6676_v47  ;;  %v6729_v48 = vpop.permute.xlu2 %6728 }
  0xb7   : > { %1184 = vmatpush.msra.mxu0 %v1130_v50  ;;  %v1126_v13 = vsel %vm1109_vm0, %v6685_v54, %v6686_v53  ;;  %v1127_v46 = vsel %vm1109_vm0, %v6686_v53, %v6715_v38  ;;  %v6730_v53 = vunpack.i.l.bf16 %v6729_v48 }
  0xbb   : > { %v6679_v52 = vpop.permute.xlu0 %6678 }
  0xbc   : > { %v6681_v55 = vunpack.i.h.bf16 %v6679_v52  ;;  %v6680_v56 = vunpack.i.l.bf16 %v6679_v52  ;;  %v6689_v57 = vpop.permute.xlu1 %6688  ;;  %v6731_v52 = vunpack.i.h.bf16 %v6729_v48 }
  0xbd   : > { %v6691_v59 = vunpack.i.h.bf16 %v6689_v57  ;;  %v6690_v60 = vunpack.i.l.bf16 %v6689_v57 }
  0xbe   : > { %v1125_v63 = vsel %vm1109_vm0, %v6681_v55, %v6685_v54  ;;  %v1131_v3 = vsel %vm1109_vm0, %v6676_v47, %v6680_v56 }
  0xbf   : > { %1185 = vmatpush.msra.mxu0 %v1125_v63  ;;  %1213 = vmatpush.msra.mxu1 %v1131_v3  ;;  %v1120_v5 = vsel %vm1109_vm0, %v6690_v60, %v6691_v59  ;;  %v1121_v17 = vsel %vm1109_vm0, %v6691_v59, %v6695_v10  ;;  %v6744_v63 = vpop.permute.xlu2 %6743 }
  0xc1   : > { %1214 = vmatpush.msra.mxu1 %v1126_v13  ;;  %1186 = vmatpush.msra.mxu0 %v1120_v5  ;;  %v1478_v13 = vld [vmem:[%s7142_s29 + $0x18] sm:$0xff] }
  0xc3   : > { %1215 = vmatpush.msra.mxu1 %v1121_v17  ;;  %v6704_v31 = vpop.permute.xlu0 %6703  ;;  %1187 = vmatpush.msra.mxu0 %v1115_v22  ;;  %v7458_v22 = vld [vmem:[%s7117_s9 + $0x30] sm:$0xff] }
  0xc4   : > { %v6709_v34 = vpop.permute.xlu1 %6708  ;;  %v6706_v35 = vunpack.i.h.bf16 %v6704_v31  ;;  %v6705_v37 = vunpack.i.l.bf16 %v6704_v31 }
  0xc5   : > { %v6711_v39 = vunpack.i.h.bf16 %v6709_v34  ;;  %v6710_v40 = vunpack.i.l.bf16 %v6709_v34  ;;  %1216 = vmatpush.msra.mxu1 %v1116_v25  ;;  %v6745_v25 = vunpack.i.l.bf16 %v6744_v63  ;;  %v1476_v34 = vld [vmem:[%s7142_s29 + $0x8] sm:$0xff] }
  0xc6   : > { %v1110_v41 = vsel %vm1109_vm0, %v6705_v37, %v6706_v35 }
  0xc7   : > { %1188 = vmatpush.msra.mxu0 %v1110_v41  ;;  %v1111_v43 = vsel %vm1109_vm0, %v6706_v35, %v6710_v40  ;;  %v1132_v44 = vsel %vm1109_vm0, %v6680_v56, %v6711_v39  ;;  %v1133_v45 = vsel %vm1109_vm0, %v6711_v39, %v6716_v26  ;;  %v1112_v62 = vsel %vm1109_vm0, %v6710_v40, %v6730_v53 }
  0xc8   : > { %1217 = vmatpush.msra.mxu1 %v1111_v43  ;;  %1242 = vmatpush.msra.mxu2 %v1132_v44 }
  0xc9   : > { %6309 = vmatmul.msk.f32.vlgmr.msra.gmra.mxu0 %vm1160_vm1, %v7420_v42  ;;  %6313 = vmatmul.msk.f32.vlgmr.msra.gmra.mxu1 %vm1160_vm1, %v7420_v42 }
  0xca   : > { %1243 = vmatpush.msra.mxu2 %v1127_v46  ;;  %1271 = vmatpush.msra.mxu3 %v1133_v45 }
  0xcb   : > { %v6719_v47 = vpop.permute.xlu0 %6718  ;;  %1341 = vmatpush.msrb.mxu1 %v7279_v0 }
  0xcc   : > { %v6724_v49 = vpop.permute.xlu1 %6723  ;;  %v6721_v50 = vunpack.i.h.bf16 %v6719_v47  ;;  %v6720_v51 = vunpack.i.l.bf16 %v6719_v47 }
  0xcd   : > { %v6726_v54 = vunpack.i.h.bf16 %v6724_v49  ;;  %v6725_v55 = vunpack.i.l.bf16 %v6724_v49  ;;  %1342 = vmatpush.msrb.mxu1 %v7303_v8 }
  0xce   : > { %v1122_v56 = vsel %vm1109_vm0, %v6695_v10, %v6720_v51  ;;  %v1128_v57 = vsel %vm1109_vm0, %v6715_v38, %v6721_v50 }
  0xcf   : > { %1244 = vmatpush.msra.mxu2 %v1122_v56  ;;  %1272 = vmatpush.msra.mxu3 %v1128_v57  ;;  %v1123_v0 = vsel %vm1109_vm0, %v6720_v51, %v6726_v54  ;;  %v1117_v8 = vsel %vm1109_vm0, %v6701_v61, %v6725_v55  ;;  %v1118_v59 = vsel %vm1109_vm0, %v6725_v55, %v6731_v52 }
  0xd0   : > { %1343 = vmatpush.msrb.mxu1 %v7311_v11  ;;  %v7044_v11 = vmov 0  }
  0xd1   : > { %6310 = vmatmul.msk.f32.gmra.mxu0 %vm1160_vm1, %v7437_v58  ;;  %6314 = vmatmul.msk.f32.gmra.mxu1 %vm1160_vm1, %v7437_v58 }
  0xd2   : > { %1245 = vmatpush.msra.mxu2 %v1117_v8  ;;  %1273 = vmatpush.msra.mxu3 %v1123_v0 }
  0xd3   : > { %v6734_v60 = vpop.permute.xlu0 %6733  ;;  %1344 = vmatpush.msrb.mxu1 %v7295_v6  ;;  %6748 = vset.pattern.permute.xlu1 %v7044_v11 }
  0xd4   : > { %v6739_v3 = vpop.permute.xlu1 %6738  ;;  %v6736_v5 = vunpack.i.h.bf16 %v6734_v60  ;;  %v6735_v10 = vunpack.i.l.bf16 %v6734_v60  ;;  %1246 = vmatpush.msra.mxu2 %v1112_v62  ;;  %1274 = vmatpush.msra.mxu3 %v1118_v59 }
  0xd5   : > { %v6740_v61 = vunpack.i.l.bf16 %v6739_v3  ;;  %6317 = vmatmul.msk.f32.vlgmr.msra.gmra.mxu2 %vm1160_vm1, %v7420_v42  ;;  %1345 = vmatpush.msrb.mxu1 %v7332_v18  ;;  %v6741_v31 = vunpack.i.h.bf16 %v6739_v3  ;;  %v6746_v18 = vunpack.i.h.bf16 %v6744_v63 }
  0xd6   : > { %v1113_v17 = vsel %vm1109_vm0, %v6730_v53, %v6735_v10  ;;  %v1134_v6 = vsel %vm1109_vm0, %v6716_v26, %v6736_v5  ;;  %1370 = vmatpush.msrb.mxu2 %v7282_v1  ;;  %1496 = vperm.xlu1 %6748, %v1478_v13   ;;  %v1119_v26 = vsel %vm1109_vm0, %v6731_v52, %v6745_v25 }
  0xd7   : > { %1275 = vmatpush.msra.mxu3 %v1113_v17  ;;  %1300 = vmatpush.msrb.mxu0 %v1134_v6  ;;  %v1129_v1 = vsel %vm1109_vm0, %v6721_v50, %v6740_v61  ;;  %v1124_v16 = vsel %vm1109_vm0, %v6726_v54, %v6741_v31 }
  0xd8   : > { %6321 = vmatmul.msk.f32.vlgmr.msra.gmra.mxu3 %vm1160_vm1, %v7420_v42  ;;  %1371 = vmatpush.msrb.mxu2 %v7285_v2  ;;  %v1114_v2 = vsel %vm1109_vm0, %v6735_v10, %v6746_v18 }
  0xd9   : > { %6311 = vmatmul.msk.f32.gmra.mxu0 %vm1160_vm1, %v7458_v22  ;;  %6315 = vmatmul.msk.f32.gmra.mxu1 %vm1160_vm1, %v7458_v22 }
  0xda   : > { %1301 = vmatpush.msrb.mxu0 %v1129_v1  ;;  %1372 = vmatpush.msrb.mxu2 %v7314_v12  ;;  %v6308_v12 = vld [vmem:[%s7117_s9 + $0x38] sm:$0xff] }
  0xdb   : > { %1399 = vmatpush.msrb.mxu3 %v7306_v9  ;;  %1457 = vmatpush.msra.mxu1 %v7350_v24  ;;  %v1475_v9 = vld [vmem:[%s7142_s29] sm:$0xff] }
  0xdc   : > { %1302 = vmatpush.msrb.mxu0 %v1124_v16  ;;  %1373 = vmatpush.msrb.mxu2 %v7320_v14  ;;  %v981_v14 = vld [vmem:[%s7117_s9 + $0x8] sm:$0xff] }
  0xdd   : > { %6318 = vmatmul.msk.f32.gmra.mxu2 %vm1160_vm1, %v7437_v58  ;;  %1400 = vmatpush.msrb.mxu3 %v7290_v4  ;;  %v1477_v4 = vld [vmem:[%s7142_s29 + $0x10] sm:$0xff] }
  0xde   : > { %1303 = vmatpush.msrb.mxu0 %v1119_v26  ;;  %1374 = vmatpush.msrb.mxu2 %v7335_v19  ;;  %v983_v19 = vld [vmem:[%s7117_s9 + $0x18] sm:$0xff] }
  0xdf   : > { %1401 = vmatpush.msrb.mxu3 %v7299_v7  ;;  %1486 = vperm.xlu1 %6748, %v1476_v34   ;;  %v980_v7 = vld [vmem:[%s7117_s9] sm:$0xff] }
  0xe0   : > { %1304 = vmatpush.msrb.mxu0 %v1114_v2  ;;  %6322 = vmatmul.msk.f32.gmra.mxu3 %vm1160_vm1, %v7437_v58 }
  0xe1   : > { %6312 = vmatmul.msk.f32.gmra.mxu0 %vm1160_vm1, %v6308_v12  ;;  %6316 = vmatmul.msk.f32.gmra.mxu1 %vm1160_vm1, %v6308_v12 }
  0xe2   : > { %1402 = vmatpush.msrb.mxu3 %v7323_v15  ;;  %1428 = vmatpush.msra.mxu0 %v7341_v21  ;;  %v982_v15 = vld [vmem:[%s7117_s9 + $0x10] sm:$0xff] }
  0xe3   : > { %1458 = vmatpush.msra.mxu1 %v7362_v28  ;;  %6747 = vset.pattern.permute.xlu0 %v7044_v11 }
  0xe4   : > { %1403 = vmatpush.msrb.mxu3 %v7338_v20  ;;  %1429 = vmatpush.msra.mxu0 %v7347_v23  ;;  %v1855_v20 = vld [vmem:[%s7167_s24] sm:$0xff] }
  0xe5   : > { %6319 = vmatmul.msk.f32.gmra.mxu2 %vm1160_vm1, %v7458_v22  ;;  %1459 = vmatpush.msra.mxu1 %v7368_v30 }
  0xe6   : > { %1430 = vmatpush.msra.mxu0 %v7359_v27  ;;  %1491 = vperm.xlu0 %6747, %v1477_v4  }
  0xe7   : > { %1460 = vmatpush.msra.mxu1 %v7377_v33  ;;  %6749 = vset.pattern.permute.xlu2 %v7044_v11 }
  0xe8   : > { %6323 = vmatmul.msk.f32.gmra.mxu3 %vm1160_vm1, %v7458_v22  ;;  %1431 = vmatpush.msra.mxu0 %v7365_v29 }
  0xe9   : > { %6325 = vmatmul.msk.f32.vlgmr.msrb.gmra.mxu0 %vm1160_vm1, %v7420_v42  ;;  %6329 = vmatmul.msk.f32.vlgmr.msrb.gmra.mxu1 %vm1160_vm1, %v980_v7 }
  0xea   : > { %1432 = vmatpush.msra.mxu0 %v7374_v32  ;;  %1461 = vmatpush.msra.mxu1 %v7386_v36 }
  0xeb   : > { %1481 = vperm.xlu2 %6749, %v1475_v9   ;;  %1869 = vperm.xlu1 %6748, %v1855_v20  }
  0xed   : > { %6320 = vmatmul.msk.f32.gmra.mxu2 %vm1160_vm1, %v6308_v12 }
  0xf0   : > { %6324 = vmatmul.msk.f32.gmra.mxu3 %vm1160_vm1, %v6308_v12 }
  0xf1   : > { %6326 = vmatmul.msk.f32.gmra.mxu0 %vm1160_vm1, %v7437_v58  ;;  %6330 = vmatmul.msk.f32.gmra.mxu1 %vm1160_vm1, %v981_v14 }
  0xf5   : > { %6333 = vmatmul.msk.f32.vlgmr.msrb.gmra.mxu2 %vm1160_vm1, %v980_v7 }
  0xf8   : > { %6337 = vmatmul.msk.f32.vlgmr.msrb.gmra.mxu3 %vm1160_vm1, %v980_v7 }
  0xf9   : > { %6327 = vmatmul.msk.f32.gmra.mxu0 %vm1160_vm1, %v7458_v22  ;;  %6331 = vmatmul.msk.f32.gmra.mxu1 %vm1160_vm1, %v982_v15 }
  0xfd   : > { %6334 = vmatmul.msk.f32.gmra.mxu2 %vm1160_vm1, %v981_v14 }
 0x100   : > { %6338 = vmatmul.msk.f32.gmra.mxu3 %vm1160_vm1, %v981_v14 }
 0x101   : > { %6328 = vmatmul.msk.f32.gmra.mxu0 %vm1160_vm1, %v6308_v12  ;;  %6332 = vmatmul.msk.f32.gmra.mxu1 %vm1160_vm1, %v983_v19 }
 0x105   : > { %6335 = vmatmul.msk.f32.gmra.mxu2 %vm1160_vm1, %v982_v15 }
 0x108   : > { %6339 = vmatmul.msk.f32.gmra.mxu3 %vm1160_vm1, %v982_v15 }
 0x109   : > { %6341 = vmatmul.msk.f32.vlgmr.msra.gmra.mxu0 %vm1160_vm1, %v980_v7  ;;  %6345 = vmatmul.msk.f32.vlgmr.msra.gmra.mxu1 %vm1160_vm1, %v980_v7 }
 0x10d   : > { %6336 = vmatmul.msk.f32.gmra.mxu2 %vm1160_vm1, %v983_v19 }
 0x110   : > { %6340 = vmatmul.msk.f32.gmra.mxu3 %vm1160_vm1, %v983_v19 }
 0x111   : > { %6342 = vmatmul.msk.f32.gmra.mxu0 %vm1160_vm1, %v981_v14  ;;  %6346 = vmatmul.msk.f32.gmra.mxu1 %vm1160_vm1, %v981_v14 }
 0x119   : > { %6343 = vmatmul.msk.f32.gmra.mxu0 %vm1160_vm1, %v982_v15  ;;  %6347 = vmatmul.msk.f32.gmra.mxu1 %vm1160_vm1, %v982_v15 }
 0x121   : > { %6344 = vmatmul.msk.f32.gmra.mxu0 %vm1160_vm1, %v983_v19  ;;  %6348 = vmatmul.msk.f32.gmra.mxu1 %vm1160_vm1, %v983_v19 }
 0x145   : > { %v1482_v34 = vpop.permute.xlu2 %1481 }
 0x146   : > { %v1190_v21 = vpop.f32.mrf.mxu0  ;;  %v1219_v23 = vpop.f32.mrf.mxu1 }
 0x148   : > { %v7561_v53 = vpop.permute.xlu1 %1496 }
 0x14e   : > { %v1193_v24 = vpop.f32.mrf.mxu0  ;;  %v7538_v27 = vpop.f32.mrf.mxu1 }
 0x151   : > { %v7577_v14 = vpop.permute.xlu1 %1486 }
 0x156   : > { %v1196_v28 = vpop.f32.mrf.mxu0  ;;  %v1225_v29 = vpop.f32.mrf.mxu1 }
 0x158   : > { %v1248_v30 = vpop.f32.mrf.mxu2  ;;  %v7554_v46 = vpop.permute.xlu0 %1491 }
 0x15b   : > { %v7540_v32 = vpop.f32.mrf.mxu3 }
 0x15e   : > { %v1199_v33 = vpop.f32.mrf.mxu0  ;;  %v1228_v36 = vpop.f32.mrf.mxu1 }
 0x160   : > { %v1251_v35 = vpop.f32.mrf.mxu2 }
 0x163   : > { %v7542_v37 = vpop.f32.mrf.mxu3 }
 0x166   : > { %v7544_v38 = vpop.f32.mrf.mxu0  ;;  %v1347_v39 = vpop.f32.mrf.mxu1 }
 0x167   : > { %v1348_v18 = vadd.f32 %v1347_v39, %v1190_v21 }
 0x168   : > { %v1254_v40 = vpop.f32.mrf.mxu2 }
 0x169   : > { %v7581_v39 = vadd.f32 %v1482_v34, %v1348_v18 }
 0x16b   : > { %v7546_v41 = vpop.f32.mrf.mxu3 }
 0x16e   : > { %v7548_v42 = vpop.f32.mrf.mxu0  ;;  %v1350_v43 = vpop.f32.mrf.mxu1 }
 0x16f   : > { %v1351_v12 = vadd.f32 %v1350_v43, %v1193_v24 }
 0x170   : > { %v7550_v44 = vpop.f32.mrf.mxu2 }
 0x173   : > { %v7552_v45 = vpop.f32.mrf.mxu3 }
 0x176   : > { %v7556_v47 = vpop.f32.mrf.mxu0  ;;  %v1353_v48 = vpop.f32.mrf.mxu1 }
 0x177   : > { %v1354_v49 = vadd.f32 %v1353_v48, %v1196_v28  ;;  %v7588_v48 = vadd.f32 %v7577_v14, %v1351_v12 }
 0x178   : > { %v1376_v50 = vpop.f32.mrf.mxu2 }
 0x179   : > { %v1509_v51 = vadd.f32 %v7554_v46, %v1354_v49  ;;  %v1377_v4 = vadd.f32 %v1376_v50, %v1219_v23 }
 0x17b   : > { %v1519_v52 = vsub.f32 0.0, %v1509_v51  ;;  %v1405_v54 = vpop.f32.mrf.mxu3  ;;  %v7583_v24 = vadd.f32 %v1482_v34, %v1377_v4 }
 0x17c   : > { %v1406_v15 = vadd.f32 %v1405_v54, %v1248_v30 }
 0x17d   : > { %v1529_v55 = vmul.f32 1.442695, %v1519_v52 }
 0x17e   : > { %v7559_v56 = vpop.f32.mrf.mxu0  ;;  %v1356_v57 = vpop.f32.mrf.mxu1  ;;  %v7590_v49 = vadd.f32 %v1482_v34, %v1406_v15 }
 0x17f   : > { %6855 = vpow2.f32 %v1529_v55  ;;  %v1357_v58 = vadd.f32 %v1356_v57, %v1199_v33 }
 0x180   : > { %v1379_v0 = vpop.f32.mrf.mxu2 }
 0x181   : > { %v1514_v8 = vadd.f32 %v7561_v53, %v1357_v58  ;;  %v1380_v21 = vadd.f32 %v1379_v0, %v7538_v27 }
 0x183   : > { %v1524_v59 = vsub.f32 0.0, %v1514_v8  ;;  %v1408_v60 = vpop.f32.mrf.mxu3 }
 0x184   : > { %v1409_v28 = vadd.f32 %v1408_v60, %v1251_v35  ;;  %v7595_v35 = vadd.f32 %v7577_v14, %v1380_v21 }
 0x185   : > { %v6856_v62 = vpop.eup %6855  ;;  %v1539_v11 = vmul.f32 1.442695, %v1524_v59 }
 0x186   : > { %v7564_v63 = vadd.f32 1.0, %v6856_v62  ;;  %v1434_v3 = vpop.f32.mrf.mxu0  ;;  %v1463_v5 = vpop.f32.mrf.mxu1  ;;  %v7598_v50 = vadd.f32 %v7577_v14, %v1409_v28 }
 0x187   : > { %6857 = vpow2.f32 %v1539_v11 }
 0x188   : > { %6859 = vrcp.f32 %v7564_v63  ;;  %v1382_v10 = vpop.f32.mrf.mxu2  ;;  %vm1564_vm2 = vweird.f32 %v7564_v63  ;;  %v1570_v58 = vand.u32 2147483648, %v7564_v63 }
 0x189   : > { %v1383_v61 = vadd.f32 %v1382_v10, %v1225_v29 }
 0x18a   : > { %v1571_v12 = vor.u32 1.1754944e-38, %v1570_v58 }
 0x18b   : > { %v1510_v13 = vadd.f32 %v7554_v46, %v1383_v61  ;;  %v1411_v17 = vpop.f32.mrf.mxu3 }
 0x18c   : > { %v1412_v6 = vadd.f32 %v1411_v17, %v1254_v40  ;;  %v1435_v40 = vadd.f32 %v1434_v3, %v7540_v32  ;;  %v1464_v32 = vadd.f32 %v1463_v5, %v7544_v38 }
 0x18d   : > { %v6858_v22 = vpop.eup %6857  ;;  %v1520_v25 = vsub.f32 0.0, %v1510_v13 }
 0x18e   : > { %v7568_v31 = vpop.eup %6859  ;;  %v7570_v1 = vadd.f32 1.0, %v6858_v22  ;;  %v1511_v16 = vadd.f32 %v7554_v46, %v1412_v6  ;;  %v1437_v26 = vpop.f32.mrf.mxu0  ;;  %v7607_v8 = vadd.f32 %v1482_v34, %v1435_v40  ;;  %v7619_v17 = vadd.f32 %v1482_v34, %v1464_v32 }
 0x18f   : > { %v7573_v2 = vpop.f32.mrf.mxu1  ;;  %v1531_v7 = vmul.f32 1.442695, %v1520_v25  ;;  %v1560_v9 = vmul.f32 %v7568_v31, %v7564_v63  ;;  %vm1565_vm3 = vweird.f32 %v7568_v31 }
 0x190   : > { %6861 = vrcp.f32 %v7570_v1  ;;  %v1521_v19 = vsub.f32 0.0, %v1511_v16  ;;  %v1385_v20 = vpop.f32.mrf.mxu2  ;;  %vm7627_vm4 = vmor %vm1564_vm2, %vm1565_vm3  ;;  %v7636_v16 = vadd.f32 %v1437_v26, %v7542_v37  ;;  %vm1639_vm6 = vweird.f32 %v7570_v1 }
 0x191   : > { %6863 = vpow2.f32 %v1531_v7  ;;  %v1386_v29 = vadd.f32 %v1385_v20, %v1228_v36  ;;  %v1561_v23 = vsub.f32 1.0, %v1560_v9  ;;  %v7644_v9 = vadd.f32 %v7573_v2, %v7548_v42 }
 0x192   : > { %v1533_v33 = vmul.f32 1.442695, %v1521_v19  ;;  %v1643_v37 = vand.u32 2147483647, %v7570_v1 }
 0x193   : > { %v1515_v43 = vadd.f32 %v7561_v53, %v1386_v29  ;;  %v1414_v30 = vpop.f32.mrf.mxu3  ;;  %v1562_v36 = vmul.f32 %v7568_v31, %v1561_v23 }
 0x194   : > { %6865 = vpow2.f32 %v1533_v33  ;;  %v1415_v27 = vadd.f32 %v1414_v30, %v7550_v44  ;;  %v1568_v44 = vand.u32 2147483647, %v7564_v63  ;;  %vm7670_vm9 = vcmp.eq.f32.partialorder %v1643_v37, 8.507059e+37 }
 0x195   : > { %v1525_v51 = vsub.f32 0.0, %v1515_v43  ;;  %v1563_v3 = vadd.f32 %v7568_v31, %v1562_v36 }
 0x196   : > { %v7601_v52 = vpop.eup %6861  ;;  %v1516_v54 = vadd.f32 %v7561_v53, %v1415_v27  ;;  %v1440_v55 = vpop.f32.mrf.mxu0  ;;  %vm7631_vm5 = vcmp.eq.f32.partialorder %v1568_v44, 8.507059e+37 }
 0x197   : > { %v1469_v57 = vpop.f32.mrf.mxu1  ;;  %v6864_v0 = vpop.eup %6863  ;;  %v1541_v59 = vmul.f32 1.442695, %v1525_v51  ;;  %v1441_v60 = vadd.f32 %v1440_v55, %v7546_v41  ;;  %v1635_v5 = vmul.f32 %v7601_v52, %v7570_v1  ;;  %v1567_v34 = vsel %vm7627_vm4, %v7568_v31, %v1563_v3 }
 0x198   : > { %v1470_v38 = vadd.f32 %v1469_v57, %v7556_v47  ;;  %v7611_v62 = vadd.f32 1.0, %v6864_v0  ;;  %v1526_v11 = vsub.f32 0.0, %v1516_v54  ;;  %v1645_v47 = vand.u32 2147483648, %v7570_v1 }
 0x199   : > { %6867 = vpow2.f32 %v1541_v59  ;;  %v1512_v10 = vadd.f32 %v7554_v46, %v1441_v60  ;;  %v1636_v4 = vsub.f32 1.0, %v1635_v5  ;;  %v1572_v28 = vsel %vm7631_vm5, %v1571_v12, %v1567_v34 }
 0x19a   : > { %v1513_v61 = vadd.f32 %v7554_v46, %v1470_v38  ;;  %v6866_v13 = vpop.eup %6865  ;;  %6869 = vrcp.f32 %v7611_v62  ;;  %v1543_v41 = vmul.f32 1.442695, %v1526_v11  ;;  %v7648_v26 = vor.u32 1.1754944e-38, %v1645_v47 }
 0x19b   : > { %v7623_v6 = vadd.f32 1.0, %v6866_v13  ;;  %v1522_v22 = vsub.f32 0.0, %v1512_v10  ;;  %v1583_v2 = vand.u32 2147483647, %v7611_v62  ;;  %v1585_v33 = vand.u32 2147483648, %v7611_v62 }
 0x19c   : > { %v1523_v25 = vsub.f32 0.0, %v1513_v61  ;;  %6871 = vpow2.f32 %v1543_v41  ;;  %vm1579_vm7 = vweird.f32 %v7611_v62  ;;  %v7665_v30 = vmul.f32 %v1572_v28, %v7581_v39 }
 0x19d   : > { %6873 = vrcp.f32 %v7623_v6  ;;  %v1535_v63 = vmul.f32 1.442695, %v1522_v22  ;;  %vm1640_vm8 = vweird.f32 %v7601_v52  ;;  %vm7675_vm11 = vcmp.eq.f32.partialorder %v1583_v2, 8.507059e+37 }
 0x19e   : > { %v1537_v7 = vmul.f32 1.442695, %v1523_v25  ;;  %v1443_v15 = vpop.f32.mrf.mxu0  ;;  %v1586_v39 = vor.u32 1.1754944e-38, %v1585_v33  ;;  %v1598_v5 = vand.u32 2147483647, %v7623_v6  ;;  %vm1594_vm12 = vweird.f32 %v7623_v6  ;;  %vm7691_vm13 = vmor %vm1639_vm6, %vm1640_vm8 }
 0x19f   : > { %v1472_v19 = vpop.f32.mrf.mxu1  ;;  %v6868_v20 = vpop.eup %6867  ;;  %6875 = vpow2.f32 %v1535_v63  ;;  %v1444_v31 = vadd.f32 %v1443_v15, %v7552_v45  ;;  %v1637_v45 = vmul.f32 %v7601_v52, %v1636_v4  ;;  %v1600_v22 = vand.u32 2147483648, %v7623_v6 }
 0x1a0   : > { %v1473_v21 = vadd.f32 %v1472_v19, %v7559_v56  ;;  %v6870_v29 = vpop.eup %6869  ;;  %v7654_v42 = vadd.f32 1.0, %v6868_v20  ;;  %6877 = vpow2.f32 %v1537_v7  ;;  %vm7708_vm1 = vcmp.eq.f32.partialorder %v1598_v5, 8.507059e+37 }
 0x1a1   : > { %v1575_v23 = vmul.f32 %v6870_v29, %v7611_v62  ;;  %v1517_v40 = vadd.f32 %v7561_v53, %v1444_v31  ;;  %vm1580_vm10 = vweird.f32 %v6870_v29  ;;  %v1638_v59 = vadd.f32 %v7601_v52, %v1637_v45 }
 0x1a2   : > { %v1518_v43 = vadd.f32 %v7561_v53, %v1473_v21  ;;  %v6872_v56 = vpop.eup %6871  ;;  %6879 = vrcp.f32 %v7654_v42  ;;  %vm1581_vm14 = vmor %vm1579_vm7, %vm1580_vm10  ;;  %v1658_v62 = vand.u32 2147483647, %v7654_v42  ;;  %v1601_v19 = vor.u32 1.1754944e-38, %v1600_v22 }
 0x1a3   : > { %v6874_v27 = vpop.eup %6873  ;;  %v1576_v36 = vsub.f32 1.0, %v1575_v23  ;;  %v7668_v32 = vadd.f32 1.0, %v6872_v56  ;;  %v1527_v51 = vsub.f32 0.0, %v1517_v40  ;;  %v1642_v18 = vsel %vm7691_vm13, %v7601_v52, %v1638_v59 }
 0x1a4   : > { %v1528_v54 = vsub.f32 0.0, %v1518_v43  ;;  %v1590_v55 = vmul.f32 %v6874_v27, %v7623_v6  ;;  %vm1595_vm15 = vweird.f32 %v6874_v27  ;;  %v7724_v37 = vsel %vm7670_vm9, %v7648_v26, %v1642_v18 }
 0x1a5   : > { %v6876_v44 = vpop.eup %6875  ;;  %6881 = vrcp.f32 %v7668_v32  ;;  %v1545_v58 = vmul.f32 1.442695, %v1527_v51  ;;  %v1577_v0 = vmul.f32 %v6870_v29, %v1576_v36  ;;  %vm1596_vm2 = vmor %vm1594_vm12, %vm1595_vm15  ;;  %vm1654_vm3 = vweird.f32 %v7654_v42 }
 0x1a6   : > { %v6878_v60 = vpop.eup %6877  ;;  %v7681_v38 = vadd.f32 1.0, %v6876_v44  ;;  %v1547_v11 = vmul.f32 1.442695, %v1528_v54  ;;  %v1591_v3 = vsub.f32 1.0, %v1590_v55  ;;  %v1660_v21 = vand.u32 2147483648, %v7654_v42 }
 0x1a7   : > { %v7684_v10 = vadd.f32 1.0, %v6878_v60  ;;  %6883 = vpow2.f32 %v1545_v58  ;;  %v1578_v61 = vadd.f32 %v6870_v29, %v1577_v0  ;;  %vm1669_vm4 = vweird.f32 %v7668_v32 }
 0x1a8   : > { %v7695_v41 = vpop.eup %6879  ;;  %6885 = vrcp.f32 %v7681_v38  ;;  %v1592_v47 = vmul.f32 %v6874_v27, %v1591_v3  ;;  %v1613_v7 = vand.u32 2147483647, %v7681_v38  ;;  %v1615_v52 = vand.u32 2147483648, %v7681_v38 }
 0x1a9   : > { %v1650_v25 = vmul.f32 %v7695_v41, %v7654_v42  ;;  %6887 = vrcp.f32 %v7684_v10  ;;  %v1582_v1 = vsel %vm1581_vm14, %v6870_v29, %v1578_v61  ;;  %vm1609_vm5 = vweird.f32 %v7681_v38 }
 0x1aa   : > { %6889 = vpow2.f32 %v1547_v11  ;;  %v1593_v46 = vadd.f32 %v6874_v27, %v1592_v47  ;;  %v1587_v63 = vsel %vm7675_vm11, %v1586_v39, %v1582_v1  ;;  %vm7740_vm6 = vcmp.eq.f32.partialorder %v1658_v62, 8.507059e+37 }
 0x1ab   : > { %v7713_v12 = vpop.eup %6881  ;;  %v1651_v4 = vsub.f32 1.0, %v1650_v25  ;;  %v7738_v26 = vmul.f32 %v1587_v63, %v7583_v24  ;;  %vm7745_vm7 = vcmp.eq.f32.partialorder %v1613_v7, 8.507059e+37  ;;  %v1616_v45 = vor.u32 1.1754944e-38, %v1615_v52 }
 0x1ac   : > { %v1597_v15 = vsel %vm1596_vm2, %v6874_v27, %v1593_v46  ;;  %v1665_v31 = vmul.f32 %v7713_v12, %v7668_v32  ;;  %v1628_v56 = vand.u32 2147483647, %v7684_v10  ;;  %v1630_v27 = vand.u32 2147483648, %v7684_v10 }
 0x1ad   : > { %v6884_v20 = vpop.eup %6883  ;;  %v1652_v6 = vmul.f32 %v7695_v41, %v1651_v4  ;;  %v1602_v2 = vsel %vm7708_vm1, %v1601_v19, %v1597_v15  ;;  %vm1655_vm8 = vweird.f32 %v7695_v41  ;;  %vm1726_vm9 = vcmask 982016  }
 0x1ae   : > { %v6886_v28 = vpop.eup %6885  ;;  %v7732_v29 = vadd.f32 1.0, %v6884_v20  ;;  %v7758_v55 = vmul.f32 %v1602_v2, %v7590_v49  ;;  %v1666_v57 = vsub.f32 1.0, %v1665_v31  ;;  %v1723_v44 = vadd.f32 %v7738_v26, %v7665_v30  ;;  %vm7765_vm12 = vmor %vm1654_vm3, %vm1655_vm8 }
 0x1af   : > { %v6888_v23 = vpop.eup %6887  ;;  %v1605_v40 = vmul.f32 %v6886_v28, %v7681_v38  ;;  %v1653_v51 = vadd.f32 %v7695_v41, %v1652_v6  ;;  %vm1610_vm10 = vweird.f32 %v6886_v28  ;;  %vm1670_vm13 = vweird.f32 %v7713_v12 }
 0x1b0   : > { %v6890_v36 = vpop.eup %6889  ;;  %6891 = vrcp.f32 %v7732_v29  ;;  %v1620_v24 = vmul.f32 %v6888_v23, %v7684_v10  ;;  %vm1625_vm11 = vweird.f32 %v6888_v23  ;;  %v1667_v49 = vmul.f32 %v7713_v12, %v1666_v57  ;;  %vm7778_vm14 = vmor %vm1609_vm5, %vm1610_vm10 }
 0x1b1   : > { %v7755_v54 = vadd.f32 1.0, %v6890_v36  ;;  %v1606_v53 = vsub.f32 1.0, %v1605_v40  ;;  %v1657_v60 = vsel %vm7765_vm12, %v7695_v41, %v1653_v51  ;;  %v1673_v11 = vand.u32 2147483647, %v7668_v32  ;;  %vm7789_vm2 = vmor %vm1669_vm4, %vm1670_vm13 }
 0x1b2   : > { %v1621_v39 = vsub.f32 1.0, %v1620_v24  ;;  %v1675_v3 = vand.u32 2147483648, %v7668_v32  ;;  %vm1624_vm15 = vweird.f32 %v7684_v10  ;;  %v1661_v61 = vor.u32 1.1754944e-38, %v1660_v21 }
 0x1b3   : > { %6893 = vrcp.f32 %v7755_v54  ;;  %v1607_v58 = vmul.f32 %v6886_v28, %v1606_v53  ;;  %v1668_v13 = vadd.f32 %v7713_v12, %v1667_v49  ;;  %vm1629_vm1 = vcmp.eq.f32.partialorder %v1628_v56, 8.507059e+37  ;;  %vm1626_vm3 = vmor %vm1624_vm15, %vm1625_vm11  ;;  %v1721_v49 = vld [vmem:[%s9486_s4] sm:$0xff] }
 0x1b4   : > { %v1622_v59 = vmul.f32 %v6888_v23, %v1621_v39  ;;  %v1631_v41 = vor.u32 1.1754944e-38, %v1630_v27  ;;  %v1724_v25 = vadd.f32 %v1723_v44, %v7758_v55  ;;  %v1662_v1 = vsel %vm7740_vm6, %v1661_v61, %v1657_v60 }
 0x1b5   : > { %v1608_v5 = vadd.f32 %v6886_v28, %v1607_v58  ;;  %v1672_v18 = vsel %vm7789_vm2, %v7713_v12, %v1668_v13  ;;  %vm1674_vm4 = vcmp.eq.f32.partialorder %v1673_v11, 8.507059e+37  ;;  %v1676_v62 = vor.u32 1.1754944e-38, %v1675_v3 }
 0x1b6   : > { %v6892_v47 = vpop.eup %6891  ;;  %v1623_v22 = vadd.f32 %v6888_v23, %v1622_v59  ;;  %v1688_v15 = vand.u32 2147483647, %v7732_v29  ;;  %v1690_v12 = vand.u32 2147483648, %v7732_v29  ;;  %vm1684_vm6 = vweird.f32 %v7732_v29  ;;  %v1720_v59 = vld [vmem:[%s7192_s27 + $0x8] sm:$0xff] }
 0x1b7   : > { %v1612_v10 = vsel %vm7778_vm14, %v6886_v28, %v1608_v5  ;;  %v1680_v46 = vmul.f32 %v6892_v47, %v7732_v29  ;;  %v1677_v20 = vsel %vm1674_vm4, %v1676_v62, %v1672_v18  ;;  %vm1685_vm5 = vweird.f32 %v6892_v47 }
 0x1b8   : > { %v1617_v32 = vsel %vm7745_vm7, %v1616_v45, %v1612_v10  ;;  %v1627_v34 = vsel %vm1626_vm3, %v6888_v23, %v1623_v22  ;;  %v7813_v28 = vmul.f32 %v1662_v1, %v7595_v35  ;;  %v1705_v33 = vand.u32 2147483648, %v7755_v54  ;;  %vm1686_vm7 = vmor %vm1684_vm6, %vm1685_vm5 }
 0x1b9   : > { %v6894_v4 = vpop.eup %6893  ;;  %v1632_v63 = vsel %vm1629_vm1, %v1631_v41, %v1627_v34  ;;  %v7805_v7 = vmul.f32 %v1617_v32, %v7607_v8  ;;  %v1681_v52 = vsub.f32 1.0, %v1680_v46  ;;  %v1714_v40 = vmul.f32 %v7724_v37, %v7588_v48 }
 0x1ba   : > { %v1713_v19 = vmul.f32 %v1632_v63, %v7619_v17  ;;  %v1695_v31 = vmul.f32 %v6894_v4, %v7755_v54  ;;  %v7821_v43 = vmul.f32 %v1677_v20, %v7598_v50  ;;  %v1691_v45 = vor.u32 1.1754944e-38, %v1690_v12 }
 0x1bb   : > { %v1725_v6 = vadd.f32 %v1724_v25, %v7805_v7  ;;  %v1682_v21 = vmul.f32 %v6892_v47, %v1681_v52  ;;  %vm1700_vm8 = vweird.f32 %v6894_v4  ;;  %v1703_v35 = vand.u32 2147483647, %v7755_v54 }
 0x1bc   : > { %v1727_v8 = vsel %vm1726_vm9, %v1713_v19, 0.0  ;;  %v1696_v2 = vsub.f32 1.0, %v1695_v31  ;;  %v1507_v29 = vadd.f32 %v7577_v14, %v7636_v16  ;;  %vm1689_vm10 = vcmp.eq.f32.partialorder %v1688_v15, 8.507059e+37 }
 0x1bd   : > { %v1728_v17 = vadd.f32 %v1727_v8, %v1725_v6  ;;  %v1683_v23 = vadd.f32 %v6892_v47, %v1682_v21  ;;  %v1731_v36 = vadd.f32 %v7813_v28, %v1714_v40  ;;  %vm1699_vm11 = vweird.f32 %v7755_v54  ;;  %v1719_v54 = vld [vmem:[%s7192_s27] sm:$0xff] }
 0x1be   : > { %v1697_v56 = vmul.f32 %v6894_v4, %v1696_v2  ;;  %vm1701_vm12 = vmor %vm1699_vm11, %vm1700_vm8  ;;  %v1706_v50 = vor.u32 1.1754944e-38, %v1705_v33  ;;  %v1508_v16 = vadd.f32 %v7577_v14, %v7644_v9  ;;  %vm1704_vm13 = vcmp.eq.f32.partialorder %v1703_v35, 8.507059e+37 }
 0x1bf   : > { %1729 = vadd.xlane.f32.xlu2 %v1728_v17  ;;  %v1687_v27 = vsel %vm1686_vm7, %v6892_v47, %v1683_v23  ;;  %v1732_v51 = vadd.f32 %v1731_v36, %v7821_v43  ;;  %v7045_v60 = vmov 632.0   ;;  %v7890_v36 = vld [vmem:[%s7222_s25 + $0x48] sm:$0x7f]  ;;  %vm1933_vm15 = vcmask 1046528  }
 0x1c0   : > { %v1692_v24 = vsel %vm1689_vm10, %v1691_v45, %v1687_v27  ;;  %v1698_v48 = vadd.f32 %v6894_v4, %v1697_v56  ;;  %6895 = vrcp.f32 %v7045_v60  ;;  %v7885_v45 = vpop.permute.xlu1 %1869  ;;  %6349 = vmatpush.msk.msra.mxu2 %vm1933_vm15, %v7890_v36  ;;  %6352 = vmatpush.msk.msra.mxu3 %vm1933_vm15, %v7890_v36 }
 0x1c1   : > { %v1717_v37 = vmul.f32 %v1692_v24, %v1507_v29  ;;  %v7897_v24 = vld [vmem:[%s7222_s25 + $0x40] sm:$0xff]  ;;  %6361 = vmatpush.msk.msrb.mxu0 %vm1933_vm15, %v7890_v36  ;;  %6364 = vmatpush.msk.msrb.mxu1 %vm1933_vm15, %v7890_v36 }
 0x1c2   : > { %v1702_v53 = vsel %vm1701_vm12, %v6894_v4, %v1698_v48  ;;  %1944 = vmatpush.msra.mxu2 %v7897_v24  ;;  %2010 = vmatpush.msra.mxu3 %v7897_v24 }
 0x1c3   : > { %v1707_v57 = vsel %vm1704_vm13, %v1706_v50, %v1702_v53  ;;  %v1733_v39 = vadd.f32 %v1732_v51, %v1717_v37  ;;  %v7906_v50 = vld [vmem:[%s7222_s25 + $0x38] sm:$0xff]  ;;  %2219 = vmatpush.msrb.mxu0 %v7897_v24  ;;  %2281 = vmatpush.msrb.mxu1 %v7897_v24  ;;  %v7913_v53 = vld [vmem:[%s7222_s25 + $0x30] sm:$0xff]  ;;  %vm1926_vm13 = vcmask 646144  }
 0x1c4   : > { %v1718_v44 = vmul.f32 %v1707_v57, %v1508_v16  ;;  %1945 = vmatpush.msra.mxu2 %v7906_v50  ;;  %2011 = vmatpush.msra.mxu3 %v7906_v50 }
 0x1c5   : > { %2220 = vmatpush.msrb.mxu0 %v7906_v50  ;;  %2282 = vmatpush.msrb.mxu1 %v7906_v50 }
 0x1c6   : > { %v1734_v58 = vsel %vm1726_vm9, %v1718_v44, 0.0  ;;  %v6896_v11 = vpop.eup %6895  ;;  %1946 = vmatpush.msra.mxu2 %v7913_v53  ;;  %2012 = vmatpush.msra.mxu3 %v7913_v53 }
 0x1c7   : > { %v1735_v0 = vadd.f32 %v1734_v58, %v1733_v39  ;;  %v1739_v3 = vmul.f32 632.0, %v6896_v11  ;;  %vm1743_vm14 = vweird.f32 %v6896_v11  ;;  %2221 = vmatpush.msrb.mxu0 %v7913_v53  ;;  %2283 = vmatpush.msrb.mxu1 %v7913_v53 }
 0x1c9   : > { %1736 = vadd.xlane.f32.xlu0 %v1735_v0  ;;  %v1740_v14 = vsub.f32 1.0, %v1739_v3  ;;  %v7930_v0 = vld [vmem:[%s7222_s25 + $0x20] sm:$0xff] }
 0x1cb   : > { %v1741_v9 = vmul.f32 %v6896_v11, %v1740_v14 }
 0x1cd   : > { %v1742_v5 = vadd.f32 %v6896_v11, %v1741_v9 }
 0x1cf   : > { %v1744_v42 = vsel %vm1743_vm14, %v6896_v11, %v1742_v5  ;;  %v7947_v11 = vld [vmem:[%s7222_s25 + $0x8] sm:$0xff]  ;;  %v7958_v5 = vld [vmem:[%s7222_s25] sm:$0xff] }
 0x1d7   : > { %1817 = vperm.xlu2 %6749, %v1719_v54   ;;  %v7933_v54 = vld [vmem:[%s7222_s25 + $0x18] sm:$0xff] }
 0x1dd   : > { %1837 = vperm.xlu0 %6747, %v1721_v49  }
 0x1e5   : > { %1822 = vperm.xlu0 %6747, %v1720_v59   ;;  %v7940_v59 = vld [vmem:[%s7222_s25 + $0x10] sm:$0xff] }
 0x232   : > { %v1730_v61 = vpop.xlane.xlu2 %1729 }
 0x233   : > { %v1745_v13 = vmul.f32 %v1744_v42, %v1730_v61 }
 0x235   : > { %v7836_v47 = vsub.f32 %v7665_v30, %v1745_v13  ;;  %v7839_v22 = vsub.f32 %v7738_v26, %v1745_v13  ;;  %v7842_v41 = vsub.f32 %v7758_v55, %v1745_v13  ;;  %v7844_v25 = vsub.f32 %v1713_v19, %v1745_v13 }
 0x236   : > { %v7847_v38 = vsub.f32 %v7805_v7, %v1745_v13 }
 0x237   : > { %v1757_v10 = vmul.f32 %v7836_v47, %v7836_v47  ;;  %v1758_v1 = vmul.f32 %v7839_v22, %v7839_v22  ;;  %v1759_v30 = vmul.f32 %v7842_v41, %v7842_v41  ;;  %v1761_v26 = vmul.f32 %v7844_v25, %v7844_v25 }
 0x238   : > { %v1760_v55 = vmul.f32 %v7847_v38, %v7847_v38 }
 0x239   : > { %v1767_v18 = vadd.f32 %v1758_v1, %v1757_v10  ;;  %v1770_v4 = vsel %vm1726_vm9, %v1761_v26, 0.0 }
 0x23a   : > { %v7887_v29 = vpop.permute.xlu2 %1817 }
 0x23b   : > { %v1768_v46 = vadd.f32 %v1767_v18, %v1759_v30 }
 0x23c   : > { %v1737_v32 = vpop.xlane.xlu0 %1736 }
 0x23d   : > { %v1746_v34 = vmul.f32 %v1744_v42, %v1737_v32  ;;  %v1769_v62 = vadd.f32 %v1768_v46, %v1760_v55 }
 0x23f   : > { %v1771_v63 = vadd.f32 %v1770_v4, %v1769_v62  ;;  %v7860_v7 = vsub.f32 %v1714_v40, %v1746_v34  ;;  %v7863_v52 = vsub.f32 %v7813_v28, %v1746_v34  ;;  %v7866_v15 = vsub.f32 %v7821_v43, %v1746_v34  ;;  %v1856_v40 = vld [vmem:[%s7167_s24 + $0x8] sm:$0xff] }
 0x240   : > { %v7868_v19 = vsub.f32 %v1718_v44, %v1746_v34  ;;  %v7870_v20 = vsub.f32 %v1717_v37, %v1746_v34  ;;  %v1722_v43 = vld [vmem:[%s9486_s4 + $0x8] sm:$0xff]  ;;  %s7095_s4 = smov 65  }
 0x241   : > { %1772 = vadd.xlane.f32.xlu1 %v1771_v63  ;;  %v1762_v12 = vmul.f32 %v7860_v7, %v7860_v7  ;;  %v1763_v31 = vmul.f32 %v7863_v52, %v7863_v52  ;;  %v1764_v6 = vmul.f32 %v7866_v15, %v7866_v15  ;;  %v7922_v44 = vld [vmem:[%s7222_s25 + $0x28] sm:$0xff] }
 0x242   : > { %v1766_v28 = vmul.f32 %v7868_v19, %v7868_v19  ;;  %v1765_v8 = vmul.f32 %v7870_v20, %v7870_v20  ;;  %1947 = vmatpush.msra.mxu2 %v7922_v44  ;;  %2013 = vmatpush.msra.mxu3 %v7922_v44 }
 0x243   : > { %v1774_v21 = vadd.f32 %v1763_v31, %v1762_v12  ;;  %2222 = vmatpush.msrb.mxu0 %v7922_v44  ;;  %2284 = vmatpush.msrb.mxu1 %v7922_v44 }
 0x244   : > { %v1777_v17 = vsel %vm1726_vm9, %v1766_v28, 0.0  ;;  %1948 = vmatpush.msra.mxu2 %v7930_v0  ;;  %2014 = vmatpush.msra.mxu3 %v7930_v0 }
 0x245   : > { %v1775_v2 = vadd.f32 %v1774_v21, %v1764_v6  ;;  %2223 = vmatpush.msrb.mxu0 %v7930_v0  ;;  %2285 = vmatpush.msrb.mxu1 %v7930_v0 }
 0x246   : > { %1949 = vmatpush.msra.mxu2 %v7933_v54  ;;  %2015 = vmatpush.msra.mxu3 %v7933_v54 }
 0x247   : > { %v1776_v33 = vadd.f32 %v1775_v2, %v1765_v8  ;;  %2224 = vmatpush.msrb.mxu0 %v7933_v54  ;;  %2286 = vmatpush.msrb.mxu1 %v7933_v54 }
 0x248   : > { %1950 = vmatpush.msra.mxu2 %v7940_v59  ;;  %2016 = vmatpush.msra.mxu3 %v7940_v59 }
 0x249   : > { %v1778_v23 = vadd.f32 %v1777_v17, %v1776_v33  ;;  %2225 = vmatpush.msrb.mxu0 %v7940_v59  ;;  %2287 = vmatpush.msrb.mxu1 %v7940_v59 }
 0x24a   : > { %1951 = vmatpush.msra.mxu2 %v7947_v11  ;;  %2017 = vmatpush.msra.mxu3 %v7947_v11 }
 0x24b   : > { %1779 = vadd.xlane.f32.xlu2 %v1778_v23  ;;  %2226 = vmatpush.msrb.mxu0 %v7947_v11 }
 0x24c   : > { %1952 = vmatpush.msra.mxu2 %v7958_v5  ;;  %2018 = vmatpush.msra.mxu3 %v7958_v5 }
 0x24d   : > { %2227 = vmatpush.msrb.mxu0 %v7958_v5  ;;  %2288 = vmatpush.msrb.mxu1 %v7947_v11 }
 0x24e   : > { %6355 = vmatpush.msk.msrb.mxu2 %vm1933_vm15, %v7890_v36  ;;  %6358 = vmatpush.msk.msrb.mxu3 %vm1933_vm15, %v7890_v36 }
 0x24f   : > { %v1838_v18 = vpop.permute.xlu0 %1837  ;;  %2289 = vmatpush.msrb.mxu1 %v7958_v5 }
 0x250   : > { %2066 = vmatpush.msrb.mxu2 %v7897_v24  ;;  %2146 = vmatpush.msrb.mxu3 %v7897_v24 }
 0x252   : > { %2067 = vmatpush.msrb.mxu2 %v7906_v50  ;;  %2147 = vmatpush.msrb.mxu3 %v7906_v50 }
 0x254   : > { %2068 = vmatpush.msrb.mxu2 %v7913_v53  ;;  %2148 = vmatpush.msrb.mxu3 %v7913_v53 }
 0x256   : > { %2069 = vmatpush.msrb.mxu2 %v7922_v44  ;;  %2149 = vmatpush.msrb.mxu3 %v7922_v44 }
 0x258   : > { %2070 = vmatpush.msrb.mxu2 %v7930_v0  ;;  %2150 = vmatpush.msrb.mxu3 %v7930_v0 }
 0x25a   : > { %1874 = vperm.xlu1 %6748, %v1856_v40   ;;  %2071 = vmatpush.msrb.mxu2 %v7933_v54 }
 0x25b   : > { %2151 = vmatpush.msrb.mxu3 %v7933_v54 }
 0x25c   : > { %2072 = vmatpush.msrb.mxu2 %v7940_v59 }
 0x25d   : > { %2152 = vmatpush.msrb.mxu3 %v7940_v59 }
 0x25e   : > { %2073 = vmatpush.msrb.mxu2 %v7947_v11 }
 0x25f   : > { %2153 = vmatpush.msrb.mxu3 %v7947_v11 }
 0x260   : > { %2074 = vmatpush.msrb.mxu2 %v7958_v5 }
 0x261   : > { %2154 = vmatpush.msrb.mxu3 %v7958_v5 }
 0x263   : > { %1842 = vperm.xlu2 %6749, %v1722_v43  }
 0x2b4   : > { %v1773_v56 = vpop.xlane.xlu1 %1772 }
 0x2b5   : > { %v1781_v35 = vmul.f32 %v1773_v56, %v1744_v42 }
 0x2b7   : > { %v1783_v27 = vadd.f32 1e-05, %v1781_v35 }
 0x2b9   : > { %6897 = vrsqrt.f32 %v1783_v27  ;;  %vm1791_vm2 = vweird.f32 %v1783_v27 }
 0x2be   : > { %v1780_v48 = vpop.xlane.xlu2 %1779 }
 0x2bf   : > { %v6898_v37 = vpop.eup %6897  ;;  %v1782_v51 = vmul.f32 %v1780_v48, %v1744_v42 }
 0x2c0   : > { %v1786_v16 = vmul.f32 %v6898_v37, %v1783_v27  ;;  %vm1792_vm1 = vweird.f32 %v6898_v37 }
 0x2c1   : > { %v7917_v57 = vadd.f32 1e-05, %v1782_v51  ;;  %vm1793_vm3 = vmor %vm1791_vm2, %vm1792_vm1 }
 0x2c2   : > { %v1787_v39 = vmul.f32 %v6898_v37, %v1786_v16 }
 0x2c3   : > { %6899 = vrsqrt.f32 %v7917_v57  ;;  %vm1801_vm11 = vweird.f32 %v7917_v57 }
 0x2c4   : > { %v1788_v58 = vmul.f32 0.5, %v1787_v39 }
 0x2c6   : > { %v1789_v49 = vsub.f32 1.5, %v1788_v58 }
 0x2c8   : > { %v1790_v60 = vmul.f32 %v6898_v37, %v1789_v49 }
 0x2c9   : > { %v7951_v3 = vpop.eup %6899 }
 0x2ca   : > { %v1794_v14 = vsel %vm1793_vm3, %v6898_v37, %v1790_v60  ;;  %v1796_v9 = vmul.f32 %v7951_v3, %v7917_v57  ;;  %vm1802_vm4 = vweird.f32 %v7951_v3 }
 0x2cb   : > { %v1805_v42 = vmul.f32 %v1794_v14, %v7836_v47  ;;  %v1806_v61 = vmul.f32 %v1794_v14, %v7839_v22  ;;  %v1807_v13 = vmul.f32 %v1794_v14, %v7842_v41  ;;  %v1808_v10 = vmul.f32 %v1794_v14, %v7847_v38  ;;  %vm1803_vm12 = vmor %vm1801_vm11, %vm1802_vm4 }
 0x2cc   : > { %v1809_v1 = vmul.f32 %v1794_v14, %v7844_v25  ;;  %v1797_v30 = vmul.f32 %v7951_v3, %v1796_v9  ;;  %v1875_v58 = vpop.permute.xlu1 %1874  ;;  %vm2092_vm11 = vcmask 228352  }
 0x2cd   : > { %v1825_v26 = vmul.f32 %v7887_v29, %v1805_v42  ;;  %v1826_v47 = vmul.f32 %v7887_v29, %v1806_v61  ;;  %v1827_v22 = vmul.f32 %v7887_v29, %v1807_v13  ;;  %v1828_v41 = vmul.f32 %v7887_v29, %v1808_v10 }
 0x2ce   : > { %v1829_v25 = vmul.f32 %v7887_v29, %v1809_v1  ;;  %v1798_v38 = vmul.f32 0.5, %v1797_v30  ;;  %v1823_v29 = vpop.permute.xlu0 %1822 }
 0x2cf   : > { %v1845_v55 = vadd.f32 %v1838_v18, %v1825_v26  ;;  %v1846_v46 = vadd.f32 %v1838_v18, %v1826_v47  ;;  %v1847_v32 = vadd.f32 %v1838_v18, %v1827_v22  ;;  %v1848_v34 = vadd.f32 %v1838_v18, %v1828_v41 }
 0x2d0   : > { %v1849_v62 = vadd.f32 %v1838_v18, %v1829_v25  ;;  %v1799_v4 = vsub.f32 1.5, %v1798_v38 }
 0x2d1   : > { %vm1857_vm5 = vcmp.ge.f32.partialorder %v1845_v55, 0.0  ;;  %vm1858_vm6 = vcmp.ge.f32.partialorder %v1846_v46, 0.0  ;;  %vm1859_vm7 = vcmp.ge.f32.partialorder %v1847_v32, 0.0  ;;  %vm1860_vm8 = vcmp.ge.f32.partialorder %v1848_v34, 0.0 }
 0x2d2   : > { %vm1861_vm10 = vcmp.ge.f32.partialorder %v1849_v62, 0.0  ;;  %v1877_v63 = vmul.f32 %v7885_v45, %v1845_v55  ;;  %v1878_v12 = vmul.f32 %v7885_v45, %v1846_v46  ;;  %v1879_v31 = vmul.f32 %v7885_v45, %v1847_v32 }
 0x2d3   : > { %v1880_v6 = vmul.f32 %v7885_v45, %v1848_v34  ;;  %v1881_v21 = vmul.f32 %v7885_v45, %v1849_v62  ;;  %v1800_v28 = vmul.f32 %v7951_v3, %v1799_v4 }
 0x2d4   : > { %v1887_v8 = vsel %vm1857_vm5, %v1845_v55, %v1877_v63  ;;  %v1888_v2 = vsel %vm1858_vm6, %v1846_v46, %v1878_v12  ;;  %v8004_v33 = vsel %vm1859_vm7, %v1847_v32, %v1879_v31  ;;  %vm1917_vm5 = vcmask 318464  }
 0x2d5   : > { %v8010_v17 = vsel %vm1860_vm8, %v1848_v34, %v1880_v6  ;;  %v1891_v23 = vsel %vm1861_vm10, %v1849_v62, %v1881_v21  ;;  %1897 = vst [vmem:[%s7989_s26] sm:$0xff] %v1887_v8  ;;  %v1804_v40 = vsel %vm1803_vm12, %v7951_v3, %v1800_v28  ;;  %2124 = vrot.lane.b32.xlu1 %v1888_v2, %s7046_s28  ;;  %v7052_v34 = vmov 0.0  }
 0x2d6   : > { %1991 = vrot.lane.b32.xlu2 %v1888_v2, %s7043_s22  ;;  %1898 = vst [vmem:[%s7989_s26 + $0x8] sm:$0xff] %v1888_v2  ;;  %v1810_v43 = vmul.f32 %v1804_v40, %v7860_v7  ;;  %v1811_v45 = vmul.f32 %v1804_v40, %v7863_v52  ;;  %v1812_v56 = vmul.f32 %v1804_v40, %v7866_v15  ;;  %v1843_v15 = vpop.permute.xlu2 %1842  ;;  %vm2132_vm6 = vcmask 154624  }
 0x2d7   : > { %v1813_v35 = vmul.f32 %v1804_v40, %v7870_v20  ;;  %1899 = vst [vmem:[%s7989_s26 + $0x10] sm:$0xff] %v8004_v33  ;;  %v1814_v27 = vmul.f32 %v1804_v40, %v7868_v19  ;;  %1989 = vrot.lane.b32.xlu0 %v1887_v8, %s7043_s22  ;;  %6350 = vmatmul.msk.f32.vlgmr.msra.gmra.mxu2 %vm1926_vm13, %v1887_v8  ;;  %vm1968_vm7 = vcmask 638264   ;;  %vm2034_vm8 = vcmask 958064  }
 0x2d8   : > { %1900 = vst [vmem:[%s7989_s26 + $0x18] sm:$0xff] %v8010_v17  ;;  %v1830_v48 = vmul.f32 %v1823_v29, %v1810_v43  ;;  %v1831_v37 = vmul.f32 %v1823_v29, %v1811_v45  ;;  %v1832_v7 = vmul.f32 %v1823_v29, %v1812_v56  ;;  %6367 = vmatpush.msk.msra.mxu2 %vm1933_vm15, %v7890_v36  ;;  %vm2090_vm10 = vcmask 1048488  }
 0x2d9   : > { %v1833_v51 = vmul.f32 %v1823_v29, %v1813_v35  ;;  %1901 = vst.msk [vmem:[%s7989_s26 + $0x20] sm:$0xff] %vm1726_vm9, %v1891_v23  ;;  %v1834_v52 = vmul.f32 %v1823_v29, %v1814_v27  ;;  %vm2307_vm12 = vcmask 138240  }
 0x2da   : > { %v1850_v20 = vadd.f32 %v1843_v15, %v1830_v48  ;;  %v1851_v19 = vadd.f32 %v1843_v15, %v1831_v37  ;;  %v1852_v16 = vadd.f32 %v1843_v15, %v1832_v7  ;;  %2361 = vmatpush.msra.mxu2 %v7897_v24  ;;  %1922 = vst.msk [vmem:[#allocation2 + $0x60] sm:$0xff] %vm1917_vm5, %v7052_v34 }
 0x2db   : > { %v1853_v57 = vadd.f32 %v1843_v15, %v1833_v51  ;;  %v1854_v39 = vadd.f32 %v1843_v15, %v1834_v52  ;;  %1918 = vst.msk [vmem:[#allocation2] sm:$0xff] %vm1917_vm5, %v7052_v34 }
 0x2dc   : > { %vm1862_vm14 = vcmp.ge.f32.partialorder %v1850_v20, 0.0  ;;  %vm1863_vm1 = vcmp.ge.f32.partialorder %v1851_v19, 0.0  ;;  %vm1864_vm2 = vcmp.ge.f32.partialorder %v1852_v16, 0.0  ;;  %v1882_v49 = vmul.f32 %v1875_v58, %v1850_v20  ;;  %2362 = vmatpush.msra.mxu2 %v7906_v50  ;;  %1919 = vst.msk [vmem:[#allocation2 + $0x18] sm:$0xff] %vm1917_vm5, %v7052_v34 }
 0x2dd   : > { %vm1865_vm3 = vcmp.ge.f32.partialorder %v1853_v57, 0.0  ;;  %v1883_v60 = vmul.f32 %v1875_v58, %v1851_v19  ;;  %v1884_v3 = vmul.f32 %v1875_v58, %v1852_v16  ;;  %2199 = vrot.lane.b32.xlu1 %v8010_v17, %s7047_s1  ;;  %vm1866_vm4 = vcmp.ge.f32.partialorder %v1854_v39, 0.0  ;;  %1920 = vst.msk [vmem:[#allocation2 + $0x30] sm:$0xff] %vm1917_vm5, %v7052_v34 }
 0x2de   : > { %2051 = vrot.lane.b32.xlu2 %v1888_v2, %s7048_s2  ;;  %v1885_v14 = vmul.f32 %v1875_v58, %v1853_v57  ;;  %v1886_v9 = vmul.f32 %v1875_v58, %v1854_v39  ;;  %v1892_v42 = vsel %vm1862_vm14, %v1850_v20, %v1882_v49  ;;  %2363 = vmatpush.msra.mxu2 %v7913_v53  ;;  %vm2243_vm14 = vcmask 867864  }
 0x2df   : > { %v1893_v61 = vsel %vm1863_vm1, %v1851_v19, %v1883_v60  ;;  %v1894_v13 = vsel %vm1864_vm2, %v1852_v16, %v1884_v3  ;;  %2126 = vrot.lane.b32.xlu0 %v8004_v33, %s7046_s28  ;;  %1902 = vst [vmem:[%s7989_s26 + $0x28] sm:$0xff] %v1892_v42  ;;  %6351 = vmatmul.msk.f32.gmra.mxu2 %vm1926_vm13, %v1892_v42  ;;  %vm2305_vm1 = vcmask 1048400   ;;  %vm2385_vm2 = vcmask 457864  }
 0x2e0   : > { %v1895_v10 = vsel %vm1865_vm3, %v1853_v57, %v1885_v14  ;;  %v1896_v1 = vsel %vm1866_vm4, %v1854_v39, %v1886_v9  ;;  %1903 = vst [vmem:[%s7989_s26 + $0x30] sm:$0xff] %v1893_v61  ;;  %2364 = vmatpush.msra.mxu2 %v7922_v44  ;;  %v2332_v30 = vld [vmem:[%s7989_s26 + $0x20] sm:$0xff]  ;;  %vm2447_vm3 = vcmask 777664   ;;  %vm2578_vm4 = vcmask 392192  }
 0x2e1   : > { %1904 = vst [vmem:[%s7989_s26 + $0x38] sm:$0xff] %v1894_v13 }
 0x2e2   : > { %1905 = vst [vmem:[%s7989_s26 + $0x40] sm:$0xff] %v1895_v10  ;;  %2365 = vmatpush.msra.mxu2 %v7930_v0 }
 0x2e3   : > { %1906 = vst.msk [vmem:[%s7989_s26 + $0x48] sm:$0xff] %vm1726_vm9, %v1896_v1  ;;  %vm2205_vm9 = vcmask 556032  }
 0x2e4   : > { %2366 = vmatpush.msra.mxu2 %v7933_v54  ;;  %1921 = vst.msk [vmem:[#allocation2 + $0x48] sm:$0xff] %vm1917_vm5, %v7052_v34 }
 0x2e5   : > { %1993 = vrot.lane.b32.xlu1 %v1892_v42, %s7043_s22  ;;  %1923 = vst.msk [vmem:[#allocation2 + $0x78] sm:$0xff] %vm1917_vm5, %v7052_v34 }
 0x2e6   : > { %2197 = vrot.lane.b32.xlu2 %v8004_v33, %s7047_s1  ;;  %2367 = vmatpush.msra.mxu2 %v7940_v59  ;;  %2975 = vst.msk [vmem:[#allocation3] sm:$0xff] %vm2132_vm6, %v7052_v34 }
 0x2e7   : > { %1995 = vrot.lane.b32.xlu0 %v1893_v61, %s7043_s22  ;;  %2976 = vst.msk [vmem:[#allocation3 + $0x10] sm:$0xff] %vm2132_vm6, %v7052_v34  ;;  %s7055_s22 = smov 67  }
 0x2e8   : > { %2368 = vmatpush.msra.mxu2 %v7947_v11  ;;  %2977 = vst.msk [vmem:[#allocation3 + $0x20] sm:$0xff] %vm2132_vm6, %v7052_v34 }
 0x2e9   : > { %2978 = vst.msk [vmem:[#allocation3 + $0x30] sm:$0xff] %vm2132_vm6, %v7052_v34 }
 0x2ea   : > { %2369 = vmatpush.msra.mxu2 %v7958_v5  ;;  %v2334_v18 = vld [vmem:[%s7989_s26 + $0x48] sm:$0xff]  ;;  %2979 = vst.msk [vmem:[#allocation3 + $0x40] sm:$0xff] %vm2132_vm6, %v7052_v34  ;;  %s7057_s26 = smov 106  }
 0x2eb   : > { %2980 = vst.msk [vmem:[#allocation3 + $0x50] sm:$0xff] %vm2132_vm6, %v7052_v34 }
 0x2ed   : > { %2130 = vrot.lane.b32.xlu1 %v1894_v13, %s7046_s28 }
 0x2ee   : > { %2128 = vrot.lane.b32.xlu2 %v1893_v61, %s7046_s28 }
 0x2ef   : > { %2266 = vrot.lane.b32.xlu0 %v8010_v17, %s7049_s7 }
 0x2f5   : > { %2203 = vrot.lane.b32.xlu1 %v1895_v10, %s7047_s1 }
 0x2f6   : > { %2201 = vrot.lane.b32.xlu2 %v1894_v13, %s7047_s1  ;;  %s7058_s1 = smov 78  }
 0x2f7   : > { %2053 = vrot.lane.b32.xlu0 %v1893_v61, %s7048_s2  ;;  %s7059_s2 = smov 56  }
 0x2fd   : > { %2268 = vrot.lane.b32.xlu1 %v1895_v10, %s7049_s7 }
 0x2fe   : > { %2341 = vrot.lane.b32.xlu2 %v2332_v30, %s7050_s10 }
 0x2ff   : > { %2339 = vrot.lane.b32.xlu0 %v8010_v17, %s7050_s10 }
 0x305   : > { %2345 = vrot.lane.b32.xlu1 %v2334_v18, %s7050_s10 }
 0x306   : > { %2343 = vrot.lane.b32.xlu2 %v1895_v10, %s7050_s10 }
 0x307   : > { %2408 = vrot.lane.b32.xlu0 %v2332_v30, %s7051_s11 }
 0x30f   : > { %2410 = vrot.lane.b32.xlu0 %v2334_v18, %s7051_s11  ;;  %s7060_s11 = smov 17  }
 0x330   : > { %v1992_v26 = vpop.permute.xlu2 %1991 }
 0x338   : > { %v2052_v47 = vpop.permute.xlu2 %2051 }
 0x339   : > { %6356 = vmatmul.msk.f32.vlgmr.msrb.gmra.mxu2 %vm1926_vm13, %v2052_v47 }
 0x340   : > { %v2198_v38 = vpop.permute.xlu2 %2197 }
 0x347   : > { %v2125_v22 = vpop.permute.xlu1 %2124 }
 0x349   : > { %v1990_v41 = vpop.permute.xlu0 %1989 }
 0x34a   : > { %v1997_v25 = vsel %vm1109_vm0, %v1990_v41, %v1992_v26 }
 0x34b   : > { %6353 = vmatmul.msk.f32.vlgmr.msra.gmra.mxu3 %vm1926_vm13, %v1997_v25 }
 0x34c   : > { %6370 = vmatpush.msk.msra.mxu3 %vm1933_vm15, %v7890_v36 }
 0x34e   : > { %2423 = vmatpush.msra.mxu3 %v7897_v24  ;;  %v2129_v24 = vpop.permute.xlu2 %2128 }
 0x34f   : > { %v2200_v55 = vpop.permute.xlu1 %2199 }
 0x350   : > { %v2206_v46 = vsel %vm2205_vm9, %v2198_v38, %v2200_v55  ;;  %2424 = vmatpush.msra.mxu3 %v7906_v50 }
 0x351   : > { %v2127_v32 = vpop.permute.xlu0 %2126  ;;  %6362 = vmatmul.msk.f32.vlgmr.msrb.gmra.mxu0 %vm1926_vm13, %v2206_v46 }
 0x352   : > { %2425 = vmatpush.msra.mxu3 %v7913_v53 }
 0x354   : > { %2426 = vmatpush.msra.mxu3 %v7922_v44 }
 0x356   : > { %2427 = vmatpush.msra.mxu3 %v7930_v0  ;;  %v2202_v62 = vpop.permute.xlu2 %2201 }
 0x357   : > { %v1994_v36 = vpop.permute.xlu1 %1993 }
 0x358   : > { %2428 = vmatpush.msra.mxu3 %v7933_v54 }
 0x359   : > { %v1996_v50 = vpop.permute.xlu0 %1995 }
 0x35a   : > { %v1954_v53 = vpop.f32.mrf.mxu2  ;;  %v1998_v44 = vsel %vm1109_vm0, %v1994_v36, %v1996_v50  ;;  %2429 = vmatpush.msra.mxu3 %v7940_v59  ;;  %v2133_v59 = vsel %vm2132_vm6, %v2125_v22, %v2127_v32  ;;  %vm2347_vm0 = vcmask 310272  }
 0x35b   : > { %1973 = vrot.lane.b32.xlu0 %v1954_v53, %s7053_s0  ;;  %6354 = vmatmul.msk.f32.gmra.mxu3 %vm1926_vm13, %v1998_v44  ;;  %1971 = vst.msk [vmem:[#allocation2 + $0x30] sm:$0xff] %vm1968_vm7, %v1954_v53 }
 0x35c   : > { %2430 = vmatpush.msra.mxu3 %v7947_v11 }
 0x35e   : > { %2431 = vmatpush.msra.mxu3 %v7958_v5  ;;  %v2342_v31 = vpop.permute.xlu2 %2341 }
 0x35f   : > { %v2131_v0 = vpop.permute.xlu1 %2130 }
 0x360   : > { %v2134_v12 = vsel %vm2132_vm6, %v2129_v24, %v2131_v0 }
 0x361   : > { %v2267_v54 = vpop.permute.xlu0 %2266 }
 0x362   : > { %6365 = vmatmul.msk.f32.vlgmr.msrb.gmra.mxu1 %vm1926_vm13, %v2267_v54  ;;  %v1957_v4 = vpop.f32.mrf.mxu2 }
 0x363   : > { %1962 = vrot.lane.b32.xlu0 %v1954_v53, %s7054_s18  ;;  %6359 = vmatmul.msk.f32.vlgmr.msrb.gmra.mxu3 %vm1926_vm13, %v2133_v59  ;;  %1972 = vst.msk [vmem:[#allocation2 + $0x48] sm:$0xff] %vm1968_vm7, %v1957_v4 }
 0x364   : > { %1975 = vrot.lane.b32.xlu1 %v1957_v4, %s7053_s0 }
 0x366   : > { %v2344_v8 = vpop.permute.xlu2 %2343 }
 0x367   : > { %v2204_v11 = vpop.permute.xlu1 %2203 }
 0x368   : > { %v2207_v5 = vsel %vm2205_vm9, %v2202_v62, %v2204_v11  ;;  %vm2547_vm9 = vcmask 728064  }
 0x369   : > { %v2054_v63 = vpop.permute.xlu0 %2053  ;;  %6363 = vmatmul.msk.f32.gmra.mxu0 %vm1926_vm13, %v2207_v5 }
 0x36a   : > { %6357 = vmatmul.msk.f32.gmra.mxu2 %vm1926_vm13, %v2054_v63 }
 0x36b   : > { %1964 = vrot.lane.b32.xlu0 %v1957_v4, %s7054_s18  ;;  %6360 = vmatmul.msk.f32.gmra.mxu3 %vm1926_vm13, %v2134_v12 }
 0x36f   : > { %v2269_v6 = vpop.permute.xlu1 %2268 }
 0x370   : > { %6366 = vmatmul.msk.f32.gmra.mxu1 %vm1926_vm13, %v2269_v6 }
 0x371   : > { %v2340_v21 = vpop.permute.xlu0 %2339 }
 0x372   : > { %v2348_v28 = vsel %vm2347_vm0, %v2340_v21, %v2342_v31 }
 0x373   : > { %6368 = vmatmul.msk.f32.vlgmr.msra.gmra.mxu2 %vm1926_vm13, %v2348_v28 }
 0x377   : > { %v2346_v2 = vpop.permute.xlu1 %2345 }
 0x378   : > { %v2349_v33 = vsel %vm2347_vm0, %v2344_v8, %v2346_v2 }
 0x379   : > { %v2409_v17 = vpop.permute.xlu0 %2408 }
 0x37a   : > { %6371 = vmatmul.msk.f32.vlgmr.msra.gmra.mxu3 %vm1926_vm13, %v2409_v17 }
 0x37b   : > { %6369 = vmatmul.msk.f32.gmra.mxu2 %vm1926_vm13, %v2349_v33 }
 0x381   : > { %v2411_v23 = vpop.permute.xlu0 %2410 }
 0x382   : > { %6372 = vmatmul.msk.f32.gmra.mxu3 %vm1926_vm13, %v2411_v23  ;;  %vm2170_vm13 = vcmask 548064  }
 0x3bc   : > { %v2076_v27 = vpop.f32.mrf.mxu2 }
 0x3cd   : > { %v1974_v40 = vpop.permute.xlu0 %1973 }
 0x3ce   : > { %1979 = vst.msk [vmem:[#allocation2 + $0x60] sm:$0xff] %vm1968_vm7, %v1974_v40  ;;  %v2020_v43 = vpop.f32.mrf.mxu3  ;;  %v2229_v45 = vpop.f32.mrf.mxu0 }
 0x3cf   : > { %2254 = vrot.lane.b32.xlu2 %v2229_v45, %s7049_s7  ;;  %2045 = vst.msk [vmem:[#allocation2 + $0x60] sm:$0xff] %vm2034_vm8, %v2020_v43 }
 0x3d5   : > { %v1963_v56 = vpop.permute.xlu0 %1962 }
 0x3d6   : > { %1969 = vst.msk [vmem:[#allocation2] sm:$0xff] %vm1968_vm7, %v1963_v56  ;;  %v1976_v35 = vpop.permute.xlu1 %1975 }
 0x3d7   : > { %1980 = vst.msk [vmem:[#allocation2 + $0x78] sm:$0xff] %vm1968_vm7, %v1976_v35  ;;  %2237 = vrot.lane.b32.xlu2 %v2229_v45, %s7055_s22 }
 0x3dd   : > { %v1965_v29 = vpop.permute.xlu0 %1964 }
 0x3de   : > { %1970 = vst.msk [vmem:[#allocation2 + $0x18] sm:$0xff] %vm1968_vm7, %v1965_v29  ;;  %v2023_v48 = vpop.f32.mrf.mxu3 }
 0x3df   : > { %v2291_v37 = vpop.f32.mrf.mxu1  ;;  %2106 = vrot.lane.b32.xlu2 %v2076_v27, %s7054_s18  ;;  %2046 = vst.msk [vmem:[#allocation2 + $0x78] sm:$0xff] %vm2034_vm8, %v2023_v48 }
 0x3e0   : > { %2321 = vrot.lane.b32.xlu0 %v2291_v37, %s9462_s23  ;;  %2311 = vrot.lane.b32.xlu1 %v2291_v37, %s7055_s22 }
 0x3e6   : > { %v2232_v51 = vpop.f32.mrf.mxu0  ;;  %v2156_v15 = vpop.f32.mrf.mxu3 }
 0x3e7   : > { %2084 = vrot.lane.b32.xlu2 %v2076_v27, %s7049_s7 }
 0x3e8   : > { %2299 = vrot.lane.b32.xlu1 %v2291_v37, %s7057_s26  ;;  %2037 = vrot.lane.b32.xlu0 %v2020_v43, %s7054_s18 }
 0x3ed   : > { %v2079_v7 = vpop.f32.mrf.mxu2  ;;  %v2294_v52 = vpop.f32.mrf.mxu1 }
 0x3ee   : > { %v2159_v19 = vpop.f32.mrf.mxu3 }
 0x3ef   : > { %2108 = vrot.lane.b32.xlu2 %v2079_v7, %s7054_s18 }
 0x3f0   : > { %2028 = vrot.lane.b32.xlu0 %v2020_v43, %s7058_s1  ;;  %2246 = vrot.lane.b32.xlu1 %v2229_v45, %s9462_s23 }
 0x3f6   : > { %v2371_v20 = vpop.f32.mrf.mxu2 }
 0x3f7   : > { %2086 = vrot.lane.b32.xlu2 %v2079_v7, %s7049_s7 }
 0x3f8   : > { %2096 = vrot.lane.b32.xlu1 %v2076_v27, %s7058_s1  ;;  %2248 = vrot.lane.b32.xlu0 %v2232_v51, %s9462_s23 }
 0x3fd   : > { %v2433_v57 = vpop.f32.mrf.mxu3 }
 0x3fe   : > { %v2374_v16 = vpop.f32.mrf.mxu2 }
 0x3ff   : > { %2039 = vrot.lane.b32.xlu2 %v2023_v48, %s7054_s18 }
 0x400   : > { %2323 = vrot.lane.b32.xlu1 %v2294_v52, %s9462_s23  ;;  %2098 = vrot.lane.b32.xlu0 %v2079_v7, %s7058_s1 }
 0x405   : > { %v2436_v58 = vpop.f32.mrf.mxu3 }
 0x407   : > { %2181 = vrot.lane.b32.xlu2 %v2156_v15, %s7058_s1 }
 0x408   : > { %2313 = vrot.lane.b32.xlu1 %v2294_v52, %s7055_s22  ;;  %2030 = vrot.lane.b32.xlu0 %v2023_v48, %s7058_s1 }
 0x40f   : > { %2173 = vrot.lane.b32.xlu2 %v2156_v15, %s7049_s7 }
 0x410   : > { %2301 = vrot.lane.b32.xlu1 %v2294_v52, %s7057_s26  ;;  %2183 = vrot.lane.b32.xlu0 %v2159_v19, %s7058_s1  ;;  %s7064_s1 = smov 61  }
 0x417   : > { %2164 = vrot.lane.b32.xlu2 %v2156_v15, %s9462_s23 }
 0x418   : > { %2256 = vrot.lane.b32.xlu1 %v2232_v51, %s7049_s7  ;;  %2398 = vrot.lane.b32.xlu0 %v2374_v16, %s7055_s22 }
 0x41f   : > { %2390 = vrot.lane.b32.xlu2 %v2374_v16, %s7057_s26 }
 0x420   : > { %2239 = vrot.lane.b32.xlu1 %v2232_v51, %s7055_s22  ;;  %2388 = vrot.lane.b32.xlu0 %v2371_v20, %s7057_s26  ;;  %v2779_v51 = vld [vmem:[%s9487_s3 + $0x10] sm:$0xff] }
 0x427   : > { %2166 = vrot.lane.b32.xlu2 %v2159_v19, %s9462_s23  ;;  %s7079_s23 = smov 33  }
 0x428   : > { %2396 = vrot.lane.b32.xlu1 %v2371_v20, %s7055_s22  ;;  %2458 = vrot.lane.b32.xlu0 %v2433_v57, %s7057_s26  ;;  %s7061_s22 = smov 50  }
 0x429   : > { %v2255_v39 = vpop.permute.xlu2 %2254 }
 0x42f   : > { %2460 = vrot.lane.b32.xlu2 %v2436_v58, %s7057_s26  ;;  %s7062_s26 = smov 11  }
 0x430   : > { %2175 = vrot.lane.b32.xlu1 %v2159_v19, %s7049_s7  ;;  %2443 = vrot.lane.b32.xlu0 %v2436_v58, %s7059_s2  ;;  %s6572_s7 = smul.u32 48, %s9526_s16 }
 0x431   : > { %v8185_v49 = vpop.permute.xlu2 %2237 }
 0x432   : > { %s8467_s18 = scalar_lea.vmem %s7247_s14, %s6572_s7  ;;  %s7067_s7 = smov 109  }
 0x437   : > { %2450 = vrot.lane.b32.xlu2 %v2433_v57, %s7060_s11 }
 0x438   : > { %2381 = vrot.lane.b32.xlu1 %v2374_v16, %s7060_s11  ;;  %v2933_v16 = vld [vmem:[%s7172_s30] sm:$0xff] }
 0x439   : > { %v2107_v60 = vpop.permute.xlu2 %2106 }
 0x43a   : > { %2112 = vst.msk [vmem:[#allocation2 + $0x60] sm:$0xff] %vm2090_vm10, %v2107_v60 }
 0x43b   : > { %2113 = vst.msk [vmem:[#allocation2 + $0x68] sm:$0xff] %vm2092_vm11, %v2107_v60 }
 0x43f   : > { %2379 = vrot.lane.b32.xlu2 %v2371_v20, %s7060_s11 }
 0x440   : > { %2452 = vrot.lane.b32.xlu1 %v2436_v58, %s7060_s11  ;;  %s7066_s11 = smov 100  }
 0x441   : > { %v2085_v3 = vpop.permute.xlu2 %2084  ;;  %v2482_v10 = vld [vmem:[#allocation2 + $0x60] sm:$0xff] }
 0x442   : > { %2093 = vst.msk [vmem:[#allocation2 + $0x8] sm:$0xff] %vm2092_vm11, %v2085_v3 }
 0x448   : > { %2441 = vrot.lane.b32.xlu1 %v2433_v57, %s7059_s2  ;;  %s7065_s2 = smov 111  }
 0x449   : > { %v2109_v14 = vpop.permute.xlu2 %2108 }
 0x44a   : > { %2114 = vst.msk [vmem:[#allocation2 + $0x78] sm:$0xff] %vm2090_vm10, %v2109_v14 }
 0x44b   : > { %2115 = vst.msk [vmem:[#allocation2 + $0x80] sm:$0xff] %vm2092_vm11, %v2109_v14 }
 0x451   : > { %v2087_v9 = vpop.permute.xlu2 %2086  ;;  %v8192_v42 = vld [vmem:[#allocation2 + $0x78] sm:$0xff] }
 0x452   : > { %v2322_v61 = vpop.permute.xlu0 %2321  ;;  %v2312_v13 = vpop.permute.xlu1 %2311  ;;  %2095 = vst.msk [vmem:[#allocation2 + $0x20] sm:$0xff] %vm2092_vm11, %v2087_v9  ;;  %2700 = vmatpush.msrb.mxu3 %v8192_v42 }
 0x453   : > { %2328 = vst.msk [vmem:[#allocation2 + $0x70] sm:$0xff] %vm2307_vm12, %v2322_v61 }
 0x454   : > { %2318 = vst.msk [vmem:[#allocation2 + $0x40] sm:$0xff] %vm2307_vm12, %v2312_v13  ;;  %2701 = vmatpush.msrb.mxu3 %v2482_v10 }
 0x459   : > { %v2040_v1 = vpop.permute.xlu2 %2039 }
 0x45a   : > { %v2300_v30 = vpop.permute.xlu1 %2299  ;;  %v2038_v18 = vpop.permute.xlu0 %2037  ;;  %2044 = vst.msk [vmem:[#allocation2 + $0x48] sm:$0xff] %vm2034_vm8, %v2040_v1 }
 0x45b   : > { %2308 = vst.msk [vmem:[#allocation2 + $0x10] sm:$0xff] %vm2307_vm12, %v2300_v30 }
 0x45c   : > { %2043 = vst.msk [vmem:[#allocation2 + $0x30] sm:$0xff] %vm2034_vm8, %v2038_v18 }
 0x461   : > { %v2182_v26 = vpop.permute.xlu2 %2181 }
 0x462   : > { %v2029_v47 = vpop.permute.xlu0 %2028  ;;  %v2247_v22 = vpop.permute.xlu1 %2246  ;;  %2187 = vst.msk [vmem:[#allocation2 + $0x68] sm:$0xff] %vm2170_vm13, %v2182_v26 }
 0x463   : > { %2035 = vst.msk [vmem:[#allocation2] sm:$0xff] %vm2034_vm8, %v2029_v47 }
 0x464   : > { %2091 = vst.msk [vmem:[#allocation2] sm:$0xff] %vm2090_vm10, %v2085_v3  ;;  %v2780_v3 = vld [vmem:[%s9487_s3 + $0x18] sm:$0xff] }
 0x465   : > { %2260 = vst.msk [vmem:[#allocation2 + $0x68] sm:$0xff] %vm2243_vm14, %v2255_v39 }
 0x466   : > { %2327 = vst.msk [vmem:[#allocation2 + $0x68] sm:$0xff] %vm2305_vm1, %v2322_v61  ;;  %v2778_v61 = vld [vmem:[%s9487_s3 + $0x8] sm:$0xff] }
 0x469   : > { %v2174_v41 = vpop.permute.xlu2 %2173 }
 0x46a   : > { %v2097_v25 = vpop.permute.xlu1 %2096  ;;  %v8206_v38 = vpop.permute.xlu0 %2248 }
 0x46b   : > { %2102 = vst.msk [vmem:[#allocation2 + $0x30] sm:$0xff] %vm2090_vm10, %v2097_v25  ;;  %v2470_v5 = vld [vmem:[#allocation2] sm:$0xff] }
 0x46c   : > { %2103 = vst.msk [vmem:[#allocation2 + $0x38] sm:$0xff] %vm2092_vm11, %v2097_v25 }
 0x46d   : > { %2179 = vst.msk [vmem:[#allocation2 + $0x38] sm:$0xff] %vm2170_vm13, %v2174_v41  ;;  %v8211_v55 = vld [vmem:[#allocation2 + $0x68] sm:$0xff] }
 0x46e   : > { %2252 = vst.msk [vmem:[#allocation2 + $0x38] sm:$0xff] %vm2243_vm14, %v2247_v22  ;;  %v6750_v46 = vpack.i.bf16 %v8211_v55, %v2482_v10  ;;  %v2934_v10 = vld [vmem:[%s7172_s30 + $0x8] sm:$0xff] }
 0x46f   : > { %2317 = vst.msk [vmem:[#allocation2 + $0x38] sm:$0xff] %vm2305_vm1, %v2312_v13  ;;  %v2777_v13 = vld [vmem:[%s9487_s3] sm:$0xff]  ;;  %s7094_s3 = smov 83  }
 0x470   : > { %6751 = vrot.lane.b32.xlu2 %v6750_v46, %s7053_s0  ;;  %v8310_v46 = vld [vmem:[%s7122_s13 + $0x8] sm:$0xff] }
 0x471   : > { %v2165_v32 = vpop.permute.xlu2 %2164 }
 0x472   : > { %v2324_v36 = vpop.permute.xlu1 %2323  ;;  %v2099_v24 = vpop.permute.xlu0 %2098  ;;  %2171 = vst.msk [vmem:[#allocation2 + $0x8] sm:$0xff] %vm2170_vm13, %v2165_v32  ;;  %v2476_v54 = vld [vmem:[#allocation2 + $0x30] sm:$0xff] }
 0x473   : > { %2330 = vst.msk [vmem:[#allocation2 + $0x88] sm:$0xff] %vm2307_vm12, %v2324_v36 }
 0x474   : > { %2104 = vst.msk [vmem:[#allocation2 + $0x48] sm:$0xff] %vm2090_vm10, %v2099_v24 }
 0x475   : > { %2105 = vst.msk [vmem:[#allocation2 + $0x50] sm:$0xff] %vm2092_vm11, %v2099_v24 }
 0x476   : > { %2244 = vst.msk [vmem:[#allocation2 + $0x8] sm:$0xff] %vm2243_vm14, %v8185_v49  ;;  %v8247_v33 = vld [vmem:[#allocation2 + $0x38] sm:$0xff] }
 0x477   : > { %2306 = vst.msk [vmem:[#allocation2 + $0x8] sm:$0xff] %vm2305_vm1, %v2300_v30  ;;  %v6760_v45 = vpack.i.bf16 %v8247_v33, %v2476_v54  ;;  %v8303_v30 = vld [vmem:[%s7122_s13] sm:$0xff] }
 0x479   : > { %v2391_v50 = vpop.permute.xlu2 %2390 }
 0x47a   : > { %v2314_v53 = vpop.permute.xlu1 %2313  ;;  %v2031_v44 = vpop.permute.xlu0 %2030 }
 0x47b   : > { %2320 = vst.msk [vmem:[#allocation2 + $0x58] sm:$0xff] %vm2307_vm12, %v2314_v53  ;;  %v8225_v0 = vld [vmem:[#allocation2 + $0x48] sm:$0xff] }
 0x47c   : > { %2036 = vst.msk [vmem:[#allocation2 + $0x18] sm:$0xff] %vm2034_vm8, %v2031_v44  ;;  %2702 = vmatpush.msrb.mxu3 %v8225_v0 }
 0x47d   : > { %2094 = vst.msk [vmem:[#allocation2 + $0x18] sm:$0xff] %vm2090_vm10, %v2087_v9 }
 0x47e   : > { %2395 = vst.msk [vmem:[#allocation2 + $0x58] sm:$0xff] %vm2385_vm2, %v2391_v50  ;;  %2703 = vmatpush.msrb.mxu3 %v2476_v54  ;;  %v8277_v20 = vld [vmem:[#allocation2 + $0x8] sm:$0xff]  ;;  %v8315_v50 = vld [vmem:[%s7122_s13 + $0x10] sm:$0xff] }
 0x47f   : > { %v6775_v57 = vpack.i.bf16 %v8277_v20, %v2470_v5 }
 0x481   : > { %v2167_v59 = vpop.permute.xlu2 %2166 }
 0x482   : > { %v2302_v62 = vpop.permute.xlu1 %2301  ;;  %v2184_v4 = vpop.permute.xlu0 %2183  ;;  %2172 = vst.msk [vmem:[#allocation2 + $0x20] sm:$0xff] %vm2170_vm13, %v2167_v59 }
 0x483   : > { %2310 = vst.msk [vmem:[#allocation2 + $0x28] sm:$0xff] %vm2307_vm12, %v2302_v62 }
 0x484   : > { %2188 = vst.msk [vmem:[#allocation2 + $0x80] sm:$0xff] %vm2170_vm13, %v2184_v4  ;;  %v2473_v11 = vld [vmem:[#allocation2 + $0x18] sm:$0xff] }
 0x485   : > { %2704 = vmatpush.msrb.mxu3 %v2473_v11 }
 0x487   : > { %2705 = vmatpush.msrb.mxu3 %v2470_v5 }
 0x488   : > { %6389 = vmatmul.msk.f32.vlgmr.msrb.gmra.mxu3 %vm2578_vm4, %v8303_v30 }
 0x489   : > { %v2461_v63 = vpop.permute.xlu2 %2460 }
 0x48a   : > { %v2257_v12 = vpop.permute.xlu1 %2256  ;;  %v2399_v31 = vpop.permute.xlu0 %2398 }
 0x48b   : > { %2261 = vst.msk [vmem:[#allocation2 + $0x80] sm:$0xff] %vm2243_vm14, %v2257_v12 }
 0x48c   : > { %2329 = vst.msk [vmem:[#allocation2 + $0x80] sm:$0xff] %vm2305_vm1, %v2324_v36 }
 0x48d   : > { %2403 = vst.msk [vmem:[#allocation2 + $0x88] sm:$0xff] %vm2385_vm2, %v2399_v31 }
 0x48e   : > { %2465 = vst.msk [vmem:[#allocation2 + $0x88] sm:$0xff] %vm2447_vm3, %v2461_v63 }
 0x490   : > { %6390 = vmatmul.msk.f32.gmra.mxu3 %vm2578_vm4, %v8310_v46 }
 0x491   : > { %v2451_v6 = vpop.permute.xlu2 %2450 }
 0x492   : > { %v2240_v21 = vpop.permute.xlu1 %2239  ;;  %v2389_v28 = vpop.permute.xlu0 %2388 }
 0x493   : > { %2245 = vst.msk [vmem:[#allocation2 + $0x20] sm:$0xff] %vm2243_vm14, %v2240_v21  ;;  %v8239_v8 = vld [vmem:[#allocation2 + $0x80] sm:$0xff] }
 0x494   : > { %2309 = vst.msk [vmem:[#allocation2 + $0x20] sm:$0xff] %vm2305_vm1, %v2302_v62  ;;  %v6755_v2 = vpack.i.bf16 %v8239_v8, %v8192_v42 }
 0x495   : > { %2394 = vst.msk [vmem:[#allocation2 + $0x40] sm:$0xff] %vm2385_vm2, %v2389_v28  ;;  %v8261_v27 = vld [vmem:[#allocation2 + $0x88] sm:$0xff] }
 0x496   : > { %2456 = vst.msk [vmem:[#allocation2 + $0x40] sm:$0xff] %vm2447_vm3, %v2451_v6  ;;  %6756 = vrot.lane.b32.xlu0 %v6755_v2, %s7053_s0 }
 0x498   : > { %6391 = vmatmul.msk.f32.gmra.mxu3 %vm2578_vm4, %v8315_v50 }
 0x499   : > { %v2380_v17 = vpop.permute.xlu2 %2379 }
 0x49a   : > { %v2397_v23 = vpop.permute.xlu1 %2396  ;;  %v2459_v40 = vpop.permute.xlu0 %2458  ;;  %2386 = vst.msk [vmem:[#allocation2 + $0x10] sm:$0xff] %vm2385_vm2, %v2380_v17 }
 0x49b   : > { %2402 = vst.msk [vmem:[#allocation2 + $0x70] sm:$0xff] %vm2385_vm2, %v2397_v23  ;;  %v8251_v43 = vld [vmem:[#allocation2 + $0x20] sm:$0xff] }
 0x49c   : > { %2464 = vst.msk [vmem:[#allocation2 + $0x70] sm:$0xff] %vm2447_vm3, %v2459_v40  ;;  %v6770_v56 = vpack.i.bf16 %v8251_v43, %v2473_v11  ;;  %v8322_v11 = vld [vmem:[%s7122_s13 + $0x18] sm:$0xff] }
 0x49d   : > { %v8283_v58 = vld [vmem:[#allocation2 + $0x40] sm:$0xff] }
 0x49e   : > { %6761 = vrot.lane.b32.xlu0 %v6760_v45, %s7053_s0  ;;  %6771 = vrot.lane.b32.xlu2 %v6770_v56, %s7053_s0 }
 0x4a0   : > { %6392 = vmatmul.msk.f32.gmra.mxu3 %vm2578_vm4, %v8322_v11 }
 0x4a2   : > { %v2176_v35 = vpop.permute.xlu1 %2175  ;;  %v2444_v7 = vpop.permute.xlu0 %2443 }
 0x4a3   : > { %2180 = vst.msk [vmem:[#allocation2 + $0x50] sm:$0xff] %vm2170_vm13, %v2176_v35  ;;  %v8259_v29 = vld [vmem:[#allocation2 + $0x70] sm:$0xff] }
 0x4a4   : > { %2253 = vst.msk [vmem:[#allocation2 + $0x50] sm:$0xff] %vm2243_vm14, %v8206_v38  ;;  %v6780_v48 = vpack.i.bf16 %v8259_v29, %v8261_v27 }
 0x4a5   : > { %2319 = vst.msk [vmem:[#allocation2 + $0x50] sm:$0xff] %vm2305_vm1, %v2314_v53 }
 0x4a6   : > { %6781 = vrot.lane.b32.xlu0 %v6780_v48, %s7053_s0 }
 0x4aa   : > { %v2382_v37 = vpop.permute.xlu1 %2381 }
 0x4ab   : > { %2387 = vst.msk [vmem:[#allocation2 + $0x28] sm:$0xff] %vm2385_vm2, %v2382_v37  ;;  %v6373_v37 = vld [vmem:[%s7122_s13 + $0x20] sm:$0xff] }
 0x4ac   : > { %2449 = vst.msk [vmem:[#allocation2 + $0x28] sm:$0xff] %vm2447_vm3, %v2444_v7  ;;  %v8272_v52 = vld [vmem:[#allocation2 + $0x50] sm:$0xff] }
 0x4ad   : > { %v6765_v15 = vpack.i.bf16 %v8272_v52, %v8225_v0 }
 0x4ae   : > { %2793 = vperm.xlu0 %6747, %v2779_v51   ;;  %v6374_v51 = vld [vmem:[%s7122_s13 + $0x28] sm:$0xff] }
 0x4af   : > { %6766 = vrot.lane.b32.xlu1 %v6765_v15, %s7053_s0 }
 0x4b2   : > { %v2453_v19 = vpop.permute.xlu1 %2452 }
 0x4b3   : > { %2457 = vst.msk [vmem:[#allocation2 + $0x58] sm:$0xff] %vm2447_vm3, %v2453_v19  ;;  %v8294_v9 = vld [vmem:[#allocation2 + $0x28] sm:$0xff] }
 0x4b6   : > { %2943 = vperm.xlu0 %6747, %v2933_v16  }
 0x4b7   : > { %6776 = vrot.lane.b32.xlu1 %v6775_v57, %s7053_s0 }
 0x4ba   : > { %v2442_v39 = vpop.permute.xlu1 %2441  ;;  %v8285_v49 = vld [vmem:[#allocation2 + $0x58] sm:$0xff] }
 0x4bb   : > { %2448 = vst.msk [vmem:[#allocation2 + $0x10] sm:$0xff] %vm2447_vm3, %v2442_v39  ;;  %v6785_v60 = vpack.i.bf16 %v8283_v58, %v8285_v49 }
 0x4bd   : > { %6786 = vrot.lane.b32.xlu2 %v6785_v60, %s7053_s0 }
 0x4c2   : > { %v8292_v14 = vld [vmem:[#allocation2 + $0x10] sm:$0xff] }
 0x4c3   : > { %v6790_v42 = vpack.i.bf16 %v8292_v14, %v8294_v9 }
 0x4c5   : > { %2798 = vperm.xlu2 %6749, %v2780_v3   ;;  %6791 = vrot.lane.b32.xlu1 %v6790_v42, %s7053_s0 }
 0x4ca   : > { %v6752_v1 = vpop.permute.xlu2 %6751 }
 0x4cb   : > { %v6754_v26 = vunpack.i.h.bf16 %v6752_v1  ;;  %v6753_v47 = vunpack.i.l.bf16 %v6752_v1 }
 0x4cd   : > { %2788 = vperm.xlu2 %6749, %v2778_v61   ;;  %2783 = vperm.xlu1 %6748, %v2777_v13   ;;  %v2556_v38 = vsel %vm2547_vm9, %v6753_v47, %v6754_v26 }
 0x4d5   : > { %2948 = vperm.xlu1 %6748, %v2934_v10  }
 0x4f8   : > { %v6772_v36 = vpop.permute.xlu2 %6771 }
 0x4f9   : > { %v6774_v21 = vunpack.i.h.bf16 %v6772_v36  ;;  %v6773_v28 = vunpack.i.l.bf16 %v6772_v36  ;;  %v8404_v36 = vld [vmem:[%s7227_s21 + $0x18] sm:$0xff] }
 0x4fb   : > { %v2550_v45 = vsel %vm2547_vm9, %v6773_v28, %v6774_v21 }
 0x508   : > { %v6757_v18 = vpop.permute.xlu0 %6756 }
 0x509   : > { %v6759_v22 = vunpack.i.h.bf16 %v6757_v18  ;;  %v6758_v41 = vunpack.i.l.bf16 %v6757_v18 }
 0x50b   : > { %v2558_v25 = vsel %vm2547_vm9, %v6758_v41, %v6759_v22 }
 0x50c   : > { %2601 = vmatpush.msra.mxu0 %v2558_v25 }
 0x50e   : > { %2602 = vmatpush.msra.mxu0 %v2556_v38  ;;  %v8395_v38 = vld [vmem:[%s7227_s21 + $0x20] sm:$0x7f] }
 0x50f   : > { %6404 = vmatpush.msk.msra.mxu3 %vm1933_vm15, %v8395_v38 }
 0x510   : > { %v6762_v32 = vpop.permute.xlu0 %6761 }
 0x511   : > { %v6764_v63 = vunpack.i.h.bf16 %v6762_v32  ;;  %v6763_v12 = vunpack.i.l.bf16 %v6762_v32  ;;  %3060 = vmatpush.msra.mxu3 %v8404_v36 }
 0x513   : > { %v2552_v23 = vsel %vm2547_vm9, %v6763_v12, %v6764_v63  ;;  %v8434_v12 = vld [vmem:[%s7227_s21] sm:$0xff] }
 0x517   : > { %v6787_v0 = vpop.permute.xlu2 %6786 }
 0x518   : > { %v6782_v24 = vpop.permute.xlu0 %6781  ;;  %v6788_v59 = vunpack.i.l.bf16 %v6787_v0  ;;  %v6789_v4 = vunpack.i.h.bf16 %v6787_v0 }
 0x519   : > { %v6784_v53 = vunpack.i.h.bf16 %v6782_v24  ;;  %v6783_v44 = vunpack.i.l.bf16 %v6782_v24 }
 0x51a   : > { %v2553_v40 = vsel %vm2547_vm9, %v6764_v63, %v6789_v4 }
 0x51b   : > { %2659 = vmatpush.msrb.mxu2 %v6783_v44  ;;  %v2559_v54 = vsel %vm2547_vm9, %v6759_v22, %v6783_v44  ;;  %v2557_v62 = vsel %vm2547_vm9, %v6754_v26, %v6784_v53 }
 0x51c   : > { %2630 = vmatpush.msra.mxu1 %v2559_v54  ;;  %v8419_v54 = vld [vmem:[%s7227_s21 + $0x10] sm:$0xff] }
 0x51d   : > { %2660 = vmatpush.msrb.mxu2 %v6784_v53  ;;  %3061 = vmatpush.msra.mxu3 %v8419_v54 }
 0x51e   : > { %2631 = vmatpush.msra.mxu1 %v2557_v62  ;;  %v8427_v62 = vld [vmem:[%s7227_s21 + $0x8] sm:$0xff] }
 0x51f   : > { %2661 = vmatpush.msrb.mxu2 %v6788_v59  ;;  %v8389_v1 = vpop.permute.xlu2 %2798  ;;  %3062 = vmatpush.msra.mxu3 %v8427_v62 }
 0x520   : > { %v8384_v60 = vpop.permute.xlu0 %2793 }
 0x521   : > { %v6767_v5 = vpop.permute.xlu1 %6766  ;;  %2662 = vmatpush.msrb.mxu2 %v6789_v4  ;;  %3063 = vmatpush.msra.mxu3 %v8434_v12 }
 0x522   : > { %v6769_v31 = vunpack.i.h.bf16 %v6767_v5  ;;  %v6768_v6 = vunpack.i.l.bf16 %v6767_v5 }
 0x523   : > { %6410 = vmatpush.msk.msrb.mxu3 %vm1933_vm15, %v8395_v38 }
 0x524   : > { %v2554_v2 = vsel %vm2547_vm9, %v6768_v6, %v6769_v31  ;;  %v2555_v17 = vsel %vm2547_vm9, %v6769_v31, %v6788_v59 }
 0x525   : > { %2603 = vmatpush.msra.mxu0 %v2554_v2  ;;  %2632 = vmatpush.msra.mxu1 %v2555_v17 }
 0x526   : > { %3189 = vmatpush.msrb.mxu3 %v8404_v36 }
 0x527   : > { %2604 = vmatpush.msra.mxu0 %v2552_v23  ;;  %2633 = vmatpush.msra.mxu1 %v2553_v40 }
 0x528   : > { %3190 = vmatpush.msrb.mxu3 %v8419_v54 }
 0x529   : > { %v6777_v56 = vpop.permute.xlu1 %6776  ;;  %2605 = vmatpush.msra.mxu0 %v2550_v45 }
 0x52a   : > { %v6779_v35 = vunpack.i.h.bf16 %v6777_v56  ;;  %v6778_v48 = vunpack.i.l.bf16 %v6777_v56  ;;  %3191 = vmatpush.msrb.mxu3 %v8427_v62 }
 0x52c   : > { %v2548_v7 = vsel %vm2547_vm9, %v6778_v48, %v6779_v35  ;;  %3192 = vmatpush.msrb.mxu3 %v8434_v12 }
 0x52d   : > { %2606 = vmatpush.msra.mxu0 %v2548_v7 }
 0x52e   : > { %6377 = vmatmul.msk.f32.vlgmr.msra.gmra.mxu0 %vm2578_vm4, %v6373_v37 }
 0x52f   : > { %2729 = vmatpush.msrb.mxu0 %v8239_v8 }
 0x531   : > { %2730 = vmatpush.msrb.mxu0 %v8211_v55  ;;  %v6375_v55 = vld [vmem:[%s7122_s13 + $0x30] sm:$0xff] }
 0x533   : > { %2731 = vmatpush.msrb.mxu0 %v8272_v52 }
 0x535   : > { %2732 = vmatpush.msrb.mxu0 %v8247_v33  ;;  %v6376_v33 = vld [vmem:[%s7122_s13 + $0x38] sm:$0xff] }
 0x536   : > { %6378 = vmatmul.msk.f32.gmra.mxu0 %vm2578_vm4, %v6374_v51 }
 0x537   : > { %2733 = vmatpush.msrb.mxu0 %v8251_v43  ;;  %v6792_v15 = vpop.permute.xlu1 %6791  ;;  %v2707_v43 = vpop.f32.mrf.mxu3 }
 0x538   : > { %v6794_v19 = vunpack.i.h.bf16 %v6792_v15  ;;  %v6793_v16 = vunpack.i.l.bf16 %v6792_v15  ;;  %v8460_v15 = vpop.permute.xlu0 %2943 }
 0x539   : > { %2734 = vmatpush.msrb.mxu0 %v8277_v20 }
 0x53a   : > { %2663 = vmatpush.msrb.mxu2 %v6793_v16  ;;  %v2551_v8 = vsel %vm2547_vm9, %v6774_v21, %v6793_v16  ;;  %v2549_v52 = vsel %vm2547_vm9, %v6779_v35, %v6794_v19 }
 0x53b   : > { %2634 = vmatpush.msra.mxu1 %v2551_v8  ;;  %6413 = vmatpush.msk.msra.mxu0 %vm1933_vm15, %v8395_v38 }
 0x53c   : > { %2664 = vmatpush.msrb.mxu2 %v6794_v19 }
 0x53d   : > { %2635 = vmatpush.msra.mxu1 %v2549_v52  ;;  %6385 = vmatmul.msk.f32.vlgmr.msrb.gmra.mxu2 %vm2578_vm4, %v6373_v37 }
 0x53e   : > { %6379 = vmatmul.msk.f32.gmra.mxu0 %vm2578_vm4, %v6375_v55  ;;  %6381 = vmatmul.msk.f32.vlgmr.msra.gmra.mxu1 %vm2578_vm4, %v6373_v37 }
 0x53f   : > { %2758 = vmatpush.msrb.mxu1 %v8261_v27  ;;  %v8378_v27 = vpop.f32.mrf.mxu3  ;;  %6401 = vmatpush.msk.msra.mxu2 %vm1933_vm15, %v8395_v38  ;;  %v8440_v31 = vpop.permute.xlu1 %2783 }
 0x540   : > { %3251 = vmatpush.msra.mxu0 %v8404_v36 }
 0x541   : > { %2759 = vmatpush.msrb.mxu1 %v8259_v29  ;;  %3004 = vmatpush.msra.mxu2 %v8404_v36 }
 0x542   : > { %3252 = vmatpush.msra.mxu0 %v8419_v54 }
 0x543   : > { %2760 = vmatpush.msrb.mxu1 %v8285_v49  ;;  %3005 = vmatpush.msra.mxu2 %v8419_v54 }
 0x544   : > { %3253 = vmatpush.msra.mxu0 %v8427_v62 }
 0x545   : > { %2761 = vmatpush.msrb.mxu1 %v8283_v58  ;;  %6386 = vmatmul.msk.f32.gmra.mxu2 %vm2578_vm4, %v6374_v51 }
 0x546   : > { %6380 = vmatmul.msk.f32.gmra.mxu0 %vm2578_vm4, %v6376_v33  ;;  %6382 = vmatmul.msk.f32.gmra.mxu1 %vm2578_vm4, %v6374_v51 }
 0x547   : > { %2762 = vmatpush.msrb.mxu1 %v8294_v9  ;;  %v2713_v57 = vpop.f32.mrf.mxu3  ;;  %3006 = vmatpush.msra.mxu2 %v8427_v62 }
 0x548   : > { %3254 = vmatpush.msra.mxu0 %v8434_v12 }
 0x549   : > { %2763 = vmatpush.msrb.mxu1 %v8292_v14  ;;  %3007 = vmatpush.msra.mxu2 %v8434_v12 }
 0x54b   : > { %6416 = vmatpush.msk.msra.mxu1 %vm1933_vm15, %v8395_v38  ;;  %6407 = vmatpush.msk.msrb.mxu2 %vm1933_vm15, %v8395_v38 }
 0x54d   : > { %6387 = vmatmul.msk.f32.gmra.mxu2 %vm2578_vm4, %v6375_v55  ;;  %3313 = vmatpush.msra.mxu1 %v8404_v36 }
 0x54e   : > { %6383 = vmatmul.msk.f32.gmra.mxu1 %vm2578_vm4, %v6375_v55  ;;  %6393 = vmatmul.msk.f32.vlgmr.msrb.gmra.mxu0 %vm2578_vm4, %v8303_v30 }
 0x54f   : > { %v2716_v9 = vpop.f32.mrf.mxu3  ;;  %3314 = vmatpush.msra.mxu1 %v8419_v54  ;;  %3116 = vmatpush.msrb.mxu2 %v8404_v36 }
 0x551   : > { %3315 = vmatpush.msra.mxu1 %v8427_v62  ;;  %3117 = vmatpush.msrb.mxu2 %v8419_v54 }
 0x553   : > { %3316 = vmatpush.msra.mxu1 %v8434_v12  ;;  %3118 = vmatpush.msrb.mxu2 %v8427_v62 }
 0x555   : > { %6388 = vmatmul.msk.f32.gmra.mxu2 %vm2578_vm4, %v6376_v33 }
 0x556   : > { %6384 = vmatmul.msk.f32.gmra.mxu1 %vm2578_vm4, %v6376_v33  ;;  %6394 = vmatmul.msk.f32.gmra.mxu0 %vm2578_vm4, %v8310_v46 }
 0x557   : > { %3119 = vmatpush.msrb.mxu2 %v8434_v12 }
 0x55e   : > { %6395 = vmatmul.msk.f32.gmra.mxu0 %vm2578_vm4, %v8315_v50  ;;  %6397 = vmatmul.msk.f32.vlgmr.msrb.gmra.mxu1 %vm2578_vm4, %v8303_v30 }
 0x566   : > { %6396 = vmatmul.msk.f32.gmra.mxu0 %vm2578_vm4, %v8322_v11  ;;  %6398 = vmatmul.msk.f32.gmra.mxu1 %vm2578_vm4, %v8310_v46 }
 0x56e   : > { %6399 = vmatmul.msk.f32.gmra.mxu1 %vm2578_vm4, %v8315_v50 }
 0x576   : > { %6400 = vmatmul.msk.f32.gmra.mxu1 %vm2578_vm4, %v8322_v11 }
 0x5ab   : > { %v2608_v29 = vpop.f32.mrf.mxu0 }
 0x5ac   : > { %v2708_v4 = vadd.f32 %v2707_v43, %v2608_v29  ;;  %v8472_v43 = vpop.permute.xlu2 %2788 }
 0x5ae   : > { %v2801_v28 = vadd.f32 %v8440_v31, %v2708_v4 }
 0x5b3   : > { %v8380_v20 = vpop.f32.mrf.mxu0 }
 0x5b4   : > { %v2711_v19 = vadd.f32 %v8378_v27, %v8380_v20 }
 0x5bb   : > { %v2614_v39 = vpop.f32.mrf.mxu0  ;;  %v8382_v58 = vpop.f32.mrf.mxu1 }
 0x5bc   : > { %v2714_v49 = vadd.f32 %v2713_v57, %v2614_v39  ;;  %v2804_v57 = vadd.f32 %v8472_v43, %v2711_v19 }
 0x5be   : > { %v2807_v3 = vadd.f32 %v8384_v60, %v2714_v49 }
 0x5c0   : > { %v2813_v14 = vsub.f32 0.0, %v2807_v3  ;;  %v8401_v32 = vpop.f32.mrf.mxu2 }
 0x5c2   : > { %v2819_v42 = vmul.f32 1.442695, %v2813_v14 }
 0x5c3   : > { %v2617_v61 = vpop.f32.mrf.mxu0  ;;  %v8387_v13 = vpop.f32.mrf.mxu1 }
 0x5c4   : > { %6901 = vpow2.f32 %v2819_v42  ;;  %v2717_v10 = vadd.f32 %v2716_v9, %v2617_v61 }
 0x5c6   : > { %v2810_v30 = vadd.f32 %v8389_v1, %v2717_v10 }
 0x5c8   : > { %v2816_v18 = vsub.f32 0.0, %v2810_v30  ;;  %v8455_v48 = vpop.f32.mrf.mxu2  ;;  %v8488_v30 = vpop.permute.xlu1 %2948 }
 0x5ca   : > { %v6902_v26 = vpop.eup %6901  ;;  %v2825_v47 = vmul.f32 1.442695, %v2816_v18 }
 0x5cb   : > { %v2831_v22 = vadd.f32 1.0, %v6902_v26  ;;  %v2643_v41 = vpop.f32.mrf.mxu1  ;;  %v8392_v25 = vpop.f32.mrf.mxu0 }
 0x5cc   : > { %6903 = vpow2.f32 %v2825_v47 }
 0x5cd   : > { %6905 = vrcp.f32 %v2831_v22  ;;  %v2848_v11 = vand.u32 2147483648, %v2831_v22  ;;  %v2846_v63 = vand.u32 2147483647, %v2831_v22  ;;  %vm2842_vm0 = vweird.f32 %v2831_v22 }
 0x5cf   : > { %v2849_v2 = vor.u32 1.1754944e-38, %v2848_v11  ;;  %vm2847_vm10 = vcmp.eq.f32.partialorder %v2846_v63, 8.507059e+37 }
 0x5d0   : > { %v2672_v18 = vpop.f32.mrf.mxu2 }
 0x5d2   : > { %v6904_v46 = vpop.eup %6903 }
 0x5d3   : > { %v6906_v24 = vpop.eup %6905  ;;  %v8410_v50 = vadd.f32 1.0, %v6904_v46  ;;  %v8412_v53 = vpop.f32.mrf.mxu1 }
 0x5d4   : > { %v8414_v44 = vpop.f32.mrf.mxu0  ;;  %v2838_v0 = vmul.f32 %v6906_v24, %v2831_v22  ;;  %vm2843_vm7 = vweird.f32 %v6906_v24 }
 0x5d5   : > { %6907 = vrcp.f32 %v8410_v50  ;;  %vm2844_vm8 = vmor %vm2842_vm0, %vm2843_vm7  ;;  %v2891_v16 = vand.u32 2147483647, %v8410_v50  ;;  %v2893_v8 = vand.u32 2147483648, %v8410_v50  ;;  %vm2887_vm13 = vweird.f32 %v8410_v50 }
 0x5d6   : > { %v2839_v59 = vsub.f32 1.0, %v2838_v0 }
 0x5d7   : > { %v2894_v39 = vor.u32 1.1754944e-38, %v2893_v8  ;;  %vm2892_vm1 = vcmp.eq.f32.partialorder %v2891_v16, 8.507059e+37 }
 0x5d8   : > { %v2840_v5 = vmul.f32 %v6906_v24, %v2839_v59  ;;  %v2675_v4 = vpop.f32.mrf.mxu2 }
 0x5da   : > { %v2841_v6 = vadd.f32 %v6906_v24, %v2840_v5 }
 0x5db   : > { %v6908_v21 = vpop.eup %6907  ;;  %v8447_v23 = vpop.f32.mrf.mxu1 }
 0x5dc   : > { %v2742_v17 = vpop.f32.mrf.mxu0  ;;  %v2845_v40 = vsel %vm2844_vm8, %v6906_v24, %v2841_v6  ;;  %v2883_v45 = vmul.f32 %v6908_v21, %v8410_v50  ;;  %vm2888_vm11 = vweird.f32 %v6908_v21 }
 0x5dd   : > { %v2743_v56 = vadd.f32 %v2742_v17, %v2643_v41  ;;  %v2850_v35 = vsel %vm2847_vm10, %v2849_v2, %v2845_v40  ;;  %vm2889_vm14 = vmor %vm2887_vm13, %vm2888_vm11 }
 0x5de   : > { %v2927_v37 = vmul.f32 %v2850_v35, %v2801_v28  ;;  %v2884_v7 = vsub.f32 1.0, %v2883_v45 }
 0x5df   : > { %v2808_v51 = vadd.f32 %v8384_v60, %v2743_v56 }
 0x5e0   : > { %vm2935_vm12 = vcmp.ge.f32.partialorder %v2927_v37, 0.0  ;;  %v2951_v55 = vmul.f32 %v8460_v15, %v2927_v37  ;;  %v2885_v52 = vmul.f32 %v6908_v21, %v2884_v7 }
 0x5e1   : > { %v2814_v33 = vsub.f32 0.0, %v2808_v51 }
 0x5e2   : > { %v2957_v29 = vsel %vm2935_vm12, %v2927_v37, %v2951_v55  ;;  %v2886_v27 = vadd.f32 %v6908_v21, %v2885_v52 }
 0x5e3   : > { %v2821_v20 = vmul.f32 1.442695, %v2814_v33  ;;  %2963 = vst [vmem:[%s8467_s18] sm:$0xff] %v2957_v29  ;;  %v8480_v3 = vpop.f32.mrf.mxu1  ;;  %3096 = vrot.lane.b32.xlu1 %v2957_v29, %s7061_s22  ;;  %3040 = vrot.lane.b32.xlu0 %v2957_v29, %s7053_s0 }
 0x5e4   : > { %v2745_v49 = vpop.f32.mrf.mxu0  ;;  %v2890_v14 = vsel %vm2889_vm14, %v6908_v21, %v2886_v27  ;;  %6402 = vmatmul.msk.f32.vlgmr.msra.gmra.mxu2 %vm1917_vm5, %v2957_v29  ;;  %v2740_v27 = vadd.f32 %v8414_v44, %v8387_v13 }
 0x5e5   : > { %6909 = vpow2.f32 %v2821_v20  ;;  %v2746_v9 = vadd.f32 %v2745_v49, %v8412_v53  ;;  %v2895_v42 = vsel %vm2892_vm1, %v2894_v39, %v2890_v14  ;;  %6419 = vmatpush.msk.msra.mxu2 %vm1933_vm15, %v8395_v38 }
 0x5e6   : > { %v2930_v61 = vmul.f32 %v2895_v42, %v2804_v57  ;;  %v2805_v13 = vadd.f32 %v8472_v43, %v2740_v27 }
 0x5e7   : > { %v2811_v10 = vadd.f32 %v8389_v1, %v2746_v9  ;;  %3393 = vmatpush.msra.mxu2 %v8404_v36 }
 0x5e8   : > { %vm2938_vm2 = vcmp.ge.f32.partialorder %v2930_v61, 0.0  ;;  %v2954_v26 = vmul.f32 %v8488_v30, %v2930_v61 }
 0x5e9   : > { %v2817_v47 = vsub.f32 0.0, %v2811_v10  ;;  %3394 = vmatpush.msra.mxu2 %v8419_v54 }
 0x5ea   : > { %v2960_v41 = vsel %vm2938_vm2, %v2930_v61, %v2954_v26 }
 0x5eb   : > { %v6910_v22 = vpop.eup %6909  ;;  %v2827_v46 = vmul.f32 1.442695, %v2817_v47  ;;  %2967 = vst [vmem:[%s8467_s18 + $0x18] sm:$0xff] %v2960_v41  ;;  %v2771_v50 = vpop.f32.mrf.mxu1  ;;  %3162 = vrot.lane.b32.xlu0 %v2957_v29, %s7062_s26  ;;  %3098 = vrot.lane.b32.xlu1 %v2960_v41, %s7061_s22  ;;  %s7069_s22 = smov 76  }
 0x5ec   : > { %v2832_v24 = vadd.f32 1.0, %v6910_v22  ;;  %v2772_v53 = vadd.f32 %v2771_v50, %v2672_v18  ;;  %3042 = vrot.lane.b32.xlu2 %v2960_v41, %s7053_s0  ;;  %6403 = vmatmul.msk.f32.gmra.mxu2 %vm1917_vm5, %v2960_v41  ;;  %s7063_s0 = smov 22  }
 0x5ed   : > { %6911 = vpow2.f32 %v2827_v46  ;;  %3395 = vmatpush.msra.mxu2 %v8427_v62  ;;  %v2766_v46 = vadd.f32 %v8447_v23, %v8401_v32 }
 0x5ee   : > { %6913 = vrcp.f32 %v2832_v24  ;;  %v2809_v0 = vadd.f32 %v8384_v60, %v2772_v53  ;;  %v2737_v60 = vadd.f32 %v8392_v25, %v8382_v58  ;;  %v2863_v45 = vand.u32 2147483648, %v2832_v24 }
 0x5ef   : > { %3396 = vmatpush.msra.mxu2 %v8434_v12  ;;  %v2861_v35 = vand.u32 2147483647, %v2832_v24  ;;  %vm2857_vm9 = vweird.f32 %v2832_v24  ;;  %v2803_v32 = vadd.f32 %v8440_v31, %v2766_v46 }
 0x5f0   : > { %v2815_v59 = vsub.f32 0.0, %v2809_v0  ;;  %v2802_v8 = vadd.f32 %v8440_v31, %v2737_v60  ;;  %v2864_v55 = vor.u32 1.1754944e-38, %v2863_v45 }
 0x5f1   : > { %vm2862_vm0 = vcmp.eq.f32.partialorder %v2861_v35, 8.507059e+37 }
 0x5f2   : > { %v2823_v5 = vmul.f32 1.442695, %v2815_v59 }
 0x5f3   : > { %v6912_v11 = vpop.eup %6911  ;;  %v2774_v21 = vpop.f32.mrf.mxu1  ;;  %3166 = vrot.lane.b32.xlu0 %v2960_v41, %s7062_s26 }
 0x5f4   : > { %v6914_v63 = vpop.eup %6913  ;;  %v2835_v6 = vadd.f32 1.0, %v6912_v11  ;;  %6915 = vpow2.f32 %v2823_v5  ;;  %v2775_v2 = vadd.f32 %v2774_v21, %v2675_v4 }
 0x5f5   : > { %v2853_v28 = vmul.f32 %v6914_v63, %v2832_v24  ;;  %vm2858_vm3 = vweird.f32 %v6914_v63 }
 0x5f6   : > { %6917 = vrcp.f32 %v2835_v6  ;;  %v2812_v40 = vadd.f32 %v8389_v1, %v2775_v2  ;;  %vm2859_vm7 = vmor %vm2857_vm9, %vm2858_vm3  ;;  %v2906_v20 = vand.u32 2147483647, %v2835_v6  ;;  %v2908_v57 = vand.u32 2147483648, %v2835_v6 }
 0x5f7   : > { %v2854_v17 = vsub.f32 1.0, %v2853_v28  ;;  %vm2902_vm11 = vweird.f32 %v2835_v6  ;;  %v2769_v2 = vadd.f32 %v8480_v3, %v8455_v48 }
 0x5f8   : > { %v2818_v37 = vsub.f32 0.0, %v2812_v40  ;;  %v2909_v10 = vor.u32 1.1754944e-38, %v2908_v57  ;;  %vm2907_vm13 = vcmp.eq.f32.partialorder %v2906_v20, 8.507059e+37 }
 0x5f9   : > { %v2855_v56 = vmul.f32 %v6914_v63, %v2854_v17  ;;  %v2806_v48 = vadd.f32 %v8472_v43, %v2769_v2 }
 0x5fa   : > { %v6916_v7 = vpop.eup %6915  ;;  %v2829_v19 = vmul.f32 1.442695, %v2818_v37 }
 0x5fb   : > { %v2856_v51 = vadd.f32 %v6914_v63, %v2855_v56  ;;  %v2833_v52 = vadd.f32 1.0, %v6916_v7 }
 0x5fc   : > { %v6918_v16 = vpop.eup %6917  ;;  %6919 = vpow2.f32 %v2829_v19 }
 0x5fd   : > { %v2860_v33 = vsel %vm2859_vm7, %v6914_v63, %v2856_v51  ;;  %v2898_v1 = vmul.f32 %v6918_v16, %v2835_v6  ;;  %6921 = vrcp.f32 %v2833_v52  ;;  %vm2903_vm10 = vweird.f32 %v6918_v16 }
 0x5fe   : > { %v2865_v58 = vsel %vm2862_vm0, %v2864_v55, %v2860_v33  ;;  %vm2904_vm12 = vmor %vm2902_vm11, %vm2903_vm10  ;;  %v2876_v24 = vand.u32 2147483647, %v2833_v52  ;;  %v2878_v50 = vand.u32 2147483648, %v2833_v52  ;;  %vm2872_vm2 = vweird.f32 %v2833_v52 }
 0x5ff   : > { %v2928_v25 = vmul.f32 %v2865_v58, %v2802_v8  ;;  %v2899_v29 = vsub.f32 1.0, %v2898_v1  ;;  %vm2965_vm7 = vcmask 457728  }
 0x600   : > { %v2879_v5 = vor.u32 1.1754944e-38, %v2878_v50  ;;  %vm2877_vm9 = vcmp.eq.f32.partialorder %v2876_v24, 8.507059e+37 }
 0x601   : > { %vm2936_vm8 = vcmp.ge.f32.partialorder %v2928_v25, 0.0  ;;  %v2952_v39 = vmul.f32 %v8460_v15, %v2928_v25  ;;  %v2900_v49 = vmul.f32 %v6918_v16, %v2899_v29 }
 0x602   : > { %v6920_v14 = vpop.eup %6919 }
 0x603   : > { %v8508_v9 = vsel %vm2936_vm8, %v2928_v25, %v2952_v39  ;;  %v2901_v42 = vadd.f32 %v6918_v16, %v2900_v49  ;;  %v6922_v61 = vpop.eup %6921  ;;  %v2836_v18 = vadd.f32 1.0, %v6920_v14 }
 0x604   : > { %2964 = vst [vmem:[%s8467_s18 + $0x8] sm:$0xff] %v8508_v9  ;;  %3366 = vrot.lane.b32.xlu1 %v8508_v9, %s7063_s0  ;;  %3164 = vrot.lane.b32.xlu2 %v8508_v9, %s7062_s26  ;;  %v2868_v26 = vmul.f32 %v6922_v61, %v2833_v52  ;;  %vm2873_vm1 = vweird.f32 %v6922_v61 }
 0x605   : > { %v2905_v44 = vsel %vm2904_vm12, %v6918_v16, %v2901_v42  ;;  %6923 = vrcp.f32 %v2836_v18  ;;  %vm2874_vm3 = vmor %vm2872_vm2, %vm2873_vm1  ;;  %v2921_v17 = vand.u32 2147483647, %v2836_v18  ;;  %v2923_v40 = vand.u32 2147483648, %v2836_v18 }
 0x606   : > { %v2910_v47 = vsel %vm2907_vm13, %v2909_v10, %v2905_v44  ;;  %v2869_v41 = vsub.f32 1.0, %v2868_v26  ;;  %vm2917_vm10 = vweird.f32 %v2836_v18  ;;  %vm3023_vm1 = vcmask 310424  }
 0x607   : > { %v2931_v22 = vmul.f32 %v2910_v47, %v2805_v13  ;;  %v2924_v35 = vor.u32 1.1754944e-38, %v2923_v40  ;;  %vm2922_vm12 = vcmp.eq.f32.partialorder %v2921_v17, 8.507059e+37  ;;  %vm3079_vm2 = vcmask 466224  }
 0x608   : > { %v2870_v0 = vmul.f32 %v6922_v61, %v2869_v41 }
 0x609   : > { %vm2939_vm14 = vcmp.ge.f32.partialorder %v2931_v22, 0.0  ;;  %v2955_v53 = vmul.f32 %v8488_v30, %v2931_v22 }
 0x60a   : > { %v2871_v4 = vadd.f32 %v6922_v61, %v2870_v0 }
 0x60b   : > { %v2961_v59 = vsel %vm2939_vm14, %v2931_v22, %v2955_v53  ;;  %v6924_v11 = vpop.eup %6923  ;;  %vm3170_vm14 = vcmask 89088  }
 0x60c   : > { %2968 = vst [vmem:[%s8467_s18 + $0x20] sm:$0xff] %v2961_v59  ;;  %3293 = vrot.lane.b32.xlu1 %v8508_v9, %s7064_s1  ;;  %3168 = vrot.lane.b32.xlu2 %v2961_v59, %s7062_s26  ;;  %v2875_v23 = vsel %vm2874_vm3, %v6922_v61, %v2871_v4  ;;  %v2913_v63 = vmul.f32 %v6924_v11, %v2836_v18  ;;  %vm2918_vm8 = vweird.f32 %v6924_v11  ;;  %s7070_s26 = smov 114   ;;  %vm3334_vm3 = vcmask 39936  }
 0x60d   : > { %v2880_v6 = vsel %vm2877_vm9, %v2879_v5, %v2875_v23  ;;  %vm2919_vm11 = vmor %vm2917_vm10, %vm2918_vm8  ;;  %vm3208_vm9 = vcmask 777824   ;;  %vm3412_vm8 = vcmask 195624   ;;  %vm3474_vm10 = vcmask 351424  }
 0x60e   : > { %v2929_v21 = vmul.f32 %v2880_v6, %v2803_v32  ;;  %v2914_v28 = vsub.f32 1.0, %v2913_v63 }
 0x610   : > { %vm2937_vm0 = vcmp.ge.f32.partialorder %v2929_v21, 0.0  ;;  %v2953_v60 = vmul.f32 %v8460_v15, %v2929_v21  ;;  %v2915_v45 = vmul.f32 %v6924_v11, %v2914_v28 }
 0x612   : > { %v2959_v31 = vsel %vm2937_vm0, %v2929_v21, %v2953_v60  ;;  %v2916_v56 = vadd.f32 %v6924_v11, %v2915_v45  ;;  %vm3332_vm0 = vcmask 1048464  }
 0x613   : > { %2966 = vst.msk [vmem:[%s8467_s18 + $0x10] sm:$0xff] %vm2965_vm7, %v2959_v31 }
 0x614   : > { %v2920_v3 = vsel %vm2919_vm11, %v6924_v11, %v2916_v56  ;;  %vm3550_vm11 = vcmask 891904  }
 0x615   : > { %v2925_v37 = vsel %vm2922_vm12, %v2924_v35, %v2920_v3  ;;  %vm3868_vm12 = vcmask 1042432  }
 0x616   : > { %v2932_v7 = vmul.f32 %v2925_v37, %v2806_v48 }
 0x618   : > { %vm2940_vm13 = vcmp.ge.f32.partialorder %v2932_v7, 0.0  ;;  %v2956_v15 = vmul.f32 %v8488_v30, %v2932_v7 }
 0x61a   : > { %v2962_v51 = vsel %vm2940_vm13, %v2932_v7, %v2956_v15  ;;  %v3359_v19 = vld [vmem:[%s8467_s18 + $0x10] sm:$0xff] }
 0x61b   : > { %2969 = vst.msk [vmem:[%s8467_s18 + $0x28] sm:$0xff] %vm2965_vm7, %v2962_v51  ;;  %3368 = vrot.lane.b32.xlu0 %v3359_v19, %s7063_s0  ;;  %3435 = vrot.lane.b32.xlu2 %v3359_v19, %s7065_s2  ;;  %vm3270_vm7 = vcmask 933624  }
 0x622   : > { %v3361_v16 = vld [vmem:[%s8467_s18 + $0x28] sm:$0xff]  ;;  %s7068_s18 = smov 57  }
 0x623   : > { %3231 = vrot.lane.b32.xlu0 %v8508_v9, %s7066_s11  ;;  %3372 = vrot.lane.b32.xlu1 %v3361_v16, %s7063_s0 }
 0x624   : > { %3370 = vrot.lane.b32.xlu2 %v2961_v59, %s7063_s0  ;;  %s7071_s0 = smov 95  }
 0x62b   : > { %3437 = vrot.lane.b32.xlu0 %v3361_v16, %s7065_s2  ;;  %3233 = vrot.lane.b32.xlu1 %v2961_v59, %s7066_s11  ;;  %s9511_s2 = sld [smem:[#allocation19_spill]]  ;;  %s6555_s11 = sshll.u32 %s9526_s16, 5 }
 0x62c   : > { %3295 = vrot.lane.b32.xlu2 %v2961_v59, %s7064_s1  ;;  %s9510_s1 = sld [smem:[#allocation6_spill]] }
 0x646   : > { %v3043_v8 = vpop.permute.xlu2 %3042 }
 0x655   : > { %v3097_v43 = vpop.permute.xlu1 %3096  ;;  %v3041_v30 = vpop.permute.xlu0 %3040 }
 0x656   : > { %6405 = vmatmul.msk.f32.vlgmr.msra.gmra.mxu3 %vm1917_vm5, %v3041_v30  ;;  %6408 = vmatmul.msk.f32.vlgmr.msrb.gmra.mxu2 %vm1917_vm5, %v3097_v43 }
 0x657   : > { %6422 = vmatpush.msk.msra.mxu3 %vm1933_vm15, %v8395_v38  ;;  %vm3374_vm15 = vcmask 179200  }
 0x659   : > { %3455 = vmatpush.msra.mxu3 %v8404_v36 }
 0x65b   : > { %3456 = vmatpush.msra.mxu3 %v8419_v54 }
 0x65d   : > { %v3099_v55 = vpop.permute.xlu1 %3098  ;;  %3457 = vmatpush.msra.mxu3 %v8427_v62  ;;  %v3163_v52 = vpop.permute.xlu0 %3162 }
 0x65e   : > { %6406 = vmatmul.msk.f32.gmra.mxu3 %vm1917_vm5, %v3043_v8  ;;  %6409 = vmatmul.msk.f32.gmra.mxu2 %vm1917_vm5, %v3099_v55  ;;  %v3165_v33 = vpop.permute.xlu2 %3164 }
 0x65f   : > { %3458 = vmatpush.msra.mxu3 %v8434_v12  ;;  %v3171_v1 = vsel %vm3170_vm14, %v3163_v52, %v3165_v33 }
 0x665   : > { %v3167_v36 = vpop.permute.xlu0 %3166 }
 0x666   : > { %6411 = vmatmul.msk.f32.vlgmr.msrb.gmra.mxu3 %vm1917_vm5, %v3171_v1  ;;  %v3169_v54 = vpop.permute.xlu2 %3168 }
 0x667   : > { %v3009_v38 = vpop.f32.mrf.mxu2  ;;  %v3172_v62 = vsel %vm3170_vm14, %v3167_v36, %v3169_v54 }
 0x668   : > { %3017 = vrot.lane.b32.xlu0 %v3009_v38, %s7046_s28  ;;  %3028 = vrot.lane.b32.xlu2 %v3009_v38, %s7067_s7  ;;  %3026 = vst.msk [vmem:[#allocation3 + $0x20] sm:$0xff] %vm3023_vm1, %v3009_v38 }
 0x66e   : > { %6412 = vmatmul.msk.f32.gmra.mxu3 %vm1917_vm5, %v3172_v62 }
 0x66f   : > { %v3012_v12 = vpop.f32.mrf.mxu2 }
 0x670   : > { %3019 = vrot.lane.b32.xlu2 %v3012_v12, %s7046_s28  ;;  %3030 = vrot.lane.b32.xlu0 %v3012_v12, %s7067_s7  ;;  %3027 = vst.msk [vmem:[#allocation3 + $0x30] sm:$0xff] %vm3023_vm1, %v3012_v12 }
 0x675   : > { %v3436_v58 = vpop.permute.xlu2 %3435 }
 0x676   : > { %v3367_v25 = vpop.permute.xlu1 %3366  ;;  %6423 = vmatmul.msk.f32.vlgmr.msra.gmra.mxu3 %vm1917_vm5, %v3436_v58 }
 0x67e   : > { %v3294_v29 = vpop.permute.xlu1 %3293  ;;  %v3371_v27 = vpop.permute.xlu2 %3370 }
 0x67f   : > { %6417 = vmatmul.msk.f32.vlgmr.msra.gmra.mxu1 %vm1917_vm5, %v3294_v29 }
 0x686   : > { %v3296_v20 = vpop.permute.xlu2 %3295 }
 0x687   : > { %6418 = vmatmul.msk.f32.gmra.mxu1 %vm1917_vm5, %v3296_v20 }
 0x68d   : > { %v3369_v57 = vpop.permute.xlu0 %3368 }
 0x68e   : > { %v3375_v39 = vsel %vm3374_vm15, %v3367_v25, %v3369_v57 }
 0x68f   : > { %6420 = vmatmul.msk.f32.vlgmr.msra.gmra.mxu2 %vm1917_vm5, %v3375_v39 }
 0x695   : > { %v3232_v49 = vpop.permute.xlu0 %3231  ;;  %v3373_v14 = vpop.permute.xlu1 %3372 }
 0x696   : > { %6414 = vmatmul.msk.f32.vlgmr.msra.gmra.mxu0 %vm1917_vm5, %v3232_v49  ;;  %v3376_v9 = vsel %vm3374_vm15, %v3371_v27, %v3373_v14 }
 0x697   : > { %6421 = vmatmul.msk.f32.gmra.mxu2 %vm1917_vm5, %v3376_v9 }
 0x69d   : > { %v3438_v42 = vpop.permute.xlu0 %3437  ;;  %v3234_v61 = vpop.permute.xlu1 %3233 }
 0x69e   : > { %6415 = vmatmul.msk.f32.gmra.mxu0 %vm1917_vm5, %v3234_v61  ;;  %6424 = vmatmul.msk.f32.gmra.mxu3 %vm1917_vm5, %v3438_v42  ;;  %vm3135_vm5 = vcmask 622024  }
 0x6c2   : > { %v3029_v10 = vpop.permute.xlu2 %3028 }
 0x6c3   : > { %3034 = vst.msk [vmem:[#allocation3 + $0x40] sm:$0xff] %vm3023_vm1, %v3029_v10 }
 0x6ca   : > { %v3020_v18 = vpop.permute.xlu2 %3019 }
 0x6cb   : > { %3025 = vst.msk [vmem:[#allocation3 + $0x10] sm:$0xff] %vm3023_vm1, %v3020_v18 }
 0x6d9   : > { %v3065_v13 = vpop.f32.mrf.mxu3  ;;  %v3121_v44 = vpop.f32.mrf.mxu2 }
 0x6da   : > { %v3018_v26 = vpop.permute.xlu0 %3017  ;;  %3073 = vrot.lane.b32.xlu2 %v3065_v13, %s7050_s10  ;;  %3082 = vrot.lane.b32.xlu0 %v3065_v13, %s7046_s28  ;;  %3090 = vst.msk [vmem:[#allocation3 + $0x40] sm:$0xff] %vm3079_vm2, %v3065_v13 }
 0x6db   : > { %3024 = vst.msk [vmem:[#allocation3] sm:$0xff] %vm3023_vm1, %v3018_v26  ;;  %3146 = vrot.lane.b32.xlu1 %v3121_v44, %s7046_s28 }
 0x6e1   : > { %v3068_v47 = vpop.f32.mrf.mxu3  ;;  %v3124_v22 = vpop.f32.mrf.mxu2 }
 0x6e2   : > { %v3031_v41 = vpop.permute.xlu0 %3030  ;;  %3131 = vrot.lane.b32.xlu2 %v3124_v22, %s7068_s18  ;;  %3140 = vrot.lane.b32.xlu0 %v3124_v22, %s7050_s10 }
 0x6e3   : > { %3035 = vst.msk [vmem:[#allocation3 + $0x50] sm:$0xff] %vm3023_vm1, %v3031_v41  ;;  %3138 = vrot.lane.b32.xlu1 %v3121_v44, %s7050_s10 }
 0x6e4   : > { %3091 = vst.msk [vmem:[#allocation3 + $0x50] sm:$0xff] %vm3079_vm2, %v3068_v47 }
 0x6e9   : > { %v3194_v24 = vpop.f32.mrf.mxu3 }
 0x6eb   : > { %3129 = vrot.lane.b32.xlu1 %v3121_v44, %s7068_s18 }
 0x6f1   : > { %v3197_v59 = vpop.f32.mrf.mxu3 }
 0x6f3   : > { %3148 = vrot.lane.b32.xlu1 %v3124_v22, %s7046_s28 }
 0x6f9   : > { %v3460_v11 = vpop.f32.mrf.mxu3 }
 0x6fb   : > { %3084 = vrot.lane.b32.xlu1 %v3068_v47, %s7046_s28  ;;  %s7072_s28 = smov 5  }
 0x6fc   : > { %v3318_v46 = vpop.f32.mrf.mxu1 }
 0x6fd   : > { %3348 = vrot.lane.b32.xlu2 %v3318_v46, %s7069_s22  ;;  %3326 = vrot.lane.b32.xlu0 %v3318_v46, %s7070_s26 }
 0x703   : > { %3075 = vrot.lane.b32.xlu1 %v3068_v47, %s7050_s10 }
 0x704   : > { %v3321_v0 = vpop.f32.mrf.mxu1 }
 0x705   : > { %3219 = vrot.lane.b32.xlu0 %v3194_v24, %s7050_s10 }
 0x70d   : > { %3211 = vrot.lane.b32.xlu0 %v3194_v24, %s7068_s18 }
 0x712   : > { %v3398_v4 = vpop.f32.mrf.mxu2 }
 0x713   : > { %v3256_v50 = vpop.f32.mrf.mxu0 }
 0x714   : > { %3281 = vrot.lane.b32.xlu2 %v3256_v50, %s7068_s18  ;;  %3273 = vrot.lane.b32.xlu1 %v3256_v50, %s7069_s22 }
 0x71a   : > { %v3401_v32 = vpop.f32.mrf.mxu2 }
 0x71b   : > { %v3259_v53 = vpop.f32.mrf.mxu0 }
 0x71c   : > { %3338 = vrot.lane.b32.xlu2 %v3318_v46, %s7071_s0  ;;  %3283 = vrot.lane.b32.xlu0 %v3259_v53, %s7068_s18 }
 0x71d   : > { %3202 = vrot.lane.b32.xlu1 %v3194_v24, %s7069_s22  ;;  %v3711_v24 = vld [vmem:[%s7152_s8 + $0x10] sm:$0xff] }
 0x721   : > { %v3463_v23 = vpop.f32.mrf.mxu3 }
 0x724   : > { %3350 = vrot.lane.b32.xlu2 %v3321_v0, %s7069_s22  ;;  %3275 = vrot.lane.b32.xlu0 %v3259_v53, %s7069_s22 }
 0x725   : > { %3340 = vrot.lane.b32.xlu1 %v3321_v0, %s7071_s0 }
 0x72c   : > { %3213 = vrot.lane.b32.xlu2 %v3197_v59, %s7068_s18  ;;  %3328 = vrot.lane.b32.xlu0 %v3321_v0, %s7070_s26  ;;  %s8758_s18 = scalar_lea.vmem %s7252_s19, %s6555_s11  ;;  %s7078_s11 = smov 52  }
 0x72d   : > { %3204 = vrot.lane.b32.xlu1 %v3197_v59, %s7069_s22  ;;  %s7074_s22 = smov 90  }
 0x734   : > { %3477 = vrot.lane.b32.xlu2 %v3460_v11, %s7072_s28  ;;  %3266 = vrot.lane.b32.xlu0 %v3259_v53, %s7071_s0  ;;  %v3074_v5 = vpop.permute.xlu2 %3073 }
 0x735   : > { %3423 = vrot.lane.b32.xlu1 %v3398_v4, %s7071_s0  ;;  %3080 = vst.msk [vmem:[#allocation3] sm:$0xff] %vm3079_vm2, %v3074_v5  ;;  %v3709_v5 = vld [vmem:[%s7152_s8] sm:$0xff] }
 0x73c   : > { %3221 = vrot.lane.b32.xlu0 %v3197_v59, %s7050_s10  ;;  %3425 = vrot.lane.b32.xlu2 %v3401_v32, %s7071_s0  ;;  %v3132_v21 = vpop.permute.xlu2 %3131  ;;  %s9464_s10 = smov 24  }
 0x73d   : > { %3487 = vrot.lane.b32.xlu1 %v3463_v23, %s7070_s26 }
 0x744   : > { %3415 = vrot.lane.b32.xlu0 %v3398_v4, %s7070_s26  ;;  %3417 = vrot.lane.b32.xlu2 %v3401_v32, %s7070_s26 }
 0x745   : > { %3479 = vrot.lane.b32.xlu1 %v3463_v23, %s7072_s28 }
 0x74c   : > { %3485 = vrot.lane.b32.xlu0 %v3460_v11, %s7070_s26  ;;  %3408 = vrot.lane.b32.xlu2 %v3401_v32, %s7072_s28  ;;  %v3083_v63 = vpop.permute.xlu0 %3082  ;;  %v3710_v32 = vld [vmem:[%s7152_s8 + $0x8] sm:$0xff]  ;;  %s7075_s26 = smov 123  }
 0x74d   : > { %3264 = vrot.lane.b32.xlu1 %v3256_v50, %s7071_s0  ;;  %3088 = vst.msk [vmem:[#allocation3 + $0x20] sm:$0xff] %vm3079_vm2, %v3083_v63  ;;  %v3147_v6 = vpop.permute.xlu1 %3146  ;;  %v3493_v63 = vld [vmem:[%s9510_s1] sm:$0xff]  ;;  %s7076_s0 = smov 14  }
 0x74e   : > { %3152 = vst.msk [vmem:[#allocation3 + $0x40] sm:$0xff] %vm3135_vm5, %v3147_v6  ;;  %v3494_v6 = vld [vmem:[%s9510_s1 + $0x8] sm:$0xff] }
 0x754   : > { %3406 = vrot.lane.b32.xlu0 %v3398_v4, %s7072_s28  ;;  %3470 = vrot.lane.b32.xlu2 %v3463_v23, %s9464_s10  ;;  %v3141_v60 = vpop.permute.xlu0 %3140  ;;  %v3821_v4 = vld [vmem:[%s7177_s6] sm:$0xff]  ;;  %v3822_v23 = vld [vmem:[%s7177_s6 + $0x8] sm:$0xff]  ;;  %s7077_s28 = smov 71  }
 0x755   : > { %v3139_v28 = vpop.permute.xlu1 %3138 }
 0x756   : > { %3144 = vst.msk [vmem:[#allocation3 + $0x20] sm:$0xff] %vm3135_vm5, %v3139_v28 }
 0x757   : > { %v3349_v2 = vpop.permute.xlu2 %3348 }
 0x758   : > { %3355 = vst.msk [vmem:[#allocation3 + $0x48] sm:$0xff] %vm3334_vm3, %v3349_v2 }
 0x75c   : > { %3468 = vrot.lane.b32.xlu2 %v3460_v11, %s9464_s10  ;;  %v3712_v11 = vld [vmem:[%s7152_s8 + $0x18] sm:$0xff] }
 0x75d   : > { %v3130_v17 = vpop.permute.xlu1 %3129 }
 0x75e   : > { %3136 = vst.msk [vmem:[#allocation3] sm:$0xff] %vm3135_vm5, %v3130_v17 }
 0x765   : > { %v3149_v40 = vpop.permute.xlu1 %3148 }
 0x766   : > { %3153 = vst.msk [vmem:[#allocation3 + $0x50] sm:$0xff] %vm3135_vm5, %v3149_v40  ;;  %v3495_v40 = vld [vmem:[%s9510_s1 + $0x10] sm:$0xff] }
 0x76d   : > { %v3085_v45 = vpop.permute.xlu1 %3084 }
 0x76e   : > { %v3282_v31 = vpop.permute.xlu2 %3281  ;;  %3089 = vst.msk [vmem:[#allocation3 + $0x30] sm:$0xff] %vm3079_vm2, %v3085_v45  ;;  %v3496_v45 = vld [vmem:[%s9510_s1 + $0x18] sm:$0xff] }
 0x76f   : > { %v8611_v56 = vpop.permute.xlu0 %3326  ;;  %3145 = vst.msk [vmem:[#allocation3 + $0x30] sm:$0xff] %vm3135_vm5, %v3141_v60 }
 0x770   : > { %3335 = vst.msk [vmem:[#allocation3 + $0x8] sm:$0xff] %vm3334_vm3, %v8611_v56 }
 0x775   : > { %v3076_v35 = vpop.permute.xlu1 %3075 }
 0x776   : > { %v3339_v48 = vpop.permute.xlu2 %3338  ;;  %3081 = vst.msk [vmem:[#allocation3 + $0x10] sm:$0xff] %vm3079_vm2, %v3076_v35 }
 0x777   : > { %v3220_v3 = vpop.permute.xlu0 %3219  ;;  %3345 = vst.msk [vmem:[#allocation3 + $0x28] sm:$0xff] %vm3334_vm3, %v3339_v48 }
 0x778   : > { %3137 = vst.msk [vmem:[#allocation3 + $0x10] sm:$0xff] %vm3135_vm5, %v3132_v21 }
 0x779   : > { %3225 = vst.msk [vmem:[#allocation3 + $0x40] sm:$0xff] %vm3208_vm9, %v3220_v3 }
 0x77a   : > { %3287 = vst.msk [vmem:[#allocation3 + $0x40] sm:$0xff] %vm3270_vm7, %v3282_v31 }
 0x77b   : > { %3354 = vst.msk [vmem:[#allocation3 + $0x40] sm:$0xff] %vm3332_vm0, %v3349_v2 }
 0x77e   : > { %v3351_v37 = vpop.permute.xlu2 %3350 }
 0x77f   : > { %v3212_v7 = vpop.permute.xlu0 %3211  ;;  %3357 = vst.msk [vmem:[#allocation3 + $0x58] sm:$0xff] %vm3334_vm3, %v3351_v37 }
 0x780   : > { %3217 = vst.msk [vmem:[#allocation3 + $0x20] sm:$0xff] %vm3208_vm9, %v3212_v7 }
 0x782   : > { %v3505_v39 = vld [vmem:[#allocation3 + $0x40] sm:$0xff] }
 0x786   : > { %v3214_v15 = vpop.permute.xlu2 %3213  ;;  %v3274_v51 = vpop.permute.xlu1 %3273 }
 0x787   : > { %3218 = vst.msk [vmem:[#allocation3 + $0x30] sm:$0xff] %vm3208_vm9, %v3214_v15 }
 0x788   : > { %3279 = vst.msk [vmem:[#allocation3 + $0x20] sm:$0xff] %vm3270_vm7, %v3274_v51 }
 0x789   : > { %3344 = vst.msk [vmem:[#allocation3 + $0x20] sm:$0xff] %vm3332_vm0, %v3339_v48 }
 0x78e   : > { %v3478_v19 = vpop.permute.xlu2 %3477  ;;  %v3284_v16 = vpop.permute.xlu0 %3283 }
 0x78f   : > { %v3203_v43 = vpop.permute.xlu1 %3202 }
 0x790   : > { %3209 = vst.msk [vmem:[#allocation3] sm:$0xff] %vm3208_vm9, %v3203_v43  ;;  %v3501_v9 = vld [vmem:[#allocation3 + $0x20] sm:$0xff] }
 0x796   : > { %v3276_v30 = vpop.permute.xlu0 %3275  ;;  %v3426_v8 = vpop.permute.xlu2 %3425 }
 0x797   : > { %3280 = vst.msk [vmem:[#allocation3 + $0x30] sm:$0xff] %vm3270_vm7, %v3276_v30  ;;  %v3341_v55 = vpop.permute.xlu1 %3340 }
 0x798   : > { %3346 = vst.msk [vmem:[#allocation3 + $0x30] sm:$0xff] %vm3332_vm0, %v3341_v55 }
 0x799   : > { %3347 = vst.msk [vmem:[#allocation3 + $0x38] sm:$0xff] %vm3334_vm3, %v3341_v55 }
 0x79a   : > { %3430 = vst.msk [vmem:[#allocation3 + $0x58] sm:$0xff] %vm3412_vm8, %v3426_v8 }
 0x79e   : > { %v3329_v52 = vpop.permute.xlu0 %3328  ;;  %v3418_v33 = vpop.permute.xlu2 %3417 }
 0x79f   : > { %3337 = vst.msk [vmem:[#allocation3 + $0x18] sm:$0xff] %vm3334_vm3, %v3329_v52  ;;  %v3205_v1 = vpop.permute.xlu1 %3204  ;;  %v3503_v49 = vld [vmem:[#allocation3 + $0x30] sm:$0xff] }
 0x7a0   : > { %3210 = vst.msk [vmem:[#allocation3 + $0x10] sm:$0xff] %vm3208_vm9, %v3205_v1 }
 0x7a1   : > { %3422 = vst.msk [vmem:[#allocation3 + $0x38] sm:$0xff] %vm3412_vm8, %v3418_v33 }
 0x7a6   : > { %v3267_v38 = vpop.permute.xlu0 %3266  ;;  %v3409_v36 = vpop.permute.xlu2 %3408 }
 0x7a7   : > { %3272 = vst.msk [vmem:[#allocation3 + $0x10] sm:$0xff] %vm3270_vm7, %v3267_v38  ;;  %v3424_v54 = vpop.permute.xlu1 %3423  ;;  %v6425_v38 = vld [vmem:[%s9510_s1 + $0x20] sm:$0xff] }
 0x7a8   : > { %3336 = vst.msk [vmem:[#allocation3 + $0x10] sm:$0xff] %vm3332_vm0, %v3329_v52 }
 0x7a9   : > { %3429 = vst.msk [vmem:[#allocation3 + $0x48] sm:$0xff] %vm3412_vm8, %v3424_v54  ;;  %v6426_v54 = vld [vmem:[%s9510_s1 + $0x28] sm:$0xff] }
 0x7aa   : > { %3414 = vst.msk [vmem:[#allocation3 + $0x18] sm:$0xff] %vm3412_vm8, %v3409_v36 }
 0x7ae   : > { %v3222_v62 = vpop.permute.xlu0 %3221  ;;  %v3471_v58 = vpop.permute.xlu2 %3470 }
 0x7af   : > { %3226 = vst.msk [vmem:[#allocation3 + $0x50] sm:$0xff] %vm3208_vm9, %v3222_v62  ;;  %v3488_v12 = vpop.permute.xlu1 %3487  ;;  %v3499_v13 = vld [vmem:[#allocation3 + $0x10] sm:$0xff]  ;;  %v6427_v62 = vld [vmem:[%s9510_s1 + $0x30] sm:$0xff] }
 0x7b0   : > { %3288 = vst.msk [vmem:[#allocation3 + $0x50] sm:$0xff] %vm3270_vm7, %v3284_v16 }
 0x7b1   : > { %3356 = vst.msk [vmem:[#allocation3 + $0x50] sm:$0xff] %vm3332_vm0, %v3351_v37 }
 0x7b2   : > { %3492 = vst.msk [vmem:[#allocation3 + $0x58] sm:$0xff] %vm3474_vm10, %v3488_v12  ;;  %v6428_v12 = vld [vmem:[%s9510_s1 + $0x38] sm:$0xff]  ;;  %s7092_s1 = smov 74  }
 0x7b3   : > { %3476 = vst.msk [vmem:[#allocation3 + $0x18] sm:$0xff] %vm3474_vm10, %v3471_v58 }
 0x7b6   : > { %v3416_v25 = vpop.permute.xlu0 %3415  ;;  %v3469_v22 = vpop.permute.xlu2 %3468 }
 0x7b7   : > { %3421 = vst.msk [vmem:[#allocation3 + $0x28] sm:$0xff] %vm3412_vm8, %v3416_v25  ;;  %v3480_v29 = vpop.permute.xlu1 %3479 }
 0x7b8   : > { %3483 = vst.msk [vmem:[#allocation3 + $0x28] sm:$0xff] %vm3474_vm10, %v3478_v19  ;;  %v3507_v27 = vld [vmem:[#allocation3 + $0x50] sm:$0xff] }
 0x7b9   : > { %3484 = vst.msk [vmem:[#allocation3 + $0x38] sm:$0xff] %vm3474_vm10, %v3480_v29  ;;  %v3508_v20 = vld [vmem:[#allocation3 + $0x58] sm:$0xff]  ;;  %3661 = vmatpush.msrb.mxu2 %v3507_v27 }
 0x7ba   : > { %3690 = vmatpush.msrb.mxu3 %v3508_v20  ;;  %v6800_v57 = vpack.i.bf16 %v3508_v20, %v3507_v27  ;;  %v3500_v50 = vld [vmem:[#allocation3 + $0x18] sm:$0xff] }
 0x7bb   : > { %3662 = vmatpush.msrb.mxu2 %v3505_v39  ;;  %v6815_v53 = vpack.i.bf16 %v3500_v50, %v3499_v13 }
 0x7bc   : > { %6801 = vrot.lane.b32.xlu1 %v6800_v57, %s7067_s7 }
 0x7bd   : > { %3663 = vmatpush.msrb.mxu2 %v3503_v49 }
 0x7be   : > { %v3486_v14 = vpop.permute.xlu0 %3485 }
 0x7bf   : > { %3491 = vst.msk [vmem:[#allocation3 + $0x48] sm:$0xff] %vm3474_vm10, %v3486_v14  ;;  %v3265_v42 = vpop.permute.xlu1 %3264  ;;  %v3502_v61 = vld [vmem:[#allocation3 + $0x28] sm:$0xff]  ;;  %3664 = vmatpush.msrb.mxu2 %v3501_v9 }
 0x7c0   : > { %v3504_v10 = vld [vmem:[#allocation3 + $0x38] sm:$0xff]  ;;  %3271 = vst.msk [vmem:[#allocation3] sm:$0xff] %vm3270_vm7, %v3265_v42  ;;  %v6805_v18 = vpack.i.bf16 %v3502_v61, %v3501_v9  ;;  %vm3846_vm7 = vcmask 195584  }
 0x7c1   : > { %v6810_v44 = vpack.i.bf16 %v3504_v10, %v3503_v49  ;;  %3333 = vst.msk [vmem:[#allocation3] sm:$0xff] %vm3332_vm0, %v8611_v56  ;;  %3665 = vmatpush.msrb.mxu2 %v3499_v13 }
 0x7c3   : > { %6811 = vrot.lane.b32.xlu2 %v6810_v44, %s7067_s7 }
 0x7c4   : > { %6806 = vrot.lane.b32.xlu1 %v6805_v18, %s7067_s7 }
 0x7c6   : > { %v3407_v26 = vpop.permute.xlu0 %3406  ;;  %v3506_v47 = vld [vmem:[#allocation3 + $0x48] sm:$0xff] }
 0x7c7   : > { %3413 = vst.msk [vmem:[#allocation3 + $0x8] sm:$0xff] %vm3412_vm8, %v3407_v26  ;;  %v6795_v41 = vpack.i.bf16 %v3506_v47, %v3505_v39  ;;  %3691 = vmatpush.msrb.mxu3 %v3506_v47 }
 0x7c8   : > { %3475 = vst.msk [vmem:[#allocation3 + $0x8] sm:$0xff] %vm3474_vm10, %v3469_v22  ;;  %v3497_v46 = vld [vmem:[#allocation3] sm:$0xff] }
 0x7c9   : > { %3666 = vmatpush.msrb.mxu2 %v3497_v46  ;;  %6796 = vrot.lane.b32.xlu0 %v6795_v41, %s7067_s7 }
 0x7ca   : > { %3692 = vmatpush.msrb.mxu3 %v3504_v10  ;;  %6437 = vmatmul.msk.f32.vlgmr.msrb.gmra.mxu2 %vm2578_vm4, %v3493_v63 }
 0x7cc   : > { %3725 = vperm.xlu1 %6748, %v3711_v24   ;;  %3693 = vmatpush.msrb.mxu3 %v3502_v61 }
 0x7ce   : > { %3694 = vmatpush.msrb.mxu3 %v3500_v50 }
 0x7cf   : > { %v3498_v0 = vld [vmem:[#allocation3 + $0x8] sm:$0xff] }
 0x7d0   : > { %v6820_v59 = vpack.i.bf16 %v3498_v0, %v3497_v46  ;;  %3695 = vmatpush.msrb.mxu3 %v3498_v0 }
 0x7d1   : > { %6816 = vrot.lane.b32.xlu0 %v6815_v53, %s7067_s7  ;;  %6441 = vmatmul.msk.f32.vlgmr.msrb.gmra.mxu3 %vm2578_vm4, %v3493_v63 }
 0x7d2   : > { %6821 = vrot.lane.b32.xlu2 %v6820_v59, %s7067_s7  ;;  %6438 = vmatmul.msk.f32.gmra.mxu2 %vm2578_vm4, %v3494_v6 }
 0x7d4   : > { %3829 = vperm.xlu1 %6748, %v3821_v4  }
 0x7d9   : > { %3730 = vperm.xlu0 %6747, %v3712_v11   ;;  %6442 = vmatmul.msk.f32.gmra.mxu3 %vm2578_vm4, %v3494_v6 }
 0x7da   : > { %3715 = vperm.xlu2 %6749, %v3709_v5   ;;  %6439 = vmatmul.msk.f32.gmra.mxu2 %vm2578_vm4, %v3495_v40 }
 0x7e1   : > { %3720 = vperm.xlu0 %6747, %v3710_v32   ;;  %6443 = vmatmul.msk.f32.gmra.mxu3 %vm2578_vm4, %v3495_v40 }
 0x7e2   : > { %3834 = vperm.xlu2 %6749, %v3822_v23   ;;  %6440 = vmatmul.msk.f32.gmra.mxu2 %vm2578_vm4, %v3496_v45 }
 0x7e9   : > { %6444 = vmatmul.msk.f32.gmra.mxu3 %vm2578_vm4, %v3496_v45  ;;  %v3851_v45 = vld [vmem:[%s9511_s2 + $0x8] sm:$0xff] }
 0x81d   : > { %v6812_v60 = vpop.permute.xlu2 %6811 }
 0x81e   : > { %v6814_v35 = vunpack.i.h.bf16 %v6812_v60  ;;  %v6813_v48 = vunpack.i.l.bf16 %v6812_v60  ;;  %v3852_v60 = vld [vmem:[%s9511_s2 + $0x10] sm:$0x7] }
 0x81f   : > { %6451 = vmatpush.msk.msra.mxu2 %vm3868_vm12, %v3852_v60  ;;  %6454 = vmatpush.msk.msra.mxu3 %vm3868_vm12, %v3852_v60 }
 0x820   : > { %v3554_v19 = vsel %vm3550_vm11, %v6813_v48, %v6814_v35 }
 0x821   : > { %3998 = vmatpush.msra.mxu2 %v3851_v45  ;;  %4060 = vmatpush.msra.mxu3 %v3851_v45 }
 0x82c   : > { %v6822_v16 = vpop.permute.xlu2 %6821 }
 0x82d   : > { %v6824_v8 = vunpack.i.h.bf16 %v6822_v16  ;;  %v6823_v55 = vunpack.i.l.bf16 %v6822_v16 }
 0x82e   : > { %v6802_v21 = vpop.permute.xlu1 %6801 }
 0x82f   : > { %v6804_v28 = vunpack.i.h.bf16 %v6802_v21  ;;  %v6803_v2 = vunpack.i.l.bf16 %v6802_v21  ;;  %v3551_v36 = vsel %vm3550_vm11, %v6823_v55, %v6824_v8 }
 0x831   : > { %3620 = vmatpush.msrb.mxu1 %v6804_v28  ;;  %v3556_v17 = vsel %vm3550_vm11, %v6803_v2, %v6804_v28 }
 0x832   : > { %3591 = vmatpush.msrb.mxu0 %v3556_v17 }
 0x836   : > { %v6807_v31 = vpop.permute.xlu1 %6806 }
 0x837   : > { %v6809_v7 = vunpack.i.h.bf16 %v6807_v31  ;;  %v6808_v15 = vunpack.i.l.bf16 %v6807_v31  ;;  %v3850_v31 = vld [vmem:[%s9511_s2] sm:$0xff]  ;;  %s7093_s2 = smov 92  }
 0x838   : > { %3999 = vmatpush.msra.mxu2 %v3850_v31  ;;  %4061 = vmatpush.msra.mxu3 %v3850_v31 }
 0x839   : > { %v3553_v43 = vsel %vm3550_vm11, %v6808_v15, %v6809_v7 }
 0x83a   : > { %6466 = vmatpush.msk.msrb.mxu3 %vm3868_vm12, %v3852_v60  ;;  %6463 = vmatpush.msk.msrb.mxu2 %vm3868_vm12, %v3852_v60 }
 0x83b   : > { %v6797_v56 = vpop.permute.xlu0 %6796 }
 0x83c   : > { %v6799_v3 = vunpack.i.h.bf16 %v6797_v56  ;;  %v6798_v37 = vunpack.i.l.bf16 %v6797_v56  ;;  %4319 = vmatpush.msrb.mxu3 %v3851_v45  ;;  %4257 = vmatpush.msrb.mxu2 %v3851_v45 }
 0x83e   : > { %3621 = vmatpush.msrb.mxu1 %v6799_v3  ;;  %v3555_v51 = vsel %vm3550_vm11, %v6798_v37, %v6799_v3  ;;  %v3726_v18 = vpop.permute.xlu1 %3725  ;;  %4320 = vmatpush.msrb.mxu3 %v3850_v31 }
 0x83f   : > { %3592 = vmatpush.msrb.mxu0 %v3555_v51  ;;  %4258 = vmatpush.msrb.mxu2 %v3850_v31 }
 0x840   : > { %3622 = vmatpush.msrb.mxu1 %v6814_v35 }
 0x841   : > { %3593 = vmatpush.msrb.mxu0 %v3554_v19 }
 0x842   : > { %3623 = vmatpush.msrb.mxu1 %v6809_v7 }
 0x843   : > { %v6817_v30 = vpop.permute.xlu0 %6816  ;;  %3594 = vmatpush.msrb.mxu0 %v3553_v43 }
 0x844   : > { %v6819_v52 = vunpack.i.h.bf16 %v6817_v30  ;;  %v6818_v33 = vunpack.i.l.bf16 %v6817_v30 }
 0x846   : > { %3624 = vmatpush.msrb.mxu1 %v6819_v52  ;;  %v3552_v1 = vsel %vm3550_vm11, %v6818_v33, %v6819_v52 }
 0x847   : > { %3595 = vmatpush.msrb.mxu0 %v3552_v1  ;;  %v3716_v1 = vpop.permute.xlu2 %3715 }
 0x848   : > { %3625 = vmatpush.msrb.mxu1 %v6824_v8 }
 0x849   : > { %3596 = vmatpush.msrb.mxu0 %v3551_v36  ;;  %6433 = vmatmul.msk.f32.vlgmr.msrb.gmra.mxu1 %vm2578_vm4, %v6425_v38 }
 0x84a   : > { %6429 = vmatmul.msk.f32.vlgmr.msrb.gmra.mxu0 %vm2578_vm4, %v6425_v38  ;;  %6448 = vmatpush.msk.msra.mxu1 %vm3868_vm12, %v3852_v60 }
 0x84b   : > { %v3731_v4 = vpop.permute.xlu0 %3730  ;;  %6445 = vmatpush.msk.msra.mxu0 %vm3868_vm12, %v3852_v60 }
 0x84c   : > { %3942 = vmatpush.msra.mxu1 %v3851_v45 }
 0x84d   : > { %v8697_v25 = vpop.f32.mrf.mxu2  ;;  %3886 = vmatpush.msra.mxu0 %v3851_v45 }
 0x84e   : > { %3943 = vmatpush.msra.mxu1 %v3850_v31 }
 0x84f   : > { %3887 = vmatpush.msra.mxu0 %v3850_v31 }
 0x850   : > { %6460 = vmatpush.msk.msrb.mxu1 %vm3868_vm12, %v3852_v60 }
 0x851   : > { %6434 = vmatmul.msk.f32.gmra.mxu1 %vm2578_vm4, %v6426_v54  ;;  %6457 = vmatpush.msk.msrb.mxu0 %vm3868_vm12, %v3852_v60 }
 0x852   : > { %6430 = vmatmul.msk.f32.gmra.mxu0 %vm2578_vm4, %v6426_v54  ;;  %4184 = vmatpush.msrb.mxu1 %v3851_v45 }
 0x853   : > { %4122 = vmatpush.msrb.mxu0 %v3851_v45 }
 0x854   : > { %v8695_v58 = vpop.f32.mrf.mxu3  ;;  %4185 = vmatpush.msrb.mxu1 %v3850_v31 }
 0x855   : > { %v8705_v57 = vpop.f32.mrf.mxu2  ;;  %4123 = vmatpush.msrb.mxu0 %v3850_v31 }
 0x859   : > { %6435 = vmatmul.msk.f32.gmra.mxu1 %vm2578_vm4, %v6427_v62 }
 0x85a   : > { %6431 = vmatmul.msk.f32.gmra.mxu0 %vm2578_vm4, %v6427_v62 }
 0x85c   : > { %v8703_v20 = vpop.f32.mrf.mxu3 }
 0x85d   : > { %v3674_v9 = vpop.f32.mrf.mxu2 }
 0x861   : > { %6436 = vmatmul.msk.f32.gmra.mxu1 %vm2578_vm4, %v6428_v12 }
 0x862   : > { %6432 = vmatmul.msk.f32.gmra.mxu0 %vm2578_vm4, %v6428_v12 }
 0x864   : > { %v3703_v14 = vpop.f32.mrf.mxu3 }
 0x865   : > { %v3677_v24 = vpop.f32.mrf.mxu2 }
 0x86c   : > { %v3706_v41 = vpop.f32.mrf.mxu3 }
 0x8c6   : > { %v8699_v29 = vpop.f32.mrf.mxu1 }
 0x8c7   : > { %v8701_v27 = vpop.f32.mrf.mxu0  ;;  %v3698_v51 = vadd.f32 %v8695_v58, %v8699_v29 }
 0x8c8   : > { %v3669_v19 = vadd.f32 %v8697_v25, %v8701_v27 }
 0x8c9   : > { %v3734_v54 = vadd.f32 %v3716_v1, %v3698_v51 }
 0x8ca   : > { %v3733_v62 = vadd.f32 %v3716_v1, %v3669_v19 }
 0x8ce   : > { %v8707_v39 = vpop.f32.mrf.mxu1 }
 0x8cf   : > { %v8709_v49 = vpop.f32.mrf.mxu0  ;;  %v3701_v25 = vadd.f32 %v8703_v20, %v8707_v39 }
 0x8d6   : > { %v3633_v42 = vpop.f32.mrf.mxu1 }
 0x8d7   : > { %v3704_v61 = vadd.f32 %v3703_v14, %v3633_v42  ;;  %v3604_v10 = vpop.f32.mrf.mxu0 }
 0x8d8   : > { %v3675_v13 = vadd.f32 %v3674_v9, %v3604_v10 }
 0x8d9   : > { %v3738_v44 = vadd.f32 %v3726_v18, %v3704_v61  ;;  %v3672_v61 = vadd.f32 %v8705_v57, %v8709_v49 }
 0x8da   : > { %v3737_v26 = vadd.f32 %v3726_v18, %v3675_v13 }
 0x8db   : > { %v3742_v47 = vsub.f32 0.0, %v3738_v44 }
 0x8dc   : > { %v3741_v22 = vsub.f32 0.0, %v3737_v26 }
 0x8dd   : > { %v3747_v46 = vmul.f32 1.442695, %v3742_v47  ;;  %v3830_v47 = vpop.permute.xlu1 %3829 }
 0x8de   : > { %v3745_v50 = vmul.f32 1.442695, %v3741_v22  ;;  %v3636_v53 = vpop.f32.mrf.mxu1 }
 0x8df   : > { %6925 = vpow2.f32 %v3747_v46  ;;  %v3707_v0 = vadd.f32 %v3706_v41, %v3636_v53  ;;  %v3607_v59 = vpop.f32.mrf.mxu0 }
 0x8e0   : > { %6927 = vpow2.f32 %v3745_v50  ;;  %v3678_v11 = vadd.f32 %v3677_v24, %v3607_v59 }
 0x8e1   : > { %v3740_v5 = vadd.f32 %v3731_v4, %v3707_v0 }
 0x8e2   : > { %v3739_v32 = vadd.f32 %v3731_v4, %v3678_v11  ;;  %v3721_v11 = vpop.permute.xlu0 %3720 }
 0x8e3   : > { %v3744_v23 = vsub.f32 0.0, %v3740_v5  ;;  %v3735_v60 = vadd.f32 %v3721_v11, %v3672_v61 }
 0x8e4   : > { %v3743_v63 = vsub.f32 0.0, %v3739_v32 }
 0x8e5   : > { %v6926_v6 = vpop.eup %6925  ;;  %v3751_v21 = vmul.f32 1.442695, %v3744_v23 }
 0x8e6   : > { %v6928_v28 = vpop.eup %6927  ;;  %v8711_v2 = vadd.f32 1.0, %v6926_v6  ;;  %v3749_v17 = vmul.f32 1.442695, %v3743_v63  ;;  %v3736_v63 = vadd.f32 %v3721_v11, %v3701_v25 }
 0x8e7   : > { %v8713_v40 = vadd.f32 1.0, %v6928_v28  ;;  %6929 = vpow2.f32 %v3751_v21 }
 0x8e8   : > { %6931 = vrcp.f32 %v8711_v2  ;;  %v3781_v30 = vand.u32 2147483647, %v8711_v2  ;;  %v3783_v8 = vand.u32 2147483648, %v8711_v2  ;;  %vm3777_vm1 = vweird.f32 %v8711_v2 }
 0x8e9   : > { %6933 = vrcp.f32 %v8713_v40  ;;  %v3768_v33 = vand.u32 2147483648, %v8713_v40  ;;  %v3766_v36 = vand.u32 2147483647, %v8713_v40  ;;  %vm3762_vm2 = vweird.f32 %v8713_v40 }
 0x8ea   : > { %6935 = vpow2.f32 %v3749_v17  ;;  %v3784_v29 = vor.u32 1.1754944e-38, %v3783_v8  ;;  %vm3782_vm5 = vcmp.eq.f32.partialorder %v3781_v30, 8.507059e+37 }
 0x8eb   : > { %v3769_v9 = vor.u32 1.1754944e-38, %v3768_v33  ;;  %vm3767_vm9 = vcmp.eq.f32.partialorder %v3766_v36, 8.507059e+37 }
 0x8ed   : > { %v6930_v56 = vpop.eup %6929 }
 0x8ee   : > { %v6932_v35 = vpop.eup %6931  ;;  %v8724_v48 = vadd.f32 1.0, %v6930_v56 }
 0x8ef   : > { %v6934_v3 = vpop.eup %6933  ;;  %v3773_v37 = vmul.f32 %v6932_v35, %v8711_v2  ;;  %vm3778_vm13 = vweird.f32 %v6932_v35 }
 0x8f0   : > { %v6936_v7 = vpop.eup %6935  ;;  %v3758_v15 = vmul.f32 %v6934_v3, %v8713_v40  ;;  %6937 = vrcp.f32 %v8724_v48  ;;  %vm3763_vm14 = vweird.f32 %v6934_v3  ;;  %vm3779_vm15 = vmor %vm3777_vm1, %vm3778_vm13  ;;  %v3813_v26 = vand.u32 2147483648, %v8724_v48  ;;  %v3835_v40 = vpop.permute.xlu2 %3834 }
 0x8f1   : > { %v3774_v16 = vsub.f32 1.0, %v3773_v37  ;;  %v8733_v43 = vadd.f32 1.0, %v6936_v7  ;;  %vm3764_vm3 = vmor %vm3762_vm2, %vm3763_vm14  ;;  %v3811_v41 = vand.u32 2147483647, %v8724_v48  ;;  %vm3807_vm11 = vweird.f32 %v8724_v48 }
 0x8f2   : > { %v3759_v55 = vsub.f32 1.0, %v3758_v15  ;;  %v3814_v59 = vor.u32 1.1754944e-38, %v3813_v26 }
 0x8f3   : > { %v3775_v52 = vmul.f32 %v6932_v35, %v3774_v16  ;;  %6939 = vrcp.f32 %v8733_v43  ;;  %v3798_v4 = vand.u32 2147483648, %v8733_v43  ;;  %v3796_v23 = vand.u32 2147483647, %v8733_v43 }
 0x8f4   : > { %v3760_v38 = vmul.f32 %v6934_v3, %v3759_v55  ;;  %vm3812_vm14 = vcmp.eq.f32.partialorder %v3811_v41, 8.507059e+37  ;;  %vm3792_vm1 = vweird.f32 %v8733_v43 }
 0x8f5   : > { %v3776_v12 = vadd.f32 %v6932_v35, %v3775_v52  ;;  %v3799_v17 = vor.u32 1.1754944e-38, %v3798_v4  ;;  %vm3797_vm2 = vcmp.eq.f32.partialorder %v3796_v23, 8.507059e+37 }
 0x8f6   : > { %v6938_v58 = vpop.eup %6937  ;;  %v3761_v27 = vadd.f32 %v6934_v3, %v3760_v38 }
 0x8f7   : > { %v3780_v14 = vsel %vm3779_vm15, %v6932_v35, %v3776_v12  ;;  %v3803_v42 = vmul.f32 %v6938_v58, %v8724_v48  ;;  %vm3808_vm8 = vweird.f32 %v6938_v58 }
 0x8f8   : > { %v3785_v20 = vsel %vm3782_vm5, %v3784_v29, %v3780_v14  ;;  %v3765_v39 = vsel %vm3764_vm3, %v6934_v3, %v3761_v27  ;;  %vm3809_vm12 = vmor %vm3807_vm11, %vm3808_vm8  ;;  %vm3959_vm8 = vcmask 220304   ;;  %vm4139_vm11 = vcmask 441704  }
 0x8f9   : > { %v6940_v10 = vpop.eup %6939  ;;  %v3818_v18 = vmul.f32 %v3785_v20, %v3734_v54  ;;  %v3770_v13 = vsel %vm3767_vm9, %v3769_v9, %v3765_v39  ;;  %v3804_v44 = vsub.f32 1.0, %v3803_v42  ;;  %vm3853_vm9 = vcmask 72704  }
 0x8fa   : > { %v3817_v22 = vmul.f32 %v3770_v13, %v3733_v62  ;;  %v3788_v46 = vmul.f32 %v6940_v10, %v8733_v43  ;;  %vm3793_vm13 = vweird.f32 %v6940_v10  ;;  %3856 = vst.msk [vmem:[#allocation4 + $0x10] sm:$0xff] %vm3853_vm9, %v7052_v34 }
 0x8fb   : > { %vm3824_vm0 = vcmp.ge.f32.partialorder %v3818_v18, 0.0  ;;  %v3838_v57 = vmul.f32 %v3830_v47, %v3818_v18  ;;  %v3805_v49 = vmul.f32 %v6938_v58, %v3804_v44  ;;  %vm3794_vm15 = vmor %vm3792_vm1, %vm3793_vm13  ;;  %3854 = vst.msk [vmem:[#allocation4] sm:$0xff] %vm3853_vm9, %v7052_v34  ;;  %vm4274_vm13 = vcmask 589304  }
 0x8fc   : > { %vm3823_vm10 = vcmp.ge.f32.partialorder %v3817_v22, 0.0  ;;  %v3837_v24 = vmul.f32 %v3830_v47, %v3817_v22  ;;  %v3789_v50 = vsub.f32 1.0, %v3788_v46  ;;  %3855 = vst.msk [vmem:[#allocation4 + $0x8] sm:$0xff] %vm3853_vm9, %v7052_v34 }
 0x8fd   : > { %v3842_v53 = vsel %vm3824_vm0, %v3818_v18, %v3838_v57  ;;  %v3806_v0 = vadd.f32 %v6938_v58, %v3805_v49  ;;  %3857 = vst.msk [vmem:[#allocation4 + $0x18] sm:$0xff] %vm3853_vm9, %v7052_v34  ;;  %vm4236_vm0 = vcmask 113664  }
 0x8fe   : > { %3847 = vst.msk [vmem:[%s8758_s18 + $0x8] sm:$0xff] %vm3846_vm7, %v3842_v53  ;;  %v3841_v5 = vsel %vm3823_vm10, %v3817_v22, %v3837_v24  ;;  %v3790_v32 = vmul.f32 %v6940_v10, %v3789_v50  ;;  %vm4077_vm10 = vcmask 367904  }
 0x8ff   : > { %3845 = vst [vmem:[%s8758_s18] sm:$0xff] %v3841_v5  ;;  %v3810_v6 = vsel %vm3809_vm12, %v6938_v58, %v3806_v0  ;;  %3976 = vrot.lane.b32.xlu1 %v3841_v5, %s7074_s22  ;;  %6446 = vmatmul.msk.f32.vlgmr.msra.gmra.mxu0 %vm2132_vm6, %v3841_v5  ;;  %vm4201_vm12 = vcmask 515504  }
 0x900   : > { %v3815_v21 = vsel %vm3812_vm14, %v3814_v59, %v3810_v6  ;;  %v3791_v28 = vadd.f32 %v6940_v10, %v3790_v32  ;;  %3858 = vst.msk [vmem:[#allocation4 + $0x20] sm:$0xff] %vm3853_vm9, %v7052_v34  ;;  %vm4336_vm14 = vcmask 663104  }
 0x901   : > { %v3820_v2 = vmul.f32 %v3815_v21, %v3736_v63  ;;  %3859 = vst.msk [vmem:[#allocation4 + $0x28] sm:$0xff] %vm3853_vm9, %v7052_v34 }
 0x902   : > { %v3795_v45 = vsel %vm3794_vm15, %v6940_v10, %v3791_v28 }
 0x903   : > { %vm3826_vm5 = vcmp.ge.f32.partialorder %v3820_v2, 0.0  ;;  %v3840_v31 = vmul.f32 %v3835_v40, %v3820_v2  ;;  %v3800_v56 = vsel %vm3797_vm2, %v3799_v17, %v3795_v45 }
 0x904   : > { %v3819_v35 = vmul.f32 %v3800_v56, %v3735_v60 }
 0x905   : > { %v3844_v48 = vsel %vm3826_vm5, %v3820_v2, %v3840_v31  ;;  %v4293_v3 = vld [vmem:[%s8758_s18 + $0x8] sm:$0xff] }
 0x906   : > { %3849 = vst.msk [vmem:[%s8758_s18 + $0x18] sm:$0xff] %vm3846_vm7, %v3844_v48  ;;  %vm3825_vm3 = vcmp.ge.f32.partialorder %v3819_v35, 0.0  ;;  %v3839_v37 = vmul.f32 %v3835_v40, %v3819_v35  ;;  %4297 = vrot.lane.b32.xlu2 %v4293_v3, %s7075_s26  ;;  %4230 = vrot.lane.b32.xlu0 %v4293_v3, %s7076_s0  ;;  %vm3903_vm7 = vcmask 146504  }
 0x907   : > { %4228 = vrot.lane.b32.xlu1 %v3841_v5, %s7076_s0 }
 0x908   : > { %v3843_v7 = vsel %vm3825_vm3, %v3819_v35, %v3839_v37  ;;  %vm4548_vm3 = vcmask 588800  }
 0x909   : > { %3848 = vst [vmem:[%s8758_s18 + $0x10] sm:$0xff] %v3843_v7  ;;  %6447 = vmatmul.msk.f32.gmra.mxu0 %vm2132_vm6, %v3843_v7 }
 0x90d   : > { %v4294_v15 = vld [vmem:[%s8758_s18 + $0x18] sm:$0xff]  ;;  %s7082_s18 = smov 27  }
 0x90e   : > { %4038 = vrot.lane.b32.xlu0 %v3841_v5, %s7077_s28  ;;  %3920 = vrot.lane.b32.xlu2 %v3841_v5, %s7067_s7 }
 0x90f   : > { %3978 = vrot.lane.b32.xlu1 %v3843_v7, %s7074_s22  ;;  %s7083_s22 = smov 36  }
 0x916   : > { %4040 = vrot.lane.b32.xlu0 %v3843_v7, %s7077_s28  ;;  %3922 = vrot.lane.b32.xlu2 %v3843_v7, %s7067_s7  ;;  %s7081_s7 = smov 119   ;;  %s7086_s28 = smov 54  }
 0x917   : > { %4100 = vrot.lane.b32.xlu1 %v3841_v5, %s7078_s11 }
 0x91e   : > { %4162 = vrot.lane.b32.xlu0 %v3841_v5, %s7079_s23  ;;  %4232 = vrot.lane.b32.xlu2 %v3843_v7, %s7076_s0 }
 0x91f   : > { %4234 = vrot.lane.b32.xlu1 %v4294_v15, %s7076_s0  ;;  %s7085_s0 = smov 45  }
 0x926   : > { %4299 = vrot.lane.b32.xlu0 %v4294_v15, %s7075_s26  ;;  %4102 = vrot.lane.b32.xlu2 %v3843_v7, %s7078_s11  ;;  %s7084_s26 = smov 18   ;;  %s7087_s11 = smov 63  }
 0x927   : > { %4164 = vrot.lane.b32.xlu1 %v3843_v7, %s7079_s23  ;;  %s7080_s23 = smov 9  }
 0x960   : > { %v4298_v51 = vpop.permute.xlu2 %4297 }
 0x968   : > { %v3921_v19 = vpop.permute.xlu2 %3920 }
 0x969   : > { %6449 = vmatmul.msk.f32.vlgmr.msra.gmra.mxu1 %vm2132_vm6, %v3921_v19 }
 0x970   : > { %v3923_v16 = vpop.permute.xlu2 %3922 }
 0x971   : > { %6450 = vmatmul.msk.f32.gmra.mxu1 %vm2132_vm6, %v3923_v16  ;;  %v3977_v43 = vpop.permute.xlu1 %3976 }
 0x972   : > { %6452 = vmatmul.msk.f32.vlgmr.msra.gmra.mxu2 %vm2132_vm6, %v3977_v43 }
 0x978   : > { %v4231_v30 = vpop.permute.xlu0 %4230  ;;  %v4233_v38 = vpop.permute.xlu2 %4232 }
 0x979   : > { %v4229_v8 = vpop.permute.xlu1 %4228 }
 0x97a   : > { %v4237_v54 = vsel %vm4236_vm0, %v4229_v8, %v4231_v30 }
 0x97c   : > { %v3889_v55 = vpop.f32.mrf.mxu0 }
 0x97d   : > { %3906 = vst.msk [vmem:[#allocation4 + $0x10] sm:$0xff] %vm3903_vm7, %v3889_v55  ;;  %3897 = vrot.lane.b32.xlu0 %v3889_v55, %s7080_s23  ;;  %3908 = vrot.lane.b32.xlu2 %v3889_v55, %s7081_s7 }
 0x980   : > { %v4039_v52 = vpop.permute.xlu0 %4038  ;;  %v4103_v58 = vpop.permute.xlu2 %4102 }
 0x981   : > { %6455 = vmatmul.msk.f32.vlgmr.msra.gmra.mxu3 %vm2132_vm6, %v4039_v52  ;;  %v3979_v33 = vpop.permute.xlu1 %3978 }
 0x982   : > { %6453 = vmatmul.msk.f32.gmra.mxu2 %vm2132_vm6, %v3979_v33 }
 0x986   : > { %v3892_v1 = vpop.f32.mrf.mxu0 }
 0x987   : > { %3907 = vst.msk [vmem:[#allocation4 + $0x18] sm:$0xff] %vm3903_vm7, %v3892_v1  ;;  %3899 = vrot.lane.b32.xlu2 %v3892_v1, %s7080_s23  ;;  %3910 = vrot.lane.b32.xlu0 %v3892_v1, %s7081_s7 }
 0x988   : > { %v4041_v36 = vpop.permute.xlu0 %4040 }
 0x989   : > { %6456 = vmatmul.msk.f32.gmra.mxu3 %vm2132_vm6, %v4041_v36  ;;  %v4101_v62 = vpop.permute.xlu1 %4100 }
 0x98a   : > { %6458 = vmatmul.msk.f32.vlgmr.msrb.gmra.mxu0 %vm2132_vm6, %v4101_v62  ;;  %6464 = vmatmul.msk.f32.vlgmr.msrb.gmra.mxu2 %vm2132_vm6, %v4237_v54 }
 0x990   : > { %v4163_v12 = vpop.permute.xlu0 %4162 }
 0x991   : > { %6467 = vmatmul.msk.f32.vlgmr.msrb.gmra.mxu3 %vm2132_vm6, %v4298_v51  ;;  %6461 = vmatmul.msk.f32.vlgmr.msrb.gmra.mxu1 %vm2132_vm6, %v4163_v12  ;;  %v4235_v25 = vpop.permute.xlu1 %4234 }
 0x992   : > { %v4238_v29 = vsel %vm4236_vm0, %v4233_v38, %v4235_v25  ;;  %6459 = vmatmul.msk.f32.gmra.mxu0 %vm2132_vm6, %v4103_v58 }
 0x993   : > { %6465 = vmatmul.msk.f32.gmra.mxu2 %vm2132_vm6, %v4238_v29 }
 0x998   : > { %v4300_v27 = vpop.permute.xlu0 %4299 }
 0x999   : > { %6468 = vmatmul.msk.f32.gmra.mxu3 %vm2132_vm6, %v4300_v27  ;;  %v4165_v14 = vpop.permute.xlu1 %4164 }
 0x99a   : > { %6462 = vmatmul.msk.f32.gmra.mxu1 %vm2132_vm6, %v4165_v14  ;;  %vm4015_vm6 = vcmask 294104  }
 0x9d7   : > { %v3909_v9 = vpop.permute.xlu2 %3908 }
 0x9d8   : > { %3914 = vst.msk [vmem:[#allocation4 + $0x20] sm:$0xff] %vm3903_vm7, %v3909_v9 }
 0x9e1   : > { %v3900_v42 = vpop.permute.xlu2 %3899 }
 0x9e2   : > { %3905 = vst.msk [vmem:[#allocation4 + $0x8] sm:$0xff] %vm3903_vm7, %v3900_v42 }
 0x9e6   : > { %v3945_v61 = vpop.f32.mrf.mxu1 }
 0x9e7   : > { %3970 = vst.msk [vmem:[#allocation4 + $0x20] sm:$0xff] %vm3959_vm8, %v3945_v61  ;;  %3962 = vrot.lane.b32.xlu0 %v3945_v61, %s7080_s23 }
 0x9ee   : > { %v3948_v10 = vpop.f32.mrf.mxu1 }
 0x9ef   : > { %v3898_v20 = vpop.permute.xlu0 %3897 }
 0x9f0   : > { %3904 = vst.msk [vmem:[#allocation4] sm:$0xff] %vm3903_vm7, %v3898_v20 }
 0x9f5   : > { %v4001_v44 = vpop.f32.mrf.mxu2 }
 0x9f9   : > { %v3911_v39 = vpop.permute.xlu0 %3910 }
 0x9fa   : > { %3915 = vst.msk [vmem:[#allocation4 + $0x28] sm:$0xff] %vm3903_vm7, %v3911_v39 }
 0x9fb   : > { %3971 = vst.msk [vmem:[#allocation4 + $0x28] sm:$0xff] %vm3959_vm8, %v3948_v10 }
 0xa04   : > { %v4063_v18 = vpop.f32.mrf.mxu3 }
 0xa05   : > { %4080 = vrot.lane.b32.xlu0 %v4063_v18, %s7082_s18  ;;  %v4004_v22 = vpop.f32.mrf.mxu2 }
 0xa07   : > { %v4125_v13 = vpop.f32.mrf.mxu0 }
 0xa08   : > { %4142 = vrot.lane.b32.xlu1 %v4125_v13, %s7083_s22  ;;  %4150 = vrot.lane.b32.xlu2 %v4125_v13, %s7082_s18 }
 0xa0c   : > { %v4066_v47 = vpop.f32.mrf.mxu3 }
 0xa0d   : > { %3964 = vrot.lane.b32.xlu0 %v3948_v10, %s7080_s23  ;;  %v4260_v46 = vpop.f32.mrf.mxu2 }
 0xa0e   : > { %v4187_v41 = vpop.f32.mrf.mxu1 }
 0xa0f   : > { %v4128_v26 = vpop.f32.mrf.mxu0 }
 0xa10   : > { %4018 = vrot.lane.b32.xlu1 %v4001_v44, %s7084_s26  ;;  %3953 = vrot.lane.b32.xlu2 %v3945_v61, %s7084_s26 }
 0xa14   : > { %v4322_v57 = vpop.f32.mrf.mxu3 }
 0xa15   : > { %4144 = vrot.lane.b32.xlu0 %v4128_v26, %s7083_s22 }
 0xa16   : > { %v4263_v50 = vpop.f32.mrf.mxu2 }
 0xa17   : > { %v4190_v49 = vpop.f32.mrf.mxu1 }
 0xa18   : > { %4009 = vrot.lane.b32.xlu1 %v4001_v44, %s7082_s18  ;;  %4026 = vrot.lane.b32.xlu2 %v4001_v44, %s7080_s23 }
 0xa1c   : > { %v4325_v24 = vpop.f32.mrf.mxu3 }
 0xa1d   : > { %4135 = vrot.lane.b32.xlu0 %v4128_v26, %s7085_s0 }
 0xa20   : > { %4071 = vrot.lane.b32.xlu1 %v4063_v18, %s7083_s22  ;;  %4088 = vrot.lane.b32.xlu2 %v4063_v18, %s7084_s26 }
 0xa25   : > { %4090 = vrot.lane.b32.xlu0 %v4066_v47, %s7084_s26 }
 0xa28   : > { %4082 = vrot.lane.b32.xlu2 %v4066_v47, %s7082_s18  ;;  %4152 = vrot.lane.b32.xlu1 %v4128_v26, %s7082_s18 }
 0xa2d   : > { %4020 = vrot.lane.b32.xlu0 %v4004_v22, %s7084_s26 }
 0xa30   : > { %4011 = vrot.lane.b32.xlu2 %v4004_v22, %s7082_s18  ;;  %3955 = vrot.lane.b32.xlu1 %v3948_v10, %s7084_s26  ;;  %s9512_s18 = sld [smem:[#allocation10_spill]] }
 0xa31   : > { %s9514_s26 = sld [smem:[#allocation7_spill]] }
 0xa35   : > { %4204 = vrot.lane.b32.xlu0 %v4187_v41, %s7085_s0 }
 0xa36   : > { %v4479_v62 = vld [vmem:[%s9512_s18 + $0x18] sm:$0xff]  ;;  %v4478_v61 = vld [vmem:[%s9512_s18 + $0x10] sm:$0xff]  ;;  %v4477_v18 = vld [vmem:[%s9512_s18 + $0x8] sm:$0xff] }
 0xa37   : > { %v4355_v26 = vld [vmem:[%s9514_s26] sm:$0xff] }
 0xa38   : > { %4285 = vrot.lane.b32.xlu2 %v4260_v46, %s7085_s0  ;;  %4028 = vrot.lane.b32.xlu1 %v4004_v22, %s7080_s23  ;;  %s7088_s23 = smov 72   ;;  %v4357_v22 = vld [vmem:[%s9514_s26 + $0x10] sm:$0xff] }
 0xa3d   : > { %4197 = vrot.lane.b32.xlu0 %v4190_v49, %s7086_s28 }
 0xa40   : > { %4277 = vrot.lane.b32.xlu2 %v4260_v46, %s7086_s28  ;;  %4073 = vrot.lane.b32.xlu1 %v4066_v47, %s7083_s22  ;;  %v4356_v47 = vld [vmem:[%s9514_s26 + $0x8] sm:$0xff] }
 0xa45   : > { %4349 = vrot.lane.b32.xlu0 %v4325_v24, %s7086_s28 }
 0xa48   : > { %4339 = vrot.lane.b32.xlu2 %v4322_v57, %s7087_s11  ;;  %4212 = vrot.lane.b32.xlu1 %v4187_v41, %s7083_s22 }
 0xa4d   : > { %4279 = vrot.lane.b32.xlu0 %v4263_v50, %s7086_s28 }
 0xa50   : > { %4206 = vrot.lane.b32.xlu2 %v4190_v49, %s7085_s0  ;;  %4347 = vrot.lane.b32.xlu1 %v4322_v57, %s7086_s28 }
 0xa55   : > { %4270 = vrot.lane.b32.xlu0 %v4263_v50, %s7087_s11 }
 0xa58   : > { %4195 = vrot.lane.b32.xlu2 %v4187_v41, %s7086_s28  ;;  %4214 = vrot.lane.b32.xlu1 %v4190_v49, %s7083_s22  ;;  %s9513_s22 = sld [smem:[#allocation16_spill]] }
 0xa59   : > { %v3963_v53 = vpop.permute.xlu0 %3962  ;;  %s9516_s28 = sld [smem:[#allocation15_spill]] }
 0xa5a   : > { %3968 = vst.msk [vmem:[#allocation4 + $0x10] sm:$0xff] %vm3959_vm8, %v3963_v53  ;;  %v4358_v53 = vld [vmem:[%s9514_s26 + $0x18] sm:$0xff] }
 0xa5d   : > { %4268 = vrot.lane.b32.xlu0 %v4260_v46, %s7087_s11 }
 0xa5e   : > { %v4546_v44 = vld [vmem:[%s9513_s22] sm:$0xff] }
 0xa60   : > { %4341 = vrot.lane.b32.xlu2 %v4325_v24, %s7087_s11  ;;  %4287 = vrot.lane.b32.xlu1 %v4263_v50, %s7085_s0  ;;  %s9517_s11 = sld [smem:[#allocation20_spill]] }
 0xa62   : > { %v4151_v0 = vpop.permute.xlu2 %4150 }
 0xa68   : > { %4330 = vrot.lane.b32.xlu2 %v4322_v57, %s7088_s23  ;;  %4133 = vrot.lane.b32.xlu1 %v4125_v13, %s7085_s0  ;;  %v4476_v13 = vld [vmem:[%s9512_s18] sm:$0xff]  ;;  %s9515_s0 = sld [smem:[#allocation12_spill]] }
 0xa6a   : > { %v3954_v59 = vpop.permute.xlu2 %3953 }
 0xa6b   : > { %3960 = vst.msk [vmem:[#allocation4] sm:$0xff] %vm3959_vm8, %v3954_v59 }
 0xa70   : > { %4332 = vrot.lane.b32.xlu1 %v4325_v24, %s7088_s23  ;;  %s6556_s23 = sshll.u32 %s9526_s16, 4 }
 0xa71   : > { %s974_s10 = scalar_lea.vmem %s7257_s12, %s6556_s23  ;;  %s7090_s23 = smov 110  }
 0xa72   : > { %v4027_v4 = vpop.permute.xlu2 %4026 }
 0xa73   : > { %4032 = vst.msk [vmem:[#allocation4 + $0x20] sm:$0xff] %vm4015_vm6, %v4027_v4 }
 0xa77   : > { %v4081_v11 = vpop.permute.xlu0 %4080 }
 0xa7a   : > { %v4143_v5 = vpop.permute.xlu1 %4142  ;;  %v4089_v32 = vpop.permute.xlu2 %4088 }
 0xa7b   : > { %4094 = vst.msk [vmem:[#allocation4 + $0x20] sm:$0xff] %vm4077_vm10, %v4089_v32  ;;  %v6471_v32 = vld [vmem:[%s9514_s26 + $0x30] sm:$0xff] }
 0xa7c   : > { %4156 = vst.msk [vmem:[#allocation4 + $0x20] sm:$0xff] %vm4139_vm11, %v4151_v0 }
 0xa7f   : > { %v3965_v23 = vpop.permute.xlu0 %3964 }
 0xa80   : > { %3969 = vst.msk [vmem:[#allocation4 + $0x18] sm:$0xff] %vm3959_vm8, %v3965_v23  ;;  %v6472_v23 = vld [vmem:[%s9514_s26 + $0x38] sm:$0xff] }
 0xa82   : > { %v4019_v63 = vpop.permute.xlu1 %4018  ;;  %v4083_v6 = vpop.permute.xlu2 %4082 }
 0xa83   : > { %4024 = vst.msk [vmem:[#allocation4 + $0x10] sm:$0xff] %vm4015_vm6, %v4019_v63 }
 0xa84   : > { %4086 = vst.msk [vmem:[#allocation4 + $0x10] sm:$0xff] %vm4077_vm10, %v4081_v11  ;;  %v6469_v11 = vld [vmem:[%s9514_s26 + $0x20] sm:$0xff] }
 0xa85   : > { %4148 = vst.msk [vmem:[#allocation4 + $0x10] sm:$0xff] %vm4139_vm11, %v4143_v5  ;;  %v6470_v5 = vld [vmem:[%s9514_s26 + $0x28] sm:$0xff] }
 0xa87   : > { %v4145_v21 = vpop.permute.xlu0 %4144 }
 0xa8a   : > { %v4010_v28 = vpop.permute.xlu1 %4009  ;;  %v4012_v2 = vpop.permute.xlu2 %4011 }
 0xa8b   : > { %4016 = vst.msk [vmem:[#allocation4] sm:$0xff] %vm4015_vm6, %v4010_v28 }
 0xa8f   : > { %v4136_v17 = vpop.permute.xlu0 %4135 }
 0xa92   : > { %v4072_v40 = vpop.permute.xlu1 %4071  ;;  %v4286_v60 = vpop.permute.xlu2 %4285 }
 0xa93   : > { %4078 = vst.msk [vmem:[#allocation4] sm:$0xff] %vm4077_vm10, %v4072_v40 }
 0xa97   : > { %v4091_v45 = vpop.permute.xlu0 %4090 }
 0xa9a   : > { %v4278_v31 = vpop.permute.xlu2 %4277  ;;  %v4153_v56 = vpop.permute.xlu1 %4152 }
 0xa9f   : > { %v4021_v35 = vpop.permute.xlu0 %4020 }
 0xaa0   : > { %4025 = vst.msk [vmem:[#allocation4 + $0x18] sm:$0xff] %vm4015_vm6, %v4021_v35 }
 0xaa1   : > { %4087 = vst.msk [vmem:[#allocation4 + $0x18] sm:$0xff] %vm4077_vm10, %v4083_v6 }
 0xaa2   : > { %v4340_v48 = vpop.permute.xlu2 %4339  ;;  %4149 = vst.msk [vmem:[#allocation4 + $0x18] sm:$0xff] %vm4139_vm11, %v4145_v21  ;;  %v3956_v3 = vpop.permute.xlu1 %3955 }
 0xaa3   : > { %3961 = vst.msk [vmem:[#allocation4 + $0x8] sm:$0xff] %vm3959_vm8, %v3956_v3 }
 0xaa4   : > { %4017 = vst.msk [vmem:[#allocation4 + $0x8] sm:$0xff] %vm4015_vm6, %v4012_v2 }
 0xaa7   : > { %v4205_v37 = vpop.permute.xlu0 %4204 }
 0xaa8   : > { %4210 = vst.msk [vmem:[#allocation4 + $0x10] sm:$0xff] %vm4201_vm12, %v4205_v37 }
 0xaa9   : > { %4283 = vst.msk [vmem:[#allocation4 + $0x10] sm:$0xff] %vm4274_vm13, %v4278_v31 }
 0xaaa   : > { %4345 = vst.msk [vmem:[#allocation4 + $0x10] sm:$0xff] %vm4336_vm14, %v4340_v48  ;;  %v4207_v7 = vpop.permute.xlu2 %4206  ;;  %v4029_v15 = vpop.permute.xlu1 %4028 }
 0xaab   : > { %4211 = vst.msk [vmem:[#allocation4 + $0x18] sm:$0xff] %vm4201_vm12, %v4207_v7 }
 0xaac   : > { %4033 = vst.msk [vmem:[#allocation4 + $0x28] sm:$0xff] %vm4015_vm6, %v4029_v15 }
 0xaad   : > { %4095 = vst.msk [vmem:[#allocation4 + $0x28] sm:$0xff] %vm4077_vm10, %v4091_v45 }
 0xaae   : > { %4157 = vst.msk [vmem:[#allocation4 + $0x28] sm:$0xff] %vm4139_vm11, %v4153_v56 }
 0xaaf   : > { %v4198_v51 = vpop.permute.xlu0 %4197 }
 0xab1   : > { %v4361_v1 = vld [vmem:[#allocation4 + $0x10] sm:$0xff] }
 0xab2   : > { %v4074_v19 = vpop.permute.xlu1 %4073  ;;  %v4196_v16 = vpop.permute.xlu2 %4195 }
 0xab3   : > { %4079 = vst.msk [vmem:[#allocation4 + $0x8] sm:$0xff] %vm4077_vm10, %v4074_v19 }
 0xab4   : > { %4141 = vst.msk [vmem:[#allocation4 + $0x8] sm:$0xff] %vm4139_vm11, %v4136_v17 }
 0xab5   : > { %4203 = vst.msk [vmem:[#allocation4 + $0x8] sm:$0xff] %vm4201_vm12, %v4198_v51 }
 0xab7   : > { %v4350_v43 = vpop.permute.xlu0 %4349 }
 0xaba   : > { %v4213_v30 = vpop.permute.xlu1 %4212  ;;  %v4342_v55 = vpop.permute.xlu2 %4341 }
 0xabb   : > { %4218 = vst.msk [vmem:[#allocation4 + $0x20] sm:$0xff] %vm4201_vm12, %v4213_v30 }
 0xabc   : > { %4291 = vst.msk [vmem:[#allocation4 + $0x20] sm:$0xff] %vm4274_vm13, %v4286_v60 }
 0xabf   : > { %v4280_v8 = vpop.permute.xlu0 %4279 }
 0xac0   : > { %4284 = vst.msk [vmem:[#allocation4 + $0x18] sm:$0xff] %vm4274_vm13, %v4280_v8 }
 0xac1   : > { %4346 = vst.msk [vmem:[#allocation4 + $0x18] sm:$0xff] %vm4336_vm14, %v4342_v55 }
 0xac2   : > { %v4348_v52 = vpop.permute.xlu1 %4347  ;;  %v4331_v9 = vpop.permute.xlu2 %4330 }
 0xac3   : > { %4353 = vst.msk [vmem:[#allocation4 + $0x20] sm:$0xff] %vm4336_vm14, %v4348_v52 }
 0xac7   : > { %v4271_v33 = vpop.permute.xlu0 %4270 }
 0xac8   : > { %4276 = vst.msk [vmem:[#allocation4 + $0x8] sm:$0xff] %vm4274_vm13, %v4271_v33  ;;  %v4362_v38 = vld [vmem:[#allocation4 + $0x18] sm:$0xff] }
 0xac9   : > { %v6830_v36 = vpack.i.bf16 %v4361_v1, %v4362_v38 }
 0xaca   : > { %v4215_v54 = vpop.permute.xlu1 %4214  ;;  %v4363_v25 = vld [vmem:[#allocation4 + $0x20] sm:$0xff] }
 0xacb   : > { %6831 = vrot.lane.b32.xlu0 %v6830_v36, %s7081_s7  ;;  %4219 = vst.msk [vmem:[#allocation4 + $0x28] sm:$0xff] %vm4201_vm12, %v4215_v54 }
 0xacf   : > { %v4269_v27 = vpop.permute.xlu0 %4268 }
 0xad2   : > { %v4288_v12 = vpop.permute.xlu1 %4287 }
 0xad3   : > { %4497 = vperm.xlu0 %6747, %v4479_v62   ;;  %4292 = vst.msk [vmem:[#allocation4 + $0x28] sm:$0xff] %vm4274_vm13, %v4288_v12 }
 0xad4   : > { %4354 = vst.msk [vmem:[#allocation4 + $0x28] sm:$0xff] %vm4336_vm14, %v4350_v43 }
 0xada   : > { %v4134_v58 = vpop.permute.xlu1 %4133 }
 0xadb   : > { %4140 = vst.msk [vmem:[#allocation4] sm:$0xff] %vm4139_vm11, %v4134_v58  ;;  %v4364_v29 = vld [vmem:[#allocation4 + $0x28] sm:$0xff]  ;;  %vm4661_vm11 = vcmask 1040384  }
 0xadc   : > { %4202 = vst.msk [vmem:[#allocation4] sm:$0xff] %vm4201_vm12, %v4196_v16  ;;  %v6825_v14 = vpack.i.bf16 %v4363_v25, %v4364_v29  ;;  %4457 = vmatpush.msra.mxu1 %v4364_v29 }
 0xadd   : > { %4275 = vst.msk [vmem:[#allocation4] sm:$0xff] %vm4274_vm13, %v4269_v27 }
 0xade   : > { %4337 = vst.msk [vmem:[#allocation4] sm:$0xff] %vm4336_vm14, %v4331_v9  ;;  %6826 = vrot.lane.b32.xlu1 %v6825_v14, %s7081_s7  ;;  %4458 = vmatpush.msra.mxu1 %v4363_v25 }
 0xae0   : > { %4459 = vmatpush.msra.mxu1 %v4362_v38 }
 0xae2   : > { %v4333_v42 = vpop.permute.xlu1 %4332  ;;  %4460 = vmatpush.msra.mxu1 %v4361_v1 }
 0xae3   : > { %4338 = vst.msk [vmem:[#allocation4 + $0x8] sm:$0xff] %vm4336_vm14, %v4333_v42 }
 0xae5   : > { %v4359_v20 = vld [vmem:[#allocation4] sm:$0xff] }
 0xae6   : > { %4492 = vperm.xlu1 %6748, %v4478_v61  }
 0xaea   : > { %v4360_v39 = vld [vmem:[#allocation4 + $0x8] sm:$0xff] }
 0xaeb   : > { %v6835_v10 = vpack.i.bf16 %v4359_v20, %v4360_v39  ;;  %4461 = vmatpush.msra.mxu1 %v4360_v39 }
 0xaed   : > { %6836 = vrot.lane.b32.xlu2 %v6835_v10, %s7081_s7  ;;  %4462 = vmatpush.msra.mxu1 %v4359_v20 }
 0xaee   : > { %4487 = vperm.xlu1 %6748, %v4477_v18   ;;  %6477 = vmatmul.msk.f32.vlgmr.msra.gmra.mxu1 %vm2578_vm4, %v4355_v26 }
 0xaf5   : > { %4482 = vperm.xlu2 %6749, %v4476_v13  }
 0xaf6   : > { %4614 = vperm.xlu1 %6748, %v4546_v44   ;;  %6478 = vmatmul.msk.f32.gmra.mxu1 %vm2578_vm4, %v4356_v47 }
 0xafe   : > { %6479 = vmatmul.msk.f32.gmra.mxu1 %vm2578_vm4, %v4357_v22 }
 0xb06   : > { %6480 = vmatmul.msk.f32.gmra.mxu1 %vm2578_vm4, %v4358_v53  ;;  %v7089_v53 = vmov 72.0  }
 0xb3d   : > { %v6832_v57 = vpop.permute.xlu0 %6831 }
 0xb3e   : > { %v6833_v24 = vunpack.i.l.bf16 %v6832_v57  ;;  %v6834_v0 = vunpack.i.h.bf16 %v6832_v57 }
 0xb45   : > { %v4498_v37 = vpop.permute.xlu0 %4497 }
 0xb47   : > { %v6837_v50 = vpop.permute.xlu2 %6836 }
 0xb48   : > { %v6838_v59 = vunpack.i.l.bf16 %v6837_v50  ;;  %v6839_v4 = vunpack.i.h.bf16 %v6837_v50  ;;  %v4545_v50 = vld [vmem:[%s9516_s28 + $0x8] sm:$0xff] }
 0xb4f   : > { %v4483_v12 = vpop.permute.xlu2 %4482 }
 0xb50   : > { %v6827_v41 = vpop.permute.xlu1 %6826 }
 0xb51   : > { %v6828_v46 = vunpack.i.l.bf16 %v6827_v41  ;;  %v6829_v49 = vunpack.i.h.bf16 %v6827_v41 }
 0xb53   : > { %4416 = vmatpush.msra.mxu0 %v6828_v46 }
 0xb55   : > { %4417 = vmatpush.msra.mxu0 %v6829_v49  ;;  %v4624_v49 = vld [vmem:[%s9515_s0] sm:$0xff] }
 0xb57   : > { %4418 = vmatpush.msra.mxu0 %v6833_v24  ;;  %v4544_v24 = vld [vmem:[%s9516_s28] sm:$0xff] }
 0xb58   : > { %v4493_v60 = vpop.permute.xlu1 %4492 }
 0xb59   : > { %4419 = vmatpush.msra.mxu0 %v6834_v0 }
 0xb5b   : > { %4420 = vmatpush.msra.mxu0 %v6838_v59 }
 0xb5d   : > { %4421 = vmatpush.msra.mxu0 %v6839_v4 }
 0xb5e   : > { %6473 = vmatmul.msk.f32.vlgmr.msra.gmra.mxu0 %vm2578_vm4, %v6469_v11 }
 0xb60   : > { %v4488_v44 = vpop.permute.xlu1 %4487 }
 0xb66   : > { %6474 = vmatmul.msk.f32.gmra.mxu0 %vm2578_vm4, %v6470_v5 }
 0xb6b   : > { %v4464_v63 = vpop.f32.mrf.mxu1 }
 0xb6e   : > { %6475 = vmatmul.msk.f32.gmra.mxu0 %vm2578_vm4, %v6471_v32 }
 0xb73   : > { %v4467_v21 = vpop.f32.mrf.mxu1 }
 0xb76   : > { %6476 = vmatmul.msk.f32.gmra.mxu0 %vm2578_vm4, %v6472_v23 }
 0xb7b   : > { %v4470_v2 = vpop.f32.mrf.mxu1 }
 0xb83   : > { %v4473_v56 = vpop.f32.mrf.mxu1 }
 0xbdb   : > { %v4423_v6 = vpop.f32.mrf.mxu0 }
 0xbdc   : > { %v4465_v1 = vadd.f32 %v4464_v63, %v4423_v6 }
 0xbde   : > { %v4500_v25 = vadd.f32 %v4483_v12, %v4465_v1 }
 0xbe3   : > { %v4426_v28 = vpop.f32.mrf.mxu0 }
 0xbe4   : > { %v4468_v61 = vadd.f32 %v4467_v21, %v4426_v28 }
 0xbe6   : > { %v4501_v47 = vadd.f32 %v4488_v44, %v4468_v61 }
 0xbeb   : > { %v4429_v17 = vpop.f32.mrf.mxu0 }
 0xbec   : > { %v4471_v40 = vadd.f32 %v4470_v2, %v4429_v17 }
 0xbee   : > { %v4502_v45 = vadd.f32 %v4493_v60, %v4471_v40 }
 0xbf0   : > { %v4504_v31 = vsub.f32 0.0, %v4502_v45 }
 0xbf2   : > { %v4506_v35 = vmul.f32 1.442695, %v4504_v31  ;;  %v4625_v31 = vld [vmem:[%s9515_s0 + $0x8] sm:$0xff]  ;;  %s7091_s0 = smov 101  }
 0xbf3   : > { %v4432_v48 = vpop.f32.mrf.mxu0 }
 0xbf4   : > { %6941 = vpow2.f32 %v4506_v35  ;;  %v4474_v3 = vadd.f32 %v4473_v56, %v4432_v48  ;;  %v4547_v56 = vld [vmem:[%s9513_s22 + $0x8] sm:$0xff]  ;;  %v4615_v35 = vpop.permute.xlu1 %4614 }
 0xbf6   : > { %v4503_v7 = vadd.f32 %v4498_v37, %v4474_v3 }
 0xbf8   : > { %v4505_v15 = vsub.f32 0.0, %v4503_v7 }
 0xbfa   : > { %v6942_v51 = vpop.eup %6941  ;;  %v4508_v19 = vmul.f32 1.442695, %v4505_v15 }
 0xbfb   : > { %v4510_v16 = vadd.f32 1.0, %v6942_v51  ;;  %v8912_v51 = vld [vmem:[%s9517_s11 + $0x8] sm:$0x1] }
 0xbfc   : > { %6943 = vpow2.f32 %v4508_v19  ;;  %v8915_v19 = vld [vmem:[%s9517_s11] sm:$0xff]  ;;  %6481 = vmatpush.msk.msra.mxu2 %vm4661_vm11, %v8912_v51  ;;  %6484 = vmatpush.msk.msra.mxu3 %vm4661_vm11, %v8912_v51 }
 0xbfd   : > { %6945 = vrcp.f32 %v4510_v16  ;;  %v4523_v33 = vand.u32 2147483648, %v4510_v16  ;;  %v4521_v36 = vand.u32 2147483647, %v4510_v16  ;;  %vm4517_vm15 = vweird.f32 %v4510_v16  ;;  %6496 = vmatpush.msk.msrb.mxu1 %vm4661_vm11, %v8912_v51  ;;  %6493 = vmatpush.msk.msrb.mxu0 %vm4661_vm11, %v8912_v51 }
 0xbfe   : > { %4680 = vmatpush.msra.mxu2 %v8915_v19  ;;  %4736 = vmatpush.msra.mxu3 %v8915_v19 }
 0xbff   : > { %v4524_v58 = vor.u32 1.1754944e-38, %v4523_v33  ;;  %vm4522_vm5 = vcmp.eq.f32.partialorder %v4521_v36, 8.507059e+37  ;;  %4978 = vmatpush.msrb.mxu1 %v8915_v19  ;;  %4916 = vmatpush.msrb.mxu0 %v8915_v19 }
 0xc00   : > { %6487 = vmatpush.msk.msrb.mxu2 %vm4661_vm11, %v8912_v51  ;;  %6490 = vmatpush.msk.msrb.mxu3 %vm4661_vm11, %v8912_v51 }
 0xc02   : > { %v6944_v43 = vpop.eup %6943  ;;  %4792 = vmatpush.msrb.mxu2 %v8915_v19  ;;  %4854 = vmatpush.msrb.mxu3 %v8915_v19 }
 0xc03   : > { %v6946_v30 = vpop.eup %6945  ;;  %v4511_v8 = vadd.f32 1.0, %v6944_v43 }
 0xc04   : > { %v4513_v55 = vmul.f32 %v6946_v30, %v4510_v16  ;;  %vm4518_vm1 = vweird.f32 %v6946_v30 }
 0xc05   : > { %6947 = vrcp.f32 %v4511_v8  ;;  %vm4519_vm2 = vmor %vm4517_vm15, %vm4518_vm1  ;;  %v4538_v20 = vand.u32 2147483648, %v4511_v8  ;;  %v4536_v18 = vand.u32 2147483647, %v4511_v8  ;;  %vm4532_vm0 = vweird.f32 %v4511_v8 }
 0xc06   : > { %v4514_v52 = vsub.f32 1.0, %v4513_v55  ;;  %6949 = vrcp.f32 %v7089_v53 }
 0xc07   : > { %v4539_v26 = vor.u32 1.1754944e-38, %v4538_v20  ;;  %vm4537_vm6 = vcmp.eq.f32.partialorder %v4536_v18, 8.507059e+37 }
 0xc08   : > { %v4515_v38 = vmul.f32 %v6946_v30, %v4514_v52 }
 0xc0a   : > { %v4516_v54 = vadd.f32 %v6946_v30, %v4515_v38 }
 0xc0b   : > { %v6948_v62 = vpop.eup %6947 }
 0xc0c   : > { %v4520_v29 = vsel %vm4519_vm2, %v6946_v30, %v4516_v54  ;;  %v4528_v27 = vmul.f32 %v6948_v62, %v4511_v8  ;;  %vm4533_vm7 = vweird.f32 %v6948_v62  ;;  %v6950_v0 = vpop.eup %6949 }
 0xc0d   : > { %v4525_v14 = vsel %vm4522_vm5, %v4524_v58, %v4520_v29  ;;  %vm4534_vm8 = vmor %vm4532_vm0, %vm4533_vm7  ;;  %v4556_v59 = vmul.f32 72.0, %v6950_v0  ;;  %vm4560_vm10 = vweird.f32 %v6950_v0  ;;  %vm4696_vm0 = vcmask 64544  }
 0xc0e   : > { %v4542_v9 = vmul.f32 %v4525_v14, %v4500_v25  ;;  %v4529_v42 = vsub.f32 1.0, %v4528_v27 }
 0xc0f   : > { %v4557_v4 = vsub.f32 1.0, %v4556_v59 }
 0xc10   : > { %v4549_v39 = vsel %vm4548_vm3, %v4542_v9, 0.0  ;;  %v4530_v10 = vmul.f32 %v6948_v62, %v4529_v42 }
 0xc11   : > { %4550 = vadd.xlane.f32.xlu0 %v4549_v39  ;;  %v4558_v11 = vmul.f32 %v6950_v0, %v4557_v4 }
 0xc12   : > { %v4531_v13 = vadd.f32 %v6948_v62, %v4530_v10 }
 0xc13   : > { %v4559_v5 = vadd.f32 %v6950_v0, %v4558_v11 }
 0xc14   : > { %v4535_v22 = vsel %vm4534_vm8, %v6948_v62, %v4531_v13  ;;  %vm4752_vm8 = vcmask 97344  }
 0xc15   : > { %v4540_v41 = vsel %vm4537_vm6, %v4539_v26, %v4535_v22  ;;  %v4561_v32 = vsel %vm4560_vm10, %v6950_v0, %v4559_v5  ;;  %vm4870_vm6 = vcmask 162944   ;;  %vm4932_vm10 = vcmask 195744  }
 0xc16   : > { %v4543_v46 = vmul.f32 %v4540_v41, %v4501_v47 }
 0xc18   : > { %v4552_v57 = vsel %vm4548_vm3, %v4543_v46, 0.0 }
 0xc19   : > { %4553 = vadd.xlane.f32.xlu2 %v4552_v57 }
 0xc25   : > { %4630 = vperm.xlu0 %6747, %v4624_v49  }
 0xc31   : > { %4602 = vperm.xlu2 %6749, %v4544_v24  }
 0xc39   : > { %4607 = vperm.xlu2 %6749, %v4545_v50  }
 0xc84   : > { %v4551_v23 = vpop.xlane.xlu0 %4550 }
 0xc85   : > { %v4562_v63 = vmul.f32 %v4561_v32, %v4551_v23 }
 0xc87   : > { %v4564_v6 = vsub.f32 %v4542_v9, %v4562_v63 }
 0xc89   : > { %v4566_v21 = vmul.f32 %v4564_v6, %v4564_v6 }
 0xc8b   : > { %v4568_v28 = vsel %vm4548_vm3, %v4566_v21, 0.0 }
 0xc8c   : > { %v4554_v2 = vpop.xlane.xlu2 %4553  ;;  %4569 = vadd.xlane.f32.xlu1 %v4568_v28 }
 0xc8d   : > { %v4563_v17 = vmul.f32 %v4561_v32, %v4554_v2 }
 0xc8f   : > { %v8904_v40 = vsub.f32 %v4543_v46, %v4563_v17 }
 0xc91   : > { %v4567_v60 = vmul.f32 %v8904_v40, %v8904_v40 }
 0xc93   : > { %v4571_v45 = vsel %vm4548_vm3, %v4567_v60, 0.0 }
 0xc94   : > { %4572 = vadd.xlane.f32.xlu0 %v4571_v45  ;;  %v4603_v54 = vpop.permute.xlu2 %4602 }
 0xc97   : > { %v4631_v48 = vpop.permute.xlu0 %4630 }
 0xc9c   : > { %v4608_v10 = vpop.permute.xlu2 %4607 }
 0xca5   : > { %4635 = vperm.xlu1 %6748, %v4625_v31  }
 0xca8   : > { %4619 = vperm.xlu0 %6747, %v4547_v56  }
 0xcff   : > { %v4570_v3 = vpop.xlane.xlu1 %4569 }
 0xd00   : > { %v4574_v37 = vmul.f32 %v4570_v3, %v4561_v32 }
 0xd02   : > { %v4576_v7 = vadd.f32 1e-05, %v4574_v37 }
 0xd04   : > { %6951 = vrsqrt.f32 %v4576_v7  ;;  %vm4584_vm13 = vweird.f32 %v4576_v7 }
 0xd07   : > { %v4573_v15 = vpop.xlane.xlu0 %4572 }
 0xd08   : > { %v4575_v16 = vmul.f32 %v4573_v15, %v4561_v32 }
 0xd0a   : > { %v6952_v43 = vpop.eup %6951  ;;  %v4577_v30 = vadd.f32 1e-05, %v4575_v16 }
 0xd0b   : > { %v4579_v8 = vmul.f32 %v6952_v43, %v4576_v7  ;;  %vm4585_vm12 = vweird.f32 %v6952_v43 }
 0xd0c   : > { %6953 = vrsqrt.f32 %v4577_v30  ;;  %vm4586_vm14 = vmor %vm4584_vm13, %vm4585_vm12  ;;  %vm4594_vm15 = vweird.f32 %v4577_v30  ;;  %vm5056_vm12 = vcmask 261344   ;;  %vm5118_vm13 = vcmask 294144  }
 0xd0d   : > { %v4580_v55 = vmul.f32 %v6952_v43, %v4579_v8 }
 0xd0f   : > { %v4581_v52 = vmul.f32 0.5, %v4580_v55 }
 0xd11   : > { %v4582_v33 = vsub.f32 1.5, %v4581_v52 }
 0xd12   : > { %v6954_v1 = vpop.eup %6953 }
 0xd13   : > { %v4583_v38 = vmul.f32 %v6952_v43, %v4582_v33  ;;  %v4589_v36 = vmul.f32 %v6954_v1, %v4577_v30  ;;  %vm4595_vm1 = vweird.f32 %v6954_v1 }
 0xd14   : > { %vm4596_vm5 = vmor %vm4594_vm15, %vm4595_vm1 }
 0xd15   : > { %v4587_v62 = vsel %vm4586_vm14, %v6952_v43, %v4583_v38  ;;  %v4590_v12 = vmul.f32 %v6954_v1, %v4589_v36 }
 0xd16   : > { %v4598_v58 = vmul.f32 %v4587_v62, %v4564_v6 }
 0xd17   : > { %v4591_v25 = vmul.f32 0.5, %v4590_v12  ;;  %v4636_v26 = vpop.permute.xlu1 %4635 }
 0xd18   : > { %v4610_v29 = vmul.f32 %v4603_v54, %v4598_v58 }
 0xd19   : > { %v4592_v27 = vsub.f32 1.5, %v4591_v25 }
 0xd1a   : > { %v4622_v14 = vadd.f32 %v4615_v35, %v4610_v29  ;;  %v4620_v13 = vpop.permute.xlu0 %4619 }
 0xd1b   : > { %v4593_v9 = vmul.f32 %v6954_v1, %v4592_v27 }
 0xd1c   : > { %vm4626_vm2 = vcmp.ge.f32.partialorder %v4622_v14, 0.0  ;;  %v4638_v42 = vmul.f32 %v4631_v48, %v4622_v14 }
 0xd1d   : > { %v4597_v61 = vsel %vm4596_vm5, %v6954_v1, %v4593_v9 }
 0xd1e   : > { %v4640_v20 = vsel %vm4626_vm2, %v4622_v14, %v4638_v42  ;;  %v4599_v39 = vmul.f32 %v4597_v61, %v8904_v40  ;;  %vm5714_vm2 = vcmask 261120  }
 0xd1f   : > { %4642 = vst.msk [vmem:[%s974_s10] sm:$0xff] %vm4548_vm3, %v4640_v20 }
 0xd20   : > { %v4611_v18 = vmul.f32 %v4608_v10, %v4599_v39 }
 0xd22   : > { %v4623_v44 = vadd.f32 %v4620_v13, %v4611_v18 }
 0xd24   : > { %vm4627_vm7 = vcmp.ge.f32.partialorder %v4623_v44, 0.0  ;;  %v4639_v47 = vmul.f32 %v4636_v26, %v4623_v44 }
 0xd26   : > { %v4641_v22 = vsel %vm4627_vm7, %v4623_v44, %v4639_v47  ;;  %v4765_v41 = vld [vmem:[%s974_s10] sm:$0xff] }
 0xd27   : > { %4643 = vst.msk [vmem:[%s974_s10 + $0x8] sm:$0xff] %vm4548_vm3, %v4641_v22  ;;  %4769 = vrot.lane.b32.xlu1 %v4765_v41, %s7090_s23  ;;  %4713 = vrot.lane.b32.xlu2 %v4765_v41, %s7081_s7  ;;  %vm4646_vm3 = vcmask 31744  }
 0xd28   : > { %6482 = vmatmul.msk.f32.vlgmr.msra.gmra.mxu2 %vm3853_vm9, %v4765_v41  ;;  %4649 = vst.msk [vmem:[#allocation5 + $0x10] sm:$0xff] %vm4646_vm3, %v7052_v34 }
 0xd29   : > { %6499 = vmatpush.msk.msra.mxu2 %vm4661_vm11, %v8912_v51  ;;  %4647 = vst.msk [vmem:[#allocation5] sm:$0xff] %vm4646_vm3, %v7052_v34 }
 0xd2a   : > { %4648 = vst.msk [vmem:[#allocation5 + $0x8] sm:$0xff] %vm4646_vm3, %v7052_v34 }
 0xd2b   : > { %5040 = vmatpush.msra.mxu2 %v8915_v19  ;;  %4650 = vst.msk [vmem:[#allocation5 + $0x18] sm:$0xff] %vm4646_vm3, %v7052_v34 }
 0xd2c   : > { %4651 = vst.msk [vmem:[#allocation5 + $0x20] sm:$0xff] %vm4646_vm3, %v7052_v34 }
 0xd2d   : > { %4652 = vst.msk [vmem:[#allocation5 + $0x28] sm:$0xff] %vm4646_vm3, %v7052_v34 }
 0xd2e   : > { %v4828_v46 = vld [vmem:[%s974_s10 + $0x8] sm:$0xff]  ;;  %s7098_s10 = smov 16  }
 0xd2f   : > { %4831 = vrot.lane.b32.xlu2 %v4765_v41, %s7091_s0  ;;  %4833 = vrot.lane.b32.xlu1 %v4828_v46, %s7091_s0  ;;  %s7101_s0 = smov 20  }
 0xd30   : > { %4715 = vrot.lane.b32.xlu0 %v4828_v46, %s7081_s7  ;;  %6483 = vmatmul.msk.f32.gmra.mxu2 %vm3853_vm9, %v4828_v46  ;;  %s7100_s7 = smov 8  }
 0xd37   : > { %5017 = vrot.lane.b32.xlu2 %v4765_v41, %s7092_s1  ;;  %4893 = vrot.lane.b32.xlu1 %v4765_v41, %s7093_s2 }
 0xd38   : > { %4771 = vrot.lane.b32.xlu0 %v4828_v46, %s7090_s23  ;;  %s9519_s23 = smov 28  }
 0xd3f   : > { %4955 = vrot.lane.b32.xlu2 %v4765_v41, %s7094_s3  ;;  %5081 = vrot.lane.b32.xlu1 %v4828_v46, %s7095_s4 }
 0xd40   : > { %5079 = vrot.lane.b32.xlu0 %v4765_v41, %s7095_s4  ;;  %s7097_s4 = smov 124  }
 0xd47   : > { %4895 = vrot.lane.b32.xlu2 %v4828_v46, %s7093_s2  ;;  %s7099_s2 = smov 12  }
 0xd48   : > { %5019 = vrot.lane.b32.xlu0 %v4828_v46, %s7092_s1  ;;  %s9518_s1 = smov 24  }
 0xd50   : > { %4957 = vrot.lane.b32.xlu0 %v4828_v46, %s7094_s3  ;;  %s7096_s3 = smov 4  }
 0xd81   : > { %v4714_v57 = vpop.permute.xlu2 %4713 }
 0xd82   : > { %6485 = vmatmul.msk.f32.vlgmr.msra.gmra.mxu3 %vm3853_vm9, %v4714_v57 }
 0xd83   : > { %6502 = vmatpush.msk.msra.mxu3 %vm4661_vm11, %v8912_v51  ;;  %vm4994_vm11 = vcmask 228544  }
 0xd85   : > { %5102 = vmatpush.msra.mxu3 %v8915_v19 }
 0xd89   : > { %v4832_v49 = vpop.permute.xlu2 %4831 }
 0xd91   : > { %v5018_v24 = vpop.permute.xlu2 %5017 }
 0xd99   : > { %v4770_v50 = vpop.permute.xlu1 %4769  ;;  %v4956_v53 = vpop.permute.xlu2 %4955 }
 0xd9a   : > { %6488 = vmatmul.msk.f32.vlgmr.msrb.gmra.mxu2 %vm3853_vm9, %v4770_v50  ;;  %6497 = vmatmul.msk.f32.vlgmr.msrb.gmra.mxu1 %vm3853_vm9, %v4956_v53 }
 0xda1   : > { %v4834_v0 = vpop.permute.xlu1 %4833  ;;  %v4896_v34 = vpop.permute.xlu2 %4895 }
 0xda2   : > { %v4716_v59 = vpop.permute.xlu0 %4715 }
 0xda3   : > { %6486 = vmatmul.msk.f32.gmra.mxu3 %vm3853_vm9, %v4716_v59 }
 0xda9   : > { %v4894_v4 = vpop.permute.xlu1 %4893 }
 0xdaa   : > { %v4772_v11 = vpop.permute.xlu0 %4771  ;;  %6494 = vmatmul.msk.f32.vlgmr.msrb.gmra.mxu0 %vm3853_vm9, %v4894_v4 }
 0xdab   : > { %v4682_v5 = vpop.f32.mrf.mxu2  ;;  %6489 = vmatmul.msk.f32.gmra.mxu2 %vm3853_vm9, %v4772_v11  ;;  %6491 = vmatmul.msk.f32.vlgmr.msrb.gmra.mxu3 %vm3853_vm9, %v4832_v49 }
 0xdac   : > { %4699 = vst.msk [vmem:[#allocation5 + $0x10] sm:$0xff] %vm4696_vm0, %v4682_v5  ;;  %4690 = vrot.lane.b32.xlu1 %v4682_v5, %s7096_s3  ;;  %4701 = vrot.lane.b32.xlu0 %v4682_v5, %s7097_s4 }
 0xdb1   : > { %v5082_v6 = vpop.permute.xlu1 %5081 }
 0xdb2   : > { %v5080_v32 = vpop.permute.xlu0 %5079  ;;  %6495 = vmatmul.msk.f32.gmra.mxu0 %vm3853_vm9, %v4896_v34 }
 0xdb3   : > { %v4685_v23 = vpop.f32.mrf.mxu2  ;;  %6492 = vmatmul.msk.f32.gmra.mxu3 %vm3853_vm9, %v4834_v0  ;;  %6500 = vmatmul.msk.f32.vlgmr.msra.gmra.mxu2 %vm3853_vm9, %v5018_v24 }
 0xdb4   : > { %4700 = vst.msk [vmem:[#allocation5 + $0x18] sm:$0xff] %vm4696_vm0, %v4685_v23  ;;  %4703 = vrot.lane.b32.xlu1 %v4685_v23, %s7097_s4  ;;  %4692 = vrot.lane.b32.xlu2 %v4685_v23, %s7096_s3 }
 0xdba   : > { %v5020_v63 = vpop.permute.xlu0 %5019 }
 0xdbb   : > { %6501 = vmatmul.msk.f32.gmra.mxu2 %vm3853_vm9, %v5020_v63  ;;  %6503 = vmatmul.msk.f32.vlgmr.msra.gmra.mxu3 %vm3853_vm9, %v5080_v32 }
 0xdc2   : > { %v4958_v21 = vpop.permute.xlu0 %4957 }
 0xdc3   : > { %6498 = vmatmul.msk.f32.gmra.mxu1 %vm3853_vm9, %v4958_v21  ;;  %6504 = vmatmul.msk.f32.gmra.mxu3 %vm3853_vm9, %v5082_v6  ;;  %vm4808_vm9 = vcmask 130144  }
 0xe05   : > { %v4738_v17 = vpop.f32.mrf.mxu3 }
 0xe0e   : > { %v4693_v28 = vpop.permute.xlu2 %4692 }
 0xe0f   : > { %4698 = vst.msk [vmem:[#allocation5 + $0x8] sm:$0xff] %vm4696_vm0, %v4693_v28 }
 0xe17   : > { %v4980_v2 = vpop.f32.mrf.mxu1 }
 0xe18   : > { %5005 = vrot.lane.b32.xlu2 %v4980_v2, %s7098_s10 }
 0xe1d   : > { %v4794_v48 = vpop.f32.mrf.mxu2 }
 0xe1e   : > { %v4691_v40 = vpop.permute.xlu1 %4690  ;;  %v4702_v60 = vpop.permute.xlu0 %4701 }
 0xe1f   : > { %4697 = vst.msk [vmem:[#allocation5] sm:$0xff] %vm4696_vm0, %v4691_v40 }
 0xe20   : > { %4707 = vst.msk [vmem:[#allocation5 + $0x20] sm:$0xff] %vm4696_vm0, %v4702_v60  ;;  %4988 = vrot.lane.b32.xlu2 %v4980_v2, %s9518_s1 }
 0xe21   : > { %4763 = vst.msk [vmem:[#allocation5 + $0x20] sm:$0xff] %vm4752_vm8, %v4738_v17 }
 0xe26   : > { %v4741_v45 = vpop.f32.mrf.mxu3  ;;  %v4704_v31 = vpop.permute.xlu1 %4703 }
 0xe27   : > { %4708 = vst.msk [vmem:[#allocation5 + $0x28] sm:$0xff] %vm4696_vm0, %v4704_v31  ;;  %v4918_v56 = vpop.f32.mrf.mxu0 }
 0xe28   : > { %4935 = vrot.lane.b32.xlu0 %v4918_v56, %s7098_s10  ;;  %4943 = vrot.lane.b32.xlu1 %v4918_v56, %s7099_s2  ;;  %4764 = vst.msk [vmem:[#allocation5 + $0x28] sm:$0xff] %vm4752_vm8, %v4741_v45 }
 0xe29   : > { %4746 = vrot.lane.b32.xlu2 %v4738_v17, %s7100_s7 }
 0xe2e   : > { %v4797_v37 = vpop.f32.mrf.mxu2  ;;  %v4856_v7 = vpop.f32.mrf.mxu3 }
 0xe2f   : > { %v4921_v35 = vpop.f32.mrf.mxu0 }
 0xe30   : > { %4926 = vrot.lane.b32.xlu0 %v4918_v56, %s7101_s0  ;;  %4997 = vrot.lane.b32.xlu1 %v4980_v2, %s7101_s0 }
 0xe31   : > { %4945 = vrot.lane.b32.xlu2 %v4921_v35, %s7099_s2 }
 0xe36   : > { %v5042_v15 = vpop.f32.mrf.mxu2  ;;  %v4859_v51 = vpop.f32.mrf.mxu3 }
 0xe38   : > { %4755 = vrot.lane.b32.xlu0 %v4738_v17, %s7096_s3  ;;  %4819 = vrot.lane.b32.xlu1 %v4794_v48, %s7096_s3 }
 0xe3e   : > { %v5045_v19 = vpop.f32.mrf.mxu2  ;;  %v5104_v43 = vpop.f32.mrf.mxu3 }
 0xe40   : > { %v4983_v3 = vpop.f32.mrf.mxu1  ;;  %4802 = vrot.lane.b32.xlu0 %v4794_v48, %s7099_s2  ;;  %4811 = vrot.lane.b32.xlu1 %v4794_v48, %s7100_s7 }
 0xe41   : > { %5007 = vrot.lane.b32.xlu2 %v4983_v3, %s7098_s10 }
 0xe46   : > { %v5107_v8 = vpop.f32.mrf.mxu3 }
 0xe48   : > { %4999 = vrot.lane.b32.xlu0 %v4983_v3, %s7101_s0  ;;  %4928 = vrot.lane.b32.xlu1 %v4921_v35, %s7101_s0 }
 0xe49   : > { %4937 = vrot.lane.b32.xlu2 %v4921_v35, %s7098_s10 }
 0xe50   : > { %4757 = vrot.lane.b32.xlu0 %v4741_v45, %s7096_s3  ;;  %4990 = vrot.lane.b32.xlu1 %v4983_v3, %s9518_s1 }
 0xe51   : > { %4821 = vrot.lane.b32.xlu2 %v4797_v37, %s7096_s3  ;;  %s7102_s3 = smov 32  }
 0xe58   : > { %4748 = vrot.lane.b32.xlu1 %v4741_v45, %s7100_s7  ;;  %4813 = vrot.lane.b32.xlu0 %v4797_v37, %s7100_s7 }
 0xe59   : > { %4804 = vrot.lane.b32.xlu2 %v4797_v37, %s7099_s2 }
 0xe60   : > { %4881 = vrot.lane.b32.xlu1 %v4856_v7, %s7100_s7  ;;  %5067 = vrot.lane.b32.xlu0 %v5042_v15, %s7101_s0 }
 0xe61   : > { %4873 = vrot.lane.b32.xlu2 %v4856_v7, %s7099_s2 }
 0xe68   : > { %4875 = vrot.lane.b32.xlu1 %v4859_v51, %s7099_s2  ;;  %4864 = vrot.lane.b32.xlu0 %v4856_v7, %s7098_s10  ;;  %s9523_s2 = sld [smem:[#allocation13_spill]] }
 0xe69   : > { %5059 = vrot.lane.b32.xlu2 %v5042_v15, %s9518_s1 }
 0xe70   : > { %4883 = vrot.lane.b32.xlu0 %v4859_v51, %s7100_s7  ;;  %5061 = vrot.lane.b32.xlu1 %v5045_v19, %s9518_s1  ;;  %s9524_s7 = sld [smem:[#allocation8_spill]] }
 0xe71   : > { %5069 = vrot.lane.b32.xlu2 %v5045_v19, %s7101_s0  ;;  %s6557_s0 = sshll.u32 %s9526_s16, 6 }
 0xe72   : > { %v5006_v16 = vpop.permute.xlu2 %5005 }
 0xe78   : > { %4866 = vrot.lane.b32.xlu0 %v4859_v51, %s7098_s10  ;;  %5052 = vrot.lane.b32.xlu1 %v5045_v19, %s9519_s23  ;;  %s9520_s10 = sld [smem:[#allocation11_spill]] }
 0xe79   : > { %5121 = vrot.lane.b32.xlu2 %v5104_v43, %s9519_s23 }
 0xe7a   : > { %v9016_v30 = vpop.permute.xlu2 %4988 }
 0xe7e   : > { %v5427_v34 = vld [vmem:[%s9520_s10 + $0x8] sm:$0xff]  ;;  %v5430_v2 = vld [vmem:[%s9520_s10 + $0x20] sm:$0xff]  ;;  %v5433_v31 = vld [vmem:[%s9520_s10 + $0x38] sm:$0xff] }
 0xe7f   : > { %v5426_v40 = vld [vmem:[%s9520_s10] sm:$0xff]  ;;  %v5429_v56 = vld [vmem:[%s9520_s10 + $0x18] sm:$0xff]  ;;  %v5428_v35 = vld [vmem:[%s9520_s10 + $0x10] sm:$0xff] }
 0xe80   : > { %5131 = vrot.lane.b32.xlu0 %v5107_v8, %s9518_s1  ;;  %5129 = vrot.lane.b32.xlu1 %v5104_v43, %s9518_s1  ;;  %s9521_s1 = sld [smem:[#allocation17_spill]]  ;;  %v5436_v48 = vld [vmem:[%s9520_s10 + $0x50] sm:$0xff]  ;;  %v5431_v37 = vld [vmem:[%s9520_s10 + $0x28] sm:$0xff] }
 0xe81   : > { %5123 = vrot.lane.b32.xlu2 %v5107_v8, %s9519_s23  ;;  %v5432_v3 = vld [vmem:[%s9520_s10 + $0x30] sm:$0xff]  ;;  %v5439_v7 = vld [vmem:[%s9520_s10 + $0x68] sm:$0xff]  ;;  %v5434_v51 = vld [vmem:[%s9520_s10 + $0x40] sm:$0xff] }
 0xe83   : > { %v4747_v55 = vpop.permute.xlu2 %4746 }
 0xe84   : > { %4753 = vst.msk [vmem:[#allocation5] sm:$0xff] %vm4752_vm8, %v4747_v55  ;;  %v5440_v55 = vld [vmem:[%s9520_s10 + $0x70] sm:$0xff] }
 0xe86   : > { %v5700_v19 = vld [vmem:[%s9521_s1 + $0x10] sm:$0xff] }
 0xe88   : > { %5114 = vrot.lane.b32.xlu0 %v5107_v8, %s7102_s3  ;;  %5050 = vrot.lane.b32.xlu1 %v5042_v15, %s9519_s23  ;;  %v5435_v15 = vld [vmem:[%s9520_s10 + $0x48] sm:$0xff]  ;;  %v5441_v8 = vld [vmem:[%s9520_s10 + $0x78] sm:$0xff]  ;;  %s9393_s23 = scalar_lea.vmem %s7262_s17, %s6557_s0 }
 0xe89   : > { %5112 = vrot.lane.b32.xlu2 %v5104_v43, %s7102_s3  ;;  %v5437_v43 = vld [vmem:[%s9520_s10 + $0x58] sm:$0xff] }
 0xe8b   : > { %v4946_v52 = vpop.permute.xlu2 %4945 }
 0xe9a   : > { %v4936_v33 = vpop.permute.xlu0 %4935  ;;  %v4944_v1 = vpop.permute.xlu1 %4943 }
 0xe9b   : > { %v5008_v38 = vpop.permute.xlu2 %5007 }
 0xea2   : > { %v4927_v36 = vpop.permute.xlu0 %4926  ;;  %v4998_v54 = vpop.permute.xlu1 %4997 }
 0xea3   : > { %v4938_v62 = vpop.permute.xlu2 %4937 }
 0xeaa   : > { %v4756_v12 = vpop.permute.xlu0 %4755  ;;  %v4820_v58 = vpop.permute.xlu1 %4819 }
 0xeab   : > { %4761 = vst.msk [vmem:[#allocation5 + $0x10] sm:$0xff] %vm4752_vm8, %v4756_v12  ;;  %v4822_v25 = vpop.permute.xlu2 %4821  ;;  %v5704_v12 = vld [vmem:[%s9521_s1 + $0x30] sm:$0xff] }
 0xeac   : > { %4825 = vst.msk [vmem:[#allocation5 + $0x20] sm:$0xff] %vm4808_vm9, %v4820_v58  ;;  %v5705_v58 = vld [vmem:[%s9521_s1 + $0x38] sm:$0xff] }
 0xead   : > { %4826 = vst.msk [vmem:[#allocation5 + $0x28] sm:$0xff] %vm4808_vm9, %v4822_v25  ;;  %v5995_v25 = vld [vmem:[%s9523_s2 + $0x8] sm:$0xff] }
 0xeb2   : > { %v4803_v29 = vpop.permute.xlu0 %4802  ;;  %v4812_v27 = vpop.permute.xlu1 %4811 }
 0xeb3   : > { %4809 = vst.msk [vmem:[#allocation5] sm:$0xff] %vm4808_vm9, %v4803_v29  ;;  %v4805_v14 = vpop.permute.xlu2 %4804 }
 0xeb4   : > { %4817 = vst.msk [vmem:[#allocation5 + $0x10] sm:$0xff] %vm4808_vm9, %v4812_v27 }
 0xeba   : > { %v5000_v9 = vpop.permute.xlu0 %4999  ;;  %v4929_v42 = vpop.permute.xlu1 %4928 }
 0xebb   : > { %v4874_v61 = vpop.permute.xlu2 %4873 }
 0xebc   : > { %4879 = vst.msk [vmem:[#allocation5 + $0x10] sm:$0xff] %vm4870_vm6, %v4874_v61  ;;  %v5994_v61 = vld [vmem:[%s9523_s2] sm:$0xff] }
 0xebd   : > { %4941 = vst.msk [vmem:[#allocation5 + $0x10] sm:$0xff] %vm4932_vm10, %v4936_v33  ;;  %v5699_v33 = vld [vmem:[%s9521_s1 + $0x8] sm:$0xff] }
 0xebe   : > { %5003 = vst.msk [vmem:[#allocation5 + $0x10] sm:$0xff] %vm4994_vm11, %v4998_v54  ;;  %v5702_v54 = vld [vmem:[%s9521_s1 + $0x20] sm:$0xff] }
 0xec2   : > { %v4758_v20 = vpop.permute.xlu0 %4757  ;;  %v4991_v39 = vpop.permute.xlu1 %4990 }
 0xec3   : > { %4762 = vst.msk [vmem:[#allocation5 + $0x18] sm:$0xff] %vm4752_vm8, %v4758_v20  ;;  %v5060_v10 = vpop.permute.xlu2 %5059  ;;  %v5137_v20 = vld [vmem:[%s9524_s7] sm:$0xff] }
 0xec4   : > { %5065 = vst.msk [vmem:[#allocation5 + $0x10] sm:$0xff] %vm5056_vm12, %v5060_v10  ;;  %v5138_v10 = vld [vmem:[%s9524_s7 + $0x8] sm:$0xff] }
 0xeca   : > { %v4749_v18 = vpop.permute.xlu1 %4748  ;;  %v4814_v13 = vpop.permute.xlu0 %4813 }
 0xecb   : > { %4754 = vst.msk [vmem:[#allocation5 + $0x8] sm:$0xff] %vm4752_vm8, %v4749_v18  ;;  %v5070_v44 = vpop.permute.xlu2 %5069  ;;  %v5147_v18 = vld [vmem:[%s9524_s7 + $0x50] sm:$0xff] }
 0xecc   : > { %4810 = vst.msk [vmem:[#allocation5 + $0x8] sm:$0xff] %vm4808_vm9, %v4805_v14 }
 0xecd   : > { %4818 = vst.msk [vmem:[#allocation5 + $0x18] sm:$0xff] %vm4808_vm9, %v4814_v13  ;;  %v5139_v13 = vld [vmem:[%s9524_s7 + $0x10] sm:$0xff] }
 0xed2   : > { %v4882_v26 = vpop.permute.xlu1 %4881  ;;  %v5068_v47 = vpop.permute.xlu0 %5067 }
 0xed3   : > { %4887 = vst.msk [vmem:[#allocation5 + $0x20] sm:$0xff] %vm4870_vm6, %v4882_v26  ;;  %v5122_v22 = vpop.permute.xlu2 %5121 }
 0xed4   : > { %4949 = vst.msk [vmem:[#allocation5 + $0x20] sm:$0xff] %vm4932_vm10, %v4944_v1  ;;  %v5698_v1 = vld [vmem:[%s9521_s1] sm:$0xff] }
 0xed5   : > { %5011 = vst.msk [vmem:[#allocation5 + $0x20] sm:$0xff] %vm4994_vm11, %v5006_v16  ;;  %v5438_v16 = vld [vmem:[%s9520_s10 + $0x60] sm:$0xff] }
 0xed6   : > { %5073 = vst.msk [vmem:[#allocation5 + $0x20] sm:$0xff] %vm5056_vm12, %v5068_v47 }
 0xed7   : > { %5127 = vst.msk [vmem:[#allocation5 + $0x10] sm:$0xff] %vm5118_vm13, %v5122_v22 }
 0xeda   : > { %v4876_v41 = vpop.permute.xlu1 %4875  ;;  %v4865_v46 = vpop.permute.xlu0 %4864 }
 0xedb   : > { %4880 = vst.msk [vmem:[#allocation5 + $0x18] sm:$0xff] %vm4870_vm6, %v4876_v41  ;;  %v5124_v24 = vpop.permute.xlu2 %5123 }
 0xedc   : > { %4942 = vst.msk [vmem:[#allocation5 + $0x18] sm:$0xff] %vm4932_vm10, %v4938_v62 }
 0xedd   : > { %5004 = vst.msk [vmem:[#allocation5 + $0x18] sm:$0xff] %vm4994_vm11, %v5000_v9 }
 0xede   : > { %4871 = vst.msk [vmem:[#allocation5] sm:$0xff] %vm4870_vm6, %v4865_v46  ;;  %v5155_v0 = vld [vmem:[#allocation5 + $0x10] sm:$0xff] }
 0xedf   : > { %4933 = vst.msk [vmem:[#allocation5] sm:$0xff] %vm4932_vm10, %v4927_v36  ;;  %v5701_v36 = vld [vmem:[%s9521_s1 + $0x18] sm:$0xff] }
 0xee0   : > { %4995 = vst.msk [vmem:[#allocation5] sm:$0xff] %vm4994_vm11, %v9016_v30  ;;  %v5703_v30 = vld [vmem:[%s9521_s1 + $0x28] sm:$0xff] }
 0xee2   : > { %v4884_v57 = vpop.permute.xlu0 %4883  ;;  %v5062_v49 = vpop.permute.xlu1 %5061 }
 0xee3   : > { %4888 = vst.msk [vmem:[#allocation5 + $0x28] sm:$0xff] %vm4870_vm6, %v4884_v57  ;;  %v5113_v21 = vpop.permute.xlu2 %5112 }
 0xee4   : > { %4950 = vst.msk [vmem:[#allocation5 + $0x28] sm:$0xff] %vm4932_vm10, %v4946_v52 }
 0xee5   : > { %5012 = vst.msk [vmem:[#allocation5 + $0x28] sm:$0xff] %vm4994_vm11, %v5008_v38 }
 0xee6   : > { %5066 = vst.msk [vmem:[#allocation5 + $0x18] sm:$0xff] %vm5056_vm12, %v5062_v49  ;;  %v5140_v49 = vld [vmem:[%s9524_s7 + $0x18] sm:$0xff] }
 0xee7   : > { %5128 = vst.msk [vmem:[#allocation5 + $0x18] sm:$0xff] %vm5118_vm13, %v5124_v24  ;;  %v5149_v24 = vld [vmem:[%s9524_s7 + $0x60] sm:$0xff] }
 0xee8   : > { %5074 = vst.msk [vmem:[#allocation5 + $0x28] sm:$0xff] %vm5056_vm12, %v5070_v44  ;;  %v5148_v44 = vld [vmem:[%s9524_s7 + $0x58] sm:$0xff] }
 0xeea   : > { %v4867_v50 = vpop.permute.xlu0 %4866  ;;  %v5053_v53 = vpop.permute.xlu1 %5052 }
 0xeeb   : > { %4872 = vst.msk [vmem:[#allocation5 + $0x8] sm:$0xff] %vm4870_vm6, %v4867_v50 }
 0xeec   : > { %4934 = vst.msk [vmem:[#allocation5 + $0x8] sm:$0xff] %vm4932_vm10, %v4929_v42 }
 0xeed   : > { %4996 = vst.msk [vmem:[#allocation5 + $0x8] sm:$0xff] %vm4994_vm11, %v4991_v39  ;;  %v5146_v39 = vld [vmem:[%s9524_s7 + $0x48] sm:$0xff] }
 0xeee   : > { %5058 = vst.msk [vmem:[#allocation5 + $0x8] sm:$0xff] %vm5056_vm12, %v5053_v53  ;;  %v5156_v59 = vld [vmem:[#allocation5 + $0x18] sm:$0xff] }
 0xeef   : > { %v6845_v4 = vpack.i.bf16 %v5155_v0, %v5156_v59 }
 0xef1   : > { %6846 = vrot.lane.b32.xlu1 %v6845_v4, %s7097_s4  ;;  %v6514_v4 = vld [vmem:[%s9524_s7 + $0xc8] sm:$0xff] }
 0xef2   : > { %v5132_v11 = vpop.permute.xlu0 %5131  ;;  %v5130_v5 = vpop.permute.xlu1 %5129 }
 0xef3   : > { %5136 = vst.msk [vmem:[#allocation5 + $0x28] sm:$0xff] %vm5118_vm13, %v5132_v11  ;;  %v5141_v11 = vld [vmem:[%s9524_s7 + $0x20] sm:$0xff] }
 0xef4   : > { %5135 = vst.msk [vmem:[#allocation5 + $0x20] sm:$0xff] %vm5118_vm13, %v5130_v5  ;;  %v5150_v5 = vld [vmem:[%s9524_s7 + $0x68] sm:$0xff] }
 0xef9   : > { %5449 = vperm.xlu1 %6748, %v5427_v34   ;;  %v6506_v34 = vld [vmem:[%s9524_s7 + $0x88] sm:$0xff] }
 0xefa   : > { %v5115_v32 = vpop.permute.xlu0 %5114  ;;  %v5051_v23 = vpop.permute.xlu1 %5050  ;;  %v5158_v63 = vld [vmem:[#allocation5 + $0x28] sm:$0xff] }
 0xefb   : > { %5120 = vst.msk [vmem:[#allocation5 + $0x8] sm:$0xff] %vm5118_vm13, %v5115_v32  ;;  %v5157_v6 = vld [vmem:[#allocation5 + $0x20] sm:$0xff]  ;;  %5371 = vmatpush.msra.mxu1 %v5158_v63  ;;  %6564 = vmatpush.msrb.mxu3 %v5158_v63  ;;  %v6515_v32 = vld [vmem:[%s9524_s7 + $0xd0] sm:$0xff] }
 0xefc   : > { %5057 = vst.msk [vmem:[#allocation5] sm:$0xff] %vm5056_vm12, %v5051_v23  ;;  %v6840_v28 = vpack.i.bf16 %v5157_v6, %v5158_v63  ;;  %v5142_v23 = vld [vmem:[%s9524_s7 + $0x28] sm:$0xff]  ;;  %v5151_v63 = vld [vmem:[%s9524_s7 + $0x70] sm:$0xff] }
 0xefd   : > { %5119 = vst.msk [vmem:[#allocation5] sm:$0xff] %vm5118_vm13, %v5113_v21  ;;  %5372 = vmatpush.msra.mxu1 %v5157_v6  ;;  %6565 = vmatpush.msrb.mxu3 %v5157_v6  ;;  %v6507_v6 = vld [vmem:[%s9524_s7 + $0x90] sm:$0xff]  ;;  %v6516_v21 = vld [vmem:[%s9524_s7 + $0xd8] sm:$0xff] }
 0xefe   : > { %6841 = vrot.lane.b32.xlu0 %v6840_v28, %s7097_s4  ;;  %v5143_v28 = vld [vmem:[%s9524_s7 + $0x30] sm:$0xff] }
 0xeff   : > { %5373 = vmatpush.msra.mxu1 %v5156_v59  ;;  %6566 = vmatpush.msrb.mxu3 %v5156_v59  ;;  %v6505_v59 = vld [vmem:[%s9524_s7 + $0x80] sm:$0xff] }
 0xf01   : > { %5464 = vperm.xlu1 %6748, %v5430_v2   ;;  %5374 = vmatpush.msra.mxu1 %v5155_v0  ;;  %v5152_v2 = vld [vmem:[%s9524_s7 + $0x78] sm:$0xff] }
 0xf02   : > { %6567 = vmatpush.msrb.mxu3 %v5155_v0  ;;  %v5154_v17 = vld [vmem:[#allocation5 + $0x8] sm:$0xff] }
 0xf03   : > { %5375 = vmatpush.msra.mxu1 %v5154_v17 }
 0xf04   : > { %6568 = vmatpush.msrb.mxu3 %v5154_v17  ;;  %v5153_v60 = vld [vmem:[#allocation5] sm:$0xff] }
 0xf05   : > { %v6850_v45 = vpack.i.bf16 %v5153_v60, %v5154_v17  ;;  %5376 = vmatpush.msra.mxu1 %v5153_v60  ;;  %v6508_v17 = vld [vmem:[%s9524_s7 + $0x98] sm:$0xff] }
 0xf06   : > { %5444 = vperm.xlu0 %6747, %v5426_v40   ;;  %6569 = vmatpush.msrb.mxu3 %v5153_v60  ;;  %v6517_v40 = vld [vmem:[%s9524_s7 + $0xe0] sm:$0xff]  ;;  %v5144_v60 = vld [vmem:[%s9524_s7 + $0x38] sm:$0xff] }
 0xf07   : > { %6851 = vrot.lane.b32.xlu2 %v6850_v45, %s7097_s4  ;;  %s9522_s4 = sld [smem:[#allocation18_spill]]  ;;  %6537 = vmatmul.msk.f32.vlgmr.msra.gmra.mxu1 %vm2578_vm4, %v5137_v20  ;;  %v6509_v45 = vld [vmem:[%s9524_s7 + $0xa0] sm:$0xff] }
 0xf08   : > { %6546 = vmatmul.msk.f32.vlgmr.msrb.gmra.mxu3 %vm2578_vm4, %v5146_v39 }
 0xf09   : > { %5479 = vperm.xlu1 %6748, %v5433_v31   ;;  %v6518_v31 = vld [vmem:[%s9524_s7 + $0xe8] sm:$0xff] }
 0xf0d   : > { %v5706_v52 = vld [vmem:[%s9522_s4] sm:$0xff]  ;;  %v5709_v38 = vld [vmem:[%s9522_s4 + $0x18] sm:$0xff]  ;;  %v5712_v62 = vld [vmem:[%s9522_s4 + $0x30] sm:$0xff] }
 0xf0e   : > { %5459 = vperm.xlu0 %6747, %v5429_v56   ;;  %v5707_v29 = vld [vmem:[%s9522_s4 + $0x8] sm:$0xff]  ;;  %v5708_v27 = vld [vmem:[%s9522_s4 + $0x10] sm:$0xff]  ;;  %v5710_v14 = vld [vmem:[%s9522_s4 + $0x20] sm:$0xff] }
 0xf0f   : > { %5454 = vperm.xlu2 %6749, %v5428_v35   ;;  %v5711_v9 = vld [vmem:[%s9522_s4 + $0x28] sm:$0xff]  ;;  %v5713_v42 = vld [vmem:[%s9522_s4 + $0x38] sm:$0xff]  ;;  %6538 = vmatmul.msk.f32.gmra.mxu1 %vm2578_vm4, %v5138_v10  ;;  %v5145_v56 = vld [vmem:[%s9524_s7 + $0x40] sm:$0xff] }
 0xf10   : > { %6547 = vmatmul.msk.f32.gmra.mxu3 %vm2578_vm4, %v5147_v18  ;;  %v6510_v35 = vld [vmem:[%s9524_s7 + $0xa8] sm:$0xff] }
 0xf11   : > { %5494 = vperm.xlu1 %6748, %v5436_v48   ;;  %v6519_v48 = vld [vmem:[%s9524_s7 + $0xf0] sm:$0xff] }
 0xf16   : > { %5474 = vperm.xlu0 %6747, %v5432_v3   ;;  %v6511_v3 = vld [vmem:[%s9524_s7 + $0xb0] sm:$0xff] }
 0xf17   : > { %5469 = vperm.xlu2 %6749, %v5431_v37   ;;  %6539 = vmatmul.msk.f32.gmra.mxu1 %vm2578_vm4, %v5139_v13  ;;  %v6520_v37 = vld [vmem:[%s9524_s7 + $0xf8] sm:$0xff] }
 0xf18   : > { %6548 = vmatmul.msk.f32.gmra.mxu3 %vm2578_vm4, %v5148_v44 }
 0xf19   : > { %5509 = vperm.xlu1 %6748, %v5439_v7   ;;  %v6512_v7 = vld [vmem:[%s9524_s7 + $0xb8] sm:$0xff] }
 0xf1e   : > { %5489 = vperm.xlu0 %6747, %v5435_v15   ;;  %v6513_v15 = vld [vmem:[%s9524_s7 + $0xc0] sm:$0xff] }
 0xf1f   : > { %5484 = vperm.xlu2 %6749, %v5434_v51   ;;  %6540 = vmatmul.msk.f32.gmra.mxu1 %vm2578_vm4, %v5140_v49 }
 0xf20   : > { %6549 = vmatmul.msk.f32.gmra.mxu3 %vm2578_vm4, %v5149_v24 }
 0xf21   : > { %5910 = vperm.xlu1 %6748, %v5700_v19  }
 0xf26   : > { %5504 = vperm.xlu0 %6747, %v5438_v16  }
 0xf27   : > { %5499 = vperm.xlu2 %6749, %v5437_v43   ;;  %6541 = vmatmul.msk.f32.gmra.mxu1 %vm2578_vm4, %v5141_v11 }
 0xf28   : > { %6550 = vmatmul.msk.f32.gmra.mxu3 %vm2578_vm4, %v5150_v5 }
 0xf29   : > { %5925 = vperm.xlu1 %6748, %v5703_v30  }
 0xf2e   : > { %5519 = vperm.xlu0 %6747, %v5441_v8  }
 0xf2f   : > { %5514 = vperm.xlu2 %6749, %v5440_v55   ;;  %6542 = vmatmul.msk.f32.gmra.mxu1 %vm2578_vm4, %v5142_v23 }
 0xf30   : > { %6551 = vmatmul.msk.f32.gmra.mxu3 %vm2578_vm4, %v5151_v63 }
 0xf31   : > { %5948 = vperm.xlu1 %6748, %v5706_v52  }
 0xf36   : > { %5905 = vperm.xlu0 %6747, %v5699_v33  }
 0xf37   : > { %5900 = vperm.xlu2 %6749, %v5698_v1   ;;  %6543 = vmatmul.msk.f32.gmra.mxu1 %vm2578_vm4, %v5143_v28 }
 0xf38   : > { %6552 = vmatmul.msk.f32.gmra.mxu3 %vm2578_vm4, %v5152_v2 }
 0xf39   : > { %5963 = vperm.xlu1 %6748, %v5709_v38  }
 0xf3e   : > { %5915 = vperm.xlu0 %6747, %v5701_v36  }
 0xf3f   : > { %5920 = vperm.xlu2 %6749, %v5702_v54   ;;  %6544 = vmatmul.msk.f32.gmra.mxu1 %vm2578_vm4, %v5144_v60 }
 0xf41   : > { %5978 = vperm.xlu1 %6748, %v5712_v62  }
 0xf46   : > { %5930 = vperm.xlu0 %6747, %v5704_v12  }
 0xf47   : > { %5935 = vperm.xlu2 %6749, %v5705_v58   ;;  %6545 = vmatmul.msk.f32.gmra.mxu1 %vm2578_vm4, %v5145_v56 }
 0xf49   : > { %6017 = vperm.xlu1 %6748, %v5995_v25  }
 0xf4e   : > { %5953 = vperm.xlu0 %6747, %v5707_v29  }
 0xf4f   : > { %5958 = vperm.xlu2 %6749, %v5708_v27  }
 0xf56   : > { %5968 = vperm.xlu0 %6747, %v5710_v14  }
 0xf57   : > { %5973 = vperm.xlu2 %6749, %v5711_v9  }
 0xf5e   : > { %5983 = vperm.xlu0 %6747, %v5713_v42  }
 0xf5f   : > { %6012 = vperm.xlu2 %6749, %v5994_v61  }
 0xf61   : > { %v6852_v57 = vpop.permute.xlu2 %6851 }
 0xf62   : > { %v6853_v53 = vunpack.i.l.bf16 %v6852_v57  ;;  %v6854_v0 = vunpack.i.h.bf16 %v6852_v57 }
 0xf63   : > { %v6847_v22 = vpop.permute.xlu1 %6846 }
 0xf64   : > { %v6848_v46 = vunpack.i.l.bf16 %v6847_v22  ;;  %v6849_v50 = vunpack.i.h.bf16 %v6847_v22 }
 0xf69   : > { %v9170_v55 = vpop.permute.xlu2 %5454 }
 0xf6b   : > { %v9166_v16 = vpop.permute.xlu1 %5449 }
 0xf70   : > { %v6842_v26 = vpop.permute.xlu0 %6841 }
 0xf71   : > { %v6843_v47 = vunpack.i.l.bf16 %v6842_v26  ;;  %v6844_v41 = vunpack.i.h.bf16 %v6842_v26  ;;  %v9180_v62 = vpop.permute.xlu2 %5469 }
 0xf73   : > { %5258 = vmatpush.msra.mxu0 %v6843_v47  ;;  %6558 = vmatpush.msrb.mxu2 %v6843_v47  ;;  %v9172_v52 = vpop.permute.xlu1 %5464 }
 0xf75   : > { %5259 = vmatpush.msra.mxu0 %v6844_v41  ;;  %6559 = vmatpush.msrb.mxu2 %v6844_v41 }
 0xf77   : > { %5260 = vmatpush.msra.mxu0 %v6848_v46  ;;  %6560 = vmatpush.msrb.mxu2 %v6848_v46 }
 0xf78   : > { %v9164_v51 = vpop.permute.xlu0 %5444 }
 0xf79   : > { %5261 = vmatpush.msra.mxu0 %v6849_v50  ;;  %6561 = vmatpush.msrb.mxu2 %v6849_v50  ;;  %v9186_v39 = vpop.permute.xlu2 %5484 }
 0xf7b   : > { %5262 = vmatpush.msra.mxu0 %v6853_v53  ;;  %6562 = vmatpush.msrb.mxu2 %v6853_v53  ;;  %v9182_v12 = vpop.permute.xlu1 %5479 }
 0xf7d   : > { %5263 = vmatpush.msra.mxu0 %v6854_v0  ;;  %6563 = vmatpush.msrb.mxu2 %v6854_v0 }
 0xf7e   : > { %6521 = vmatmul.msk.f32.vlgmr.msra.gmra.mxu0 %vm2578_vm4, %v6505_v59  ;;  %6530 = vmatmul.msk.f32.vlgmr.msrb.gmra.mxu2 %vm2578_vm4, %v6514_v4 }
 0xf80   : > { %v9168_v43 = vpop.permute.xlu0 %5459 }
 0xf81   : > { %v5500_v53 = vpop.permute.xlu2 %5499 }
 0xf83   : > { %v5495_v13 = vpop.permute.xlu1 %5494 }
 0xf84   : > { %v5378_v19 = vpop.f32.mrf.mxu1 }
 0xf86   : > { %6522 = vmatmul.msk.f32.gmra.mxu0 %vm2578_vm4, %v6506_v34  ;;  %6531 = vmatmul.msk.f32.gmra.mxu2 %vm2578_vm4, %v6515_v32 }
 0xf88   : > { %v9174_v33 = vpop.permute.xlu0 %5474 }
 0xf8b   : > { %v5405_v30 = vpop.f32.mrf.mxu3 }
 0xf8c   : > { %v5381_v8 = vpop.f32.mrf.mxu1 }
 0xf8e   : > { %6523 = vmatmul.msk.f32.gmra.mxu0 %vm2578_vm4, %v6507_v6  ;;  %6532 = vmatmul.msk.f32.gmra.mxu2 %vm2578_vm4, %v6516_v21 }
 0xf90   : > { %v5490_v29 = vpop.permute.xlu0 %5489 }
 0xf93   : > { %v5408_v36 = vpop.f32.mrf.mxu3 }
 0xf94   : > { %v9178_v54 = vpop.f32.mrf.mxu1 }
 0xf96   : > { %6524 = vmatmul.msk.f32.gmra.mxu0 %vm2578_vm4, %v6508_v17  ;;  %6533 = vmatmul.msk.f32.gmra.mxu2 %vm2578_vm4, %v6517_v40 }
 0xf98   : > { %v5505_v63 = vpop.permute.xlu0 %5504 }
 0xf9b   : > { %v5411_v42 = vpop.f32.mrf.mxu3 }
 0xf9c   : > { %v9184_v61 = vpop.f32.mrf.mxu1 }
 0xf9e   : > { %6525 = vmatmul.msk.f32.gmra.mxu0 %vm2578_vm4, %v6509_v45  ;;  %6534 = vmatmul.msk.f32.gmra.mxu2 %vm2578_vm4, %v6518_v31 }
 0xfa3   : > { %v5414_v46 = vpop.f32.mrf.mxu3 }
 0xfa4   : > { %v9188_v24 = vpop.f32.mrf.mxu1 }
 0xfa6   : > { %6526 = vmatmul.msk.f32.gmra.mxu0 %vm2578_vm4, %v6510_v35  ;;  %6535 = vmatmul.msk.f32.gmra.mxu2 %vm2578_vm4, %v6519_v48 }
 0xfab   : > { %v5417_v21 = vpop.f32.mrf.mxu3 }
 0xfac   : > { %v9194_v17 = vpop.f32.mrf.mxu1 }
 0xfae   : > { %6527 = vmatmul.msk.f32.gmra.mxu0 %vm2578_vm4, %v6511_v3  ;;  %6536 = vmatmul.msk.f32.gmra.mxu2 %vm2578_vm4, %v6520_v37 }
 0xfb6   : > { %6528 = vmatmul.msk.f32.gmra.mxu0 %vm2578_vm4, %v6512_v7 }
 0xfbe   : > { %6529 = vmatmul.msk.f32.gmra.mxu0 %vm2578_vm4, %v6513_v15 }
 0xffb   : > { %v5265_v1 = vpop.f32.mrf.mxu0 }
 0xffc   : > { %v9176_v38 = vadd.f32 %v5378_v19, %v5265_v1 }
0x1001   : > { %v5292_v58 = vpop.f32.mrf.mxu2 }
0x1002   : > { %v5406_v25 = vadd.f32 %v5405_v30, %v5292_v58 }
0x1003   : > { %v5268_v27 = vpop.f32.mrf.mxu0 }
0x1004   : > { %v5531_v14 = vadd.f32 %v5490_v29, %v5406_v25  ;;  %v5382_v45 = vadd.f32 %v5381_v8, %v5268_v27  ;;  %v5510_v29 = vpop.permute.xlu1 %5509 }
0x1006   : > { %v5539_v9 = vsub.f32 0.0, %v5531_v14  ;;  %v5523_v19 = vadd.f32 %v9166_v16, %v5382_v45 }
0x1008   : > { %v5548_v20 = vmul.f32 1.442695, %v5539_v9 }
0x1009   : > { %v5295_v10 = vpop.f32.mrf.mxu2 }
0x100a   : > { %6955 = vpow2.f32 %v5548_v20  ;;  %v5409_v18 = vadd.f32 %v5408_v36, %v5295_v10  ;;  %v5420_v10 = vpop.f32.mrf.mxu3 }
0x100b   : > { %v5271_v44 = vpop.f32.mrf.mxu0 }
0x100c   : > { %v5532_v26 = vadd.f32 %v5495_v13, %v5409_v18  ;;  %v5385_v20 = vadd.f32 %v9178_v54, %v5271_v44  ;;  %v9205_v18 = vpop.f32.mrf.mxu1 }
0x100e   : > { %v5540_v47 = vsub.f32 0.0, %v5532_v26 }
0x1010   : > { %v6956_v22 = vpop.eup %6955  ;;  %v5550_v41 = vmul.f32 1.442695, %v5540_v47 }
0x1011   : > { %v5563_v57 = vadd.f32 1.0, %v6956_v22  ;;  %v5298_v49 = vpop.f32.mrf.mxu2 }
0x1012   : > { %6957 = vpow2.f32 %v5550_v41  ;;  %v5412_v50 = vadd.f32 %v5411_v42, %v5298_v49 }
0x1013   : > { %6959 = vrcp.f32 %v5563_v57  ;;  %v9190_v0 = vpop.f32.mrf.mxu0  ;;  %v5594_v31 = vand.u32 2147483647, %v5563_v57  ;;  %v5596_v56 = vand.u32 2147483648, %v5563_v57  ;;  %vm5590_vm14 = vweird.f32 %v5563_v57 }
0x1014   : > { %v5533_v59 = vadd.f32 %v5500_v53, %v5412_v50  ;;  %v5524_v53 = vadd.f32 %v9170_v55, %v5385_v20 }
0x1015   : > { %vm5595_vm15 = vcmp.eq.f32.partialorder %v5594_v31, 8.507059e+37  ;;  %v5597_v36 = vor.u32 1.1754944e-38, %v5596_v56  ;;  %v5423_v56 = vpop.f32.mrf.mxu3 }
0x1016   : > { %v5541_v4 = vsub.f32 0.0, %v5533_v59 }
0x1018   : > { %v6958_v11 = vpop.eup %6957  ;;  %v5552_v5 = vmul.f32 1.442695, %v5541_v4 }
0x1019   : > { %v6960_v34 = vpop.eup %6959  ;;  %v5564_v32 = vadd.f32 1.0, %v6958_v11  ;;  %v5301_v23 = vpop.f32.mrf.mxu2 }
0x101a   : > { %6961 = vpow2.f32 %v5552_v5  ;;  %v5415_v6 = vadd.f32 %v5414_v46, %v5301_v23  ;;  %v5586_v28 = vmul.f32 %v6960_v34, %v5563_v57  ;;  %vm5591_vm4 = vweird.f32 %v6960_v34 }
0x101b   : > { %6963 = vrcp.f32 %v5564_v32  ;;  %v9192_v2 = vpop.f32.mrf.mxu0  ;;  %vm5592_vm1 = vmor %vm5590_vm14, %vm5591_vm4  ;;  %v5609_v13 = vand.u32 2147483647, %v5564_v32  ;;  %v5611_v26 = vand.u32 2147483648, %v5564_v32  ;;  %vm5605_vm7 = vweird.f32 %v5564_v32 }
0x101c   : > { %v5534_v40 = vadd.f32 %v5505_v63, %v5415_v6  ;;  %v5587_v60 = vsub.f32 1.0, %v5586_v28 }
0x101d   : > { %vm5610_vm0 = vcmp.eq.f32.partialorder %v5609_v13, 8.507059e+37  ;;  %v5612_v59 = vor.u32 1.1754944e-38, %v5611_v26 }
0x101e   : > { %v5542_v35 = vsub.f32 0.0, %v5534_v40  ;;  %v5588_v48 = vmul.f32 %v6960_v34, %v5587_v60 }
0x1020   : > { %v6962_v3 = vpop.eup %6961  ;;  %v5554_v37 = vmul.f32 1.442695, %v5542_v35  ;;  %v5589_v7 = vadd.f32 %v6960_v34, %v5588_v48  ;;  %v9224_v35 = vpop.f32.mrf.mxu1 }
0x1021   : > { %v6964_v15 = vpop.eup %6963  ;;  %v9197_v30 = vadd.f32 1.0, %v6962_v3  ;;  %v5304_v1 = vpop.f32.mrf.mxu2 }
0x1022   : > { %6965 = vpow2.f32 %v5554_v37  ;;  %v5418_v8 = vadd.f32 %v5417_v21, %v5304_v1  ;;  %v5593_v58 = vsel %vm5592_vm1, %v6960_v34, %v5589_v7  ;;  %v5601_v25 = vmul.f32 %v6964_v15, %v5564_v32  ;;  %v5515_v34 = vpop.permute.xlu2 %5514 }
0x1023   : > { %6967 = vrcp.f32 %v9197_v30  ;;  %v9200_v27 = vpop.f32.mrf.mxu0  ;;  %v5598_v14 = vsel %vm5595_vm15, %v5597_v36, %v5593_v58  ;;  %vm5606_vm5 = vweird.f32 %v6964_v15  ;;  %v5388_v21 = vadd.f32 %v9184_v61, %v9190_v0  ;;  %v5520_v58 = vpop.permute.xlu0 %5519 }
0x1024   : > { %v5535_v9 = vadd.f32 %v5510_v29, %v5418_v8  ;;  %v9202_v42 = vmul.f32 %v5598_v14, %v5523_v19  ;;  %v5602_v16 = vsub.f32 1.0, %v5601_v25  ;;  %vm5607_vm3 = vmor %vm5605_vm7, %vm5606_vm5  ;;  %v5624_v28 = vand.u32 2147483647, %v9197_v30 }
0x1025   : > { %v5626_v40 = vand.u32 2147483648, %v9197_v30  ;;  %vm5620_vm9 = vweird.f32 %v9197_v30  ;;  %v5525_v0 = vadd.f32 %v9168_v43, %v5388_v21 }
0x1026   : > { %v5543_v47 = vsub.f32 0.0, %v5535_v9  ;;  %v5718_v22 = vsel %vm5714_vm2, %v9202_v42, 0.0  ;;  %v5603_v41 = vmul.f32 %v6964_v15, %v5602_v16  ;;  %vm5625_vm10 = vcmp.eq.f32.partialorder %v5624_v28, 8.507059e+37 }
0x1027   : > { %5719 = vadd.xlane.f32.xlu2 %v5718_v22  ;;  %v5627_v19 = vor.u32 1.1754944e-38, %v5626_v40  ;;  %v5391_v9 = vadd.f32 %v9188_v24, %v9192_v2 }
0x1028   : > { %v6966_v46 = vpop.eup %6965  ;;  %v5556_v57 = vmul.f32 1.442695, %v5543_v47  ;;  %v5604_v49 = vadd.f32 %v6964_v15, %v5603_v41  ;;  %v5402_v2 = vpop.f32.mrf.mxu1 }
0x1029   : > { %v6968_v50 = vpop.eup %6967  ;;  %v9210_v54 = vadd.f32 1.0, %v6966_v46  ;;  %v5307_v44 = vpop.f32.mrf.mxu2 }
0x102a   : > { %6969 = vpow2.f32 %v5556_v57  ;;  %v5421_v4 = vadd.f32 %v5420_v10, %v5307_v44  ;;  %v5608_v11 = vsel %vm5607_vm3, %v6964_v15, %v5604_v49  ;;  %v5616_v5 = vmul.f32 %v6968_v50, %v9197_v30 }
0x102b   : > { %6971 = vrcp.f32 %v9210_v54  ;;  %v9214_v23 = vpop.f32.mrf.mxu0  ;;  %v5613_v32 = vsel %vm5610_vm0, %v5612_v59, %v5608_v11  ;;  %vm5621_vm8 = vweird.f32 %v6968_v50  ;;  %v5639_v16 = vand.u32 2147483647, %v9210_v54 }
0x102c   : > { %v5536_v63 = vadd.f32 %v5515_v34, %v5421_v4  ;;  %v9216_v6 = vmul.f32 %v5613_v32, %v5524_v53  ;;  %v5617_v55 = vsub.f32 1.0, %v5616_v5  ;;  %vm5622_vm6 = vmor %vm5620_vm9, %vm5621_vm8  ;;  %v5641_v20 = vand.u32 2147483648, %v9210_v54 }
0x102d   : > { %vm5635_vm12 = vweird.f32 %v9210_v54  ;;  %v5526_v57 = vadd.f32 %v9172_v52, %v5391_v9  ;;  %vm5640_vm4 = vcmp.eq.f32.partialorder %v5639_v16, 8.507059e+37 }
0x102e   : > { %v5544_v60 = vsub.f32 0.0, %v5536_v63  ;;  %v5721_v45 = vsel %vm5714_vm2, %v9216_v6, 0.0  ;;  %v5618_v31 = vmul.f32 %v6968_v50, %v5617_v55  ;;  %v5642_v49 = vor.u32 1.1754944e-38, %v5641_v20 }
0x102f   : > { %5722 = vadd.xlane.f32.xlu0 %v5721_v45 }
0x1030   : > { %v6970_v48 = vpop.eup %6969  ;;  %v5558_v3 = vmul.f32 1.442695, %v5544_v60  ;;  %v5619_v37 = vadd.f32 %v6968_v50, %v5618_v31 }
0x1031   : > { %v6972_v61 = vpop.eup %6971  ;;  %v9228_v7 = vadd.f32 1.0, %v6970_v48  ;;  %v5310_v15 = vpop.f32.mrf.mxu2 }
0x1032   : > { %6973 = vpow2.f32 %v5558_v3  ;;  %v5424_v1 = vadd.f32 %v5423_v56, %v5310_v15  ;;  %v5623_v36 = vsel %vm5622_vm6, %v6968_v50, %v5619_v37  ;;  %v5631_v8 = vmul.f32 %v6972_v61, %v9210_v54 }
0x1033   : > { %6975 = vrcp.f32 %v9228_v7  ;;  %v9232_v25 = vpop.f32.mrf.mxu0  ;;  %v5628_v30 = vsel %vm5625_vm10, %v5627_v19, %v5623_v36  ;;  %vm5636_vm11 = vweird.f32 %v6972_v61  ;;  %v5394_v54 = vadd.f32 %v9194_v17, %v9200_v27 }
0x1034   : > { %v5537_v29 = vadd.f32 %v5520_v58, %v5424_v1  ;;  %v9234_v14 = vmul.f32 %v5628_v30, %v5525_v0  ;;  %v5632_v43 = vsub.f32 1.0, %v5631_v8  ;;  %vm5637_vm13 = vmor %vm5635_vm12, %vm5636_vm11  ;;  %v5654_v52 = vand.u32 2147483647, %v9228_v7 }
0x1035   : > { %v5656_v34 = vand.u32 2147483648, %v9228_v7  ;;  %vm5650_vm1 = vweird.f32 %v9228_v7  ;;  %v5527_v17 = vadd.f32 %v9180_v62, %v5394_v54  ;;  %v5400_v16 = vadd.f32 %v9224_v35, %v9232_v25 }
0x1036   : > { %v5545_v10 = vsub.f32 0.0, %v5537_v29  ;;  %v5724_v13 = vsel %vm5714_vm2, %v9234_v14, 0.0  ;;  %v5633_v26 = vmul.f32 %v6972_v61, %v5632_v43  ;;  %vm5655_vm5 = vcmp.eq.f32.partialorder %v5654_v52, 8.507059e+37 }
0x1037   : > { %5725 = vadd.xlane.f32.xlu1 %v5724_v13  ;;  %v5657_v45 = vor.u32 1.1754944e-38, %v5656_v34  ;;  %v9279_v34 = vpop.permute.xlu2 %5900 }
0x1038   : > { %v6974_v47 = vpop.eup %6973  ;;  %v5560_v22 = vmul.f32 1.442695, %v5545_v10  ;;  %v5634_v41 = vadd.f32 %v6972_v61, %v5633_v26 }
0x1039   : > { %v6976_v46 = vpop.eup %6975  ;;  %v5568_v24 = vadd.f32 1.0, %v6974_v47 }
0x103a   : > { %6977 = vpow2.f32 %v5560_v22  ;;  %v5638_v50 = vsel %vm5637_vm13, %v6972_v61, %v5634_v41  ;;  %v5646_v53 = vmul.f32 %v6976_v46, %v9228_v7  ;;  %vm5651_vm14 = vweird.f32 %v6976_v46 }
0x103b   : > { %6979 = vrcp.f32 %v5568_v24  ;;  %v5289_v44 = vpop.f32.mrf.mxu0  ;;  %v5643_v59 = vsel %vm5640_vm4, %v5642_v49, %v5638_v50  ;;  %vm5652_vm15 = vmor %vm5650_vm1, %vm5651_vm14  ;;  %v5397_v61 = vadd.f32 %v9205_v18, %v9214_v23  ;;  %v5671_v0 = vand.u32 2147483648, %v5568_v24  ;;  %v5996_v50 = vld [vmem:[%s9523_s2 + $0x10] sm:$0xff] }
0x103c   : > { %v5403_v4 = vadd.f32 %v5402_v2, %v5289_v44  ;;  %v9245_v11 = vmul.f32 %v5643_v59, %v5526_v57  ;;  %v5647_v5 = vsub.f32 1.0, %v5646_v53  ;;  %v5669_v15 = vand.u32 2147483647, %v5568_v24 }
0x103d   : > { %vm5665_vm3 = vweird.f32 %v5568_v24  ;;  %v5672_v36 = vor.u32 1.1754944e-38, %v5671_v0  ;;  %v5528_v58 = vadd.f32 %v9174_v33, %v5397_v61  ;;  %v5529_v22 = vadd.f32 %v9182_v12, %v5400_v16 }
0x103e   : > { %v5530_v32 = vadd.f32 %v9186_v39, %v5403_v4  ;;  %v5727_v63 = vsel %vm5714_vm2, %v9245_v11, 0.0  ;;  %v5648_v55 = vmul.f32 %v6976_v46, %v5647_v5  ;;  %vm5670_vm8 = vcmp.eq.f32.partialorder %v5669_v15, 8.507059e+37 }
0x103f   : > { %5728 = vadd.xlane.f32.xlu2 %v5727_v63  ;;  %v5522_v4 = vadd.f32 %v9164_v51, %v9176_v38  ;;  %v9283_v63 = vpop.permute.xlu0 %5905 }
0x1040   : > { %v6978_v21 = vpop.eup %6977  ;;  %v5538_v28 = vsub.f32 0.0, %v5530_v32  ;;  %v5649_v40 = vadd.f32 %v6976_v46, %v5648_v55  ;;  %v9285_v55 = vpop.permute.xlu2 %5920 }
0x1041   : > { %v6980_v60 = vpop.eup %6979  ;;  %v5569_v27 = vadd.f32 1.0, %v6978_v21  ;;  %v5997_v21 = vld [vmem:[%s9523_s2 + $0x18] sm:$0xff] }
0x1042   : > { %v5546_v31 = vmul.f32 1.442695, %v5538_v28  ;;  %v5653_v56 = vsel %vm5652_vm15, %v6976_v46, %v5649_v40  ;;  %v5661_v39 = vmul.f32 %v6980_v60, %v5568_v24  ;;  %vm5666_vm7 = vweird.f32 %v6980_v60  ;;  %v9288_v28 = vpop.permute.xlu1 %5910  ;;  %v5998_v40 = vld [vmem:[%s9523_s2 + $0x20] sm:$0xff] }
0x1043   : > { %6981 = vrcp.f32 %v5569_v27  ;;  %v5658_v48 = vsel %vm5655_vm5, %v5657_v45, %v5653_v56  ;;  %vm5667_vm0 = vmor %vm5665_vm3, %vm5666_vm7  ;;  %v5686_v20 = vand.u32 2147483648, %v5569_v27  ;;  %v5684_v26 = vand.u32 2147483647, %v5569_v27 }
0x1044   : > { %6983 = vpow2.f32 %v5546_v31  ;;  %v9256_v3 = vmul.f32 %v5658_v48, %v5527_v17  ;;  %v5662_v37 = vsub.f32 1.0, %v5661_v39  ;;  %vm5680_vm6 = vweird.f32 %v5569_v27 }
0x1045   : > { %v5687_v47 = vor.u32 1.1754944e-38, %v5686_v20  ;;  %vm5685_vm11 = vcmp.eq.f32.partialorder %v5684_v26, 8.507059e+37  ;;  %v7103_v45 = vmov 32.0  }
0x1046   : > { %v5730_v62 = vsel %vm5714_vm2, %v9256_v3, 0.0  ;;  %v5663_v7 = vmul.f32 %v6980_v60, %v5662_v37 }
0x1047   : > { %5731 = vadd.xlane.f32.xlu0 %v5730_v62  ;;  %v9290_v51 = vpop.permute.xlu0 %5915 }
0x1048   : > { %v5664_v19 = vadd.f32 %v6980_v60, %v5663_v7  ;;  %v9292_v38 = vpop.permute.xlu2 %5935 }
0x1049   : > { %v6982_v1 = vpop.eup %6981 }
0x104a   : > { %v6984_v8 = vpop.eup %6983  ;;  %v5668_v30 = vsel %vm5667_vm0, %v6980_v60, %v5664_v19  ;;  %v5676_v29 = vmul.f32 %v6982_v1, %v5569_v27  ;;  %vm5681_vm9 = vweird.f32 %v6982_v1  ;;  %v9295_v60 = vpop.permute.xlu1 %5925 }
0x104b   : > { %v5562_v18 = vadd.f32 1.0, %v6984_v8  ;;  %v5673_v23 = vsel %vm5670_vm8, %v5672_v36, %v5668_v30  ;;  %vm5682_vm10 = vmor %vm5680_vm6, %vm5681_vm9 }
0x104c   : > { %v9263_v43 = vmul.f32 %v5673_v23, %v5528_v58  ;;  %v5677_v9 = vsub.f32 1.0, %v5676_v29 }
0x104d   : > { %6985 = vrcp.f32 %v5562_v18  ;;  %v5581_v49 = vand.u32 2147483648, %v5562_v18  ;;  %v5579_v44 = vand.u32 2147483647, %v5562_v18  ;;  %vm5575_vm13 = vweird.f32 %v5562_v18 }
0x104e   : > { %v5733_v10 = vsel %vm5714_vm2, %v9263_v43, 0.0  ;;  %v5678_v13 = vmul.f32 %v6982_v1, %v5677_v9  ;;  %6987 = vrcp.f32 %v7103_v45 }
0x104f   : > { %5734 = vadd.xlane.f32.xlu1 %v5733_v10  ;;  %v5582_v12 = vor.u32 1.1754944e-38, %v5581_v49  ;;  %vm5580_vm14 = vcmp.eq.f32.partialorder %v5579_v44, 8.507059e+37  ;;  %v9297_v17 = vpop.permute.xlu0 %5930 }
0x1050   : > { %v5679_v33 = vadd.f32 %v6982_v1, %v5678_v13  ;;  %v9299_v27 = vpop.permute.xlu2 %5958 }
0x1052   : > { %v5683_v41 = vsel %vm5682_vm10, %v6982_v1, %v5679_v33  ;;  %v9301_v31 = vpop.permute.xlu1 %5948 }
0x1053   : > { %v6986_v46 = vpop.eup %6985  ;;  %v5688_v35 = vsel %vm5685_vm11, %v5687_v47, %v5683_v41 }
0x1054   : > { %v9270_v25 = vmul.f32 %v5688_v35, %v5529_v22  ;;  %v5571_v57 = vmul.f32 %v6986_v46, %v5562_v18  ;;  %vm5576_vm12 = vweird.f32 %v6986_v46  ;;  %v6988_v56 = vpop.eup %6987 }
0x1055   : > { %vm5577_vm4 = vmor %vm5575_vm13, %vm5576_vm12  ;;  %v5740_v37 = vmul.f32 32.0, %v6988_v56  ;;  %vm5744_vm1 = vweird.f32 %v6988_v56 }
0x1056   : > { %v5736_v24 = vsel %vm5714_vm2, %v9270_v25, 0.0  ;;  %v5572_v2 = vsub.f32 1.0, %v5571_v57 }
0x1057   : > { %5737 = vadd.xlane.f32.xlu2 %v5736_v24  ;;  %v9303_v39 = vpop.permute.xlu0 %5953  ;;  %v5741_v61 = vsub.f32 1.0, %v5740_v37 }
0x1058   : > { %v5573_v53 = vmul.f32 %v6986_v46, %v5572_v2  ;;  %v9305_v48 = vpop.permute.xlu2 %5973 }
0x1059   : > { %v5742_v7 = vmul.f32 %v6988_v56, %v5741_v61  ;;  %v6001_v61 = vld [vmem:[%s9523_s2 + $0x38] sm:$0xff] }
0x105a   : > { %v5574_v59 = vadd.f32 %v6986_v46, %v5573_v53  ;;  %v9307_v0 = vpop.permute.xlu1 %5963 }
0x105b   : > { %6022 = vperm.xlu0 %6747, %v5996_v50   ;;  %v5743_v19 = vadd.f32 %v6988_v56, %v5742_v7  ;;  %v5999_v7 = vld [vmem:[%s9523_s2 + $0x28] sm:$0xff] }
0x105c   : > { %v5578_v5 = vsel %vm5577_vm4, %v6986_v46, %v5574_v59 }
0x105d   : > { %v5583_v54 = vsel %vm5580_vm14, %v5582_v12, %v5578_v5  ;;  %v9315_v36 = vsel %vm5744_vm1, %v6988_v56, %v5743_v19  ;;  %v6000_v56 = vld [vmem:[%s9523_s2 + $0x30] sm:$0xff] }
0x105e   : > { %v9277_v52 = vmul.f32 %v5583_v54, %v5522_v4 }
0x105f   : > { %v9309_v62 = vpop.permute.xlu0 %5968 }
0x1060   : > { %v5715_v32 = vsel %vm5714_vm2, %v9277_v52, 0.0  ;;  %v9311_v15 = vpop.permute.xlu2 %6012 }
0x1061   : > { %5716 = vadd.xlane.f32.xlu1 %v5715_v32 }
0x1062   : > { %v9313_v1 = vpop.permute.xlu1 %5978 }
0x1067   : > { %v9317_v8 = vpop.permute.xlu0 %5983 }
0x106a   : > { %v9325_v23 = vpop.permute.xlu1 %6017 }
0x106f   : > { %6027 = vperm.xlu2 %6749, %v5997_v21  }
0x107a   : > { %6032 = vperm.xlu1 %6748, %v5998_v40  }
0x109a   : > { %v5720_v58 = vpop.xlane.xlu2 %5719 }
0x109b   : > { %v5747_v30 = vmul.f32 %v9315_v36, %v5720_v58 }
0x109d   : > { %v9321_v29 = vsub.f32 %v9202_v42, %v5747_v30 }
0x109f   : > { %v5763_v18 = vmul.f32 %v9321_v29, %v9321_v29 }
0x10a1   : > { %v5773_v20 = vsel %vm5714_vm2, %v5763_v18, 0.0 }
0x10a2   : > { %v5723_v9 = vpop.xlane.xlu0 %5722 }
0x10a3   : > { %v5748_v16 = vmul.f32 %v9315_v36, %v5723_v9 }
0x10a4   : > { %5774 = vadd.xlane.f32.xlu1 %v5773_v20 }
0x10a5   : > { %v9330_v10 = vsub.f32 %v9216_v6, %v5748_v16 }
0x10a7   : > { %v5764_v13 = vmul.f32 %v9330_v10, %v9330_v10 }
0x10a9   : > { %v5776_v42 = vsel %vm5714_vm2, %v5764_v13, 0.0 }
0x10aa   : > { %v5726_v26 = vpop.xlane.xlu1 %5725  ;;  %5777 = vadd.xlane.f32.xlu2 %v5776_v42 }
0x10ab   : > { %v5749_v33 = vmul.f32 %v9315_v36, %v5726_v26 }
0x10ad   : > { %v9337_v47 = vsub.f32 %v9234_v14, %v5749_v33 }
0x10af   : > { %v5765_v22 = vmul.f32 %v9337_v47, %v9337_v47 }
0x10b1   : > { %v5779_v41 = vsel %vm5714_vm2, %v5765_v22, 0.0 }
0x10b2   : > { %5780 = vadd.xlane.f32.xlu0 %v5779_v41  ;;  %v5729_v6 = vpop.xlane.xlu2 %5728 }
0x10b3   : > { %v5750_v46 = vmul.f32 %v9315_v36, %v5729_v6 }
0x10b5   : > { %v9344_v35 = vsub.f32 %v9245_v11, %v5750_v46 }
0x10b7   : > { %v5766_v57 = vmul.f32 %v9344_v35, %v9344_v35 }
0x10b9   : > { %v5782_v24 = vsel %vm5714_vm2, %v5766_v57, 0.0 }
0x10ba   : > { %v5732_v2 = vpop.xlane.xlu0 %5731  ;;  %5783 = vadd.xlane.f32.xlu1 %v5782_v24 }
0x10bb   : > { %v5751_v14 = vmul.f32 %v9315_v36, %v5732_v2 }
0x10bd   : > { %v9351_v49 = vsub.f32 %v9256_v3, %v5751_v14 }
0x10bf   : > { %v5767_v50 = vmul.f32 %v9351_v49, %v9351_v49 }
0x10c1   : > { %v5785_v53 = vsel %vm5714_vm2, %v5767_v50, 0.0 }
0x10c2   : > { %v5735_v44 = vpop.xlane.xlu1 %5734  ;;  %5786 = vadd.xlane.f32.xlu2 %v5785_v53 }
0x10c3   : > { %v5752_v11 = vmul.f32 %v9315_v36, %v5735_v44 }
0x10c5   : > { %v9358_v59 = vsub.f32 %v9263_v43, %v5752_v11 }
0x10c7   : > { %v5768_v12 = vmul.f32 %v9358_v59, %v9358_v59 }
0x10c9   : > { %v5788_v4 = vsel %vm5714_vm2, %v5768_v12, 0.0 }
0x10ca   : > { %5789 = vadd.xlane.f32.xlu0 %v5788_v4  ;;  %v5738_v3 = vpop.xlane.xlu2 %5737 }
0x10cb   : > { %v5753_v5 = vmul.f32 %v9315_v36, %v5738_v3 }
0x10cd   : > { %v9365_v54 = vsub.f32 %v9270_v25, %v5753_v5  ;;  %v6023_v9 = vpop.permute.xlu0 %6022 }
0x10cf   : > { %v5769_v32 = vmul.f32 %v9365_v54, %v9365_v54 }
0x10d1   : > { %v5791_v43 = vsel %vm5714_vm2, %v5769_v32, 0.0 }
0x10d2   : > { %5792 = vadd.xlane.f32.xlu1 %v5791_v43  ;;  %v9382_v58 = vpop.permute.xlu2 %6027 }
0x10d4   : > { %v5717_v21 = vpop.xlane.xlu1 %5716 }
0x10d5   : > { %v5746_v40 = vmul.f32 %v9315_v36, %v5717_v21 }
0x10d7   : > { %v9372_v45 = vsub.f32 %v9277_v52, %v5746_v40 }
0x10d9   : > { %v5762_v37 = vmul.f32 %v9372_v45, %v9372_v45 }
0x10da   : > { %6042 = vperm.xlu2 %6749, %v6000_v56  }
0x10db   : > { %v5770_v25 = vsel %vm5714_vm2, %v5762_v37, 0.0 }
0x10dc   : > { %5771 = vadd.xlane.f32.xlu0 %v5770_v25 }
0x10eb   : > { %6047 = vperm.xlu1 %6748, %v6001_v61  }
0x10ec   : > { %v9380_v19 = vpop.permute.xlu1 %6032 }
0x10f0   : > { %6037 = vperm.xlu0 %6747, %v5999_v7  }
0x1117   : > { %v5775_v30 = vpop.xlane.xlu1 %5774 }
0x1118   : > { %v5795_v52 = vmul.f32 %v5775_v30, %v9315_v36 }
0x111a   : > { %v5803_v18 = vadd.f32 1e-05, %v5795_v52 }
0x111c   : > { %6989 = vrsqrt.f32 %v5803_v18  ;;  %vm5826_vm5 = vweird.f32 %v5803_v18 }
0x111d   : > { %v5778_v16 = vpop.xlane.xlu2 %5777 }
0x111e   : > { %v5796_v20 = vmul.f32 %v5778_v16, %v9315_v36 }
0x1120   : > { %v5804_v13 = vadd.f32 1e-05, %v5796_v20 }
0x1122   : > { %v6990_v42 = vpop.eup %6989  ;;  %6991 = vrsqrt.f32 %v5804_v13  ;;  %vm5836_vm0 = vweird.f32 %v5804_v13 }
0x1123   : > { %v5821_v26 = vmul.f32 %v6990_v42, %v5803_v18  ;;  %vm5827_vm15 = vweird.f32 %v6990_v42 }
0x1124   : > { %vm5828_vm7 = vmor %vm5826_vm5, %vm5827_vm15 }
0x1125   : > { %v5822_v33 = vmul.f32 %v6990_v42, %v5821_v26  ;;  %v5781_v22 = vpop.xlane.xlu0 %5780 }
0x1126   : > { %v5797_v41 = vmul.f32 %v5781_v22, %v9315_v36 }
0x1127   : > { %v5823_v6 = vmul.f32 0.5, %v5822_v33 }
0x1128   : > { %v6992_v46 = vpop.eup %6991  ;;  %v5805_v57 = vadd.f32 1e-05, %v5797_v41 }
0x1129   : > { %v5824_v24 = vsub.f32 1.5, %v5823_v6  ;;  %v5831_v2 = vmul.f32 %v6992_v46, %v5804_v13  ;;  %vm5837_vm3 = vweird.f32 %v6992_v46 }
0x112a   : > { %6993 = vrsqrt.f32 %v5805_v57  ;;  %vm5838_vm8 = vmor %vm5836_vm0, %vm5837_vm3  ;;  %vm5846_vm10 = vweird.f32 %v5805_v57 }
0x112b   : > { %v5825_v14 = vmul.f32 %v6990_v42, %v5824_v24  ;;  %v5832_v50 = vmul.f32 %v6992_v46, %v5831_v2 }
0x112d   : > { %v5829_v53 = vsel %vm5828_vm7, %v6990_v42, %v5825_v14  ;;  %v5833_v44 = vmul.f32 0.5, %v5832_v50  ;;  %v5784_v11 = vpop.xlane.xlu1 %5783 }
0x112e   : > { %v5891_v12 = vmul.f32 %v5829_v53, %v9321_v29  ;;  %v5798_v4 = vmul.f32 %v5784_v11, %v9315_v36 }
0x112f   : > { %v5834_v3 = vsub.f32 1.5, %v5833_v44 }
0x1130   : > { %v6994_v5 = vpop.eup %6993  ;;  %v5939_v32 = vmul.f32 %v9283_v63, %v5891_v12  ;;  %v5806_v43 = vadd.f32 1e-05, %v5798_v4 }
0x1131   : > { %v5835_v21 = vmul.f32 %v6992_v46, %v5834_v3  ;;  %v5841_v40 = vmul.f32 %v6994_v5, %v5805_v57  ;;  %vm5847_vm6 = vweird.f32 %v6994_v5 }
0x1132   : > { %v5987_v56 = vadd.f32 %v9303_v39, %v5939_v32  ;;  %6995 = vrsqrt.f32 %v5806_v43  ;;  %vm5848_vm12 = vmor %vm5846_vm10, %vm5847_vm6  ;;  %vm5856_vm4 = vweird.f32 %v5806_v43 }
0x1133   : > { %v5839_v37 = vsel %vm5838_vm8, %v6992_v46, %v5835_v21  ;;  %v5842_v25 = vmul.f32 %v6994_v5, %v5841_v40 }
0x1134   : > { %vm6003_vm9 = vcmp.ge.f32.partialorder %v5987_v56, 0.0  ;;  %v6051_v29 = vmul.f32 %v9325_v23, %v5987_v56  ;;  %v5892_v61 = vmul.f32 %v5839_v37, %v9330_v10 }
0x1135   : > { %v5843_v63 = vmul.f32 0.5, %v5842_v25  ;;  %v5787_v7 = vpop.xlane.xlu2 %5786 }
0x1136   : > { %v6059_v30 = vsel %vm6003_vm9, %v5987_v56, %v6051_v29  ;;  %v5940_v52 = vmul.f32 %v9288_v28, %v5892_v61  ;;  %v5799_v18 = vmul.f32 %v5787_v7, %v9315_v36 }
0x1137   : > { %6067 = vst.msk [vmem:[%s9393_s23 + $0x8] sm:$0xff] %vm5714_vm2, %v6059_v30  ;;  %v5844_v39 = vsub.f32 1.5, %v5843_v63 }
0x1138   : > { %v6996_v16 = vpop.eup %6995  ;;  %v5988_v20 = vadd.f32 %v9299_v27, %v5940_v52  ;;  %v9402_v13 = vadd.f32 1e-05, %v5799_v18 }
0x1139   : > { %v5845_v23 = vmul.f32 %v6994_v5, %v5844_v39  ;;  %v5851_v10 = vmul.f32 %v6996_v16, %v5806_v43  ;;  %vm5857_vm13 = vweird.f32 %v6996_v16 }
0x113a   : > { %vm6004_vm11 = vcmp.ge.f32.partialorder %v5988_v20, 0.0  ;;  %v6052_v42 = vmul.f32 %v6023_v9, %v5988_v20  ;;  %6997 = vrsqrt.f32 %v9402_v13  ;;  %vm5858_vm1 = vmor %vm5856_vm4, %vm5857_vm13  ;;  %vm5866_vm8 = vweird.f32 %v9402_v13 }
0x113b   : > { %v5849_v28 = vsel %vm5848_vm12, %v6994_v5, %v5845_v23  ;;  %v5852_v26 = vmul.f32 %v6996_v16, %v5851_v10 }
0x113c   : > { %v6060_v33 = vsel %vm6004_vm11, %v5988_v20, %v6052_v42  ;;  %v5893_v22 = vmul.f32 %v5849_v28, %v9337_v47 }
0x113d   : > { %6068 = vst.msk [vmem:[%s9393_s23 + $0x10] sm:$0xff] %vm5714_vm2, %v6060_v33  ;;  %v5853_v41 = vmul.f32 0.5, %v5852_v26  ;;  %v5790_v6 = vpop.xlane.xlu0 %5789  ;;  %v6043_v42 = vpop.permute.xlu2 %6042 }
0x113e   : > { %v5941_v27 = vmul.f32 %v9290_v51, %v5893_v22  ;;  %v5800_v46 = vmul.f32 %v5790_v6, %v9315_v36 }
0x113f   : > { %v5854_v57 = vsub.f32 1.5, %v5853_v41 }
0x1140   : > { %v6998_v9 = vpop.eup %6997  ;;  %v5989_v24 = vadd.f32 %v9307_v0, %v5941_v27  ;;  %v5808_v2 = vadd.f32 1e-05, %v5800_v46 }
0x1141   : > { %v5855_v14 = vmul.f32 %v6996_v16, %v5854_v57  ;;  %v5861_v50 = vmul.f32 %v6998_v9, %v9402_v13  ;;  %vm5867_vm7 = vweird.f32 %v6998_v9 }
0x1142   : > { %vm6005_vm14 = vcmp.ge.f32.partialorder %v5989_v24, 0.0  ;;  %v6053_v47 = vmul.f32 %v9382_v58, %v5989_v24  ;;  %6999 = vrsqrt.f32 %v5808_v2  ;;  %vm5876_vm3 = vweird.f32 %v5808_v2  ;;  %vm5868_vm9 = vmor %vm5866_vm8, %vm5867_vm7 }
0x1143   : > { %v5859_v53 = vsel %vm5858_vm1, %v6996_v16, %v5855_v14  ;;  %v5862_v11 = vmul.f32 %v6998_v9, %v5861_v50 }
0x1144   : > { %v6061_v51 = vsel %vm6005_vm14, %v5989_v24, %v6053_v47  ;;  %v5894_v44 = vmul.f32 %v5859_v53, %v9344_v35 }
0x1145   : > { %6069 = vst.msk [vmem:[%s9393_s23 + $0x18] sm:$0xff] %vm5714_vm2, %v6061_v51  ;;  %v5793_v12 = vpop.xlane.xlu1 %5792  ;;  %v5863_v58 = vmul.f32 0.5, %v5862_v11 }
0x1146   : > { %v5942_v0 = vmul.f32 %v9285_v55, %v5894_v44  ;;  %v5801_v4 = vmul.f32 %v5793_v12, %v9315_v36 }
0x1147   : > { %v5864_v56 = vsub.f32 1.5, %v5863_v58 }
0x1148   : > { %v7000_v3 = vpop.eup %6999  ;;  %v5990_v5 = vadd.f32 %v9309_v62, %v5942_v0  ;;  %v5809_v32 = vadd.f32 1e-05, %v5801_v4 }
0x1149   : > { %v5871_v43 = vmul.f32 %v7000_v3, %v5808_v2  ;;  %vm5877_vm5 = vweird.f32 %v7000_v3  ;;  %v5865_v61 = vmul.f32 %v6998_v9, %v5864_v56 }
0x114a   : > { %vm6006_vm15 = vcmp.ge.f32.partialorder %v5990_v5, 0.0  ;;  %v6054_v21 = vmul.f32 %v9380_v19, %v5990_v5  ;;  %7001 = vrsqrt.f32 %v5809_v32  ;;  %vm5878_vm0 = vmor %vm5876_vm3, %vm5877_vm5  ;;  %vm5886_vm10 = vweird.f32 %v5809_v32 }
0x114b   : > { %v5872_v35 = vmul.f32 %v7000_v3, %v5871_v43  ;;  %v5869_v39 = vsel %vm5868_vm9, %v6998_v9, %v5865_v61 }
0x114c   : > { %v6062_v40 = vsel %vm6006_vm15, %v5990_v5, %v6054_v21  ;;  %v5895_v10 = vmul.f32 %v5869_v39, %v9351_v49 }
0x114d   : > { %6070 = vst.msk [vmem:[%s9393_s23 + $0x20] sm:$0xff] %vm5714_vm2, %v6062_v40  ;;  %v5873_v37 = vmul.f32 0.5, %v5872_v35 }
0x114f   : > { %v5874_v25 = vsub.f32 1.5, %v5873_v37  ;;  %v5772_v55 = vpop.xlane.xlu0 %5771 }
0x1150   : > { %v7002_v29 = vpop.eup %7001  ;;  %v5794_v62 = vmul.f32 %v5772_v55, %v9315_v36 }
0x1151   : > { %v5875_v63 = vmul.f32 %v7000_v3, %v5874_v25  ;;  %v5881_v7 = vmul.f32 %v7002_v29, %v5809_v32  ;;  %vm5887_vm6 = vweird.f32 %v7002_v29 }
0x1152   : > { %v5802_v19 = vadd.f32 1e-05, %v5794_v62  ;;  %vm5888_vm12 = vmor %vm5886_vm10, %vm5887_vm6 }
0x1153   : > { %v5879_v30 = vsel %vm5878_vm0, %v7000_v3, %v5875_v63  ;;  %v5882_v52 = vmul.f32 %v7002_v29, %v5881_v7 }
0x1154   : > { %v5896_v18 = vmul.f32 %v5879_v30, %v9358_v59  ;;  %7003 = vrsqrt.f32 %v5802_v19  ;;  %vm5816_vm14 = vweird.f32 %v5802_v19 }
0x1155   : > { %v5883_v16 = vmul.f32 0.5, %v5882_v52 }
0x1156   : > { %v5944_v20 = vmul.f32 %v9297_v17, %v5896_v18  ;;  %v5943_v17 = vmul.f32 %v9295_v60, %v5895_v10 }
0x1157   : > { %v5884_v23 = vsub.f32 1.5, %v5883_v16 }
0x1158   : > { %v5992_v36 = vadd.f32 %v9313_v1, %v5944_v20  ;;  %v5991_v46 = vadd.f32 %v9305_v48, %v5943_v17 }
0x1159   : > { %v5885_v28 = vmul.f32 %v7002_v29, %v5884_v23 }
0x115a   : > { %v7004_v13 = vpop.eup %7003  ;;  %vm6008_vm11 = vcmp.ge.f32.partialorder %v5992_v36, 0.0  ;;  %v6056_v26 = vmul.f32 %v6043_v42, %v5992_v36  ;;  %vm6007_vm15 = vcmp.ge.f32.partialorder %v5991_v46, 0.0 }
0x115b   : > { %v5889_v59 = vsel %vm5888_vm12, %v7002_v29, %v5885_v28  ;;  %v5811_v33 = vmul.f32 %v7004_v13, %v5802_v19  ;;  %vm5817_vm13 = vweird.f32 %v7004_v13 }
0x115c   : > { %v6064_v22 = vsel %vm6008_vm11, %v5992_v36, %v6056_v26  ;;  %v5897_v41 = vmul.f32 %v5889_v59, %v9365_v54  ;;  %vm5818_vm1 = vmor %vm5816_vm14, %vm5817_vm13 }
0x115d   : > { %6072 = vst.msk [vmem:[%s9393_s23 + $0x30] sm:$0xff] %vm5714_vm2, %v6064_v22  ;;  %v5812_v6 = vmul.f32 %v7004_v13, %v5811_v33  ;;  %v6048_v9 = vpop.permute.xlu1 %6047 }
0x115e   : > { %v5945_v1 = vmul.f32 %v9292_v38, %v5897_v41 }
0x115f   : > { %v5813_v49 = vmul.f32 0.5, %v5812_v6 }
0x1160   : > { %v5993_v27 = vadd.f32 %v9317_v8, %v5945_v1 }
0x1161   : > { %v5814_v57 = vsub.f32 1.5, %v5813_v49 }
0x1162   : > { %vm6009_vm4 = vcmp.ge.f32.partialorder %v5993_v27, 0.0  ;;  %v6057_v24 = vmul.f32 %v6048_v9, %v5993_v27  ;;  %v6038_v54 = vpop.permute.xlu0 %6037 }
0x1163   : > { %v5815_v2 = vmul.f32 %v7004_v13, %v5814_v57  ;;  %v6055_v60 = vmul.f32 %v6038_v54, %v5991_v46 }
0x1164   : > { %v6065_v14 = vsel %vm6009_vm4, %v5993_v27, %v6057_v24 }
0x1165   : > { %v5819_v38 = vsel %vm5818_vm1, %v7004_v13, %v5815_v2  ;;  %6073 = vst.msk [vmem:[%s9393_s23 + $0x38] sm:$0xff] %vm5714_vm2, %v6065_v14  ;;  %v6063_v8 = vsel %vm6007_vm15, %v5991_v46, %v6055_v60 }
0x1166   : > { %v5890_v48 = vmul.f32 %v5819_v38, %v9372_v45  ;;  %6071 = vst.msk [vmem:[%s9393_s23 + $0x28] sm:$0xff] %vm5714_vm2, %v6063_v8 }
0x1168   : > { %v5938_v50 = vmul.f32 %v9279_v34, %v5890_v48 }
0x116a   : > { %v5986_v47 = vadd.f32 %v9301_v31, %v5938_v50 }
0x116c   : > { %vm6002_vm5 = vcmp.ge.f32.partialorder %v5986_v47, 0.0  ;;  %v6050_v53 = vmul.f32 %v9311_v15, %v5986_v47 }
0x116e   : > { %v6058_v51 = vsel %vm6002_vm5, %v5986_v47, %v6050_v53 }
0x116f   : > { %6066 = vst.msk [vmem:[%s9393_s23] sm:$0xff] %vm5714_vm2, %v6058_v51 }
0x1170 PF: > { %s72_s15 = sadd.s32 1, %s7011_s15  }
0x1171   : > { %p69_p4 = scmp.ge.s32.totalorder %s72_s15, 4  }
0x1173   :  { %71 = sbr.rel (!%p69_p4) target bundleno = 47 (0x2f), region = 237 }

</bundles_post_ra>
